<compile_context>
chip_gen: v7x
topology: tpu7x:2x2x1
jax: 0.10.0
libtpu: 0.0.40
codegen_flags: <defaults>
</compile_context>

<pallas_src>
import functools

import jax
import jax.numpy as jnp
from jax.experimental import pallas as pl
from jax.experimental.pallas import tpu as pltpu

NEG_SLOPE = 0.1


def _leaky_relu(x):
    return jnp.where(x >= 0, x, NEG_SLOPE * x)


# ---------------------------------------------------------------------------
# Kernel 1: convblock(L), convblock(R), Wq / Wk 1x1 convs   (one image / step)
# ---------------------------------------------------------------------------
def _feat_kernel(l_ref, r_ref, w1_ref, w2_ref, wq_ref, bq_ref, wk_ref, bk_ref,
                 q_out_ref, k_out_ref, pad0_ref, pad1_ref, *, h, w):
    def conv3x3_lrelu(pad_ref, x_hw, w_ref):
        # x_hw: (h, w, cin) f32 value.  w_ref: (3, 3, cin, cout)  (no bias).
        cout = w_ref.shape[-1]
        pad_ref[...] = jnp.zeros_like(pad_ref)            # zero halo ring
        pad_ref[1:h + 1, 1:w + 1, :] = x_hw               # interior
        acc = jnp.zeros((h * w, cout), jnp.float32)
        for ky in range(3):                               # 9 full-slab MXU dots
            for kx in range(3):
                xs = pad_ref[ky:ky + h, kx:kx + w, :]     # (h, w, cin)
                xs = xs.reshape(h * w, xs.shape[-1])      # (h*w, cin)
                acc = acc + jnp.dot(xs, w_ref[ky, kx],
                                    preferred_element_type=jnp.float32)
        return _leaky_relu(acc)                           # (h*w, cout)

    def convblock(x_cf):
        # x_cf: (c, h*w) NCHW-flat slab (lane-dense load); -> (h*w, ci) f32.
        c = x_cf.shape[0]
        x_hw = x_cf.astype(jnp.float32).T.reshape(h, w, c)
        y = conv3x3_lrelu(pad0_ref, x_hw, w1_ref)
        ci = y.shape[-1]
        return conv3x3_lrelu(pad1_ref, y.reshape(h, w, ci), w2_ref)

    lp = convblock(l_ref[0])                              # (h*w, ci)
    rp = convblock(r_ref[0])
    q = jnp.dot(lp, wq_ref[...], preferred_element_type=jnp.float32) + bq_ref[...]
    k = jnp.dot(rp, wk_ref[...], preferred_element_type=jnp.float32) + bk_ref[...]
    q_out_ref[0] = q.astype(q_out_ref.dtype)              # NHWC-flat (h*w, ci)
    k_out_ref[0] = k.astype(k_out_ref.dtype)


def pam3_features(lf, rf, params, h, w):
    n, c, _ = lf.shape
    ci = params["cb_w1"].shape[-1]
    img = lambda b: (b, 0, 0)
    w4 = lambda b: (0, 0, 0, 0)
    w2 = lambda b: (0, 0)
    return pl.pallas_call(
        functools.partial(_feat_kernel, h=h, w=w),
        out_shape=(jax.ShapeDtypeStruct((n, h * w, ci), lf.dtype),
                   jax.ShapeDtypeStruct((n, h * w, ci), lf.dtype)),
        grid=(n,),
        in_specs=[
            pl.BlockSpec((1, c, h * w), img),
            pl.BlockSpec((1, c, h * w), img),
            pl.BlockSpec((3, 3, c, ci), w4),
            pl.BlockSpec((3, 3, ci, ci), w4),
            pl.BlockSpec((ci, ci), w2),
            pl.BlockSpec((1, ci), w2),
            pl.BlockSpec((ci, ci), w2),
            pl.BlockSpec((1, ci), w2),
        ],
        out_specs=(pl.BlockSpec((1, h * w, ci), img),
                   pl.BlockSpec((1, h * w, ci), img)),
        scratch_shapes=[pltpu.VMEM((h + 2, w + 2, c), jnp.float32),
                        pltpu.VMEM((h + 2, w + 2, ci), jnp.float32)],
        compiler_params=pltpu.CompilerParams(
            dimension_semantics=("parallel",)),
    )(lf, rf, params["cb_w1"], params["cb_w2"],
      params["wq_w"], params["wq_b"].reshape(1, ci),
      params["wk_w"], params["wk_b"].reshape(1, ci))


# ---------------------------------------------------------------------------
# Kernel 2: attention (all h rows batched), warps, concat, output 1x1 conv
# ---------------------------------------------------------------------------
def _attn_out_kernel(q_ref, kt_ref, l_ref, r_ref, ow_ref, ob_ref,
                     ol_ref, or_ref, *, h, w):
    f32 = jnp.float32
    q = q_ref[0].astype(f32)                       # (h, w, c)   Q rows
    kt = kt_ref[0].astype(f32)                     # (h, w, c)   (raw-view K)^T
    cin = l_ref.shape[1]
    dl = l_ref[0].astype(f32).T.reshape(h, w, cin)   # original dp_left  (NHWC)
    dr = r_ref[0].astype(f32).T.reshape(h, w, cin)   # original dp_right (NHWC)

    # attn[y, q, j] = sum_c Q[y, q, c] * Kraw[y, c, j]
    attn = jnp.einsum('yqc,yjc->yqj', q, kt, preferred_element_type=f32)
    # attn^T built with the same (minor, minor) contraction: no 3-D transpose.
    attn_t = jnp.einsum('yjc,yqc->yjq', kt, q, preferred_element_type=f32)

    def _softmax(a):
        m = jnp.max(a, axis=-1, keepdims=True)
        e = jnp.exp(a - m)
        s = jnp.sum(e, axis=-1, keepdims=True)
        return e * pl.reciprocal(s, approx=True)

    p_rtl = _softmax(attn)                         # softmax(attn, -1)
    p_ltr = _softmax(attn_t)                       # softmax(attn^T, -1)

    lw = jnp.einsum('yqj,yjc->yqc', p_rtl, dr, preferred_element_type=f32)
    rw = jnp.einsum('yjq,yqc->yjc', p_ltr, dl, preferred_element_type=f32)

    # torch.cat((warped, original), dim=1)  ->  channel-last concat
    tot = lw.shape[-1] + dl.shape[-1]
    cat_l = jnp.concatenate([lw, dl], axis=-1).reshape(h * w, tot)
    cat_r = jnp.concatenate([rw, dr], axis=-1).reshape(h * w, tot)
    out_l = jnp.dot(cat_l, ow_ref[...], preferred_element_type=f32) + ob_ref[...]
    out_r = jnp.dot(cat_r, ow_ref[...], preferred_element_type=f32) + ob_ref[...]

    # lane-dense NCHW-flat stores: (c_out, h*w), lane dim = h*w (multiple of 128)
    ol_ref[0] = out_l.T.astype(ol_ref.dtype)
    or_ref[0] = out_r.T.astype(or_ref.dtype)


def pam3_attention_out(qr, kvt, lf, rf, out_w, out_b, h, w):
    n = qr.shape[0]
    c = qr.shape[-1]
    ci = out_w.shape[-1]
    b4 = lambda b: (b, 0, 0, 0)
    b3 = lambda b: (b, 0, 0)
    w2 = lambda b: (0, 0)
    return pl.pallas_call(
        functools.partial(_attn_out_kernel, h=h, w=w),
        out_shape=(jax.ShapeDtypeStruct((n, ci, h * w), qr.dtype),
                   jax.ShapeDtypeStruct((n, ci, h * w), qr.dtype)),
        grid=(n,),
        in_specs=[
            pl.BlockSpec((1, h, w, c), b4),
            pl.BlockSpec((1, h, w, c), b4),
            pl.BlockSpec((1, lf.shape[1], h * w), b3),
            pl.BlockSpec((1, rf.shape[1], h * w), b3),
            pl.BlockSpec(out_w.shape, w2),
            pl.BlockSpec((1, ci), w2),
        ],
        out_specs=(pl.BlockSpec((1, ci, h * w), b3),
                   pl.BlockSpec((1, ci, h * w), b3)),
        compiler_params=pltpu.CompilerParams(
            dimension_semantics=("parallel",)),
    )(qr, kvt, lf, rf, out_w, out_b.reshape(1, ci))


# ---------------------------------------------------------------------------
# PAM3 forward: wrapper glue is free reshapes + one tiny transpose (raw view)
# ---------------------------------------------------------------------------
def init_params(key, c_in, c_int):
    ks = jax.random.split(key, 8)
    s = 0.1
    return {
        "cb_w1": jax.random.normal(ks[0], (3, 3, c_in, c_int), jnp.float32) * s,
        "cb_w2": jax.random.normal(ks[1], (3, 3, c_int, c_int), jnp.float32) * s,
        "wq_w": jax.random.normal(ks[2], (c_int, c_int), jnp.float32) * s,
        "wq_b": jax.random.normal(ks[3], (c_int,), jnp.float32) * s,
        "wk_w": jax.random.normal(ks[4], (c_int, c_int), jnp.float32) * s,
        "wk_b": jax.random.normal(ks[5], (c_int,), jnp.float32) * s,
        "out_w": jax.random.normal(ks[6], (c_in + c_int, c_int), jnp.float32) * s,
        "out_b": jax.random.normal(ks[7], (c_int,), jnp.float32) * s,
    }


def pam3_forward(params, dp_left, dp_right):
    n, c, h, w = dp_left.shape
    ci = params["cb_w1"].shape[-1]
    # The module's .view() math only works when interim_channels == in_channels.
    assert ci == c, "PAM3 view semantics require interim_channels == in_channels"

    # NCHW -> NCHW-flat slabs (free reshapes; lane-dense kernel loads).
    lf = dp_left.reshape(n, c, h * w)
    rf = dp_right.reshape(n, c, h * w)

    # Kernel 1: conv features + Q/K projections (NHWC-flat outputs).
    q, k = pam3_features(lf, rf, params, h, w)            # (n, h*w, ci) each

    # Exact torch raw-view semantics (free reshapes) + one tiny transpose so
    # kernel 2 only needs canonical batched matmuls.
    qr = q.reshape(n, h, w, ci)                           # Q.view(-1, w, c)
    kvt = jnp.swapaxes(k.reshape(n, h, ci, w), 2, 3)      # (K.view(-1, c, w))^T

    out_l, out_r = pam3_attention_out(qr, kvt, lf, rf,
                                      params["out_w"], params["out_b"], h, w)
    # kernel outputs are already NCHW-flat (n, ci, h*w): free reshape back.
    return (out_l.reshape(n, ci, h, w), out_r.reshape(n, ci, h, w))


if __name__ == "__main__":
    # NOTE: the module's view math requires interim_channels == in_channels.
    n, c, h, w = 2, 4, 16, 16
    c_int = 4

    key = jax.random.PRNGKey(0)
    k_p, k_l, k_r = jax.random.split(key, 3)
    params = init_params(k_p, c, c_int)
    dp_left = jax.random.normal(k_l, (n, c, h, w), jnp.float32)
    dp_right = jax.random.normal(k_r, (n, c, h, w), jnp.float32)

    fwd = jax.jit(pam3_forward)
    out_left, out_right = fwd(params, dp_left, dp_right)
    jax.block_until_ready((out_left, out_right))

    assert out_left.shape == (n, c_int, h, w)
    assert out_right.shape == (n, c_int, h, w)
    assert bool(jnp.isfinite(out_left).all())
    assert bool(jnp.isfinite(out_right).all())
    print("KERNEL_OK")
</pallas_src>

<mosaic_0001>
module attributes {stable_mosaic.version = 11 : i64} {
  func.func @_feat_kernel(%arg0: i32, %arg1: memref<1x4x256xf32, #tpu.memory_space<vmem>>, %arg2: memref<1x4x256xf32, #tpu.memory_space<vmem>>, %arg3: memref<3x3x4x4xf32, #tpu.memory_space<vmem>>, %arg4: memref<3x3x4x4xf32, #tpu.memory_space<vmem>>, %arg5: memref<4x4xf32, #tpu.memory_space<vmem>>, %arg6: memref<1x4xf32, #tpu.memory_space<vmem>>, %arg7: memref<4x4xf32, #tpu.memory_space<vmem>>, %arg8: memref<1x4xf32, #tpu.memory_space<vmem>>, %arg9: memref<1x256x4xf32, #tpu.memory_space<vmem>>, %arg10: memref<1x256x4xf32, #tpu.memory_space<vmem>>, %arg11: memref<18x18x4xf32, #tpu.memory_space<vmem>>, %arg12: memref<18x18x4xf32, #tpu.memory_space<vmem>>) attributes {dimension_semantics = [#tpu.dimension_semantics<parallel>], iteration_bounds = array<i64: 2>, scalar_prefetch = 0 : i64, scratch_operands = 2 : i64, tpu.core_type = #tpu.core_type<tc>, window_params = [{transform_indices = @transform_0, window_bounds = array<i64: 1, 4, 256>}, {transform_indices = @transform_1, window_bounds = array<i64: 1, 4, 256>}, {pipeline_mode = #tpu.pipeline_mode<synchronous>, transform_indices = @transform_2, window_bounds = array<i64: 3, 3, 4, 4>}, {pipeline_mode = #tpu.pipeline_mode<synchronous>, transform_indices = @transform_3, window_bounds = array<i64: 3, 3, 4, 4>}, {pipeline_mode = #tpu.pipeline_mode<synchronous>, transform_indices = @transform_4, window_bounds = array<i64: 4, 4>}, {pipeline_mode = #tpu.pipeline_mode<synchronous>, transform_indices = @transform_5, window_bounds = array<i64: 1, 4>}, {pipeline_mode = #tpu.pipeline_mode<synchronous>, transform_indices = @transform_6, window_bounds = array<i64: 4, 4>}, {pipeline_mode = #tpu.pipeline_mode<synchronous>, transform_indices = @transform_7, window_bounds = array<i64: 1, 4>}, {transform_indices = @transform_8, window_bounds = array<i64: 1, 256, 4>}, {transform_indices = @transform_9, window_bounds = array<i64: 1, 256, 4>}]} {
    %c0 = arith.constant 0 : index
    %c0_0 = arith.constant 0 : index
    %c0_1 = arith.constant 0 : index
    %0 = vector.load %arg1[%c0, %c0_0, %c0_1] : memref<1x4x256xf32, #tpu.memory_space<vmem>>, vector<1x4x256xf32>
    %1 = vector.shape_cast %0 : vector<1x4x256xf32> to vector<4x256xf32>
    %2 = tpu.transpose %1, [1, 0] : vector<4x256xf32> -> vector<256x4xf32>
    %3 = vector.shape_cast %2 : vector<256x4xf32> to vector<16x16x4xf32>
    %cst = arith.constant 0.000000e+00 : f32
    %4 = vector.broadcast %cst : f32 to vector<18x18x4xf32>
    %c0_2 = arith.constant 0 : index
    %c0_3 = arith.constant 0 : index
    %c0_4 = arith.constant 0 : index
    %5 = vector.load %arg11[%c0_2, %c0_3, %c0_4] : memref<18x18x4xf32, #tpu.memory_space<vmem>>, vector<18x18x4xf32>
    tpu.vector_store %arg11[%c0_2, %c0_3, %c0_4], %4 {strides = array<i32>} : memref<18x18x4xf32, #tpu.memory_space<vmem>>, vector<18x18x4xf32>,
    %c1 = arith.constant 1 : index
    %c1_5 = arith.constant 1 : index
    %c0_6 = arith.constant 0 : index
    %6 = vector.load %arg11[%c1, %c1_5, %c0_6] : memref<18x18x4xf32, #tpu.memory_space<vmem>>, vector<16x16x4xf32>
    tpu.vector_store %arg11[%c1, %c1_5, %c0_6], %3 {strides = array<i32>} : memref<18x18x4xf32, #tpu.memory_space<vmem>>, vector<16x16x4xf32>,
    %cst_7 = arith.constant 0.000000e+00 : f32
    %7 = vector.broadcast %cst_7 : f32 to vector<256x4xf32>
    %c0_8 = arith.constant 0 : index
    %c0_9 = arith.constant 0 : index
    %c0_10 = arith.constant 0 : index
    %8 = vector.load %arg11[%c0_8, %c0_9, %c0_10] : memref<18x18x4xf32, #tpu.memory_space<vmem>>, vector<16x16x4xf32>
    %9 = vector.shape_cast %8 : vector<16x16x4xf32> to vector<256x4xf32>
    %c0_11 = arith.constant 0 : index
    %c0_12 = arith.constant 0 : index
    %c0_13 = arith.constant 0 : index
    %c0_14 = arith.constant 0 : index
    %10 = vector.load %arg3[%c0_11, %c0_12, %c0_13, %c0_14] : memref<3x3x4x4xf32, #tpu.memory_space<vmem>>, vector<1x1x4x4xf32>
    %11 = vector.shape_cast %10 : vector<1x1x4x4xf32> to vector<4x4xf32>
    %cst_15 = arith.constant dense<0.000000e+00> : vector<256x4xf32>
    %12 = tpu.matmul %9, %11, %cst_15 {dimension_numbers = #tpu.dot_dimension_numbers<[1], [0], [0], [1], [0, 0, 1, 1], [], []>} : vector<256x4xf32>, vector<4x4xf32>, vector<256x4xf32> -> vector<256x4xf32>
    %13 = arith.addf %7, %12 : vector<256x4xf32>
    %c0_16 = arith.constant 0 : index
    %c1_17 = arith.constant 1 : index
    %c0_18 = arith.constant 0 : index
    %14 = vector.load %arg11[%c0_16, %c1_17, %c0_18] : memref<18x18x4xf32, #tpu.memory_space<vmem>>, vector<16x16x4xf32>
    %15 = vector.shape_cast %14 : vector<16x16x4xf32> to vector<256x4xf32>
    %c0_19 = arith.constant 0 : index
    %c1_20 = arith.constant 1 : index
    %c0_21 = arith.constant 0 : index
    %c0_22 = arith.constant 0 : index
    %16 = vector.load %arg3[%c0_19, %c1_20, %c0_21, %c0_22] : memref<3x3x4x4xf32, #tpu.memory_space<vmem>>, vector<1x1x4x4xf32>
    %17 = vector.shape_cast %16 : vector<1x1x4x4xf32> to vector<4x4xf32>
    %cst_23 = arith.constant dense<0.000000e+00> : vector<256x4xf32>
    %18 = tpu.matmul %15, %17, %cst_23 {dimension_numbers = #tpu.dot_dimension_numbers<[1], [0], [0], [1], [0, 0, 1, 1], [], []>} : vector<256x4xf32>, vector<4x4xf32>, vector<256x4xf32> -> vector<256x4xf32>
    %19 = arith.addf %13, %18 : vector<256x4xf32>
    %c0_24 = arith.constant 0 : index
    %c2 = arith.constant 2 : index
    %c0_25 = arith.constant 0 : index
    %20 = vector.load %arg11[%c0_24, %c2, %c0_25] : memref<18x18x4xf32, #tpu.memory_space<vmem>>, vector<16x16x4xf32>
    %21 = vector.shape_cast %20 : vector<16x16x4xf32> to vector<256x4xf32>
    %c0_26 = arith.constant 0 : index
    %c2_27 = arith.constant 2 : index
    %c0_28 = arith.constant 0 : index
    %c0_29 = arith.constant 0 : index
    %22 = vector.load %arg3[%c0_26, %c2_27, %c0_28, %c0_29] : memref<3x3x4x4xf32, #tpu.memory_space<vmem>>, vector<1x1x4x4xf32>
    %23 = vector.shape_cast %22 : vector<1x1x4x4xf32> to vector<4x4xf32>
    %cst_30 = arith.constant dense<0.000000e+00> : vector<256x4xf32>
    %24 = tpu.matmul %21, %23, %cst_30 {dimension_numbers = #tpu.dot_dimension_numbers<[1], [0], [0], [1], [0, 0, 1, 1], [], []>} : vector<256x4xf32>, vector<4x4xf32>, vector<256x4xf32> -> vector<256x4xf32>
    %25 = arith.addf %19, %24 : vector<256x4xf32>
    %c1_31 = arith.constant 1 : index
    %c0_32 = arith.constant 0 : index
    %c0_33 = arith.constant 0 : index
    %26 = vector.load %arg11[%c1_31, %c0_32, %c0_33] : memref<18x18x4xf32, #tpu.memory_space<vmem>>, vector<16x16x4xf32>
    %27 = vector.shape_cast %26 : vector<16x16x4xf32> to vector<256x4xf32>
    %c1_34 = arith.constant 1 : index
    %c0_35 = arith.constant 0 : index
    %c0_36 = arith.constant 0 : index
    %c0_37 = arith.constant 0 : index
    %28 = vector.load %arg3[%c1_34, %c0_35, %c0_36, %c0_37] : memref<3x3x4x4xf32, #tpu.memory_space<vmem>>, vector<1x1x4x4xf32>
    %29 = vector.shape_cast %28 : vector<1x1x4x4xf32> to vector<4x4xf32>
    %cst_38 = arith.constant dense<0.000000e+00> : vector<256x4xf32>
    %30 = tpu.matmul %27, %29, %cst_38 {dimension_numbers = #tpu.dot_dimension_numbers<[1], [0], [0], [1], [0, 0, 1, 1], [], []>} : vector<256x4xf32>, vector<4x4xf32>, vector<256x4xf32> -> vector<256x4xf32>
    %31 = arith.addf %25, %30 : vector<256x4xf32>
    %c1_39 = arith.constant 1 : index
    %c1_40 = arith.constant 1 : index
    %c0_41 = arith.constant 0 : index
    %32 = vector.load %arg11[%c1_39, %c1_40, %c0_41] : memref<18x18x4xf32, #tpu.memory_space<vmem>>, vector<16x16x4xf32>
    %33 = vector.shape_cast %32 : vector<16x16x4xf32> to vector<256x4xf32>
    %c1_42 = arith.constant 1 : index
    %c1_43 = arith.constant 1 : index
    %c0_44 = arith.constant 0 : index
    %c0_45 = arith.constant 0 : index
    %34 = vector.load %arg3[%c1_42, %c1_43, %c0_44, %c0_45] : memref<3x3x4x4xf32, #tpu.memory_space<vmem>>, vector<1x1x4x4xf32>
    %35 = vector.shape_cast %34 : vector<1x1x4x4xf32> to vector<4x4xf32>
    %cst_46 = arith.constant dense<0.000000e+00> : vector<256x4xf32>
    %36 = tpu.matmul %33, %35, %cst_46 {dimension_numbers = #tpu.dot_dimension_numbers<[1], [0], [0], [1], [0, 0, 1, 1], [], []>} : vector<256x4xf32>, vector<4x4xf32>, vector<256x4xf32> -> vector<256x4xf32>
    %37 = arith.addf %31, %36 : vector<256x4xf32>
    %c1_47 = arith.constant 1 : index
    %c2_48 = arith.constant 2 : index
    %c0_49 = arith.constant 0 : index
    %38 = vector.load %arg11[%c1_47, %c2_48, %c0_49] : memref<18x18x4xf32, #tpu.memory_space<vmem>>, vector<16x16x4xf32>
    %39 = vector.shape_cast %38 : vector<16x16x4xf32> to vector<256x4xf32>
    %c1_50 = arith.constant 1 : index
    %c2_51 = arith.constant 2 : index
    %c0_52 = arith.constant 0 : index
    %c0_53 = arith.constant 0 : index
    %40 = vector.load %arg3[%c1_50, %c2_51, %c0_52, %c0_53] : memref<3x3x4x4xf32, #tpu.memory_space<vmem>>, vector<1x1x4x4xf32>
    %41 = vector.shape_cast %40 : vector<1x1x4x4xf32> to vector<4x4xf32>
    %cst_54 = arith.constant dense<0.000000e+00> : vector<256x4xf32>
    %42 = tpu.matmul %39, %41, %cst_54 {dimension_numbers = #tpu.dot_dimension_numbers<[1], [0], [0], [1], [0, 0, 1, 1], [], []>} : vector<256x4xf32>, vector<4x4xf32>, vector<256x4xf32> -> vector<256x4xf32>
    %43 = arith.addf %37, %42 : vector<256x4xf32>
    %c2_55 = arith.constant 2 : index
    %c0_56 = arith.constant 0 : index
    %c0_57 = arith.constant 0 : index
    %44 = vector.load %arg11[%c2_55, %c0_56, %c0_57] : memref<18x18x4xf32, #tpu.memory_space<vmem>>, vector<16x16x4xf32>
    %45 = vector.shape_cast %44 : vector<16x16x4xf32> to vector<256x4xf32>
    %c2_58 = arith.constant 2 : index
    %c0_59 = arith.constant 0 : index
    %c0_60 = arith.constant 0 : index
    %c0_61 = arith.constant 0 : index
    %46 = vector.load %arg3[%c2_58, %c0_59, %c0_60, %c0_61] : memref<3x3x4x4xf32, #tpu.memory_space<vmem>>, vector<1x1x4x4xf32>
    %47 = vector.shape_cast %46 : vector<1x1x4x4xf32> to vector<4x4xf32>
    %cst_62 = arith.constant dense<0.000000e+00> : vector<256x4xf32>
    %48 = tpu.matmul %45, %47, %cst_62 {dimension_numbers = #tpu.dot_dimension_numbers<[1], [0], [0], [1], [0, 0, 1, 1], [], []>} : vector<256x4xf32>, vector<4x4xf32>, vector<256x4xf32> -> vector<256x4xf32>
    %49 = arith.addf %43, %48 : vector<256x4xf32>
    %c2_63 = arith.constant 2 : index
    %c1_64 = arith.constant 1 : index
    %c0_65 = arith.constant 0 : index
    %50 = vector.load %arg11[%c2_63, %c1_64, %c0_65] : memref<18x18x4xf32, #tpu.memory_space<vmem>>, vector<16x16x4xf32>
    %51 = vector.shape_cast %50 : vector<16x16x4xf32> to vector<256x4xf32>
    %c2_66 = arith.constant 2 : index
    %c1_67 = arith.constant 1 : index
    %c0_68 = arith.constant 0 : index
    %c0_69 = arith.constant 0 : index
    %52 = vector.load %arg3[%c2_66, %c1_67, %c0_68, %c0_69] : memref<3x3x4x4xf32, #tpu.memory_space<vmem>>, vector<1x1x4x4xf32>
    %53 = vector.shape_cast %52 : vector<1x1x4x4xf32> to vector<4x4xf32>
    %cst_70 = arith.constant dense<0.000000e+00> : vector<256x4xf32>
    %54 = tpu.matmul %51, %53, %cst_70 {dimension_numbers = #tpu.dot_dimension_numbers<[1], [0], [0], [1], [0, 0, 1, 1], [], []>} : vector<256x4xf32>, vector<4x4xf32>, vector<256x4xf32> -> vector<256x4xf32>
    %55 = arith.addf %49, %54 : vector<256x4xf32>
    %c2_71 = arith.constant 2 : index
    %c2_72 = arith.constant 2 : index
    %c0_73 = arith.constant 0 : index
    %56 = vector.load %arg11[%c2_71, %c2_72, %c0_73] : memref<18x18x4xf32, #tpu.memory_space<vmem>>, vector<16x16x4xf32>
    %57 = vector.shape_cast %56 : vector<16x16x4xf32> to vector<256x4xf32>
    %c2_74 = arith.constant 2 : index
    %c2_75 = arith.constant 2 : index
    %c0_76 = arith.constant 0 : index
    %c0_77 = arith.constant 0 : index
    %58 = vector.load %arg3[%c2_74, %c2_75, %c0_76, %c0_77] : memref<3x3x4x4xf32, #tpu.memory_space<vmem>>, vector<1x1x4x4xf32>
    %59 = vector.shape_cast %58 : vector<1x1x4x4xf32> to vector<4x4xf32>
    %cst_78 = arith.constant dense<0.000000e+00> : vector<256x4xf32>
    %60 = tpu.matmul %57, %59, %cst_78 {dimension_numbers = #tpu.dot_dimension_numbers<[1], [0], [0], [1], [0, 0, 1, 1], [], []>} : vector<256x4xf32>, vector<4x4xf32>, vector<256x4xf32> -> vector<256x4xf32>
    %61 = arith.addf %55, %60 : vector<256x4xf32>
    %cst_79 = arith.constant 0.000000e+00 : f32
    %62 = vector.broadcast %cst_79 : f32 to vector<256x4xf32>
    %63 = arith.cmpf oge, %61, %62 : vector<256x4xf32>
    %cst_80 = arith.constant 1.000000e-01 : f32
    %64 = vector.broadcast %cst_80 : f32 to vector<256x4xf32>
    %65 = arith.mulf %64, %61 : vector<256x4xf32>
    %66 = arith.select %63, %61, %65 : vector<256x4xi1>, vector<256x4xf32>
    %67 = vector.shape_cast %66 : vector<256x4xf32> to vector<16x16x4xf32>
    %cst_81 = arith.constant 0.000000e+00 : f32
    %68 = vector.broadcast %cst_81 : f32 to vector<18x18x4xf32>
    %c0_82 = arith.constant 0 : index
    %c0_83 = arith.constant 0 : index
    %c0_84 = arith.constant 0 : index
    %69 = vector.load %arg12[%c0_82, %c0_83, %c0_84] : memref<18x18x4xf32, #tpu.memory_space<vmem>>, vector<18x18x4xf32>
    tpu.vector_store %arg12[%c0_82, %c0_83, %c0_84], %68 {strides = array<i32>} : memref<18x18x4xf32, #tpu.memory_space<vmem>>, vector<18x18x4xf32>,
    %c1_85 = arith.constant 1 : index
    %c1_86 = arith.constant 1 : index
    %c0_87 = arith.constant 0 : index
    %70 = vector.load %arg12[%c1_85, %c1_86, %c0_87] : memref<18x18x4xf32, #tpu.memory_space<vmem>>, vector<16x16x4xf32>
    tpu.vector_store %arg12[%c1_85, %c1_86, %c0_87], %67 {strides = array<i32>} : memref<18x18x4xf32, #tpu.memory_space<vmem>>, vector<16x16x4xf32>,
    %cst_88 = arith.constant 0.000000e+00 : f32
    %71 = vector.broadcast %cst_88 : f32 to vector<256x4xf32>
    %c0_89 = arith.constant 0 : index
    %c0_90 = arith.constant 0 : index
    %c0_91 = arith.constant 0 : index
    %72 = vector.load %arg12[%c0_89, %c0_90, %c0_91] : memref<18x18x4xf32, #tpu.memory_space<vmem>>, vector<16x16x4xf32>
    %73 = vector.shape_cast %72 : vector<16x16x4xf32> to vector<256x4xf32>
    %c0_92 = arith.constant 0 : index
    %c0_93 = arith.constant 0 : index
    %c0_94 = arith.constant 0 : index
    %c0_95 = arith.constant 0 : index
    %74 = vector.load %arg4[%c0_92, %c0_93, %c0_94, %c0_95] : memref<3x3x4x4xf32, #tpu.memory_space<vmem>>, vector<1x1x4x4xf32>
    %75 = vector.shape_cast %74 : vector<1x1x4x4xf32> to vector<4x4xf32>
    %cst_96 = arith.constant dense<0.000000e+00> : vector<256x4xf32>
    %76 = tpu.matmul %73, %75, %cst_96 {dimension_numbers = #tpu.dot_dimension_numbers<[1], [0], [0], [1], [0, 0, 1, 1], [], []>} : vector<256x4xf32>, vector<4x4xf32>, vector<256x4xf32> -> vector<256x4xf32>
    %77 = arith.addf %71, %76 : vector<256x4xf32>
    %c0_97 = arith.constant 0 : index
    %c1_98 = arith.constant 1 : index
    %c0_99 = arith.constant 0 : index
    %78 = vector.load %arg12[%c0_97, %c1_98, %c0_99] : memref<18x18x4xf32, #tpu.memory_space<vmem>>, vector<16x16x4xf32>
    %79 = vector.shape_cast %78 : vector<16x16x4xf32> to vector<256x4xf32>
    %c0_100 = arith.constant 0 : index
    %c1_101 = arith.constant 1 : index
    %c0_102 = arith.constant 0 : index
    %c0_103 = arith.constant 0 : index
    %80 = vector.load %arg4[%c0_100, %c1_101, %c0_102, %c0_103] : memref<3x3x4x4xf32, #tpu.memory_space<vmem>>, vector<1x1x4x4xf32>
    %81 = vector.shape_cast %80 : vector<1x1x4x4xf32> to vector<4x4xf32>
    %cst_104 = arith.constant dense<0.000000e+00> : vector<256x4xf32>
    %82 = tpu.matmul %79, %81, %cst_104 {dimension_numbers = #tpu.dot_dimension_numbers<[1], [0], [0], [1], [0, 0, 1, 1], [], []>} : vector<256x4xf32>, vector<4x4xf32>, vector<256x4xf32> -> vector<256x4xf32>
    %83 = arith.addf %77, %82 : vector<256x4xf32>
    %c0_105 = arith.constant 0 : index
    %c2_106 = arith.constant 2 : index
    %c0_107 = arith.constant 0 : index
    %84 = vector.load %arg12[%c0_105, %c2_106, %c0_107] : memref<18x18x4xf32, #tpu.memory_space<vmem>>, vector<16x16x4xf32>
    %85 = vector.shape_cast %84 : vector<16x16x4xf32> to vector<256x4xf32>
    %c0_108 = arith.constant 0 : index
    %c2_109 = arith.constant 2 : index
    %c0_110 = arith.constant 0 : index
    %c0_111 = arith.constant 0 : index
    %86 = vector.load %arg4[%c0_108, %c2_109, %c0_110, %c0_111] : memref<3x3x4x4xf32, #tpu.memory_space<vmem>>, vector<1x1x4x4xf32>
    %87 = vector.shape_cast %86 : vector<1x1x4x4xf32> to vector<4x4xf32>
    %cst_112 = arith.constant dense<0.000000e+00> : vector<256x4xf32>
    %88 = tpu.matmul %85, %87, %cst_112 {dimension_numbers = #tpu.dot_dimension_numbers<[1], [0], [0], [1], [0, 0, 1, 1], [], []>} : vector<256x4xf32>, vector<4x4xf32>, vector<256x4xf32> -> vector<256x4xf32>
    %89 = arith.addf %83, %88 : vector<256x4xf32>
    %c1_113 = arith.constant 1 : index
    %c0_114 = arith.constant 0 : index
    %c0_115 = arith.constant 0 : index
    %90 = vector.load %arg12[%c1_113, %c0_114, %c0_115] : memref<18x18x4xf32, #tpu.memory_space<vmem>>, vector<16x16x4xf32>
    %91 = vector.shape_cast %90 : vector<16x16x4xf32> to vector<256x4xf32>
    %c1_116 = arith.constant 1 : index
    %c0_117 = arith.constant 0 : index
    %c0_118 = arith.constant 0 : index
    %c0_119 = arith.constant 0 : index
    %92 = vector.load %arg4[%c1_116, %c0_117, %c0_118, %c0_119] : memref<3x3x4x4xf32, #tpu.memory_space<vmem>>, vector<1x1x4x4xf32>
    %93 = vector.shape_cast %92 : vector<1x1x4x4xf32> to vector<4x4xf32>
    %cst_120 = arith.constant dense<0.000000e+00> : vector<256x4xf32>
    %94 = tpu.matmul %91, %93, %cst_120 {dimension_numbers = #tpu.dot_dimension_numbers<[1], [0], [0], [1], [0, 0, 1, 1], [], []>} : vector<256x4xf32>, vector<4x4xf32>, vector<256x4xf32> -> vector<256x4xf32>
    %95 = arith.addf %89, %94 : vector<256x4xf32>
    %c1_121 = arith.constant 1 : index
    %c1_122 = arith.constant 1 : index
    %c0_123 = arith.constant 0 : index
    %96 = vector.load %arg12[%c1_121, %c1_122, %c0_123] : memref<18x18x4xf32, #tpu.memory_space<vmem>>, vector<16x16x4xf32>
    %97 = vector.shape_cast %96 : vector<16x16x4xf32> to vector<256x4xf32>
    %c1_124 = arith.constant 1 : index
    %c1_125 = arith.constant 1 : index
    %c0_126 = arith.constant 0 : index
    %c0_127 = arith.constant 0 : index
    %98 = vector.load %arg4[%c1_124, %c1_125, %c0_126, %c0_127] : memref<3x3x4x4xf32, #tpu.memory_space<vmem>>, vector<1x1x4x4xf32>
    %99 = vector.shape_cast %98 : vector<1x1x4x4xf32> to vector<4x4xf32>
    %cst_128 = arith.constant dense<0.000000e+00> : vector<256x4xf32>
    %100 = tpu.matmul %97, %99, %cst_128 {dimension_numbers = #tpu.dot_dimension_numbers<[1], [0], [0], [1], [0, 0, 1, 1], [], []>} : vector<256x4xf32>, vector<4x4xf32>, vector<256x4xf32> -> vector<256x4xf32>
    %101 = arith.addf %95, %100 : vector<256x4xf32>
    %c1_129 = arith.constant 1 : index
    %c2_130 = arith.constant 2 : index
    %c0_131 = arith.constant 0 : index
    %102 = vector.load %arg12[%c1_129, %c2_130, %c0_131] : memref<18x18x4xf32, #tpu.memory_space<vmem>>, vector<16x16x4xf32>
    %103 = vector.shape_cast %102 : vector<16x16x4xf32> to vector<256x4xf32>
    %c1_132 = arith.constant 1 : index
    %c2_133 = arith.constant 2 : index
    %c0_134 = arith.constant 0 : index
    %c0_135 = arith.constant 0 : index
    %104 = vector.load %arg4[%c1_132, %c2_133, %c0_134, %c0_135] : memref<3x3x4x4xf32, #tpu.memory_space<vmem>>, vector<1x1x4x4xf32>
    %105 = vector.shape_cast %104 : vector<1x1x4x4xf32> to vector<4x4xf32>
    %cst_136 = arith.constant dense<0.000000e+00> : vector<256x4xf32>
    %106 = tpu.matmul %103, %105, %cst_136 {dimension_numbers = #tpu.dot_dimension_numbers<[1], [0], [0], [1], [0, 0, 1, 1], [], []>} : vector<256x4xf32>, vector<4x4xf32>, vector<256x4xf32> -> vector<256x4xf32>
    %107 = arith.addf %101, %106 : vector<256x4xf32>
    %c2_137 = arith.constant 2 : index
    %c0_138 = arith.constant 0 : index
    %c0_139 = arith.constant 0 : index
    %108 = vector.load %arg12[%c2_137, %c0_138, %c0_139] : memref<18x18x4xf32, #tpu.memory_space<vmem>>, vector<16x16x4xf32>
    %109 = vector.shape_cast %108 : vector<16x16x4xf32> to vector<256x4xf32>
    %c2_140 = arith.constant 2 : index
    %c0_141 = arith.constant 0 : index
    %c0_142 = arith.constant 0 : index
    %c0_143 = arith.constant 0 : index
    %110 = vector.load %arg4[%c2_140, %c0_141, %c0_142, %c0_143] : memref<3x3x4x4xf32, #tpu.memory_space<vmem>>, vector<1x1x4x4xf32>
    %111 = vector.shape_cast %110 : vector<1x1x4x4xf32> to vector<4x4xf32>
    %cst_144 = arith.constant dense<0.000000e+00> : vector<256x4xf32>
    %112 = tpu.matmul %109, %111, %cst_144 {dimension_numbers = #tpu.dot_dimension_numbers<[1], [0], [0], [1], [0, 0, 1, 1], [], []>} : vector<256x4xf32>, vector<4x4xf32>, vector<256x4xf32> -> vector<256x4xf32>
    %113 = arith.addf %107, %112 : vector<256x4xf32>
    %c2_145 = arith.constant 2 : index
    %c1_146 = arith.constant 1 : index
    %c0_147 = arith.constant 0 : index
    %114 = vector.load %arg12[%c2_145, %c1_146, %c0_147] : memref<18x18x4xf32, #tpu.memory_space<vmem>>, vector<16x16x4xf32>
    %115 = vector.shape_cast %114 : vector<16x16x4xf32> to vector<256x4xf32>
    %c2_148 = arith.constant 2 : index
    %c1_149 = arith.constant 1 : index
    %c0_150 = arith.constant 0 : index
    %c0_151 = arith.constant 0 : index
    %116 = vector.load %arg4[%c2_148, %c1_149, %c0_150, %c0_151] : memref<3x3x4x4xf32, #tpu.memory_space<vmem>>, vector<1x1x4x4xf32>
    %117 = vector.shape_cast %116 : vector<1x1x4x4xf32> to vector<4x4xf32>
    %cst_152 = arith.constant dense<0.000000e+00> : vector<256x4xf32>
    %118 = tpu.matmul %115, %117, %cst_152 {dimension_numbers = #tpu.dot_dimension_numbers<[1], [0], [0], [1], [0, 0, 1, 1], [], []>} : vector<256x4xf32>, vector<4x4xf32>, vector<256x4xf32> -> vector<256x4xf32>
    %119 = arith.addf %113, %118 : vector<256x4xf32>
    %c2_153 = arith.constant 2 : index
    %c2_154 = arith.constant 2 : index
    %c0_155 = arith.constant 0 : index
    %120 = vector.load %arg12[%c2_153, %c2_154, %c0_155] : memref<18x18x4xf32, #tpu.memory_space<vmem>>, vector<16x16x4xf32>
    %121 = vector.shape_cast %120 : vector<16x16x4xf32> to vector<256x4xf32>
    %c2_156 = arith.constant 2 : index
    %c2_157 = arith.constant 2 : index
    %c0_158 = arith.constant 0 : index
    %c0_159 = arith.constant 0 : index
    %122 = vector.load %arg4[%c2_156, %c2_157, %c0_158, %c0_159] : memref<3x3x4x4xf32, #tpu.memory_space<vmem>>, vector<1x1x4x4xf32>
    %123 = vector.shape_cast %122 : vector<1x1x4x4xf32> to vector<4x4xf32>
    %cst_160 = arith.constant dense<0.000000e+00> : vector<256x4xf32>
    %124 = tpu.matmul %121, %123, %cst_160 {dimension_numbers = #tpu.dot_dimension_numbers<[1], [0], [0], [1], [0, 0, 1, 1], [], []>} : vector<256x4xf32>, vector<4x4xf32>, vector<256x4xf32> -> vector<256x4xf32>
    %125 = arith.addf %119, %124 : vector<256x4xf32>
    %cst_161 = arith.constant 0.000000e+00 : f32
    %126 = vector.broadcast %cst_161 : f32 to vector<256x4xf32>
    %127 = arith.cmpf oge, %125, %126 : vector<256x4xf32>
    %cst_162 = arith.constant 1.000000e-01 : f32
    %128 = vector.broadcast %cst_162 : f32 to vector<256x4xf32>
    %129 = arith.mulf %128, %125 : vector<256x4xf32>
    %130 = arith.select %127, %125, %129 : vector<256x4xi1>, vector<256x4xf32>
    %c0_163 = arith.constant 0 : index
    %c0_164 = arith.constant 0 : index
    %c0_165 = arith.constant 0 : index
    %131 = vector.load %arg2[%c0_163, %c0_164, %c0_165] : memref<1x4x256xf32, #tpu.memory_space<vmem>>, vector<1x4x256xf32>
    %132 = vector.shape_cast %131 : vector<1x4x256xf32> to vector<4x256xf32>
    %133 = tpu.transpose %132, [1, 0] : vector<4x256xf32> -> vector<256x4xf32>
    %134 = vector.shape_cast %133 : vector<256x4xf32> to vector<16x16x4xf32>
    %cst_166 = arith.constant 0.000000e+00 : f32
    %135 = vector.broadcast %cst_166 : f32 to vector<18x18x4xf32>
    %c0_167 = arith.constant 0 : index
    %c0_168 = arith.constant 0 : index
    %c0_169 = arith.constant 0 : index
    %136 = vector.load %arg11[%c0_167, %c0_168, %c0_169] : memref<18x18x4xf32, #tpu.memory_space<vmem>>, vector<18x18x4xf32>
    tpu.vector_store %arg11[%c0_167, %c0_168, %c0_169], %135 {strides = array<i32>} : memref<18x18x4xf32, #tpu.memory_space<vmem>>, vector<18x18x4xf32>,
    %c1_170 = arith.constant 1 : index
    %c1_171 = arith.constant 1 : index
    %c0_172 = arith.constant 0 : index
    %137 = vector.load %arg11[%c1_170, %c1_171, %c0_172] : memref<18x18x4xf32, #tpu.memory_space<vmem>>, vector<16x16x4xf32>
    tpu.vector_store %arg11[%c1_170, %c1_171, %c0_172], %134 {strides = array<i32>} : memref<18x18x4xf32, #tpu.memory_space<vmem>>, vector<16x16x4xf32>,
    %cst_173 = arith.constant 0.000000e+00 : f32
    %138 = vector.broadcast %cst_173 : f32 to vector<256x4xf32>
    %c0_174 = arith.constant 0 : index
    %c0_175 = arith.constant 0 : index
    %c0_176 = arith.constant 0 : index
    %139 = vector.load %arg11[%c0_174, %c0_175, %c0_176] : memref<18x18x4xf32, #tpu.memory_space<vmem>>, vector<16x16x4xf32>
    %140 = vector.shape_cast %139 : vector<16x16x4xf32> to vector<256x4xf32>
    %c0_177 = arith.constant 0 : index
    %c0_178 = arith.constant 0 : index
    %c0_179 = arith.constant 0 : index
    %c0_180 = arith.constant 0 : index
    %141 = vector.load %arg3[%c0_177, %c0_178, %c0_179, %c0_180] : memref<3x3x4x4xf32, #tpu.memory_space<vmem>>, vector<1x1x4x4xf32>
    %142 = vector.shape_cast %141 : vector<1x1x4x4xf32> to vector<4x4xf32>
    %cst_181 = arith.constant dense<0.000000e+00> : vector<256x4xf32>
    %143 = tpu.matmul %140, %142, %cst_181 {dimension_numbers = #tpu.dot_dimension_numbers<[1], [0], [0], [1], [0, 0, 1, 1], [], []>} : vector<256x4xf32>, vector<4x4xf32>, vector<256x4xf32> -> vector<256x4xf32>
    %144 = arith.addf %138, %143 : vector<256x4xf32>
    %c0_182 = arith.constant 0 : index
    %c1_183 = arith.constant 1 : index
    %c0_184 = arith.constant 0 : index
    %145 = vector.load %arg11[%c0_182, %c1_183, %c0_184] : memref<18x18x4xf32, #tpu.memory_space<vmem>>, vector<16x16x4xf32>
    %146 = vector.shape_cast %145 : vector<16x16x4xf32> to vector<256x4xf32>
    %c0_185 = arith.constant 0 : index
    %c1_186 = arith.constant 1 : index
    %c0_187 = arith.constant 0 : index
    %c0_188 = arith.constant 0 : index
    %147 = vector.load %arg3[%c0_185, %c1_186, %c0_187, %c0_188] : memref<3x3x4x4xf32, #tpu.memory_space<vmem>>, vector<1x1x4x4xf32>
    %148 = vector.shape_cast %147 : vector<1x1x4x4xf32> to vector<4x4xf32>
    %cst_189 = arith.constant dense<0.000000e+00> : vector<256x4xf32>
    %149 = tpu.matmul %146, %148, %cst_189 {dimension_numbers = #tpu.dot_dimension_numbers<[1], [0], [0], [1], [0, 0, 1, 1], [], []>} : vector<256x4xf32>, vector<4x4xf32>, vector<256x4xf32> -> vector<256x4xf32>
    %150 = arith.addf %144, %149 : vector<256x4xf32>
    %c0_190 = arith.constant 0 : index
    %c2_191 = arith.constant 2 : index
    %c0_192 = arith.constant 0 : index
    %151 = vector.load %arg11[%c0_190, %c2_191, %c0_192] : memref<18x18x4xf32, #tpu.memory_space<vmem>>, vector<16x16x4xf32>
    %152 = vector.shape_cast %151 : vector<16x16x4xf32> to vector<256x4xf32>
    %c0_193 = arith.constant 0 : index
    %c2_194 = arith.constant 2 : index
    %c0_195 = arith.constant 0 : index
    %c0_196 = arith.constant 0 : index
    %153 = vector.load %arg3[%c0_193, %c2_194, %c0_195, %c0_196] : memref<3x3x4x4xf32, #tpu.memory_space<vmem>>, vector<1x1x4x4xf32>
    %154 = vector.shape_cast %153 : vector<1x1x4x4xf32> to vector<4x4xf32>
    %cst_197 = arith.constant dense<0.000000e+00> : vector<256x4xf32>
    %155 = tpu.matmul %152, %154, %cst_197 {dimension_numbers = #tpu.dot_dimension_numbers<[1], [0], [0], [1], [0, 0, 1, 1], [], []>} : vector<256x4xf32>, vector<4x4xf32>, vector<256x4xf32> -> vector<256x4xf32>
    %156 = arith.addf %150, %155 : vector<256x4xf32>
    %c1_198 = arith.constant 1 : index
    %c0_199 = arith.constant 0 : index
    %c0_200 = arith.constant 0 : index
    %157 = vector.load %arg11[%c1_198, %c0_199, %c0_200] : memref<18x18x4xf32, #tpu.memory_space<vmem>>, vector<16x16x4xf32>
    %158 = vector.shape_cast %157 : vector<16x16x4xf32> to vector<256x4xf32>
    %c1_201 = arith.constant 1 : index
    %c0_202 = arith.constant 0 : index
    %c0_203 = arith.constant 0 : index
    %c0_204 = arith.constant 0 : index
    %159 = vector.load %arg3[%c1_201, %c0_202, %c0_203, %c0_204] : memref<3x3x4x4xf32, #tpu.memory_space<vmem>>, vector<1x1x4x4xf32>
    %160 = vector.shape_cast %159 : vector<1x1x4x4xf32> to vector<4x4xf32>
    %cst_205 = arith.constant dense<0.000000e+00> : vector<256x4xf32>
    %161 = tpu.matmul %158, %160, %cst_205 {dimension_numbers = #tpu.dot_dimension_numbers<[1], [0], [0], [1], [0, 0, 1, 1], [], []>} : vector<256x4xf32>, vector<4x4xf32>, vector<256x4xf32> -> vector<256x4xf32>
    %162 = arith.addf %156, %161 : vector<256x4xf32>
    %c1_206 = arith.constant 1 : index
    %c1_207 = arith.constant 1 : index
    %c0_208 = arith.constant 0 : index
    %163 = vector.load %arg11[%c1_206, %c1_207, %c0_208] : memref<18x18x4xf32, #tpu.memory_space<vmem>>, vector<16x16x4xf32>
    %164 = vector.shape_cast %163 : vector<16x16x4xf32> to vector<256x4xf32>
    %c1_209 = arith.constant 1 : index
    %c1_210 = arith.constant 1 : index
    %c0_211 = arith.constant 0 : index
    %c0_212 = arith.constant 0 : index
    %165 = vector.load %arg3[%c1_209, %c1_210, %c0_211, %c0_212] : memref<3x3x4x4xf32, #tpu.memory_space<vmem>>, vector<1x1x4x4xf32>
    %166 = vector.shape_cast %165 : vector<1x1x4x4xf32> to vector<4x4xf32>
    %cst_213 = arith.constant dense<0.000000e+00> : vector<256x4xf32>
    %167 = tpu.matmul %164, %166, %cst_213 {dimension_numbers = #tpu.dot_dimension_numbers<[1], [0], [0], [1], [0, 0, 1, 1], [], []>} : vector<256x4xf32>, vector<4x4xf32>, vector<256x4xf32> -> vector<256x4xf32>
    %168 = arith.addf %162, %167 : vector<256x4xf32>
    %c1_214 = arith.constant 1 : index
    %c2_215 = arith.constant 2 : index
    %c0_216 = arith.constant 0 : index
    %169 = vector.load %arg11[%c1_214, %c2_215, %c0_216] : memref<18x18x4xf32, #tpu.memory_space<vmem>>, vector<16x16x4xf32>
    %170 = vector.shape_cast %169 : vector<16x16x4xf32> to vector<256x4xf32>
    %c1_217 = arith.constant 1 : index
    %c2_218 = arith.constant 2 : index
    %c0_219 = arith.constant 0 : index
    %c0_220 = arith.constant 0 : index
    %171 = vector.load %arg3[%c1_217, %c2_218, %c0_219, %c0_220] : memref<3x3x4x4xf32, #tpu.memory_space<vmem>>, vector<1x1x4x4xf32>
    %172 = vector.shape_cast %171 : vector<1x1x4x4xf32> to vector<4x4xf32>
    %cst_221 = arith.constant dense<0.000000e+00> : vector<256x4xf32>
    %173 = tpu.matmul %170, %172, %cst_221 {dimension_numbers = #tpu.dot_dimension_numbers<[1], [0], [0], [1], [0, 0, 1, 1], [], []>} : vector<256x4xf32>, vector<4x4xf32>, vector<256x4xf32> -> vector<256x4xf32>
    %174 = arith.addf %168, %173 : vector<256x4xf32>
    %c2_222 = arith.constant 2 : index
    %c0_223 = arith.constant 0 : index
    %c0_224 = arith.constant 0 : index
    %175 = vector.load %arg11[%c2_222, %c0_223, %c0_224] : memref<18x18x4xf32, #tpu.memory_space<vmem>>, vector<16x16x4xf32>
    %176 = vector.shape_cast %175 : vector<16x16x4xf32> to vector<256x4xf32>
    %c2_225 = arith.constant 2 : index
    %c0_226 = arith.constant 0 : index
    %c0_227 = arith.constant 0 : index
    %c0_228 = arith.constant 0 : index
    %177 = vector.load %arg3[%c2_225, %c0_226, %c0_227, %c0_228] : memref<3x3x4x4xf32, #tpu.memory_space<vmem>>, vector<1x1x4x4xf32>
    %178 = vector.shape_cast %177 : vector<1x1x4x4xf32> to vector<4x4xf32>
    %cst_229 = arith.constant dense<0.000000e+00> : vector<256x4xf32>
    %179 = tpu.matmul %176, %178, %cst_229 {dimension_numbers = #tpu.dot_dimension_numbers<[1], [0], [0], [1], [0, 0, 1, 1], [], []>} : vector<256x4xf32>, vector<4x4xf32>, vector<256x4xf32> -> vector<256x4xf32>
    %180 = arith.addf %174, %179 : vector<256x4xf32>
    %c2_230 = arith.constant 2 : index
    %c1_231 = arith.constant 1 : index
    %c0_232 = arith.constant 0 : index
    %181 = vector.load %arg11[%c2_230, %c1_231, %c0_232] : memref<18x18x4xf32, #tpu.memory_space<vmem>>, vector<16x16x4xf32>
    %182 = vector.shape_cast %181 : vector<16x16x4xf32> to vector<256x4xf32>
    %c2_233 = arith.constant 2 : index
    %c1_234 = arith.constant 1 : index
    %c0_235 = arith.constant 0 : index
    %c0_236 = arith.constant 0 : index
    %183 = vector.load %arg3[%c2_233, %c1_234, %c0_235, %c0_236] : memref<3x3x4x4xf32, #tpu.memory_space<vmem>>, vector<1x1x4x4xf32>
    %184 = vector.shape_cast %183 : vector<1x1x4x4xf32> to vector<4x4xf32>
    %cst_237 = arith.constant dense<0.000000e+00> : vector<256x4xf32>
    %185 = tpu.matmul %182, %184, %cst_237 {dimension_numbers = #tpu.dot_dimension_numbers<[1], [0], [0], [1], [0, 0, 1, 1], [], []>} : vector<256x4xf32>, vector<4x4xf32>, vector<256x4xf32> -> vector<256x4xf32>
    %186 = arith.addf %180, %185 : vector<256x4xf32>
    %c2_238 = arith.constant 2 : index
    %c2_239 = arith.constant 2 : index
    %c0_240 = arith.constant 0 : index
    %187 = vector.load %arg11[%c2_238, %c2_239, %c0_240] : memref<18x18x4xf32, #tpu.memory_space<vmem>>, vector<16x16x4xf32>
    %188 = vector.shape_cast %187 : vector<16x16x4xf32> to vector<256x4xf32>
    %c2_241 = arith.constant 2 : index
    %c2_242 = arith.constant 2 : index
    %c0_243 = arith.constant 0 : index
    %c0_244 = arith.constant 0 : index
    %189 = vector.load %arg3[%c2_241, %c2_242, %c0_243, %c0_244] : memref<3x3x4x4xf32, #tpu.memory_space<vmem>>, vector<1x1x4x4xf32>
    %190 = vector.shape_cast %189 : vector<1x1x4x4xf32> to vector<4x4xf32>
    %cst_245 = arith.constant dense<0.000000e+00> : vector<256x4xf32>
    %191 = tpu.matmul %188, %190, %cst_245 {dimension_numbers = #tpu.dot_dimension_numbers<[1], [0], [0], [1], [0, 0, 1, 1], [], []>} : vector<256x4xf32>, vector<4x4xf32>, vector<256x4xf32> -> vector<256x4xf32>
    %192 = arith.addf %186, %191 : vector<256x4xf32>
    %cst_246 = arith.constant 0.000000e+00 : f32
    %193 = vector.broadcast %cst_246 : f32 to vector<256x4xf32>
    %194 = arith.cmpf oge, %192, %193 : vector<256x4xf32>
    %cst_247 = arith.constant 1.000000e-01 : f32
    %195 = vector.broadcast %cst_247 : f32 to vector<256x4xf32>
    %196 = arith.mulf %195, %192 : vector<256x4xf32>
    %197 = arith.select %194, %192, %196 : vector<256x4xi1>, vector<256x4xf32>
    %198 = vector.shape_cast %197 : vector<256x4xf32> to vector<16x16x4xf32>
    %cst_248 = arith.constant 0.000000e+00 : f32
    %199 = vector.broadcast %cst_248 : f32 to vector<18x18x4xf32>
    %c0_249 = arith.constant 0 : index
    %c0_250 = arith.constant 0 : index
    %c0_251 = arith.constant 0 : index
    %200 = vector.load %arg12[%c0_249, %c0_250, %c0_251] : memref<18x18x4xf32, #tpu.memory_space<vmem>>, vector<18x18x4xf32>
    tpu.vector_store %arg12[%c0_249, %c0_250, %c0_251], %199 {strides = array<i32>} : memref<18x18x4xf32, #tpu.memory_space<vmem>>, vector<18x18x4xf32>,
    %c1_252 = arith.constant 1 : index
    %c1_253 = arith.constant 1 : index
    %c0_254 = arith.constant 0 : index
    %201 = vector.load %arg12[%c1_252, %c1_253, %c0_254] : memref<18x18x4xf32, #tpu.memory_space<vmem>>, vector<16x16x4xf32>
    tpu.vector_store %arg12[%c1_252, %c1_253, %c0_254], %198 {strides = array<i32>} : memref<18x18x4xf32, #tpu.memory_space<vmem>>, vector<16x16x4xf32>,
    %cst_255 = arith.constant 0.000000e+00 : f32
    %202 = vector.broadcast %cst_255 : f32 to vector<256x4xf32>
    %c0_256 = arith.constant 0 : index
    %c0_257 = arith.constant 0 : index
    %c0_258 = arith.constant 0 : index
    %203 = vector.load %arg12[%c0_256, %c0_257, %c0_258] : memref<18x18x4xf32, #tpu.memory_space<vmem>>, vector<16x16x4xf32>
    %204 = vector.shape_cast %203 : vector<16x16x4xf32> to vector<256x4xf32>
    %c0_259 = arith.constant 0 : index
    %c0_260 = arith.constant 0 : index
    %c0_261 = arith.constant 0 : index
    %c0_262 = arith.constant 0 : index
    %205 = vector.load %arg4[%c0_259, %c0_260, %c0_261, %c0_262] : memref<3x3x4x4xf32, #tpu.memory_space<vmem>>, vector<1x1x4x4xf32>
    %206 = vector.shape_cast %205 : vector<1x1x4x4xf32> to vector<4x4xf32>
    %cst_263 = arith.constant dense<0.000000e+00> : vector<256x4xf32>
    %207 = tpu.matmul %204, %206, %cst_263 {dimension_numbers = #tpu.dot_dimension_numbers<[1], [0], [0], [1], [0, 0, 1, 1], [], []>} : vector<256x4xf32>, vector<4x4xf32>, vector<256x4xf32> -> vector<256x4xf32>
    %208 = arith.addf %202, %207 : vector<256x4xf32>
    %c0_264 = arith.constant 0 : index
    %c1_265 = arith.constant 1 : index
    %c0_266 = arith.constant 0 : index
    %209 = vector.load %arg12[%c0_264, %c1_265, %c0_266] : memref<18x18x4xf32, #tpu.memory_space<vmem>>, vector<16x16x4xf32>
    %210 = vector.shape_cast %209 : vector<16x16x4xf32> to vector<256x4xf32>
    %c0_267 = arith.constant 0 : index
    %c1_268 = arith.constant 1 : index
    %c0_269 = arith.constant 0 : index
    %c0_270 = arith.constant 0 : index
    %211 = vector.load %arg4[%c0_267, %c1_268, %c0_269, %c0_270] : memref<3x3x4x4xf32, #tpu.memory_space<vmem>>, vector<1x1x4x4xf32>
    %212 = vector.shape_cast %211 : vector<1x1x4x4xf32> to vector<4x4xf32>
    %cst_271 = arith.constant dense<0.000000e+00> : vector<256x4xf32>
    %213 = tpu.matmul %210, %212, %cst_271 {dimension_numbers = #tpu.dot_dimension_numbers<[1], [0], [0], [1], [0, 0, 1, 1], [], []>} : vector<256x4xf32>, vector<4x4xf32>, vector<256x4xf32> -> vector<256x4xf32>
    %214 = arith.addf %208, %213 : vector<256x4xf32>
    %c0_272 = arith.constant 0 : index
    %c2_273 = arith.constant 2 : index
    %c0_274 = arith.constant 0 : index
    %215 = vector.load %arg12[%c0_272, %c2_273, %c0_274] : memref<18x18x4xf32, #tpu.memory_space<vmem>>, vector<16x16x4xf32>
    %216 = vector.shape_cast %215 : vector<16x16x4xf32> to vector<256x4xf32>
    %c0_275 = arith.constant 0 : index
    %c2_276 = arith.constant 2 : index
    %c0_277 = arith.constant 0 : index
    %c0_278 = arith.constant 0 : index
    %217 = vector.load %arg4[%c0_275, %c2_276, %c0_277, %c0_278] : memref<3x3x4x4xf32, #tpu.memory_space<vmem>>, vector<1x1x4x4xf32>
    %218 = vector.shape_cast %217 : vector<1x1x4x4xf32> to vector<4x4xf32>
    %cst_279 = arith.constant dense<0.000000e+00> : vector<256x4xf32>
    %219 = tpu.matmul %216, %218, %cst_279 {dimension_numbers = #tpu.dot_dimension_numbers<[1], [0], [0], [1], [0, 0, 1, 1], [], []>} : vector<256x4xf32>, vector<4x4xf32>, vector<256x4xf32> -> vector<256x4xf32>
    %220 = arith.addf %214, %219 : vector<256x4xf32>
    %c1_280 = arith.constant 1 : index
    %c0_281 = arith.constant 0 : index
    %c0_282 = arith.constant 0 : index
    %221 = vector.load %arg12[%c1_280, %c0_281, %c0_282] : memref<18x18x4xf32, #tpu.memory_space<vmem>>, vector<16x16x4xf32>
    %222 = vector.shape_cast %221 : vector<16x16x4xf32> to vector<256x4xf32>
    %c1_283 = arith.constant 1 : index
    %c0_284 = arith.constant 0 : index
    %c0_285 = arith.constant 0 : index
    %c0_286 = arith.constant 0 : index
    %223 = vector.load %arg4[%c1_283, %c0_284, %c0_285, %c0_286] : memref<3x3x4x4xf32, #tpu.memory_space<vmem>>, vector<1x1x4x4xf32>
    %224 = vector.shape_cast %223 : vector<1x1x4x4xf32> to vector<4x4xf32>
    %cst_287 = arith.constant dense<0.000000e+00> : vector<256x4xf32>
    %225 = tpu.matmul %222, %224, %cst_287 {dimension_numbers = #tpu.dot_dimension_numbers<[1], [0], [0], [1], [0, 0, 1, 1], [], []>} : vector<256x4xf32>, vector<4x4xf32>, vector<256x4xf32> -> vector<256x4xf32>
    %226 = arith.addf %220, %225 : vector<256x4xf32>
    %c1_288 = arith.constant 1 : index
    %c1_289 = arith.constant 1 : index
    %c0_290 = arith.constant 0 : index
    %227 = vector.load %arg12[%c1_288, %c1_289, %c0_290] : memref<18x18x4xf32, #tpu.memory_space<vmem>>, vector<16x16x4xf32>
    %228 = vector.shape_cast %227 : vector<16x16x4xf32> to vector<256x4xf32>
    %c1_291 = arith.constant 1 : index
    %c1_292 = arith.constant 1 : index
    %c0_293 = arith.constant 0 : index
    %c0_294 = arith.constant 0 : index
    %229 = vector.load %arg4[%c1_291, %c1_292, %c0_293, %c0_294] : memref<3x3x4x4xf32, #tpu.memory_space<vmem>>, vector<1x1x4x4xf32>
    %230 = vector.shape_cast %229 : vector<1x1x4x4xf32> to vector<4x4xf32>
    %cst_295 = arith.constant dense<0.000000e+00> : vector<256x4xf32>
    %231 = tpu.matmul %228, %230, %cst_295 {dimension_numbers = #tpu.dot_dimension_numbers<[1], [0], [0], [1], [0, 0, 1, 1], [], []>} : vector<256x4xf32>, vector<4x4xf32>, vector<256x4xf32> -> vector<256x4xf32>
    %232 = arith.addf %226, %231 : vector<256x4xf32>
    %c1_296 = arith.constant 1 : index
    %c2_297 = arith.constant 2 : index
    %c0_298 = arith.constant 0 : index
    %233 = vector.load %arg12[%c1_296, %c2_297, %c0_298] : memref<18x18x4xf32, #tpu.memory_space<vmem>>, vector<16x16x4xf32>
    %234 = vector.shape_cast %233 : vector<16x16x4xf32> to vector<256x4xf32>
    %c1_299 = arith.constant 1 : index
    %c2_300 = arith.constant 2 : index
    %c0_301 = arith.constant 0 : index
    %c0_302 = arith.constant 0 : index
    %235 = vector.load %arg4[%c1_299, %c2_300, %c0_301, %c0_302] : memref<3x3x4x4xf32, #tpu.memory_space<vmem>>, vector<1x1x4x4xf32>
    %236 = vector.shape_cast %235 : vector<1x1x4x4xf32> to vector<4x4xf32>
    %cst_303 = arith.constant dense<0.000000e+00> : vector<256x4xf32>
    %237 = tpu.matmul %234, %236, %cst_303 {dimension_numbers = #tpu.dot_dimension_numbers<[1], [0], [0], [1], [0, 0, 1, 1], [], []>} : vector<256x4xf32>, vector<4x4xf32>, vector<256x4xf32> -> vector<256x4xf32>
    %238 = arith.addf %232, %237 : vector<256x4xf32>
    %c2_304 = arith.constant 2 : index
    %c0_305 = arith.constant 0 : index
    %c0_306 = arith.constant 0 : index
    %239 = vector.load %arg12[%c2_304, %c0_305, %c0_306] : memref<18x18x4xf32, #tpu.memory_space<vmem>>, vector<16x16x4xf32>
    %240 = vector.shape_cast %239 : vector<16x16x4xf32> to vector<256x4xf32>
    %c2_307 = arith.constant 2 : index
    %c0_308 = arith.constant 0 : index
    %c0_309 = arith.constant 0 : index
    %c0_310 = arith.constant 0 : index
    %241 = vector.load %arg4[%c2_307, %c0_308, %c0_309, %c0_310] : memref<3x3x4x4xf32, #tpu.memory_space<vmem>>, vector<1x1x4x4xf32>
    %242 = vector.shape_cast %241 : vector<1x1x4x4xf32> to vector<4x4xf32>
    %cst_311 = arith.constant dense<0.000000e+00> : vector<256x4xf32>
    %243 = tpu.matmul %240, %242, %cst_311 {dimension_numbers = #tpu.dot_dimension_numbers<[1], [0], [0], [1], [0, 0, 1, 1], [], []>} : vector<256x4xf32>, vector<4x4xf32>, vector<256x4xf32> -> vector<256x4xf32>
    %244 = arith.addf %238, %243 : vector<256x4xf32>
    %c2_312 = arith.constant 2 : index
    %c1_313 = arith.constant 1 : index
    %c0_314 = arith.constant 0 : index
    %245 = vector.load %arg12[%c2_312, %c1_313, %c0_314] : memref<18x18x4xf32, #tpu.memory_space<vmem>>, vector<16x16x4xf32>
    %246 = vector.shape_cast %245 : vector<16x16x4xf32> to vector<256x4xf32>
    %c2_315 = arith.constant 2 : index
    %c1_316 = arith.constant 1 : index
    %c0_317 = arith.constant 0 : index
    %c0_318 = arith.constant 0 : index
    %247 = vector.load %arg4[%c2_315, %c1_316, %c0_317, %c0_318] : memref<3x3x4x4xf32, #tpu.memory_space<vmem>>, vector<1x1x4x4xf32>
    %248 = vector.shape_cast %247 : vector<1x1x4x4xf32> to vector<4x4xf32>
    %cst_319 = arith.constant dense<0.000000e+00> : vector<256x4xf32>
    %249 = tpu.matmul %246, %248, %cst_319 {dimension_numbers = #tpu.dot_dimension_numbers<[1], [0], [0], [1], [0, 0, 1, 1], [], []>} : vector<256x4xf32>, vector<4x4xf32>, vector<256x4xf32> -> vector<256x4xf32>
    %250 = arith.addf %244, %249 : vector<256x4xf32>
    %c2_320 = arith.constant 2 : index
    %c2_321 = arith.constant 2 : index
    %c0_322 = arith.constant 0 : index
    %251 = vector.load %arg12[%c2_320, %c2_321, %c0_322] : memref<18x18x4xf32, #tpu.memory_space<vmem>>, vector<16x16x4xf32>
    %252 = vector.shape_cast %251 : vector<16x16x4xf32> to vector<256x4xf32>
    %c2_323 = arith.constant 2 : index
    %c2_324 = arith.constant 2 : index
    %c0_325 = arith.constant 0 : index
    %c0_326 = arith.constant 0 : index
    %253 = vector.load %arg4[%c2_323, %c2_324, %c0_325, %c0_326] : memref<3x3x4x4xf32, #tpu.memory_space<vmem>>, vector<1x1x4x4xf32>
    %254 = vector.shape_cast %253 : vector<1x1x4x4xf32> to vector<4x4xf32>
    %cst_327 = arith.constant dense<0.000000e+00> : vector<256x4xf32>
    %255 = tpu.matmul %252, %254, %cst_327 {dimension_numbers = #tpu.dot_dimension_numbers<[1], [0], [0], [1], [0, 0, 1, 1], [], []>} : vector<256x4xf32>, vector<4x4xf32>, vector<256x4xf32> -> vector<256x4xf32>
    %256 = arith.addf %250, %255 : vector<256x4xf32>
    %cst_328 = arith.constant 0.000000e+00 : f32
    %257 = vector.broadcast %cst_328 : f32 to vector<256x4xf32>
    %258 = arith.cmpf oge, %256, %257 : vector<256x4xf32>
    %cst_329 = arith.constant 1.000000e-01 : f32
    %259 = vector.broadcast %cst_329 : f32 to vector<256x4xf32>
    %260 = arith.mulf %259, %256 : vector<256x4xf32>
    %261 = arith.select %258, %256, %260 : vector<256x4xi1>, vector<256x4xf32>
    %c0_330 = arith.constant 0 : index
    %c0_331 = arith.constant 0 : index
    %262 = vector.load %arg5[%c0_330, %c0_331] : memref<4x4xf32, #tpu.memory_space<vmem>>, vector<4x4xf32>
    %cst_332 = arith.constant dense<0.000000e+00> : vector<256x4xf32>
    %263 = tpu.matmul %130, %262, %cst_332 {dimension_numbers = #tpu.dot_dimension_numbers<[1], [0], [0], [1], [0, 0, 1, 1], [], []>} : vector<256x4xf32>, vector<4x4xf32>, vector<256x4xf32> -> vector<256x4xf32>
    %c0_333 = arith.constant 0 : index
    %c0_334 = arith.constant 0 : index
    %264 = vector.load %arg6[%c0_333, %c0_334] : memref<1x4xf32, #tpu.memory_space<vmem>>, vector<1x4xf32>
    %265 = vector.broadcast %264 : vector<1x4xf32> to vector<256x4xf32>
    %266 = arith.addf %263, %265 : vector<256x4xf32>
    %c0_335 = arith.constant 0 : index
    %c0_336 = arith.constant 0 : index
    %267 = vector.load %arg7[%c0_335, %c0_336] : memref<4x4xf32, #tpu.memory_space<vmem>>, vector<4x4xf32>
    %cst_337 = arith.constant dense<0.000000e+00> : vector<256x4xf32>
    %268 = tpu.matmul %261, %267, %cst_337 {dimension_numbers = #tpu.dot_dimension_numbers<[1], [0], [0], [1], [0, 0, 1, 1], [], []>} : vector<256x4xf32>, vector<4x4xf32>, vector<256x4xf32> -> vector<256x4xf32>
    %c0_338 = arith.constant 0 : index
    %c0_339 = arith.constant 0 : index
    %269 = vector.load %arg8[%c0_338, %c0_339] : memref<1x4xf32, #tpu.memory_space<vmem>>, vector<1x4xf32>
    %270 = vector.broadcast %269 : vector<1x4xf32> to vector<256x4xf32>
    %271 = arith.addf %268, %270 : vector<256x4xf32>
    %c0_340 = arith.constant 0 : index
    %c0_341 = arith.constant 0 : index
    %c0_342 = arith.constant 0 : index
    %272 = vector.load %arg9[%c0_340, %c0_341, %c0_342] : memref<1x256x4xf32, #tpu.memory_space<vmem>>, vector<1x256x4xf32>
    %273 = vector.shape_cast %272 : vector<1x256x4xf32> to vector<256x4xf32>
    %274 = vector.shape_cast %266 : vector<256x4xf32> to vector<1x256x4xf32>
    tpu.vector_store %arg9[%c0_340, %c0_341, %c0_342], %274 {strides = array<i32>} : memref<1x256x4xf32, #tpu.memory_space<vmem>>, vector<1x256x4xf32>,
    %c0_343 = arith.constant 0 : index
    %c0_344 = arith.constant 0 : index
    %c0_345 = arith.constant 0 : index
    %275 = vector.load %arg10[%c0_343, %c0_344, %c0_345] : memref<1x256x4xf32, #tpu.memory_space<vmem>>, vector<1x256x4xf32>
    %276 = vector.shape_cast %275 : vector<1x256x4xf32> to vector<256x4xf32>
    %277 = vector.shape_cast %271 : vector<256x4xf32> to vector<1x256x4xf32>
    tpu.vector_store %arg10[%c0_343, %c0_344, %c0_345], %277 {strides = array<i32>} : memref<1x256x4xf32, #tpu.memory_space<vmem>>, vector<1x256x4xf32>,
    return
  }
  func.func @transform_0(%arg0: i32) -> (i32, i32, i32) {
    %c0_i32 = arith.constant 0 : i32
    %c0_i32_0 = arith.constant 0 : i32
    %c0_i32_1 = arith.constant 0 : i32
    return %arg0, %c0_i32, %c0_i32_0 : i32, i32, i32
  }
  func.func @transform_1(%arg0: i32) -> (i32, i32, i32) {
    %c0_i32 = arith.constant 0 : i32
    %c0_i32_0 = arith.constant 0 : i32
    %c0_i32_1 = arith.constant 0 : i32
    return %arg0, %c0_i32, %c0_i32_0 : i32, i32, i32
  }
  func.func @transform_2(%arg0: i32) -> (i32, i32, i32, i32) {
    %c0_i32 = arith.constant 0 : i32
    %c0_i32_0 = arith.constant 0 : i32
    %c0_i32_1 = arith.constant 0 : i32
    %c0_i32_2 = arith.constant 0 : i32
    %c0_i32_3 = arith.constant 0 : i32
    return %c0_i32, %c0_i32_0, %c0_i32_1, %c0_i32_2 : i32, i32, i32, i32
  }
  func.func @transform_3(%arg0: i32) -> (i32, i32, i32, i32) {
    %c0_i32 = arith.constant 0 : i32
    %c0_i32_0 = arith.constant 0 : i32
    %c0_i32_1 = arith.constant 0 : i32
    %c0_i32_2 = arith.constant 0 : i32
    %c0_i32_3 = arith.constant 0 : i32
    return %c0_i32, %c0_i32_0, %c0_i32_1, %c0_i32_2 : i32, i32, i32, i32
  }
  func.func @transform_4(%arg0: i32) -> (i32, i32) {
    %c0_i32 = arith.constant 0 : i32
    %c0_i32_0 = arith.constant 0 : i32
    %c0_i32_1 = arith.constant 0 : i32
    return %c0_i32, %c0_i32_0 : i32, i32
  }
  func.func @transform_5(%arg0: i32) -> (i32, i32) {
    %c0_i32 = arith.constant 0 : i32
    %c0_i32_0 = arith.constant 0 : i32
    %c0_i32_1 = arith.constant 0 : i32
    return %c0_i32, %c0_i32_0 : i32, i32
  }
  func.func @transform_6(%arg0: i32) -> (i32, i32) {
    %c0_i32 = arith.constant 0 : i32
    %c0_i32_0 = arith.constant 0 : i32
    %c0_i32_1 = arith.constant 0 : i32
    return %c0_i32, %c0_i32_0 : i32, i32
  }
  func.func @transform_7(%arg0: i32) -> (i32, i32) {
    %c0_i32 = arith.constant 0 : i32
    %c0_i32_0 = arith.constant 0 : i32
    %c0_i32_1 = arith.constant 0 : i32
    return %c0_i32, %c0_i32_0 : i32, i32
  }
  func.func @transform_8(%arg0: i32) -> (i32, i32, i32) {
    %c0_i32 = arith.constant 0 : i32
    %c0_i32_0 = arith.constant 0 : i32
    %c0_i32_1 = arith.constant 0 : i32
    return %arg0, %c0_i32, %c0_i32_0 : i32, i32, i32
  }
  func.func @transform_9(%arg0: i32) -> (i32, i32, i32) {
    %c0_i32 = arith.constant 0 : i32
    %c0_i32_0 = arith.constant 0 : i32
    %c0_i32_1 = arith.constant 0 : i32
    return %arg0, %c0_i32, %c0_i32_0 : i32, i32, i32
  }
}

module attributes {stable_mosaic.version = 11 : i64} {
  func.func @_attn_out_kernel(%arg0: i32, %arg1: memref<1x16x16x4xf32, #tpu.memory_space<vmem>>, %arg2: memref<1x16x16x4xf32, #tpu.memory_space<vmem>>, %arg3: memref<1x4x256xf32, #tpu.memory_space<vmem>>, %arg4: memref<1x4x256xf32, #tpu.memory_space<vmem>>, %arg5: memref<8x4xf32, #tpu.memory_space<vmem>>, %arg6: memref<1x4xf32, #tpu.memory_space<vmem>>, %arg7: memref<1x4x256xf32, #tpu.memory_space<vmem>>, %arg8: memref<1x4x256xf32, #tpu.memory_space<vmem>>) attributes {dimension_semantics = [#tpu.dimension_semantics<parallel>], iteration_bounds = array<i64: 2>, scalar_prefetch = 0 : i64, scratch_operands = 0 : i64, tpu.core_type = #tpu.core_type<tc>, window_params = [{transform_indices = @transform_0, window_bounds = array<i64: 1, 16, 16, 4>}, {transform_indices = @transform_1, window_bounds = array<i64: 1, 16, 16, 4>}, {transform_indices = @transform_2, window_bounds = array<i64: 1, 4, 256>}, {transform_indices = @transform_3, window_bounds = array<i64: 1, 4, 256>}, {pipeline_mode = #tpu.pipeline_mode<synchronous>, transform_indices = @transform_4, window_bounds = array<i64: 8, 4>}, {pipeline_mode = #tpu.pipeline_mode<synchronous>, transform_indices = @transform_5, window_bounds = array<i64: 1, 4>}, {transform_indices = @transform_6, window_bounds = array<i64: 1, 4, 256>}, {transform_indices = @transform_7, window_bounds = array<i64: 1, 4, 256>}]} {
    %c0 = arith.constant 0 : index
    %c0_0 = arith.constant 0 : index
    %c0_1 = arith.constant 0 : index
    %c0_2 = arith.constant 0 : index
    %0 = vector.load %arg1[%c0, %c0_0, %c0_1, %c0_2] : memref<1x16x16x4xf32, #tpu.memory_space<vmem>>, vector<1x16x16x4xf32>
    %1 = vector.shape_cast %0 : vector<1x16x16x4xf32> to vector<16x16x4xf32>
    %c0_3 = arith.constant 0 : index
    %c0_4 = arith.constant 0 : index
    %c0_5 = arith.constant 0 : index
    %c0_6 = arith.constant 0 : index
    %2 = vector.load %arg2[%c0_3, %c0_4, %c0_5, %c0_6] : memref<1x16x16x4xf32, #tpu.memory_space<vmem>>, vector<1x16x16x4xf32>
    %3 = vector.shape_cast %2 : vector<1x16x16x4xf32> to vector<16x16x4xf32>
    %c0_7 = arith.constant 0 : index
    %c0_8 = arith.constant 0 : index
    %c0_9 = arith.constant 0 : index
    %4 = vector.load %arg3[%c0_7, %c0_8, %c0_9] : memref<1x4x256xf32, #tpu.memory_space<vmem>>, vector<1x4x256xf32>
    %5 = vector.shape_cast %4 : vector<1x4x256xf32> to vector<4x256xf32>
    %6 = tpu.transpose %5, [1, 0] : vector<4x256xf32> -> vector<256x4xf32>
    %7 = vector.shape_cast %6 : vector<256x4xf32> to vector<16x16x4xf32>
    %c0_10 = arith.constant 0 : index
    %c0_11 = arith.constant 0 : index
    %c0_12 = arith.constant 0 : index
    %8 = vector.load %arg4[%c0_10, %c0_11, %c0_12] : memref<1x4x256xf32, #tpu.memory_space<vmem>>, vector<1x4x256xf32>
    %9 = vector.shape_cast %8 : vector<1x4x256xf32> to vector<4x256xf32>
    %10 = tpu.transpose %9, [1, 0] : vector<4x256xf32> -> vector<256x4xf32>
    %11 = vector.shape_cast %10 : vector<256x4xf32> to vector<16x16x4xf32>
    "tpu.trace_start"() <{level = 10 : i32, message = "yqc,yjc->yqj"}> : () -> ()
    %cst = arith.constant dense<0.000000e+00> : vector<16x16x16xf32>
    %12 = tpu.matmul %1, %3, %cst {dimension_numbers = #tpu.dot_dimension_numbers<[2], [2], [1], [1], [0, 0, 0, 1, 1, 1], [0], [0]>} : vector<16x16x4xf32>, vector<16x16x4xf32>, vector<16x16x16xf32> -> vector<16x16x16xf32>
    "tpu.trace_stop"() : () -> ()
    "tpu.trace_start"() <{level = 10 : i32, message = "yjc,yqc->yjq"}> : () -> ()
    %cst_13 = arith.constant dense<0.000000e+00> : vector<16x16x16xf32>
    %13 = tpu.matmul %3, %1, %cst_13 {dimension_numbers = #tpu.dot_dimension_numbers<[2], [2], [1], [1], [0, 0, 0, 1, 1, 1], [0], [0]>} : vector<16x16x4xf32>, vector<16x16x4xf32>, vector<16x16x16xf32> -> vector<16x16x16xf32>
    "tpu.trace_stop"() : () -> ()
    %cst_14 = arith.constant dense<0xFF800000> : vector<16x16xf32>
    %14 = vector.multi_reduction <maximumf>, %12, %cst_14 [2] : vector<16x16x16xf32> to vector<16x16xf32>
    %15 = vector.shape_cast %14 : vector<16x16xf32> to vector<16x16x1xf32>
    %16 = vector.broadcast %15 : vector<16x16x1xf32> to vector<16x16x16xf32>
    %17 = arith.subf %12, %16 : vector<16x16x16xf32>
    %18 = math.exp %17 : vector<16x16x16xf32>
    %cst_15 = arith.constant dense<0.000000e+00> : vector<16x16xf32>
    %19 = vector.multi_reduction <add>, %18, %cst_15 [2] : vector<16x16x16xf32> to vector<16x16xf32>
    %20 = vector.shape_cast %19 : vector<16x16xf32> to vector<16x16x1xf32>
    %21 = tpu.reciprocal %20 {approx = true} : vector<16x16x1xf32> -> vector<16x16x1xf32>
    %22 = vector.broadcast %21 : vector<16x16x1xf32> to vector<16x16x16xf32>
    %23 = arith.mulf %18, %22 : vector<16x16x16xf32>
    %cst_16 = arith.constant dense<0xFF800000> : vector<16x16xf32>
    %24 = vector.multi_reduction <maximumf>, %13, %cst_16 [2] : vector<16x16x16xf32> to vector<16x16xf32>
    %25 = vector.shape_cast %24 : vector<16x16xf32> to vector<16x16x1xf32>
    %26 = vector.broadcast %25 : vector<16x16x1xf32> to vector<16x16x16xf32>
    %27 = arith.subf %13, %26 : vector<16x16x16xf32>
    %28 = math.exp %27 : vector<16x16x16xf32>
    %cst_17 = arith.constant dense<0.000000e+00> : vector<16x16xf32>
    %29 = vector.multi_reduction <add>, %28, %cst_17 [2] : vector<16x16x16xf32> to vector<16x16xf32>
    %30 = vector.shape_cast %29 : vector<16x16xf32> to vector<16x16x1xf32>
    %31 = tpu.reciprocal %30 {approx = true} : vector<16x16x1xf32> -> vector<16x16x1xf32>
    %32 = vector.broadcast %31 : vector<16x16x1xf32> to vector<16x16x16xf32>
    %33 = arith.mulf %28, %32 : vector<16x16x16xf32>
    "tpu.trace_start"() <{level = 10 : i32, message = "yqj,yjc->yqc"}> : () -> ()
    %cst_18 = arith.constant dense<0.000000e+00> : vector<16x16x4xf32>
    %34 = tpu.matmul %23, %11, %cst_18 {dimension_numbers = #tpu.dot_dimension_numbers<[2], [1], [1], [2], [0, 0, 0, 1, 1, 2], [0], [0]>} : vector<16x16x16xf32>, vector<16x16x4xf32>, vector<16x16x4xf32> -> vector<16x16x4xf32>
    "tpu.trace_stop"() : () -> ()
    "tpu.trace_start"() <{level = 10 : i32, message = "yjq,yqc->yjc"}> : () -> ()
    %cst_19 = arith.constant dense<0.000000e+00> : vector<16x16x4xf32>
    %35 = tpu.matmul %33, %7, %cst_19 {dimension_numbers = #tpu.dot_dimension_numbers<[2], [1], [1], [2], [0, 0, 0, 1, 1, 2], [0], [0]>} : vector<16x16x16xf32>, vector<16x16x4xf32>, vector<16x16x4xf32> -> vector<16x16x4xf32>
    "tpu.trace_stop"() : () -> ()
    %36 = tpu.concatenate %34, %7 in 2 : vector<16x16x4xf32>, vector<16x16x4xf32> -> vector<16x16x8xf32>
    %37 = vector.shape_cast %36 : vector<16x16x8xf32> to vector<256x8xf32>
    %38 = tpu.concatenate %35, %11 in 2 : vector<16x16x4xf32>, vector<16x16x4xf32> -> vector<16x16x8xf32>
    %39 = vector.shape_cast %38 : vector<16x16x8xf32> to vector<256x8xf32>
    %c0_20 = arith.constant 0 : index
    %c0_21 = arith.constant 0 : index
    %40 = vector.load %arg5[%c0_20, %c0_21] : memref<8x4xf32, #tpu.memory_space<vmem>>, vector<8x4xf32>
    %cst_22 = arith.constant dense<0.000000e+00> : vector<256x4xf32>
    %41 = tpu.matmul %37, %40, %cst_22 {dimension_numbers = #tpu.dot_dimension_numbers<[1], [0], [0], [1], [0, 0, 1, 1], [], []>} : vector<256x8xf32>, vector<8x4xf32>, vector<256x4xf32> -> vector<256x4xf32>
    %c0_23 = arith.constant 0 : index
    %c0_24 = arith.constant 0 : index
    %42 = vector.load %arg6[%c0_23, %c0_24] : memref<1x4xf32, #tpu.memory_space<vmem>>, vector<1x4xf32>
    %43 = vector.broadcast %42 : vector<1x4xf32> to vector<256x4xf32>
    %44 = arith.addf %41, %43 : vector<256x4xf32>
    %c0_25 = arith.constant 0 : index
    %c0_26 = arith.constant 0 : index
    %45 = vector.load %arg5[%c0_25, %c0_26] : memref<8x4xf32, #tpu.memory_space<vmem>>, vector<8x4xf32>
    %cst_27 = arith.constant dense<0.000000e+00> : vector<256x4xf32>
    %46 = tpu.matmul %39, %45, %cst_27 {dimension_numbers = #tpu.dot_dimension_numbers<[1], [0], [0], [1], [0, 0, 1, 1], [], []>} : vector<256x8xf32>, vector<8x4xf32>, vector<256x4xf32> -> vector<256x4xf32>
    %c0_28 = arith.constant 0 : index
    %c0_29 = arith.constant 0 : index
    %47 = vector.load %arg6[%c0_28, %c0_29] : memref<1x4xf32, #tpu.memory_space<vmem>>, vector<1x4xf32>
    %48 = vector.broadcast %47 : vector<1x4xf32> to vector<256x4xf32>
    %49 = arith.addf %46, %48 : vector<256x4xf32>
    %50 = tpu.transpose %44, [1, 0] : vector<256x4xf32> -> vector<4x256xf32>
    %c0_30 = arith.constant 0 : index
    %c0_31 = arith.constant 0 : index
    %c0_32 = arith.constant 0 : index
    %51 = vector.load %arg7[%c0_30, %c0_31, %c0_32] : memref<1x4x256xf32, #tpu.memory_space<vmem>>, vector<1x4x256xf32>
    %52 = vector.shape_cast %51 : vector<1x4x256xf32> to vector<4x256xf32>
    %53 = vector.shape_cast %50 : vector<4x256xf32> to vector<1x4x256xf32>
    tpu.vector_store %arg7[%c0_30, %c0_31, %c0_32], %53 {strides = array<i32>} : memref<1x4x256xf32, #tpu.memory_space<vmem>>, vector<1x4x256xf32>,
    %54 = tpu.transpose %49, [1, 0] : vector<256x4xf32> -> vector<4x256xf32>
    %c0_33 = arith.constant 0 : index
    %c0_34 = arith.constant 0 : index
    %c0_35 = arith.constant 0 : index
    %55 = vector.load %arg8[%c0_33, %c0_34, %c0_35] : memref<1x4x256xf32, #tpu.memory_space<vmem>>, vector<1x4x256xf32>
    %56 = vector.shape_cast %55 : vector<1x4x256xf32> to vector<4x256xf32>
    %57 = vector.shape_cast %54 : vector<4x256xf32> to vector<1x4x256xf32>
    tpu.vector_store %arg8[%c0_33, %c0_34, %c0_35], %57 {strides = array<i32>} : memref<1x4x256xf32, #tpu.memory_space<vmem>>, vector<1x4x256xf32>,
    return
  }
  func.func @transform_0(%arg0: i32) -> (i32, i32, i32, i32) {
    %c0_i32 = arith.constant 0 : i32
    %c0_i32_0 = arith.constant 0 : i32
    %c0_i32_1 = arith.constant 0 : i32
    %c0_i32_2 = arith.constant 0 : i32
    return %arg0, %c0_i32, %c0_i32_0, %c0_i32_1 : i32, i32, i32, i32
  }
  func.func @transform_1(%arg0: i32) -> (i32, i32, i32, i32) {
    %c0_i32 = arith.constant 0 : i32
    %c0_i32_0 = arith.constant 0 : i32
    %c0_i32_1 = arith.constant 0 : i32
    %c0_i32_2 = arith.constant 0 : i32
    return %arg0, %c0_i32, %c0_i32_0, %c0_i32_1 : i32, i32, i32, i32
  }
  func.func @transform_2(%arg0: i32) -> (i32, i32, i32) {
    %c0_i32 = arith.constant 0 : i32
    %c0_i32_0 = arith.constant 0 : i32
    %c0_i32_1 = arith.constant 0 : i32
    return %arg0, %c0_i32, %c0_i32_0 : i32, i32, i32
  }
  func.func @transform_3(%arg0: i32) -> (i32, i32, i32) {
    %c0_i32 = arith.constant 0 : i32
    %c0_i32_0 = arith.constant 0 : i32
    %c0_i32_1 = arith.constant 0 : i32
    return %arg0, %c0_i32, %c0_i32_0 : i32, i32, i32
  }
  func.func @transform_4(%arg0: i32) -> (i32, i32) {
    %c0_i32 = arith.constant 0 : i32
    %c0_i32_0 = arith.constant 0 : i32
    %c0_i32_1 = arith.constant 0 : i32
    return %c0_i32, %c0_i32_0 : i32, i32
  }
  func.func @transform_5(%arg0: i32) -> (i32, i32) {
    %c0_i32 = arith.constant 0 : i32
    %c0_i32_0 = arith.constant 0 : i32
    %c0_i32_1 = arith.constant 0 : i32
    return %c0_i32, %c0_i32_0 : i32, i32
  }
  func.func @transform_6(%arg0: i32) -> (i32, i32, i32) {
    %c0_i32 = arith.constant 0 : i32
    %c0_i32_0 = arith.constant 0 : i32
    %c0_i32_1 = arith.constant 0 : i32
    return %arg0, %c0_i32, %c0_i32_0 : i32, i32, i32
  }
  func.func @transform_7(%arg0: i32) -> (i32, i32, i32) {
    %c0_i32 = arith.constant 0 : i32
    %c0_i32_0 = arith.constant 0 : i32
    %c0_i32_1 = arith.constant 0 : i32
    return %arg0, %c0_i32, %c0_i32_0 : i32, i32, i32
  }
}

</mosaic_0001>

<bundles_post_ra>
// kernel: pam3_forward.3
= control target key start
LH: loop header
LB: loop body
LE: loop exit
PB: predicated region body
PF: predicated region fallthrough
CT: control target
= control target key end

     0   :  { %s9464_s24 = smov 0   ;;  %s11450_s0 = inlined_call_operand.vmem [shape: f32[2,16,16,4], index: 0, kind: input, shape index: {}]   ;;  %s11451_s1 = inlined_call_operand.vmem [shape: f32[2,16,16,4], index: 1, kind: input, shape index: {}]   ;;  %s11452_s2 = inlined_call_operand.vmem [shape: f32[2,4,256], index: 2, kind: input, shape index: {}]   ;;  %s11453_s3 = inlined_call_operand.vmem [shape: f32[2,4,256], index: 3, kind: input, shape index: {}]   ;;  %s11454_s4 = inlined_call_operand.vmem [shape: f32[8,4], index: 4, kind: input, shape index: {}]   ;;  %s11455_s5 = inlined_call_operand.vmem [shape: f32[1,4], index: 5, kind: input, shape index: {}]   ;;  %s11456_s6 = inlined_call_operand.vmem [shape: f32[2,4,256], index: 6, kind: output, shape index: {0}]   ;;  %s11457_s7 = inlined_call_operand.vmem [shape: f32[2,4,256], index: 7, kind: output, shape index: {1}]  }
   0x1 LB: > { %s7675_s25 = sadd.s32 4294967295, %s9421_s24   ;;  %p7679_p0 = scmp.ge.s32.totalorder %s9421_s24, 1  ;;  %s9421_s24 = sphi %s9464_s24, %s18_s24  }
   0x2   : > { %p270_p1 = scmp.lt.s32.totalorder %s9421_s24, 3 }
   0x4   : > { %p271_p2 = pnand %p7679_p0, %p270_p1 }
   0x6   : > { %274 = sbr.rel (%p271_p2) target bundleno = 1338 (0x53a), region = 44 }
   0xd   : > { %p322_p3 = scmp.lt.s32.totalorder %s7675_s25, 1  ;;  %vm552_vm0 = vcmask 31744   ;;  %vm3145_vm2 = vcmask 130048   ;;  %s9423_s17 = smov 4   ;;  %vm6770_vm3 = vcmask 64512  }
   0xe   : > { %vm9482_vm1 = vmpackc.low %vm552_vm0, %vm552_vm0 }
   0xf   : > { %s11673_s25 = smov (!%p322_p3, %s7675_s25), 1 }
  0x10   : > { %s7951_s26 = sshll.u32 %s11673_s25, 8  ;;  %s9596_s10 = sshll.u32 %s11673_s25, 3 }
  0x11   : > { %s9478_s29 = scalar_lea.vmem %s11451_s1, %s7951_s26  ;;  %s9489_s9 = scalar_lea.vmem %s11450_s0, %s7951_s26 }
  0x12   : > { %v9492_v1 = vld [vmem:[%s9478_s29] sm:$0xff]  ;;  %v9495_v2 = vld [vmem:[%s9478_s29 + $0x8] sm:$0xff]  ;;  %v9498_v3 = vld [vmem:[%s9478_s29 + $0x10] sm:$0xff]  ;;  %s341_s13 = scalar_lea.vmem %s11453_s3, %s9596_s10  ;;  %s336_s16 = scalar_lea.vmem %s11452_s2, %s9596_s10 }
  0x13   : > { %v8827_v4 = vpack.c.bf16 %v9495_v2, %v9492_v1  ;;  %v9503_v5 = vld [vmem:[%s9478_s29 + $0x18] sm:$0xff]  ;;  %v9506_v6 = vld [vmem:[%s9489_s9] sm:$0xff]  ;;  %v9513_v8 = vld [vmem:[%s9489_s9 + $0x10] sm:$0xff]  ;;  %s346_s25 = scalar_lea.vmem %s11456_s6, %s9596_s10  ;;  %s351_s28 = scalar_lea.vmem %s11457_s7, %s9596_s10 }
  0x14   : > { %v8833_v7 = vpack.c.bf16 %v9503_v5, %v9498_v3  ;;  %8283 = vmatprep.mubr.msk.f32.mxu0 %vm552_vm0, %v9506_v6  ;;  %v9516_v9 = vld [vmem:[%s9478_s29 + $0x20] sm:$0xff]  ;;  %8290 = vmatprep.mubr.msk.f32.mxu1 %vm552_vm0, %v9513_v8  ;;  %v9523_v10 = vld [vmem:[%s9478_s29 + $0x28] sm:$0xff]  ;;  %v9526_v11 = vld [vmem:[%s9478_s29 + $0x30] sm:$0xff] }
  0x15   : > { %8829 = vmatprep.subr.msk.bf16.mxu0 %vm9482_vm1, %v8827_v4  ;;  %v9529_v12 = vld [vmem:[%s9478_s29 + $0x38] sm:$0xff]  ;;  %v8839_v13 = vpack.c.bf16 %v9523_v10, %v9516_v9  ;;  %v9546_v15 = vld [vmem:[%s9478_s29 + $0x40] sm:$0xff]  ;;  %v9549_v16 = vld [vmem:[%s9478_s29 + $0x48] sm:$0xff] }
  0x16   : > { %8835 = vmatprep.subr.msk.bf16.mxu1 %vm9482_vm1, %v8833_v7  ;;  %8832 = vmatpush3.bf16.xpose.msk.msra.mxu0 %vm9482_vm1, %v8827_v4  ;;  %v8845_v14 = vpack.c.bf16 %v9529_v12, %v9526_v11  ;;  %v9552_v17 = vld [vmem:[%s9489_s9 + $0x8] sm:$0xff]  ;;  %v9555_v18 = vld [vmem:[%s9478_s29 + $0x50] sm:$0xff]  ;;  %v9558_v19 = vld [vmem:[%s9478_s29 + $0x58] sm:$0xff]  ;;  %v8851_v22 = vpack.c.bf16 %v9549_v16, %v9546_v15 }
  0x17   : > { %8838 = vmatpush3.bf16.xpose.msk.msra.mxu1 %vm9482_vm1, %v8833_v7  ;;  %8841 = vmatprep.subr.msk.bf16.mxu0 %vm9482_vm1, %v8839_v13  ;;  %v9561_v20 = vld [vmem:[%s9489_s9 + $0x18] sm:$0xff]  ;;  %v9564_v21 = vld [vmem:[%s9489_s9 + $0x20] sm:$0xff]  ;;  %v9571_v23 = vld [vmem:[%s9489_s9 + $0x30] sm:$0xff]  ;;  %v8857_v24 = vpack.c.bf16 %v9558_v19, %v9555_v18 }
  0x18   : > { %8847 = vmatprep.subr.msk.bf16.mxu1 %vm9482_vm1, %v8845_v14  ;;  %v9590_v25 = vld [vmem:[%s9478_s29 + $0x60] sm:$0xff]  ;;  %v9593_v26 = vld [vmem:[%s9478_s29 + $0x68] sm:$0xff]  ;;  %v9602_v28 = vld [vmem:[%s9478_s29 + $0x70] sm:$0xff] }
  0x19   : > { %v9599_v27 = vld [vmem:[%s9489_s9 + $0x28] sm:$0xff]  ;;  %v9605_v29 = vld [vmem:[%s9478_s29 + $0x78] sm:$0xff]  ;;  %v9611_v31 = vld [vmem:[%s9489_s9 + $0x40] sm:$0xff]  ;;  %v8863_v32 = vpack.c.bf16 %v9593_v26, %v9590_v25 }
  0x1a   : > { %v9608_v30 = vld [vmem:[%s9489_s9 + $0x38] sm:$0xff]  ;;  %v9622_v33 = vld [vmem:[%s9489_s9 + $0x50] sm:$0xff]  ;;  %v8869_v34 = vpack.c.bf16 %v9605_v29, %v9602_v28  ;;  %v484_v35 = vld [vmem:[%s341_s13] sm:$0xff] }
  0x1b   : > { %v486_v36 = vcombine.high %v484_v35, %v484_v35  ;;  %v9641_v37 = vld [vmem:[%s9478_s29 + $0x80] sm:$0xff]  ;;  %v9644_v38 = vld [vmem:[%s9478_s29 + $0x88] sm:$0xff]  ;;  %488 = vxpose.xlu0.b32.start.end [1/1] (short) %v484_v35, 128  ;;  %v9650_v40 = vld [vmem:[%s9478_s29 + $0x90] sm:$0xff] }
  0x1c   : > { %v9647_v39 = vld [vmem:[%s9489_s9 + $0x48] sm:$0xff]  ;;  %v9653_v41 = vld [vmem:[%s9478_s29 + $0x98] sm:$0xff]  ;;  %v9659_v43 = vld [vmem:[%s9489_s9 + $0x60] sm:$0xff]  ;;  %v8875_v44 = vpack.c.bf16 %v9644_v38, %v9641_v37 }
  0x1d   : > { %8284 = vmatmul.mubr.msk.f32.vlgmr.msra.gmra.mrb[0].mxu0 %vm552_vm0, %v9552_v17  ;;  %520 = vxpose.xlu1.b32.start.end [1/1] (short) %v486_v36, 128  ;;  %v9656_v42 = vld [vmem:[%s9489_s9 + $0x58] sm:$0xff]  ;;  %v9666_v45 = vld [vmem:[%s9489_s9 + $0x70] sm:$0xff]  ;;  %v8881_v46 = vpack.c.bf16 %v9653_v41, %v9650_v40  ;;  %v9685_v47 = vld [vmem:[%s9478_s29 + $0xa0] sm:$0xff] }
  0x1e   : > { %8291 = vmatmul.mubr.msk.f32.vlgmr.msra.gmra.mrb[0].mxu1 %vm552_vm0, %v9561_v20  ;;  %8844 = vmatpush3.bf16.xpose.msk.msra.mxu0 %vm9482_vm1, %v8839_v13  ;;  %v9688_v48 = vld [vmem:[%s9478_s29 + $0xa8] sm:$0xff]  ;;  %v9694_v50 = vld [vmem:[%s9478_s29 + $0xb0] sm:$0xff]  ;;  %v9697_v51 = vld [vmem:[%s9478_s29 + $0xb8] sm:$0xff] }
  0x1f   : > { %8850 = vmatpush3.bf16.xpose.msk.msra.mxu1 %vm9482_vm1, %v8845_v14  ;;  %8297 = vmatprep.mubr.msk.f32.mxu0 %vm552_vm0, %v9564_v21  ;;  %v9691_v49 = vld [vmem:[%s9489_s9 + $0x68] sm:$0xff]  ;;  %v9700_v52 = vld [vmem:[%s9489_s9 + $0x78] sm:$0xff]  ;;  %v9703_v53 = vld [vmem:[%s9489_s9 + $0x80] sm:$0xff]  ;;  %v8887_v54 = vpack.c.bf16 %v9688_v48, %v9685_v47  ;;  %v8893_v56 = vpack.c.bf16 %v9697_v51, %v9694_v50 }
  0x20   : > { %8304 = vmatprep.mubr.msk.f32.mxu1 %vm552_vm0, %v9571_v23  ;;  %8853 = vmatprep.subr.msk.bf16.mxu0 %vm9482_vm1, %v8851_v22  ;;  %v9710_v55 = vld [vmem:[%s9489_s9 + $0x90] sm:$0xff]  ;;  %v9729_v57 = vld [vmem:[%s9478_s29 + $0xc0] sm:$0xff]  ;;  %v9732_v58 = vld [vmem:[%s9478_s29 + $0xc8] sm:$0xff] }
  0x21   : > { %8859 = vmatprep.subr.msk.bf16.mxu1 %vm9482_vm1, %v8857_v24  ;;  %v9735_v59 = vld [vmem:[%s9489_s9 + $0x88] sm:$0xff]  ;;  %v9738_v60 = vld [vmem:[%s9478_s29 + $0xd0] sm:$0xff]  ;;  %v9741_v61 = vld [vmem:[%s9478_s29 + $0xd8] sm:$0xff]  ;;  %v8899_v4 = vpack.c.bf16 %v9732_v58, %v9729_v57 }
  0x22   : > { %v9744_v62 = vld [vmem:[%s9489_s9 + $0x98] sm:$0xff]  ;;  %v9747_v63 = vld [vmem:[%s9489_s9 + $0xa0] sm:$0xff]  ;;  %v9754_v7 = vld [vmem:[%s9489_s9 + $0xb0] sm:$0xff]  ;;  %v8905_v13 = vpack.c.bf16 %v9741_v61, %v9738_v60 }
  0x23   : > { %v9773_v14 = vld [vmem:[%s9478_s29 + $0xe0] sm:$0xff]  ;;  %v9788_v35 = vld [vmem:[%s9489_s9 + $0xb8] sm:$0xff] }
  0x24   : > { %11529 = vst [vmem:[#allocation2_spill] sm:$0xff] %v9773_v14  ;;  %v9791_v36 = vld [vmem:[%s9489_s9 + $0xc0] sm:$0xff] }
  0x25   : > { %8298 = vmatmul.mubr.msk.f32.vlgmr.msra.gmra.mrb[2].mxu0 %vm552_vm0, %v9599_v27 }
  0x26   : > { %8305 = vmatmul.mubr.msk.f32.vlgmr.msra.gmra.mrb[2].mxu1 %vm552_vm0, %v9608_v30  ;;  %8856 = vmatpush3.bf16.xpose.msk.msra.mxu0 %vm9482_vm1, %v8851_v22  ;;  %v9776_v22 = vld [vmem:[%s9478_s29 + $0xe8] sm:$0xff] }
  0x27   : > { %8862 = vmatpush3.bf16.xpose.msk.msra.mxu1 %vm9482_vm1, %v8857_v24  ;;  %8311 = vmatprep.mubr.msk.f32.mxu0 %vm552_vm0, %v9611_v31  ;;  %11530 = vst [vmem:[#allocation3_spill] sm:$0xff] %v9776_v22  ;;  %v9779_v24 = vld [vmem:[%s9489_s9 + $0xa8] sm:$0xff] }
  0x28   : > { %8318 = vmatprep.mubr.msk.f32.mxu1 %vm552_vm0, %v9622_v33  ;;  %8865 = vmatprep.subr.msk.bf16.mxu0 %vm9482_vm1, %v8863_v32 }
  0x29   : > { %8871 = vmatprep.subr.msk.bf16.mxu1 %vm9482_vm1, %v8869_v34 }
  0x2d   : > { %8312 = vmatmul.mubr.msk.f32.vlgmr.msra.gmra.mrb[4].mxu0 %vm552_vm0, %v9647_v39 }
  0x2e   : > { %8319 = vmatmul.mubr.msk.f32.vlgmr.msra.gmra.mrb[4].mxu1 %vm552_vm0, %v9656_v42  ;;  %8868 = vmatpush3.bf16.xpose.msk.msra.mxu0 %vm9482_vm1, %v8863_v32  ;;  %v9782_v32 = vld [vmem:[%s9478_s29 + $0xf0] sm:$0xff] }
  0x2f   : > { %8874 = vmatpush3.bf16.xpose.msk.msra.mxu1 %vm9482_vm1, %v8869_v34  ;;  %8325 = vmatprep.mubr.msk.f32.mxu0 %vm552_vm0, %v9659_v43  ;;  %v9785_v34 = vld [vmem:[%s9478_s29 + $0xf8] sm:$0xff] }
  0x30   : > { %8332 = vmatprep.mubr.msk.f32.mxu1 %vm552_vm0, %v9666_v45  ;;  %8877 = vmatprep.subr.msk.bf16.mxu0 %vm9482_vm1, %v8875_v44  ;;  %11531 = vst [vmem:[#allocation4_spill] sm:$0xff] %v9785_v34 }
  0x31   : > { %8883 = vmatprep.subr.msk.bf16.mxu1 %vm9482_vm1, %v8881_v46 }
  0x35   : > { %8326 = vmatmul.mubr.msk.f32.vlgmr.msra.gmra.mrb[6].mxu0 %vm552_vm0, %v9691_v49 }
  0x36   : > { %8333 = vmatmul.mubr.msk.f32.vlgmr.msra.gmra.mrb[6].mxu1 %vm552_vm0, %v9700_v52  ;;  %8880 = vmatpush3.bf16.xpose.msk.msra.mxu0 %vm9482_vm1, %v8875_v44  ;;  %v8911_v44 = vpack.c.bf16 %v9776_v22, %v9773_v14  ;;  %v8929_v22 = vpack.c.bf16 %v9561_v20, %v9513_v8  ;;  %v9832_v14 = vld [vmem:[%s9489_s9 + $0xf0] sm:$0xff]  ;;  %v383_v8 = vld [vmem:[%s9489_s9 + $0xf8] sm:$0xff]  ;;  %v8941_v20 = vpack.c.bf16 %v9608_v30, %v9571_v23 }
  0x37   : > { %8886 = vmatpush3.bf16.xpose.msk.msra.mxu1 %vm9482_vm1, %v8881_v46  ;;  %8339 = vmatprep.mubr.msk.f32.mxu0 %vm552_vm0, %v9703_v53  ;;  %v9798_v46 = vld [vmem:[%s9489_s9 + $0xd0] sm:$0xff]  ;;  %v8953_v23 = vpack.c.bf16 %v9656_v42, %v9622_v33 }
  0x38   : > { %8346 = vmatprep.mubr.msk.f32.mxu1 %vm552_vm0, %v9710_v55  ;;  %8889 = vmatprep.subr.msk.bf16.mxu0 %vm9482_vm1, %v8887_v54 }
  0x39   : > { %8895 = vmatprep.subr.msk.bf16.mxu1 %vm9482_vm1, %v8893_v56 }
  0x3d   : > { %8340 = vmatmul.mubr.msk.f32.vlgmr.msra.gmra.mrb[8].mxu0 %vm552_vm0, %v9735_v59 }
  0x3e   : > { %8347 = vmatmul.mubr.msk.f32.vlgmr.msra.gmra.mrb[8].mxu1 %vm552_vm0, %v9744_v62  ;;  %8892 = vmatpush3.bf16.xpose.msk.msra.mxu0 %vm9482_vm1, %v8887_v54  ;;  %v8917_v54 = vpack.c.bf16 %v9785_v34, %v9782_v32  ;;  %v9825_v34 = vld [vmem:[%s9489_s9 + $0xe0] sm:$0xff] }
  0x3f   : > { %8898 = vmatpush3.bf16.xpose.msk.msra.mxu1 %vm9482_vm1, %v8893_v56  ;;  %8353 = vmatprep.mubr.msk.f32.mxu0 %vm552_vm0, %v9747_v63  ;;  %v9817_v56 = vld [vmem:[%s9489_s9 + $0xc8] sm:$0xff] }
  0x40   : > { %8360 = vmatprep.mubr.msk.f32.mxu1 %vm552_vm0, %v9754_v7  ;;  %8901 = vmatprep.subr.msk.bf16.mxu0 %vm9482_vm1, %v8899_v4 }
  0x41   : > { %8907 = vmatprep.subr.msk.bf16.mxu1 %vm9482_vm1, %v8905_v13 }
  0x45   : > { %8354 = vmatmul.mubr.msk.f32.vlgmr.msra.gmra.mrb[10].mxu0 %vm552_vm0, %v9779_v24 }
  0x46   : > { %8361 = vmatmul.mubr.msk.f32.vlgmr.msra.gmra.mrb[10].mxu1 %vm552_vm0, %v9788_v35  ;;  %8904 = vmatpush3.bf16.xpose.msk.msra.mxu0 %vm9482_vm1, %v8899_v4  ;;  %v9820_v4 = vld [vmem:[%s9489_s9 + $0xd8] sm:$0xff] }
  0x47   : > { %8910 = vmatpush3.bf16.xpose.msk.msra.mxu1 %vm9482_vm1, %v8905_v13  ;;  %8367 = vmatprep.mubr.msk.f32.mxu0 %vm552_vm0, %v9791_v36  ;;  %v8923_v13 = vpack.c.bf16 %v9552_v17, %v9506_v6  ;;  %v9849_v6 = vld [vmem:[%s9489_s9 + $0xe8] sm:$0xff]  ;;  %v8935_v17 = vpack.c.bf16 %v9599_v27, %v9564_v21  ;;  %v8947_v21 = vpack.c.bf16 %v9647_v39, %v9611_v31 }
  0x48   : > { %8374 = vmatprep.mubr.msk.f32.mxu1 %vm552_vm0, %v9798_v46  ;;  %8913 = vmatprep.subr.msk.bf16.mxu0 %vm9482_vm1, %v8911_v44 }
  0x49   : > { %8919 = vmatprep.subr.msk.bf16.mxu1 %vm9482_vm1, %v8917_v54 }
  0x4d   : > { %8368 = vmatmul.mubr.msk.f32.vlgmr.msra.gmra.mrb[12].mxu0 %vm552_vm0, %v9817_v56 }
  0x4e   : > { %8375 = vmatmul.mubr.msk.f32.vlgmr.msra.gmra.mrb[12].mxu1 %vm552_vm0, %v9820_v4  ;;  %8916 = vmatpush3.bf16.xpose.msk.msra.mxu0 %vm9482_vm1, %v8911_v44 }
  0x4f   : > { %8922 = vmatpush3.bf16.xpose.msk.msra.mxu1 %vm9482_vm1, %v8917_v54  ;;  %8381 = vmatprep.mubr.msk.f32.mxu0 %vm552_vm0, %v9825_v34 }
  0x50   : > { %8388 = vmatprep.mubr.msk.f32.mxu1 %vm552_vm0, %v9832_v14  ;;  %8925 = vmatprep.subr.msk.bf16.mxu0 %vm9482_vm1, %v8923_v13 }
  0x51   : > { %8931 = vmatprep.subr.msk.bf16.mxu1 %vm9482_vm1, %v8929_v22 }
  0x55   : > { %8382 = vmatmul.mubr.msk.f32.vlgmr.msra.gmra.mrb[14].mxu0 %vm552_vm0, %v9849_v6 }
  0x56   : > { %8389 = vmatmul.mubr.msk.f32.vlgmr.msra.gmra.mrb[14].mxu1 %vm552_vm0, %v383_v8  ;;  %8928 = vmatpush3.bf16.xpose.msk.msra.mxu0 %vm9482_vm1, %v8923_v13 }
  0x57   : > { %8934 = vmatpush3.bf16.xpose.msk.msra.mxu1 %vm9482_vm1, %v8929_v22  ;;  %8395 = vmatprep.mubr.msk.f32.mxu0 %vm552_vm0, %v9492_v1  ;;  %v8959_v1 = vpack.c.bf16 %v9691_v49, %v9659_v43 }
  0x58   : > { %8402 = vmatprep.mubr.msk.f32.mxu1 %vm552_vm0, %v9498_v3  ;;  %8937 = vmatprep.subr.msk.bf16.mxu0 %vm9482_vm1, %v8935_v17  ;;  %v8971_v3 = vpack.c.bf16 %v9735_v59, %v9703_v53 }
  0x59   : > { %8943 = vmatprep.subr.msk.bf16.mxu1 %vm9482_vm1, %v8941_v20 }
  0x5d   : > { %8396 = vmatmul.mubr.msk.f32.vlgmr.msra.gmra.mrb[16].mxu0 %vm552_vm0, %v9495_v2  ;;  %v8965_v2 = vpack.c.bf16 %v9700_v52, %v9666_v45 }
  0x5e   : > { %8403 = vmatmul.mubr.msk.f32.vlgmr.msra.gmra.mrb[16].mxu1 %vm552_vm0, %v9503_v5  ;;  %8940 = vmatpush3.bf16.xpose.msk.msra.mxu0 %vm9482_vm1, %v8935_v17  ;;  %v8977_v5 = vpack.c.bf16 %v9744_v62, %v9710_v55 }
  0x5f   : > { %8946 = vmatpush3.bf16.xpose.msk.msra.mxu1 %vm9482_vm1, %v8941_v20  ;;  %8409 = vmatprep.mubr.msk.f32.mxu0 %vm552_vm0, %v9516_v9  ;;  %v8983_v9 = vpack.c.bf16 %v9779_v24, %v9747_v63 }
  0x60   : > { %8416 = vmatprep.mubr.msk.f32.mxu1 %vm552_vm0, %v9526_v11  ;;  %8949 = vmatprep.subr.msk.bf16.mxu0 %vm9482_vm1, %v8947_v21  ;;  %v8995_v11 = vpack.c.bf16 %v9817_v56, %v9791_v36 }
  0x61   : > { %8955 = vmatprep.subr.msk.bf16.mxu1 %vm9482_vm1, %v8953_v23 }
  0x65   : > { %8410 = vmatmul.mubr.msk.f32.vlgmr.msra.gmra.mrb[18].mxu0 %vm552_vm0, %v9523_v10  ;;  %v8989_v10 = vpack.c.bf16 %v9788_v35, %v9754_v7 }
  0x66   : > { %8417 = vmatmul.mubr.msk.f32.vlgmr.msra.gmra.mrb[18].mxu1 %vm552_vm0, %v9529_v12  ;;  %8952 = vmatpush3.bf16.xpose.msk.msra.mxu0 %vm9482_vm1, %v8947_v21  ;;  %v9001_v12 = vpack.c.bf16 %v9820_v4, %v9798_v46 }
  0x67   : > { %8958 = vmatpush3.bf16.xpose.msk.msra.mxu1 %vm9482_vm1, %v8953_v23  ;;  %8423 = vmatprep.mubr.msk.f32.mxu0 %vm552_vm0, %v9546_v15  ;;  %v9013_v15 = vpack.c.bf16 %v383_v8, %v9832_v14 }
  0x68   : > { %8430 = vmatprep.mubr.msk.f32.mxu1 %vm552_vm0, %v9555_v18  ;;  %8961 = vmatprep.subr.msk.bf16.mxu0 %vm9482_vm1, %v8959_v1  ;;  %v11532_v18 = vld [vmem:[#allocation2_spill] sm:$0xff] }
  0x69   : > { %8967 = vmatprep.subr.msk.bf16.mxu1 %vm9482_vm1, %v8965_v2 }
  0x6d   : > { %8424 = vmatmul.mubr.msk.f32.vlgmr.msra.gmra.mrb[20].mxu0 %vm552_vm0, %v9549_v16  ;;  %v9007_v16 = vpack.c.bf16 %v9849_v6, %v9825_v34 }
  0x6e   : > { %8431 = vmatmul.mubr.msk.f32.vlgmr.msra.gmra.mrb[20].mxu1 %vm552_vm0, %v9558_v19  ;;  %8964 = vmatpush3.bf16.xpose.msk.msra.mxu0 %vm9482_vm1, %v8959_v1  ;;  %v11533_v19 = vld [vmem:[#allocation3_spill] sm:$0xff] }
  0x6f   : > { %8970 = vmatpush3.bf16.xpose.msk.msra.mxu1 %vm9482_vm1, %v8965_v2  ;;  %8437 = vmatprep.mubr.msk.f32.mxu0 %vm552_vm0, %v9590_v25  ;;  %v11534_v25 = vld [vmem:[#allocation4_spill] sm:$0xff] }
  0x70   : > { %8444 = vmatprep.mubr.msk.f32.mxu1 %vm552_vm0, %v9602_v28  ;;  %8973 = vmatprep.subr.msk.bf16.mxu0 %vm9482_vm1, %v8971_v3 }
  0x71   : > { %8979 = vmatprep.subr.msk.bf16.mxu1 %vm9482_vm1, %v8977_v5 }
  0x75   : > { %8438 = vmatmul.mubr.msk.f32.vlgmr.msra.gmra.mrb[22].mxu0 %vm552_vm0, %v9593_v26 }
  0x76   : > { %8445 = vmatmul.mubr.msk.f32.vlgmr.msra.gmra.mrb[22].mxu1 %vm552_vm0, %v9605_v29  ;;  %8976 = vmatpush3.bf16.xpose.msk.msra.mxu0 %vm9482_vm1, %v8971_v3 }
  0x77   : > { %8982 = vmatpush3.bf16.xpose.msk.msra.mxu1 %vm9482_vm1, %v8977_v5  ;;  %8451 = vmatprep.mubr.msk.f32.mxu0 %vm552_vm0, %v9641_v37 }
  0x78   : > { %8458 = vmatprep.mubr.msk.f32.mxu1 %vm552_vm0, %v9650_v40  ;;  %8985 = vmatprep.subr.msk.bf16.mxu0 %vm9482_vm1, %v8983_v9 }
  0x79   : > { %8991 = vmatprep.subr.msk.bf16.mxu1 %vm9482_vm1, %v8989_v10 }
  0x7d   : > { %8452 = vmatmul.mubr.msk.f32.vlgmr.msra.gmra.mrb[24].mxu0 %vm552_vm0, %v9644_v38 }
  0x7e   : > { %8459 = vmatmul.mubr.msk.f32.vlgmr.msra.gmra.mrb[24].mxu1 %vm552_vm0, %v9653_v41  ;;  %8988 = vmatpush3.bf16.xpose.msk.msra.mxu0 %vm9482_vm1, %v8983_v9 }
  0x7f   : > { %8994 = vmatpush3.bf16.xpose.msk.msra.mxu1 %vm9482_vm1, %v8989_v10  ;;  %8465 = vmatprep.mubr.msk.f32.mxu0 %vm552_vm0, %v9685_v47 }
  0x80   : > { %8472 = vmatprep.mubr.msk.f32.mxu1 %vm552_vm0, %v9694_v50  ;;  %8997 = vmatprep.subr.msk.bf16.mxu0 %vm9482_vm1, %v8995_v11 }
  0x81   : > { %9003 = vmatprep.subr.msk.bf16.mxu1 %vm9482_vm1, %v9001_v12 }
  0x85   : > { %8466 = vmatmul.mubr.msk.f32.vlgmr.msra.gmra.mrb[26].mxu0 %vm552_vm0, %v9688_v48 }
  0x86   : > { %8473 = vmatmul.mubr.msk.f32.vlgmr.msra.gmra.mrb[26].mxu1 %vm552_vm0, %v9697_v51  ;;  %9000 = vmatpush3.bf16.xpose.msk.msra.mxu0 %vm9482_vm1, %v8995_v11 }
  0x87   : > { %9006 = vmatpush3.bf16.xpose.msk.msra.mxu1 %vm9482_vm1, %v9001_v12  ;;  %8479 = vmatprep.mubr.msk.f32.mxu0 %vm552_vm0, %v9729_v57 }
  0x88   : > { %8486 = vmatprep.mubr.msk.f32.mxu1 %vm552_vm0, %v9738_v60  ;;  %9015 = vmatprep.subr.msk.bf16.mxu1 %vm9482_vm1, %v9013_v15 }
  0x89   : > { %9009 = vmatprep.subr.msk.bf16.mxu0 %vm9482_vm1, %v9007_v16 }
  0x8d   : > { %8480 = vmatmul.mubr.msk.f32.vlgmr.msra.gmra.mrb[28].mxu0 %vm552_vm0, %v9732_v58 }
  0x8e   : > { %8487 = vmatmul.mubr.msk.f32.vlgmr.msra.gmra.mrb[28].mxu1 %vm552_vm0, %v9741_v61  ;;  %9012 = vmatpush3.bf16.xpose.msk.msra.mxu0 %vm9482_vm1, %v9007_v16 }
  0x8f   : > { %9018 = vmatpush3.bf16.xpose.msk.msra.mxu1 %vm9482_vm1, %v9013_v15  ;;  %8500 = vmatprep.mubr.msk.f32.mxu1 %vm552_vm0, %v9782_v32 }
  0x90   : > { %8493 = vmatprep.mubr.msk.f32.mxu0 %vm552_vm0, %v11532_v18 }
  0x95   : > { %8494 = vmatmul.mubr.msk.f32.vlgmr.msra.gmra.mrb[30].mxu0 %vm552_vm0, %v11533_v19 }
  0x96   : > { %8501 = vmatmul.mubr.msk.f32.vlgmr.msra.gmra.mrb[30].mxu1 %vm552_vm0, %v11534_v25 }
  0x9b   : > { %v10006_v26 = vpop.trf.xlu0 }
  0x9c   : > { %11535 = vst [vmem:[#allocation2_spill] sm:$0xff] %v10006_v26 }
  0x9f   : > { %v10008_v27 = vpop.trf.xlu0 }
  0xa0   : > { %11536 = vst [vmem:[#allocation3_spill] sm:$0xff] %v10008_v27  ;;  %v9019_v0 = vpack.c.bf16 %v10008_v27, %v10006_v26 }
  0xa2   : > { %9020 = vmatprep.subr.bf16.mxu0 %v9019_v0 }
  0xa3   : > { %v10012_v28 = vpop.trf.xlu0  ;;  %9022 = vmatpush3.bf16.msra.mxu0 %v9019_v0 }
  0xa4   : > { %11537 = vst [vmem:[#allocation4_spill] sm:$0xff] %v10012_v28 }
  0xa7   : > { %v10014_v29 = vpop.trf.xlu0 }
  0xa8   : > { %11538 = vst [vmem:[#allocation5_spill] sm:$0xff] %v10014_v29  ;;  %v9023_v30 = vpack.c.bf16 %v10014_v29, %v10012_v28 }
  0xaa   : > { %9024 = vmatprep.subr.bf16.mxu1 %v9023_v30 }
  0xab   : > { %v10018_v31 = vpop.trf.xlu0  ;;  %9026 = vmatpush3.bf16.msra.mxu1 %v9023_v30  ;;  %v10142_v30 = vpop.trf.xlu1 }
  0xac   : > { %11539 = vst [vmem:[#allocation6_spill] sm:$0xff] %v10018_v31  ;;  %11545 = vst [vmem:[#allocation12_spill] sm:$0xff] %v10142_v30 }
  0xaf   : > { %v10020_v33 = vpop.trf.xlu0 }
  0xb0   : > { %11540 = vst [vmem:[#allocation7_spill] sm:$0xff] %v10020_v33  ;;  %v10024_v37 = vpack.c.bf16 %v10020_v33, %v10018_v31 }
  0xb2   : > { %11541 = vst [vmem:[#allocation8_spill] sm:$0xff] %v10024_v37  ;;  %9028 = vmatprep.subr.bf16.mxu0 %v10024_v37 }
  0xb3   : > { %v10027_v38 = vpop.trf.xlu0 }
  0xb4   : > { %11542 = vst [vmem:[#allocation9_spill] sm:$0xff] %v10027_v38 }
  0xb7   : > { %v10029_v39 = vpop.trf.xlu0 }
  0xb8   : > { %11543 = vst [vmem:[#allocation10_spill] sm:$0xff] %v10029_v39  ;;  %v10033_v40 = vpack.c.bf16 %v10029_v39, %v10027_v38 }
  0xba   : > { %11544 = vst [vmem:[#allocation11_spill] sm:$0xff] %v10033_v40  ;;  %9032 = vmatprep.subr.bf16.mxu1 %v10033_v40 }
  0xbb   : > { %v10242_v33 = vpop.trf.xlu0 }
  0xbc   : > { %11553 = vst [vmem:[#allocation20_spill] sm:$0xff] %v10242_v33 }
  0xf0   : > { %v10036_v41 = vpop.f32.mrb[0].mxu0 }
  0xf1   : > { %v10038_v42 = vpop.f32.mrb[0].mxu1  ;;  %v10040_v43 = vpop.f32.mrb[1].mxu0  ;;  %v3149_v45 = vsel %vm3145_vm2, %v10036_v41, -inf }
  0xf2   : > { %v10044_v47 = vpop.f32.mrb[1].mxu1  ;;  %3150 = vmax.xlane.f32.xlu0 %v3149_v45  ;;  %v3155_v49 = vsel %vm3145_vm2, %v10038_v42, -inf  ;;  %v3146_v52 = vsel %vm3145_vm2, %v10040_v43, -inf }
  0xf3   : > { %v3152_v48 = vsel %vm3145_vm2, %v10044_v47, -inf }
  0xf4   : > { %3153 = vmax.xlane.f32.xlu1 %v3152_v48 }
  0xf6   : > { %3156 = vmax.xlane.f32.xlu0 %v3155_v49 }
  0xf8   : > { %v10050_v50 = vpop.f32.mrb[2].mxu0 }
  0xf9   : > { %v10052_v51 = vpop.f32.mrb[3].mxu0  ;;  %v3161_v53 = vsel %vm3145_vm2, %v10050_v50, -inf  ;;  %v10058_v55 = vpop.f32.mrb[2].mxu1 }
  0xfa   : > { %3147 = vmax.xlane.f32.xlu0 %v3146_v52  ;;  %3162 = vmax.xlane.f32.xlu1 %v3161_v53  ;;  %v10060_v57 = vpop.f32.mrb[3].mxu1  ;;  %v3167_v58 = vsel %vm3145_vm2, %v10058_v55, -inf  ;;  %v3158_v59 = vsel %vm3145_vm2, %v10052_v51, -inf  ;;  %v10150_v52 = vpop.trf.xlu1 }
  0xfb   : > { %v3164_v62 = vsel %vm3145_vm2, %v10060_v57, -inf  ;;  %11546 = vst [vmem:[#allocation13_spill] sm:$0xff] %v10150_v52 }
  0xfe   : > { %3168 = vmax.xlane.f32.xlu0 %v3167_v58  ;;  %3159 = vmax.xlane.f32.xlu1 %v3158_v59 }
 0x100   : > { %v10066_v60 = vpop.f32.mrb[4].mxu0 }
 0x101   : > { %v10068_v61 = vpop.f32.mrb[5].mxu0  ;;  %v3173_v63 = vsel %vm3145_vm2, %v10066_v60, -inf  ;;  %v10074_v7 = vpop.f32.mrb[4].mxu1 }
 0x102   : > { %3165 = vmax.xlane.f32.xlu0 %v3164_v62  ;;  %3174 = vmax.xlane.f32.xlu1 %v3173_v63  ;;  %v10076_v14 = vpop.f32.mrb[5].mxu1  ;;  %v3179_v22 = vsel %vm3145_vm2, %v10074_v7, -inf  ;;  %v3170_v24 = vsel %vm3145_vm2, %v10068_v61, -inf }
 0x103   : > { %v3176_v35 = vsel %vm3145_vm2, %v10076_v14, -inf }
 0x106   : > { %3180 = vmax.xlane.f32.xlu0 %v3179_v22  ;;  %3171 = vmax.xlane.f32.xlu1 %v3170_v24 }
 0x108   : > { %v10082_v32 = vpop.f32.mrb[6].mxu0 }
 0x109   : > { %v10084_v34 = vpop.f32.mrb[7].mxu0  ;;  %v3185_v36 = vsel %vm3145_vm2, %v10082_v32, -inf  ;;  %v10090_v44 = vpop.f32.mrb[6].mxu1 }
 0x10a   : > { %3177 = vmax.xlane.f32.xlu0 %v3176_v35  ;;  %3186 = vmax.xlane.f32.xlu1 %v3185_v36  ;;  %v10092_v46 = vpop.f32.mrb[7].mxu1  ;;  %v3191_v54 = vsel %vm3145_vm2, %v10090_v44, -inf  ;;  %v3182_v56 = vsel %vm3145_vm2, %v10084_v34, -inf  ;;  %v10166_v35 = vpop.trf.xlu1 }
 0x10b   : > { %v3188_v6 = vsel %vm3145_vm2, %v10092_v46, -inf  ;;  %11547 = vst [vmem:[#allocation14_spill] sm:$0xff] %v10166_v35 }
 0x10e   : > { %3192 = vmax.xlane.f32.xlu0 %v3191_v54  ;;  %3183 = vmax.xlane.f32.xlu1 %v3182_v56 }
 0x110   : > { %v10098_v4 = vpop.f32.mrb[8].mxu0 }
 0x111   : > { %v10100_v13 = vpop.f32.mrb[9].mxu0  ;;  %v3197_v8 = vsel %vm3145_vm2, %v10098_v4, -inf  ;;  %v10106_v17 = vpop.f32.mrb[8].mxu1 }
 0x112   : > { %3189 = vmax.xlane.f32.xlu0 %v3188_v6  ;;  %3198 = vmax.xlane.f32.xlu1 %v3197_v8  ;;  %v10108_v20 = vpop.f32.mrb[9].mxu1  ;;  %v3203_v21 = vsel %vm3145_vm2, %v10106_v17, -inf  ;;  %v3194_v23 = vsel %vm3145_vm2, %v10100_v13, -inf }
 0x113   : > { %v3200_v3 = vsel %vm3145_vm2, %v10108_v20, -inf }
 0x116   : > { %3204 = vmax.xlane.f32.xlu0 %v3203_v21  ;;  %3195 = vmax.xlane.f32.xlu1 %v3194_v23 }
 0x118   : > { %v10114_v1 = vpop.f32.mrb[10].mxu0 }
 0x119   : > { %v10116_v2 = vpop.f32.mrb[11].mxu0  ;;  %v3209_v5 = vsel %vm3145_vm2, %v10114_v1, -inf  ;;  %v10122_v9 = vpop.f32.mrb[10].mxu1 }
 0x11a   : > { %3201 = vmax.xlane.f32.xlu0 %v3200_v3  ;;  %3210 = vmax.xlane.f32.xlu1 %v3209_v5  ;;  %v10124_v10 = vpop.f32.mrb[11].mxu1  ;;  %v3215_v11 = vsel %vm3145_vm2, %v10122_v9, -inf  ;;  %v3206_v12 = vsel %vm3145_vm2, %v10116_v2, -inf  ;;  %v10184_v5 = vpop.trf.xlu1 }
 0x11b   : > { %v3212_v18 = vsel %vm3145_vm2, %v10124_v10, -inf  ;;  %11548 = vst [vmem:[#allocation15_spill] sm:$0xff] %v10184_v5 }
 0x11e   : > { %3216 = vmax.xlane.f32.xlu0 %v3215_v11  ;;  %3207 = vmax.xlane.f32.xlu1 %v3206_v12 }
 0x120   : > { %v10130_v15 = vpop.f32.mrb[12].mxu0 }
 0x121   : > { %v10132_v16 = vpop.f32.mrb[13].mxu0  ;;  %v3221_v19 = vsel %vm3145_vm2, %v10130_v15, -inf  ;;  %v10138_v25 = vpop.f32.mrb[12].mxu1 }
 0x122   : > { %3213 = vmax.xlane.f32.xlu0 %v3212_v18  ;;  %3222 = vmax.xlane.f32.xlu1 %v3221_v19  ;;  %v10140_v0 = vpop.f32.mrb[13].mxu1  ;;  %v3227_v45 = vsel %vm3145_vm2, %v10138_v25, -inf  ;;  %v3218_v48 = vsel %vm3145_vm2, %v10132_v16, -inf }
 0x123   : > { %v3224_v58 = vsel %vm3145_vm2, %v10140_v0, -inf }
 0x126   : > { %3228 = vmax.xlane.f32.xlu0 %v3227_v45  ;;  %3219 = vmax.xlane.f32.xlu1 %v3218_v48 }
 0x128   : > { %v10148_v49 = vpop.f32.mrb[14].mxu0 }
 0x129   : > { %v10152_v53 = vpop.f32.mrb[15].mxu0  ;;  %v3233_v59 = vsel %vm3145_vm2, %v10148_v49, -inf  ;;  %v10158_v62 = vpop.f32.mrb[14].mxu1 }
 0x12a   : > { %3225 = vmax.xlane.f32.xlu0 %v3224_v58  ;;  %3234 = vmax.xlane.f32.xlu1 %v3233_v59  ;;  %v10160_v63 = vpop.f32.mrb[15].mxu1  ;;  %v3239_v22 = vsel %vm3145_vm2, %v10158_v62, -inf  ;;  %v3230_v24 = vsel %vm3145_vm2, %v10152_v53, -inf  ;;  %v10198_v58 = vpop.trf.xlu1 }
 0x12b   : > { %v3236_v56 = vsel %vm3145_vm2, %v10160_v63, -inf  ;;  %11549 = vst [vmem:[#allocation16_spill] sm:$0xff] %v10198_v58 }
 0x12e   : > { %3240 = vmax.xlane.f32.xlu0 %v3239_v22  ;;  %3231 = vmax.xlane.f32.xlu1 %v3230_v24 }
 0x130   : > { %v10168_v36 = vpop.f32.mrb[16].mxu0 }
 0x131   : > { %v10170_v54 = vpop.f32.mrb[17].mxu0  ;;  %v3501_v6 = vsel %vm3145_vm2, %v10168_v36, -inf  ;;  %v10176_v8 = vpop.f32.mrb[16].mxu1 }
 0x132   : > { %3237 = vmax.xlane.f32.xlu0 %v3236_v56  ;;  %3502 = vmax.xlane.f32.xlu1 %v3501_v6  ;;  %v10178_v21 = vpop.f32.mrb[17].mxu1  ;;  %v3507_v3 = vsel %vm3145_vm2, %v10176_v8, -inf  ;;  %v3498_v18 = vsel %vm3145_vm2, %v10170_v54, -inf  ;;  %v10208_v6 = vpop.trf.xlu1 }
 0x133   : > { %v3504_v23 = vsel %vm3145_vm2, %v10178_v21, -inf  ;;  %11550 = vst [vmem:[#allocation17_spill] sm:$0xff] %v10208_v6  ;;  %v10262_v6 = vpop.trf.xlu0 }
 0x134   : > { %11559 = vst [vmem:[#allocation26_spill] sm:$0xff] %v10262_v6 }
 0x136   : > { %3505 = vmax.xlane.f32.xlu0 %v3504_v23  ;;  %3508 = vmax.xlane.f32.xlu1 %v3507_v3  ;;  %v10222_v31 = vpop.trf.xlu1 }
 0x137   : > { %11551 = vst [vmem:[#allocation18_spill] sm:$0xff] %v10222_v31  ;;  %v10278_v37 = vpop.trf.xlu0 }
 0x138   : > { %v10186_v11 = vpop.f32.mrb[18].mxu0  ;;  %11564 = vst [vmem:[#allocation31_spill] sm:$0xff] %v10278_v37 }
 0x139   : > { %v10188_v12 = vpop.f32.mrb[19].mxu0  ;;  %v10192_v19 = vpop.f32.mrb[18].mxu1  ;;  %v3513_v59 = vsel %vm3145_vm2, %v10186_v11, -inf }
 0x13a   : > { %3499 = vmax.xlane.f32.xlu1 %v3498_v18  ;;  %v3510_v45 = vsel %vm3145_vm2, %v10188_v12, -inf  ;;  %v10196_v48 = vpop.f32.mrb[19].mxu1  ;;  %v3519_v24 = vsel %vm3145_vm2, %v10192_v19, -inf  ;;  %v10240_v38 = vpop.trf.xlu1 }
 0x13b   : > { %3511 = vmax.xlane.f32.xlu0 %v3510_v45  ;;  %v3516_v22 = vsel %vm3145_vm2, %v10196_v48, -inf  ;;  %11552 = vst [vmem:[#allocation19_spill] sm:$0xff] %v10240_v38  ;;  %v10290_v33 = vpop.trf.xlu0 }
 0x13c   : > { %11567 = vst [vmem:[#allocation34_spill] sm:$0xff] %v10290_v33 }
 0x13e   : > { %3514 = vmax.xlane.f32.xlu1 %v3513_v59  ;;  %v10256_v38 = vpop.trf.xlu1 }
 0x13f   : > { %3517 = vmax.xlane.f32.xlu0 %v3516_v22  ;;  %11558 = vst [vmem:[#allocation25_spill] sm:$0xff] %v10256_v38 }
 0x140   : > { %v10206_v56 = vpop.f32.mrb[20].mxu0 }
 0x141   : > { %v10210_v23 = vpop.f32.mrb[21].mxu0  ;;  %v10212_v3 = vpop.f32.mrb[20].mxu1  ;;  %v3525_v59 = vsel %vm3145_vm2, %v10206_v56, -inf }
 0x142   : > { %3520 = vmax.xlane.f32.xlu1 %v3519_v24  ;;  %v3522_v18 = vsel %vm3145_vm2, %v10210_v23, -inf  ;;  %v10216_v45 = vpop.f32.mrb[21].mxu1  ;;  %v3531_v29 = vsel %vm3145_vm2, %v10212_v3, -inf  ;;  %v10268_v52 = vpop.trf.xlu1 }
 0x143   : > { %3523 = vmax.xlane.f32.xlu0 %v3522_v18  ;;  %v3528_v22 = vsel %vm3145_vm2, %v10216_v45, -inf  ;;  %11560 = vst [vmem:[#allocation27_spill] sm:$0xff] %v10268_v52 }
 0x146   : > { %3526 = vmax.xlane.f32.xlu1 %v3525_v59 }
 0x147   : > { %3529 = vmax.xlane.f32.xlu0 %v3528_v22 }
 0x148   : > { %v10226_v24 = vpop.f32.mrb[22].mxu0 }
 0x149   : > { %v10228_v28 = vpop.f32.mrb[23].mxu0  ;;  %v10230_v27 = vpop.f32.mrb[22].mxu1  ;;  %v3537_v59 = vsel %vm3145_vm2, %v10226_v24, -inf }
 0x14a   : > { %3532 = vmax.xlane.f32.xlu1 %v3531_v29  ;;  %v3534_v18 = vsel %vm3145_vm2, %v10228_v28, -inf  ;;  %v10234_v39 = vpop.f32.mrb[23].mxu1  ;;  %v3543_v29 = vsel %vm3145_vm2, %v10230_v27, -inf }
 0x14b   : > { %3535 = vmax.xlane.f32.xlu0 %v3534_v18  ;;  %v3540_v22 = vsel %vm3145_vm2, %v10234_v39, -inf }
 0x14e   : > { %3538 = vmax.xlane.f32.xlu1 %v3537_v59 }
 0x14f   : > { %3541 = vmax.xlane.f32.xlu0 %v3540_v22 }
 0x150   : > { %v10246_v26 = vpop.f32.mrb[24].mxu0 }
 0x151   : > { %11554 = vst [vmem:[#allocation21_spill] sm:$0xff] %v10246_v26  ;;  %v10248_v31 = vpop.f32.mrb[25].mxu0  ;;  %v10250_v18 = vpop.f32.mrb[24].mxu1  ;;  %v3549_v59 = vsel %vm3145_vm2, %v10246_v26, -inf }
 0x152   : > { %11555 = vst [vmem:[#allocation22_spill] sm:$0xff] %v10248_v31  ;;  %11556 = vst [vmem:[#allocation23_spill] sm:$0xff] %v10250_v18  ;;  %3544 = vmax.xlane.f32.xlu1 %v3543_v29  ;;  %v3546_v5 = vsel %vm3145_vm2, %v10248_v31, -inf  ;;  %v10254_v35 = vpop.f32.mrb[25].mxu1  ;;  %v3555_v29 = vsel %vm3145_vm2, %v10250_v18, -inf }
 0x153   : > { %11557 = vst [vmem:[#allocation24_spill] sm:$0xff] %v10254_v35  ;;  %3547 = vmax.xlane.f32.xlu0 %v3546_v5  ;;  %v3552_v22 = vsel %vm3145_vm2, %v10254_v35, -inf }
 0x156   : > { %3550 = vmax.xlane.f32.xlu1 %v3549_v59 }
 0x157   : > { %3553 = vmax.xlane.f32.xlu0 %v3552_v22 }
 0x158   : > { %v10266_v58 = vpop.f32.mrb[26].mxu0 }
 0x159   : > { %v10270_v30 = vpop.f32.mrb[27].mxu0  ;;  %v10272_v5 = vpop.f32.mrb[26].mxu1  ;;  %v3561_v59 = vsel %vm3145_vm2, %v10266_v58, -inf }
 0x15a   : > { %11561 = vst [vmem:[#allocation28_spill] sm:$0xff] %v10270_v30  ;;  %11562 = vst [vmem:[#allocation29_spill] sm:$0xff] %v10272_v5  ;;  %3556 = vmax.xlane.f32.xlu1 %v3555_v29  ;;  %v3558_v38 = vsel %vm3145_vm2, %v10270_v30, -inf  ;;  %v10276_v40 = vpop.f32.mrb[27].mxu1  ;;  %v3567_v52 = vsel %vm3145_vm2, %v10272_v5, -inf  ;;  %v10286_v29 = vpop.trf.xlu1 }
 0x15b   : > { %11563 = vst [vmem:[#allocation30_spill] sm:$0xff] %v10276_v40  ;;  %3559 = vmax.xlane.f32.xlu0 %v3558_v38  ;;  %v3564_v22 = vsel %vm3145_vm2, %v10276_v40, -inf  ;;  %11565 = vst [vmem:[#allocation32_spill] sm:$0xff] %v10286_v29 }
 0x15e   : > { %3562 = vmax.xlane.f32.xlu1 %v3561_v59  ;;  %v10304_v29 = vpop.trf.xlu1 }
 0x15f   : > { %3565 = vmax.xlane.f32.xlu0 %v3564_v22  ;;  %11571 = vst [vmem:[#allocation38_spill] sm:$0xff] %v10304_v29 }
 0x160   : > { %v10288_v6 = vpop.f32.mrb[28].mxu0 }
 0x161   : > { %11566 = vst [vmem:[#allocation33_spill] sm:$0xff] %v10288_v6  ;;  %v10292_v30 = vpop.f32.mrb[29].mxu0  ;;  %v10294_v38 = vpop.f32.mrb[28].mxu1  ;;  %v3573_v59 = vsel %vm3145_vm2, %v10288_v6, -inf }
 0x162   : > { %11568 = vst [vmem:[#allocation35_spill] sm:$0xff] %v10292_v30  ;;  %11569 = vst [vmem:[#allocation36_spill] sm:$0xff] %v10294_v38  ;;  %3568 = vmax.xlane.f32.xlu1 %v3567_v52  ;;  %v3570_v37 = vsel %vm3145_vm2, %v10292_v30, -inf  ;;  %v10298_v35 = vpop.f32.mrb[29].mxu1  ;;  %v3579_v33 = vsel %vm3145_vm2, %v10294_v38, -inf  ;;  %v10308_v52 = vpop.trf.xlu0 }
 0x163   : > { %11570 = vst [vmem:[#allocation37_spill] sm:$0xff] %v10298_v35  ;;  %3571 = vmax.xlane.f32.xlu0 %v3570_v37  ;;  %v3576_v22 = vsel %vm3145_vm2, %v10298_v35, -inf  ;;  %11572 = vst [vmem:[#allocation39_spill] sm:$0xff] %v10308_v52 }
 0x166   : > { %3574 = vmax.xlane.f32.xlu1 %v3573_v59  ;;  %v10324_v29 = vpop.trf.xlu0 }
 0x167   : > { %3577 = vmax.xlane.f32.xlu0 %v3576_v22  ;;  %v10322_v22 = vpop.trf.xlu1  ;;  %11578 = vst [vmem:[#allocation45_spill] sm:$0xff] %v10324_v29 }
 0x168   : > { %v10310_v31 = vpop.f32.mrb[30].mxu0  ;;  %11577 = vst [vmem:[#allocation44_spill] sm:$0xff] %v10322_v22 }
 0x169   : > { %11573 = vst [vmem:[#allocation40_spill] sm:$0xff] %v10310_v31  ;;  %v10312_v30 = vpop.f32.mrb[30].mxu1  ;;  %v10314_v37 = vpop.f32.mrb[31].mxu0  ;;  %v3585_v59 = vsel %vm3145_vm2, %v10310_v31, -inf }
 0x16a   : > { %11574 = vst [vmem:[#allocation41_spill] sm:$0xff] %v10312_v30  ;;  %11575 = vst [vmem:[#allocation42_spill] sm:$0xff] %v10314_v37  ;;  %v10316_v18 = vpop.f32.mrb[31].mxu1  ;;  %3580 = vmax.xlane.f32.xlu1 %v3579_v33  ;;  %v3591_v52 = vsel %vm3145_vm2, %v10312_v30, -inf  ;;  %v3582_v33 = vsel %vm3145_vm2, %v10314_v37, -inf  ;;  %v10332_v6 = vpop.trf.xlu0 }
 0x16b   : > { %11576 = vst [vmem:[#allocation43_spill] sm:$0xff] %v10316_v18  ;;  %v3588_v35 = vsel %vm3145_vm2, %v10316_v18, -inf  ;;  %v10328_v38 = vpop.trf.xlu1  ;;  %11580 = vst [vmem:[#allocation47_spill] sm:$0xff] %v10332_v6 }
 0x16c   : > { %3589 = vmax.xlane.f32.xlu0 %v3588_v35  ;;  %11579 = vst [vmem:[#allocation46_spill] sm:$0xff] %v10328_v38 }
 0x16e   : > { %3586 = vmax.xlane.f32.xlu1 %v3585_v59  ;;  %v10336_v31 = vpop.trf.xlu0 }
 0x16f   : > { %v10334_v18 = vpop.trf.xlu1  ;;  %11582 = vst [vmem:[#allocation49_spill] sm:$0xff] %v10336_v31 }
 0x170   : > { %11581 = vst [vmem:[#allocation48_spill] sm:$0xff] %v10334_v18 }
 0x172   : > { %3592 = vmax.xlane.f32.xlu1 %v3591_v52 }
 0x173   : > { %v10338_v35 = vpop.trf.xlu1 }
 0x174   : > { %11583 = vst [vmem:[#allocation50_spill] sm:$0xff] %v10338_v35 }
 0x176   : > { %3583 = vmax.xlane.f32.xlu1 %v3582_v33 }
 0x17f   : > { %v3151_v22 = vpop.xlane.xlu0 %3150 }
 0x180   : > { %v3243_v59 = vsub.f32 %v10036_v41, %v3151_v22 }
 0x181   : > { %v3154_v30 = vpop.xlane.xlu1 %3153 }
 0x182   : > { %v3276_v29 = vmul.f32 1.442695, %v3243_v59  ;;  %v3244_v38 = vsub.f32 %v10044_v47, %v3154_v30 }
 0x183   : > { %v3157_v5 = vpop.xlane.xlu0 %3156 }
 0x184   : > { %9159 = vpow2.f32 %v3276_v29  ;;  %v3245_v52 = vsub.f32 %v10038_v42, %v3157_v5  ;;  %v3278_v31 = vmul.f32 1.442695, %v3244_v38 }
 0x186   : > { %v3280_v37 = vmul.f32 1.442695, %v3245_v52 }
 0x187   : > { %v3148_v6 = vpop.xlane.xlu0 %3147  ;;  %v3163_v33 = vpop.xlane.xlu1 %3162 }
 0x188   : > { %9161 = vpow2.f32 %v3280_v37  ;;  %v3242_v18 = vsub.f32 %v10040_v43, %v3148_v6  ;;  %v3247_v35 = vsub.f32 %v10050_v50, %v3163_v33 }
 0x18a   : > { %v3274_v40 = vmul.f32 1.442695, %v3242_v18  ;;  %v3284_v42 = vmul.f32 1.442695, %v3247_v35 }
 0x18b   : > { %v3169_v26 = vpop.xlane.xlu0 %3168  ;;  %v3160_v41 = vpop.xlane.xlu1 %3159 }
 0x18c   : > { %9163 = vpow2.f32 %v3274_v40  ;;  %v3246_v22 = vsub.f32 %v10052_v51, %v3160_v41  ;;  %v3249_v47 = vsub.f32 %v10058_v55, %v3169_v26 }
 0x18d   : > { %9165 = vpow2.f32 %v3278_v31 }
 0x18e   : > { %v10346_v29 = vpop.eup %9159  ;;  %v3282_v30 = vmul.f32 1.442695, %v3246_v22  ;;  %v3288_v40 = vmul.f32 1.442695, %v3249_v47 }
 0x18f   : > { %v3166_v5 = vpop.xlane.xlu0 %3165  ;;  %v3175_v37 = vpop.xlane.xlu1 %3174  ;;  %v3341_v43 = vsel %vm3145_vm2, %v10346_v29, 0.0 }
 0x190   : > { %v3251_v6 = vsub.f32 %v10066_v60, %v3175_v37  ;;  %3342 = vadd.xlane.f32.xlu0 %v3341_v43  ;;  %9167 = vpow2.f32 %v3282_v30  ;;  %v3248_v51 = vsub.f32 %v10060_v57, %v3166_v5 }
 0x191   : > { %9169 = vpow2.f32 %v3284_v42 }
 0x192   : > { %v10352_v50 = vpop.eup %9161  ;;  %v3292_v31 = vmul.f32 1.442695, %v3251_v6  ;;  %v3286_v60 = vmul.f32 1.442695, %v3248_v51 }
 0x193   : > { %v3181_v18 = vpop.xlane.xlu0 %3180  ;;  %v3172_v38 = vpop.xlane.xlu1 %3171  ;;  %v3347_v26 = vsel %vm3145_vm2, %v10352_v50, 0.0 }
 0x194   : > { %v3250_v55 = vsub.f32 %v10068_v61, %v3172_v38  ;;  %3348 = vadd.xlane.f32.xlu1 %v3347_v26  ;;  %9171 = vpow2.f32 %v3292_v31  ;;  %v3253_v59 = vsub.f32 %v10074_v7, %v3181_v18 }
 0x195   : > { %9173 = vpow2.f32 %v3288_v40 }
 0x196   : > { %v10358_v35 = vpop.eup %9163  ;;  %v3290_v52 = vmul.f32 1.442695, %v3250_v55  ;;  %v3296_v61 = vmul.f32 1.442695, %v3253_v59 }
 0x197   : > { %v3178_v33 = vpop.xlane.xlu0 %3177  ;;  %v3187_v41 = vpop.xlane.xlu1 %3186  ;;  %v3338_v57 = vsel %vm3145_vm2, %v10358_v35, 0.0 }
 0x198   : > { %v10363_v22 = vpop.eup %9165  ;;  %v3255_v42 = vsub.f32 %v10082_v32, %v3187_v41  ;;  %3339 = vadd.xlane.f32.xlu0 %v3338_v57  ;;  %9175 = vpow2.f32 %v3290_v52  ;;  %v3252_v47 = vsub.f32 %v10076_v14, %v3178_v33 }
 0x199   : > { %9177 = vpow2.f32 %v3286_v60  ;;  %v3344_v43 = vsel %vm3145_vm2, %v10363_v22, 0.0 }
 0x19a   : > { %v3300_v30 = vmul.f32 1.442695, %v3255_v42  ;;  %v10367_v5 = vpop.eup %9167  ;;  %v3294_v14 = vmul.f32 1.442695, %v3252_v47 }
 0x19b   : > { %v3193_v7 = vpop.xlane.xlu0 %3192  ;;  %v3184_v37 = vpop.xlane.xlu1 %3183  ;;  %v3350_v32 = vsel %vm3145_vm2, %v10367_v5, 0.0 }
 0x19c   : > { %v10371_v6 = vpop.eup %9169  ;;  %v3254_v40 = vsub.f32 %v10084_v34, %v3184_v37  ;;  %3345 = vadd.xlane.f32.xlu0 %v3344_v43  ;;  %9179 = vpow2.f32 %v3300_v30  ;;  %3351 = vadd.xlane.f32.xlu1 %v3350_v32  ;;  %v3257_v51 = vsub.f32 %v10090_v44, %v3193_v7 }
 0x19d   : > { %9181 = vpow2.f32 %v3296_v61  ;;  %v3353_v55 = vsel %vm3145_vm2, %v10371_v6, 0.0 }
 0x19e   : > { %v3298_v31 = vmul.f32 1.442695, %v3254_v40  ;;  %v10377_v18 = vpop.eup %9171  ;;  %v3304_v44 = vmul.f32 1.442695, %v3257_v51 }
 0x19f   : > { %v3190_v38 = vpop.xlane.xlu0 %3189  ;;  %v3199_v26 = vpop.xlane.xlu1 %3198  ;;  %v3365_v59 = vsel %vm3145_vm2, %v10377_v18, 0.0 }
 0x1a0   : > { %v10381_v60 = vpop.eup %9173  ;;  %v3259_v34 = vsub.f32 %v10098_v4, %v3199_v26  ;;  %3354 = vadd.xlane.f32.xlu0 %v3353_v55  ;;  %9183 = vpow2.f32 %v3298_v31  ;;  %3366 = vadd.xlane.f32.xlu1 %v3365_v59  ;;  %v3256_v52 = vsub.f32 %v10092_v46, %v3190_v38 }
 0x1a1   : > { %9185 = vpow2.f32 %v3294_v14  ;;  %v3359_v61 = vsel %vm3145_vm2, %v10381_v60, 0.0 }
 0x1a2   : > { %v3308_v33 = vmul.f32 1.442695, %v3259_v34  ;;  %v10387_v41 = vpop.eup %9175  ;;  %v3302_v46 = vmul.f32 1.442695, %v3256_v52 }
 0x1a3   : > { %v3205_v57 = vpop.xlane.xlu0 %3204  ;;  %v3196_v42 = vpop.xlane.xlu1 %3195  ;;  %v3362_v30 = vsel %vm3145_vm2, %v10387_v41, 0.0 }
 0x1a4   : > { %v10391_v47 = vpop.eup %9177  ;;  %v3258_v4 = vsub.f32 %v10100_v13, %v3196_v42  ;;  %3360 = vadd.xlane.f32.xlu0 %v3359_v61  ;;  %9187 = vpow2.f32 %v3308_v33  ;;  %3363 = vadd.xlane.f32.xlu1 %v3362_v30  ;;  %v3261_v7 = vsub.f32 %v10106_v17, %v3205_v57 }
 0x1a5   : > { %9189 = vpow2.f32 %v3304_v44  ;;  %v3356_v14 = vsel %vm3145_vm2, %v10391_v47, 0.0 }
 0x1a6   : > { %v3306_v37 = vmul.f32 1.442695, %v3258_v4  ;;  %v10397_v43 = vpop.eup %9179  ;;  %v3312_v17 = vmul.f32 1.442695, %v3261_v7 }
 0x1a7   : > { %v3202_v40 = vpop.xlane.xlu0 %3201  ;;  %v3211_v32 = vpop.xlane.xlu1 %3210  ;;  %v3377_v31 = vsel %vm3145_vm2, %v10397_v43, 0.0 }
 0x1a8   : > { %v10401_v51 = vpop.eup %9181  ;;  %v3263_v13 = vsub.f32 %v10114_v1, %v3211_v32  ;;  %3357 = vadd.xlane.f32.xlu0 %v3356_v14  ;;  %9191 = vpow2.f32 %v3306_v37  ;;  %3378 = vadd.xlane.f32.xlu1 %v3377_v31  ;;  %v3260_v38 = vsub.f32 %v10108_v20, %v3202_v40 }
 0x1a9   : > { %9193 = vpow2.f32 %v3302_v46  ;;  %v3371_v44 = vsel %vm3145_vm2, %v10401_v51, 0.0 }
 0x1aa   : > { %v3316_v26 = vmul.f32 1.442695, %v3263_v13  ;;  %v10407_v55 = vpop.eup %9183  ;;  %v3310_v20 = vmul.f32 1.442695, %v3260_v38 }
 0x1ab   : > { %v3217_v34 = vpop.xlane.xlu0 %3216  ;;  %v3208_v59 = vpop.xlane.xlu1 %3207  ;;  %v3374_v33 = vsel %vm3145_vm2, %v10407_v55, 0.0 }
 0x1ac   : > { %v10411_v52 = vpop.eup %9185  ;;  %v3262_v1 = vsub.f32 %v10116_v2, %v3208_v59  ;;  %3372 = vadd.xlane.f32.xlu0 %v3371_v44  ;;  %9195 = vpow2.f32 %v3316_v26  ;;  %3375 = vadd.xlane.f32.xlu1 %v3374_v33  ;;  %v3265_v57 = vsub.f32 %v10122_v9, %v3217_v34 }
 0x1ad   : > { %9197 = vpow2.f32 %v3312_v17  ;;  %v3368_v46 = vsel %vm3145_vm2, %v10411_v52, 0.0 }
 0x1ae   : > { %v3314_v42 = vmul.f32 1.442695, %v3262_v1  ;;  %v10417_v61 = vpop.eup %9187  ;;  %v3320_v9 = vmul.f32 1.442695, %v3265_v57 }
 0x1af   : > { %v3214_v4 = vpop.xlane.xlu0 %3213  ;;  %v3223_v30 = vpop.xlane.xlu1 %3222  ;;  %v3389_v37 = vsel %vm3145_vm2, %v10417_v61, 0.0 }
 0x1b0   : > { %v10421_v7 = vpop.eup %9189  ;;  %v3267_v2 = vsub.f32 %v10130_v15, %v3223_v30  ;;  %3369 = vadd.xlane.f32.xlu0 %v3368_v46  ;;  %9199 = vpow2.f32 %v3314_v42  ;;  %3390 = vadd.xlane.f32.xlu1 %v3389_v37  ;;  %v3264_v40 = vsub.f32 %v10124_v10, %v3214_v4 }
 0x1b1   : > { %9201 = vpow2.f32 %v3310_v20  ;;  %v3383_v17 = vsel %vm3145_vm2, %v10421_v7, 0.0 }
 0x1b2   : > { %v3324_v32 = vmul.f32 1.442695, %v3267_v2  ;;  %v10427_v14 = vpop.eup %9191  ;;  %v3318_v10 = vmul.f32 1.442695, %v3264_v40 }
 0x1b3   : > { %v3229_v13 = vpop.xlane.xlu0 %3228  ;;  %v3220_v31 = vpop.xlane.xlu1 %3219  ;;  %v3386_v34 = vsel %vm3145_vm2, %v10427_v14, 0.0 }
 0x1b4   : > { %v10431_v38 = vpop.eup %9193  ;;  %v3269_v15 = vsub.f32 %v10138_v25, %v3229_v13  ;;  %v3266_v26 = vsub.f32 %v10132_v16, %v3220_v31  ;;  %3384 = vadd.xlane.f32.xlu0 %v3383_v17  ;;  %9203 = vpow2.f32 %v3324_v32  ;;  %3387 = vadd.xlane.f32.xlu1 %v3386_v34 }
 0x1b5   : > { %9205 = vpow2.f32 %v3320_v9  ;;  %v3380_v20 = vsel %vm3145_vm2, %v10431_v38, 0.0 }
 0x1b6   : > { %v3322_v59 = vmul.f32 1.442695, %v3266_v26  ;;  %v10437_v44 = vpop.eup %9195  ;;  %v3328_v25 = vmul.f32 1.442695, %v3269_v15 }
 0x1b7   : > { %v3226_v1 = vpop.xlane.xlu0 %3225  ;;  %v3235_v33 = vpop.xlane.xlu1 %3234  ;;  %v3401_v42 = vsel %vm3145_vm2, %v10437_v44, 0.0 }
 0x1b8   : > { %v10441_v57 = vpop.eup %9197  ;;  %v3271_v16 = vsub.f32 %v10148_v49, %v3235_v33  ;;  %3381 = vadd.xlane.f32.xlu0 %v3380_v20  ;;  %9207 = vpow2.f32 %v3322_v59  ;;  %3402 = vadd.xlane.f32.xlu1 %v3401_v42  ;;  %v3268_v4 = vsub.f32 %v10140_v0, %v3226_v1 }
 0x1b9   : > { %9209 = vpow2.f32 %v3318_v10  ;;  %v3395_v9 = vsel %vm3145_vm2, %v10441_v57, 0.0 }
 0x1ba   : > { %v3332_v30 = vmul.f32 1.442695, %v3271_v16  ;;  %v10447_v46 = vpop.eup %9199  ;;  %9211 = vpow2.f32 %v3328_v25  ;;  %v3326_v0 = vmul.f32 1.442695, %v3268_v4 }
 0x1bb   : > { %v3241_v2 = vpop.xlane.xlu0 %3240  ;;  %v3232_v37 = vpop.xlane.xlu1 %3231  ;;  %v3398_v13 = vsel %vm3145_vm2, %v10447_v46, 0.0 }
 0x1bc   : > { %v10451_v40 = vpop.eup %9201  ;;  %v3273_v49 = vsub.f32 %v10158_v62, %v3241_v2  ;;  %v3270_v32 = vsub.f32 %v10152_v53, %v3232_v37  ;;  %3396 = vadd.xlane.f32.xlu0 %v3395_v9  ;;  %9213 = vpow2.f32 %v3332_v30  ;;  %3399 = vadd.xlane.f32.xlu1 %v3398_v13 }
 0x1bd   : > { %v3392_v10 = vsel %vm3145_vm2, %v10451_v40, 0.0 }
 0x1be   : > { %v3336_v31 = vmul.f32 1.442695, %v3273_v49  ;;  %v10457_v17 = vpop.eup %9203  ;;  %v3330_v15 = vmul.f32 1.442695, %v3270_v32 }
 0x1bf   : > { %v3238_v26 = vpop.xlane.xlu0 %3237  ;;  %v3503_v34 = vpop.xlane.xlu1 %3502  ;;  %v3413_v62 = vsel %vm3145_vm2, %v10457_v17, 0.0 }
 0x1c0   : > { %v10461_v59 = vpop.eup %9205  ;;  %9215 = vpow2.f32 %v3336_v31  ;;  %v3272_v53 = vsub.f32 %v10160_v63, %v3238_v26  ;;  %3393 = vadd.xlane.f32.xlu0 %v3392_v10  ;;  %3414 = vadd.xlane.f32.xlu1 %v3413_v62  ;;  %v3595_v20 = vsub.f32 %v10168_v36, %v3503_v34 }
 0x1c1   : > { %9217 = vpow2.f32 %v3326_v0  ;;  %v3407_v42 = vsel %vm3145_vm2, %v10461_v59, 0.0 }
 0x1c2   : > { %v10466_v1 = vpop.eup %9207  ;;  %9219 = vpow2.f32 %v3330_v15  ;;  %v3334_v33 = vmul.f32 1.442695, %v3272_v53  ;;  %v3628_v37 = vmul.f32 1.442695, %v3595_v20 }
 0x1c3   : > { %v3506_v25 = vpop.xlane.xlu0 %3505  ;;  %v3509_v16 = vpop.xlane.xlu1 %3508  ;;  %v3410_v63 = vsel %vm3145_vm2, %v10466_v1, 0.0 }
 0x1c4   : > { %v10471_v4 = vpop.eup %9209  ;;  %3408 = vadd.xlane.f32.xlu0 %v3407_v42  ;;  %3411 = vadd.xlane.f32.xlu1 %v3410_v63  ;;  %9221 = vpow2.f32 %v3334_v33  ;;  %v3597_v36 = vsub.f32 %v10176_v8, %v3509_v16  ;;  %v3596_v33 = vsub.f32 %v10178_v21, %v3506_v25 }
 0x1c5   : > { %v10475_v30 = vpop.eup %9211  ;;  %v3404_v49 = vsel %vm3145_vm2, %v10471_v4, 0.0  ;;  %9223 = vpow2.f32 %v3628_v37 }
 0x1c6   : > { %v10477_v2 = vpop.eup %9213  ;;  %v3419_v31 = vsel %vm3145_vm2, %v10475_v30, 0.0  ;;  %v3632_v15 = vmul.f32 1.442695, %v3597_v36  ;;  %v3630_v36 = vmul.f32 1.442695, %v3596_v33 }
 0x1c7   : > { %v3500_v9 = vpop.xlane.xlu1 %3499  ;;  %v3425_v13 = vsel %vm3145_vm2, %v10477_v2, 0.0 }
 0x1c8   : > { %v3512_v32 = vpop.xlane.xlu0 %3511  ;;  %3405 = vadd.xlane.f32.xlu0 %v3404_v49  ;;  %3426 = vadd.xlane.f32.xlu1 %v3425_v13  ;;  %v3594_v26 = vsub.f32 %v10170_v54, %v3500_v9  ;;  %9225 = vpow2.f32 %v3632_v15 }
 0x1ca   : > { %v10484_v0 = vpop.eup %9215  ;;  %v3626_v20 = vmul.f32 1.442695, %v3594_v26 }
 0x1cb   : > { %v3515_v8 = vpop.xlane.xlu1 %3514  ;;  %v3431_v34 = vsel %vm3145_vm2, %v10484_v0, 0.0  ;;  %v10491_v10 = vpop.eup %9217 }
 0x1cc   : > { %v3518_v53 = vpop.xlane.xlu0 %3517  ;;  %3420 = vadd.xlane.f32.xlu0 %v3419_v31  ;;  %v10493_v62 = vpop.eup %9219  ;;  %3432 = vadd.xlane.f32.xlu1 %v3431_v34  ;;  %v3416_v42 = vsel %vm3145_vm2, %v10491_v10, 0.0  ;;  %9227 = vpow2.f32 %v3626_v20  ;;  %v3599_v9 = vsub.f32 %v10186_v11, %v3515_v8 }
 0x1cd   : > { %v3422_v63 = vsel %vm3145_vm2, %v10493_v62, 0.0  ;;  %9229 = vpow2.f32 %v3630_v36 }
 0x1ce   : > { %v10500_v37 = vpop.eup %9221  ;;  %v3636_v15 = vmul.f32 1.442695, %v3599_v9 }
 0x1cf   : > { %v3521_v16 = vpop.xlane.xlu1 %3520  ;;  %v3428_v25 = vsel %vm3145_vm2, %v10500_v37, 0.0  ;;  %v10505_v13 = vpop.eup %9223 }
 0x1d0   : > { %v3524_v54 = vpop.xlane.xlu0 %3523  ;;  %3417 = vadd.xlane.f32.xlu0 %v3416_v42  ;;  %3423 = vadd.xlane.f32.xlu1 %v3422_v63  ;;  %v3601_v26 = vsub.f32 %v10192_v19, %v3521_v16  ;;  %v3693_v11 = vsel %vm3145_vm2, %v10505_v13, 0.0  ;;  %9231 = vpow2.f32 %v3636_v15 }
 0x1d1   : > { %v3602_v31 = vsub.f32 %v10210_v23, %v3524_v54  ;;  %v3598_v23 = vsub.f32 %v10188_v12, %v3512_v32 }
 0x1d2   : > { %v10512_v8 = vpop.eup %9225  ;;  %v3640_v54 = vmul.f32 1.442695, %v3601_v26 }
 0x1d3   : > { %v3527_v49 = vpop.xlane.xlu1 %3526  ;;  %v3642_v42 = vmul.f32 1.442695, %v3602_v31 }
 0x1d4   : > { %v3530_v21 = vpop.xlane.xlu0 %3529  ;;  %3429 = vadd.xlane.f32.xlu1 %v3428_v25 }
 0x1d5   : > { %v3604_v63 = vsub.f32 %v10216_v45, %v3530_v21  ;;  %v3600_v45 = vsub.f32 %v10196_v48, %v3518_v53 }
 0x1d6   : > { %v10518_v16 = vpop.eup %9227 }
 0x1d7   : > { %v3533_v34 = vpop.xlane.xlu1 %3532  ;;  %v3646_v9 = vmul.f32 1.442695, %v3604_v63  ;;  %v3690_v21 = vsel %vm3145_vm2, %v10518_v16, 0.0  ;;  %v10526_v15 = vpop.eup %9229 }
 0x1d8   : > { %v3605_v33 = vsub.f32 %v10212_v3, %v3533_v34  ;;  %v3536_v20 = vpop.xlane.xlu0 %3535  ;;  %3694 = vadd.xlane.f32.xlu1 %v3693_v11  ;;  %v3699_v3 = vsel %vm3145_vm2, %v10512_v8, 0.0  ;;  %v3634_v34 = vmul.f32 1.442695, %v3598_v23  ;;  %v3638_v11 = vmul.f32 1.442695, %v3600_v45 }
 0x1d9   : > { %v3696_v53 = vsel %vm3145_vm2, %v10526_v15, 0.0 }
 0x1da   : > { %v3648_v25 = vmul.f32 1.442695, %v3605_v33  ;;  %v10534_v63 = vpop.eup %9231 }
 0x1db   : > { %v3539_v36 = vpop.xlane.xlu1 %3538 }
 0x1dc   : > { %9233 = vpow2.f32 %v3648_v25  ;;  %v3542_v19 = vpop.xlane.xlu0 %3541  ;;  %3700 = vadd.xlane.f32.xlu1 %v3699_v3  ;;  %v3607_v31 = vsub.f32 %v10226_v24, %v3539_v36  ;;  %v3603_v24 = vsub.f32 %v10206_v56, %v3527_v49  ;;  %v3606_v25 = vsub.f32 %v10228_v28, %v3536_v20 }
 0x1dd   : > { %9235 = vpow2.f32 %v3642_v42 }
 0x1de   : > { %9237 = vpow2.f32 %v3640_v54  ;;  %v3652_v26 = vmul.f32 1.442695, %v3607_v31  ;;  %v3650_v20 = vmul.f32 1.442695, %v3606_v25  ;;  %v3608_v31 = vsub.f32 %v10234_v39, %v3542_v19  ;;  %v11585_v19 = vld [vmem:[#allocation21_spill] sm:$0xff]  ;;  %v11586_v25 = vld [vmem:[#allocation30_spill] sm:$0xff] }
 0x1df   : > { %v3545_v12 = vpop.xlane.xlu1 %3544  ;;  %9239 = vpow2.f32 %v3646_v9  ;;  %v3705_v9 = vsel %vm3145_vm2, %v10534_v63, 0.0 }
 0x1e0   : > { %v10522_v32 = vpop.xlane.xlu0 %3547  ;;  %3691 = vadd.xlane.f32.xlu1 %v3690_v21  ;;  %v3609_v33 = vsub.f32 %v10230_v27, %v3545_v12  ;;  %9241 = vpow2.f32 %v3634_v34  ;;  %v3644_v27 = vmul.f32 1.442695, %v3603_v24  ;;  %v3654_v39 = vmul.f32 1.442695, %v3608_v31 }
 0x1e1   : > { %9243 = vpow2.f32 %v3652_v26 }
 0x1e2   : > { %v3656_v54 = vmul.f32 1.442695, %v3609_v33  ;;  %9245 = vpow2.f32 %v3638_v11 }
 0x1e3   : > { %v3551_v42 = vpop.xlane.xlu1 %3550 }
 0x1e4   : > { %v10530_v48 = vpop.xlane.xlu0 %3553  ;;  %3697 = vadd.xlane.f32.xlu1 %v3696_v53  ;;  %9247 = vpow2.f32 %v3656_v54  ;;  %v3611_v24 = vsub.f32 %v11585_v19, %v3551_v42 }
 0x1e5   : > { %9249 = vpow2.f32 %v3644_v27 }
 0x1e6   : > { %v10537_v23 = vpop.eup %9233  ;;  %9251 = vpow2.f32 %v3650_v20  ;;  %v3660_v42 = vmul.f32 1.442695, %v3611_v24 }
 0x1e7   : > { %11584 = vst [vmem:[#allocation51_spill] sm:$0xff] %v10537_v23  ;;  %v3557_v36 = vpop.xlane.xlu1 %3556  ;;  %v3723_v56 = vsel %vm3145_vm2, %v10537_v23, 0.0  ;;  %v10541_v49 = vpop.eup %9235 }
 0x1e8   : > { %v10543_v3 = vpop.xlane.xlu0 %3559  ;;  %3724 = vadd.xlane.f32.xlu0 %v3723_v56  ;;  %v10547_v28 = vpop.eup %9237  ;;  %3706 = vadd.xlane.f32.xlu1 %v3705_v9  ;;  %v3714_v45 = vsel %vm3145_vm2, %v10541_v49, 0.0  ;;  %v11588_v9 = vld [vmem:[#allocation29_spill] sm:$0xff] }
 0x1e9   : > { %v10552_v12 = vpop.eup %9239  ;;  %v3711_v33 = vsel %vm3145_vm2, %v10547_v28, 0.0 }
 0x1ea   : > { %v10557_v11 = vpop.eup %9241  ;;  %v3720_v56 = vsel %vm3145_vm2, %v10552_v12, 0.0 }
 0x1eb   : > { %v3563_v34 = vpop.xlane.xlu1 %3562  ;;  %v3702_v20 = vsel %vm3145_vm2, %v10557_v11, 0.0 }
 0x1ec   : > { %v3615_v21 = vsub.f32 %v10266_v58, %v3563_v34  ;;  %v3566_v26 = vpop.xlane.xlu0 %3565  ;;  %3715 = vadd.xlane.f32.xlu0 %v3714_v45  ;;  %3712 = vadd.xlane.f32.xlu1 %v3711_v33  ;;  %v10563_v58 = vpop.eup %9243  ;;  %v11589_v45 = vld [vmem:[#allocation23_spill] sm:$0xff] }
 0x1ed   : > { %v3616_v54 = vsub.f32 %v11586_v25, %v3566_v26  ;;  %11587 = vst [vmem:[#allocation21_spill] sm:$0xff] %v10563_v58  ;;  %v10568_v31 = vpop.eup %9245  ;;  %v3729_v25 = vsel %vm3145_vm2, %v10563_v58, 0.0 }
 0x1ee   : > { %v3668_v53 = vmul.f32 1.442695, %v3615_v21  ;;  %v3613_v21 = vsub.f32 %v11589_v45, %v3557_v36  ;;  %v11592_v36 = vld [vmem:[#allocation22_spill] sm:$0xff] }
 0x1ef   : > { %v3569_v27 = vpop.xlane.xlu1 %3568  ;;  %v3670_v33 = vmul.f32 1.442695, %v3616_v54  ;;  %v3610_v24 = vsub.f32 %v11592_v36, %v10522_v32  ;;  %v11596_v36 = vld [vmem:[#allocation35_spill] sm:$0xff] }
 0x1f0   : > { %9253 = vpow2.f32 %v3668_v53  ;;  %v3617_v34 = vsub.f32 %v11588_v9, %v3569_v27  ;;  %3721 = vadd.xlane.f32.xlu0 %v3720_v56  ;;  %3703 = vadd.xlane.f32.xlu1 %v3702_v20  ;;  %v10573_v53 = vpop.eup %9247  ;;  %v11591_v27 = vld [vmem:[#allocation33_spill] sm:$0xff]  ;;  %v3708_v9 = vsel %vm3145_vm2, %v10568_v31, 0.0  ;;  %v3664_v54 = vmul.f32 1.442695, %v3613_v21 }
 0x1f1   : > { %9255 = vpow2.f32 %v3654_v39  ;;  %11590 = vst [vmem:[#allocation30_spill] sm:$0xff] %v10573_v53  ;;  %v10578_v39 = vpop.eup %9249  ;;  %v3658_v32 = vmul.f32 1.442695, %v3610_v24 }
 0x1f2   : > { %v3672_v26 = vmul.f32 1.442695, %v3617_v34  ;;  %v3572_v34 = vpop.xlane.xlu0 %3571  ;;  %v10582_v20 = vpop.eup %9251 }
 0x1f3   : > { %v3575_v19 = vpop.xlane.xlu1 %3574 }
 0x1f4   : > { %9257 = vpow2.f32 %v3672_v26  ;;  %v3619_v56 = vsub.f32 %v11591_v27, %v3575_v19  ;;  %3730 = vadd.xlane.f32.xlu0 %v3729_v25  ;;  %3709 = vadd.xlane.f32.xlu1 %v3708_v9  ;;  %v3735_v19 = vsel %vm3145_vm2, %v10573_v53, 0.0  ;;  %v11593_v25 = vld [vmem:[#allocation36_spill] sm:$0xff]  ;;  %v3717_v9 = vsel %vm3145_vm2, %v10578_v39, 0.0 }
 0x1f5   : > { %9259 = vpow2.f32 %v3660_v42  ;;  %v11595_v42 = vld [vmem:[#allocation24_spill] sm:$0xff]  ;;  %v3618_v53 = vsub.f32 %v11596_v36, %v3572_v34 }
 0x1f6   : > { %9261 = vpow2.f32 %v3670_v33  ;;  %v3676_v45 = vmul.f32 1.442695, %v3619_v56  ;;  %v3612_v21 = vsub.f32 %v11595_v42, %v10530_v48  ;;  %v3726_v33 = vsel %vm3145_vm2, %v10582_v20, 0.0 }
 0x1f7   : > { %v3581_v26 = vpop.xlane.xlu1 %3580  ;;  %9263 = vpow2.f32 %v3664_v54  ;;  %v11598_v54 = vld [vmem:[#allocation28_spill] sm:$0xff]  ;;  %v3674_v34 = vmul.f32 1.442695, %v3618_v53 }
 0x1f8   : > { %v3621_v27 = vsub.f32 %v11593_v25, %v3581_v26  ;;  %3736 = vadd.xlane.f32.xlu0 %v3735_v19  ;;  %3718 = vadd.xlane.f32.xlu1 %v3717_v9  ;;  %9265 = vpow2.f32 %v3676_v45  ;;  %v3578_v25 = vpop.xlane.xlu0 %3577  ;;  %v3662_v48 = vmul.f32 1.442695, %v3612_v21  ;;  %v3614_v42 = vsub.f32 %v11598_v54, %v10543_v3  ;;  %v11599_v45 = vld [vmem:[#allocation37_spill] sm:$0xff] }
 0x1f9   : > { %9267 = vpow2.f32 %v3658_v32 }
 0x1fa   : > { %v10589_v58 = vpop.eup %9253  ;;  %v3680_v26 = vmul.f32 1.442695, %v3621_v27  ;;  %v3620_v27 = vsub.f32 %v11599_v45, %v3578_v25  ;;  %v3666_v32 = vmul.f32 1.442695, %v3614_v42  ;;  %v11604_v42 = vld [vmem:[#allocation41_spill] sm:$0xff] }
 0x1fb   : > { %11594 = vst [vmem:[#allocation29_spill] sm:$0xff] %v10589_v58  ;;  %v10595_v56 = vpop.eup %9255  ;;  %v3753_v19 = vsel %vm3145_vm2, %v10589_v58, 0.0  ;;  %v3587_v9 = vpop.xlane.xlu1 %3586 }
 0x1fc   : > { %3727 = vadd.xlane.f32.xlu0 %v3726_v33  ;;  %3754 = vadd.xlane.f32.xlu1 %v3753_v19  ;;  %v3732_v23 = vsel %vm3145_vm2, %v10595_v56, 0.0  ;;  %9269 = vpow2.f32 %v3680_v26  ;;  %v3678_v3 = vmul.f32 1.442695, %v3620_v27  ;;  %v11601_v19 = vld [vmem:[#allocation40_spill] sm:$0xff] }
 0x1fd   : > { %9271 = vpow2.f32 %v3662_v48  ;;  %v3623_v54 = vsub.f32 %v11601_v19, %v3587_v9 }
 0x1fe   : > { %v10600_v24 = vpop.eup %9257  ;;  %9273 = vpow2.f32 %v3674_v34 }
 0x1ff   : > { %11597 = vst [vmem:[#allocation23_spill] sm:$0xff] %v10600_v24  ;;  %v3759_v36 = vsel %vm3145_vm2, %v10600_v24, 0.0  ;;  %v10609_v58 = vpop.eup %9259  ;;  %v3593_v21 = vpop.xlane.xlu1 %3592  ;;  %9275 = vpow2.f32 %v3666_v32  ;;  %v3684_v48 = vmul.f32 1.442695, %v3623_v54  ;;  %v11606_v32 = vld [vmem:[#allocation42_spill] sm:$0xff]  ;;  %v11609_v24 = vld [vmem:[#allocation43_spill] sm:$0xff] }
 0x200   : > { %3733 = vadd.xlane.f32.xlu0 %v3732_v23  ;;  %v10611_v33 = vpop.eup %9261  ;;  %3760 = vadd.xlane.f32.xlu1 %v3759_v36  ;;  %v3741_v53 = vsel %vm3145_vm2, %v10609_v58, 0.0  ;;  %9277 = vpow2.f32 %v3678_v3  ;;  %v3625_v34 = vsub.f32 %v11604_v42, %v3593_v21 }
 0x201   : > { %11600 = vst [vmem:[#allocation33_spill] sm:$0xff] %v10611_v33  ;;  %v10616_v26 = vpop.eup %9263  ;;  %v3756_v25 = vsel %vm3145_vm2, %v10611_v33, 0.0  ;;  %9279 = vpow2.f32 %v3684_v48 }
 0x202   : > { %11602 = vst [vmem:[#allocation22_spill] sm:$0xff] %v10616_v26  ;;  %v10620_v23 = vpop.eup %9265  ;;  %v3747_v9 = vsel %vm3145_vm2, %v10616_v26, 0.0  ;;  %v11618_v26 = vld [vmem:[#allocation8_spill] sm:$0xff] }
 0x203   : > { %11603 = vst [vmem:[#allocation36_spill] sm:$0xff] %v10620_v23  ;;  %v10625_v45 = vpop.eup %9267  ;;  %v3584_v27 = vpop.xlane.xlu1 %3583  ;;  %v3765_v36 = vsel %vm3145_vm2, %v10620_v23, 0.0 }
 0x204   : > { %3742 = vadd.xlane.f32.xlu0 %v3741_v53  ;;  %3757 = vadd.xlane.f32.xlu1 %v3756_v25  ;;  %v3688_v53 = vmul.f32 1.442695, %v3625_v34  ;;  %v3622_v3 = vsub.f32 %v11606_v32, %v3584_v27  ;;  %v3738_v21 = vsel %vm3145_vm2, %v10625_v45, 0.0  ;;  %v3590_v25 = vpop.xlane.xlu0 %3589 }
 0x205   : > { %v3624_v33 = vsub.f32 %v11609_v24, %v3590_v25 }
 0x206   : > { %v10629_v19 = vpop.eup %9269  ;;  %9281 = vpow2.f32 %v3688_v53  ;;  %v3682_v48 = vmul.f32 1.442695, %v3622_v3 }
 0x207   : > { %11605 = vst [vmem:[#allocation24_spill] sm:$0xff] %v10629_v19  ;;  %v10634_v54 = vpop.eup %9271  ;;  %v3771_v42 = vsel %vm3145_vm2, %v10629_v19, 0.0 }
 0x208   : > { %3748 = vadd.xlane.f32.xlu0 %v3747_v9  ;;  %3766 = vadd.xlane.f32.xlu1 %v3765_v36  ;;  %11607 = vst [vmem:[#allocation35_spill] sm:$0xff] %v10634_v54  ;;  %v10638_v9 = vpop.eup %9273  ;;  %v3744_v34 = vsel %vm3145_vm2, %v10634_v54, 0.0  ;;  %9283 = vpow2.f32 %v3682_v48 }
 0x209   : > { %11608 = vst [vmem:[#allocation28_spill] sm:$0xff] %v10638_v9  ;;  %v10643_v27 = vpop.eup %9275  ;;  %v3762_v36 = vsel %vm3145_vm2, %v10638_v9, 0.0 }
 0x20a   : > { %11610 = vst [vmem:[#allocation37_spill] sm:$0xff] %v10643_v27  ;;  %v10647_v32 = vpop.eup %9277 }
 0x20b   : > { %11611 = vst [vmem:[#allocation40_spill] sm:$0xff] %v10647_v32  ;;  %v3768_v24 = vsel %vm3145_vm2, %v10647_v32, 0.0  ;;  %v10653_v53 = vpop.eup %9279 }
 0x20c   : > { %3739 = vadd.xlane.f32.xlu0 %v3738_v21  ;;  %3772 = vadd.xlane.f32.xlu1 %v3771_v42  ;;  %v3686_v21 = vmul.f32 1.442695, %v3624_v33  ;;  %v3750_v42 = vsel %vm3145_vm2, %v10643_v27, 0.0  ;;  %11612 = vst [vmem:[#allocation41_spill] sm:$0xff] %v10653_v53  ;;  %v3777_v3 = vsel %vm3145_vm2, %v10653_v53, 0.0 }
 0x20e   : > { %9285 = vpow2.f32 %v3686_v21 }
 0x210   : > { %3745 = vadd.xlane.f32.xlu0 %v3744_v34  ;;  %3763 = vadd.xlane.f32.xlu1 %v3762_v36  ;;  %v10657_v25 = vpop.eup %9281 }
 0x211   : > { %11613 = vst [vmem:[#allocation42_spill] sm:$0xff] %v10657_v25  ;;  %v3783_v33 = vsel %vm3145_vm2, %v10657_v25, 0.0 }
 0x212   : > { %v10661_v48 = vpop.eup %9283 }
 0x213   : > { %11614 = vst [vmem:[#allocation43_spill] sm:$0xff] %v10661_v48  ;;  %v3774_v34 = vsel %vm3145_vm2, %v10661_v48, 0.0 }
 0x214   : > { %3751 = vadd.xlane.f32.xlu0 %v3750_v42  ;;  %3769 = vadd.xlane.f32.xlu1 %v3768_v24 }
 0x218   : > { %3778 = vadd.xlane.f32.xlu1 %v3777_v3  ;;  %v10665_v36 = vpop.eup %9285 }
 0x219   : > { %11615 = vst [vmem:[#allocation52_spill] sm:$0xff] %v10665_v36  ;;  %v3780_v21 = vsel %vm3145_vm2, %v10665_v36, 0.0 }
 0x21c   : > { %3784 = vadd.xlane.f32.xlu1 %v3783_v33 }
 0x21d   : > { %v3343_v42 = vpop.xlane.xlu0 %3342 }
 0x21e   : > { %9287 = vrcp.f32 %v3343_v42 }
 0x220   : > { %3775 = vadd.xlane.f32.xlu1 %v3774_v34 }
 0x221   : > { %v3349_v3 = vpop.xlane.xlu1 %3348 }
 0x224   : > { %3781 = vadd.xlane.f32.xlu1 %v3780_v21 }
 0x225   : > { %v3340_v24 = vpop.xlane.xlu0 %3339 }
 0x226   : > { %9289 = vrcp.f32 %v3340_v24 }
 0x227   : > { %9291 = vrcp.f32 %v3349_v3  ;;  %v11617_v3 = vld [vmem:[#allocation26_spill] sm:$0xff] }
 0x228   : > { %v9288_v32 = vpop.eup %9287 }
 0x229   : > { %v3346_v25 = vpop.xlane.xlu0 %3345  ;;  %v3352_v53 = vpop.xlane.xlu1 %3351  ;;  %v3467_v42 = vmul.f32 %v9288_v32, %v10346_v29 }
 0x22a   : > { %9293 = vrcp.f32 %v3346_v25  ;;  %v11616_v25 = vld [vmem:[#allocation20_spill] sm:$0xff] }
 0x22b   : > { %9295 = vrcp.f32 %v3352_v53  ;;  %v9035_v53 = vpack.c.bf16 %v11617_v3, %v11616_v25 }
 0x22d   : > { %v3355_v33 = vpop.xlane.xlu0 %3354  ;;  %v3367_v19 = vpop.xlane.xlu1 %3366 }
 0x22e   : > { %9297 = vrcp.f32 %v3355_v33 }
 0x22f   : > { %9299 = vrcp.f32 %v3367_v19 }
 0x230   : > { %v9290_v48 = vpop.eup %9289 }
 0x231   : > { %v3361_v23 = vpop.xlane.xlu0 %3360  ;;  %v3466_v34 = vmul.f32 %v9290_v48, %v10358_v35  ;;  %v3364_v36 = vpop.xlane.xlu1 %3363 }
 0x232   : > { %v9292_v21 = vpop.eup %9291  ;;  %9301 = vrcp.f32 %v3364_v36  ;;  %v11619_v36 = vld [vmem:[#allocation31_spill] sm:$0xff] }
 0x233   : > { %8507 = vmatprep.mubr.msk.f32.mxu0 %vm3145_vm2, %v3466_v34  ;;  %9303 = vrcp.f32 %v3361_v23  ;;  %v3469_v19 = vmul.f32 %v9292_v21, %v10352_v50  ;;  %v11620_v34 = vld [vmem:[#allocation34_spill] sm:$0xff] }
 0x234   : > { %v9294_v24 = vpop.eup %9293  ;;  %8508 = vmatmul.mubr.msk.f32.vlgmr.msra.gmra.mrb[32].mxu0 %vm3145_vm2, %v3467_v42  ;;  %v9039_v42 = vpack.c.bf16 %v11620_v34, %v11619_v36 }
 0x235   : > { %v9296_v33 = vpop.eup %9295  ;;  %9030 = vmatpush3.bf16.msra.mxu0 %v11618_v26  ;;  %v3358_v9 = vpop.xlane.xlu0 %3357  ;;  %v3468_v35 = vmul.f32 %v9294_v24, %v10363_v22  ;;  %v11621_v26 = vld [vmem:[#allocation11_spill] sm:$0xff] }
 0x236   : > { %9036 = vmatprep.subr.bf16.mxu0 %v9035_v53  ;;  %9305 = vrcp.f32 %v3358_v9  ;;  %v3379_v29 = vpop.xlane.xlu1 %3378  ;;  %v3470_v32 = vmul.f32 %v9296_v33, %v10367_v5  ;;  %v11622_v9 = vld [vmem:[#allocation39_spill] sm:$0xff]  ;;  %v11623_v5 = vld [vmem:[#allocation45_spill] sm:$0xff] }
 0x237   : > { %8514 = vmatprep.mubr.msk.f32.mxu1 %vm3145_vm2, %v3468_v35  ;;  %9307 = vrcp.f32 %v3379_v29  ;;  %v9043_v21 = vpack.c.bf16 %v11623_v5, %v11622_v9  ;;  %v10694_v29 = vld [vmem:[%s336_s16] sm:$0xff] }
 0x238   : > { %v9298_v48 = vpop.eup %9297  ;;  %8521 = vmatprep.mubr.msk.f32.mxu0 %vm3145_vm2, %v3470_v32  ;;  %8515 = vmatmul.mubr.msk.f32.vlgmr.msra.gmra.mrb[32].mxu1 %vm3145_vm2, %v3469_v19 }
 0x239   : > { %9034 = vmatpush3.bf16.msra.mxu1 %v11621_v26  ;;  %v3373_v22 = vpop.xlane.xlu0 %3372  ;;  %v3471_v50 = vmul.f32 %v9298_v48, %v10371_v6  ;;  %v9300_v24 = vpop.eup %9299 }
 0x23a   : > { %9040 = vmatprep.subr.bf16.mxu1 %v9039_v42  ;;  %v3376_v23 = vpop.xlane.xlu1 %3375  ;;  %v3475_v48 = vmul.f32 %v9300_v24, %v10377_v18  ;;  %v11626_v24 = vld [vmem:[#allocation47_spill] sm:$0xff] }
 0x23b   : > { %9309 = vrcp.f32 %v3376_v23  ;;  %8522 = vmatmul.mubr.msk.f32.vlgmr.msra.gmra.mrb[34].mxu0 %vm3145_vm2, %v3471_v50  ;;  %v11624_v50 = vld [vmem:[#allocation12_spill] sm:$0xff]  ;;  %v11625_v23 = vld [vmem:[#allocation13_spill] sm:$0xff] }
 0x23c   : > { %9038 = vmatpush3.bf16.msra.mxu0 %v9035_v53  ;;  %v9302_v33 = vpop.eup %9301  ;;  %9311 = vrcp.f32 %v3373_v22  ;;  %v9051_v54 = vpack.c.bf16 %v11625_v23, %v11624_v50 }
 0x23d   : > { %9044 = vmatprep.subr.bf16.mxu0 %v9043_v21  ;;  %v3370_v35 = vpop.xlane.xlu0 %3369  ;;  %v3474_v19 = vmul.f32 %v9302_v33, %v10387_v41  ;;  %v9304_v32 = vpop.eup %9303 }
 0x23e   : > { %9313 = vrcp.f32 %v3370_v35  ;;  %v3391_v6 = vpop.xlane.xlu1 %3390  ;;  %v3473_v33 = vmul.f32 %v9304_v32, %v10381_v60  ;;  %v11627_v35 = vld [vmem:[#allocation49_spill] sm:$0xff] }
 0x23f   : > { %8535 = vmatprep.mubr.msk.f32.mxu0 %vm3145_vm2, %v3474_v19  ;;  %9315 = vrcp.f32 %v3391_v6  ;;  %v9047_v19 = vpack.c.bf16 %v11627_v35, %v11626_v24 }
 0x240   : > { %v9306_v26 = vpop.eup %9305  ;;  %8536 = vmatmul.mubr.msk.f32.vlgmr.msra.gmra.mrb[36].mxu0 %vm3145_vm2, %v3475_v48 }
 0x241   : > { %420 = vxpose.xlu0.b32.start.end [1/1] (short) %v10694_v29, 128  ;;  %v3385_v53 = vpop.xlane.xlu0 %3384  ;;  %v3472_v22 = vmul.f32 %v9306_v26, %v10391_v47  ;;  %9046 = vmatpush3.bf16.msra.mxu0 %v9043_v21  ;;  %v9308_v18 = vpop.eup %9307  ;;  %v11628_v26 = vld [vmem:[#allocation16_spill] sm:$0xff] }
 0x242   : > { %v3388_v41 = vpop.xlane.xlu1 %3387  ;;  %9052 = vmatprep.subr.bf16.mxu0 %v9051_v54  ;;  %v3479_v6 = vmul.f32 %v9308_v18, %v10397_v43  ;;  %v11631_v18 = vld [vmem:[#allocation15_spill] sm:$0xff] }
 0x243   : > { %9317 = vrcp.f32 %v3388_v41  ;;  %8528 = vmatprep.mubr.msk.f32.mxu1 %vm3145_vm2, %v3472_v22  ;;  %v11629_v22 = vld [vmem:[#allocation17_spill] sm:$0xff] }
 0x244   : > { %8529 = vmatmul.mubr.msk.f32.vlgmr.msra.gmra.mrb[34].mxu1 %vm3145_vm2, %v3473_v33  ;;  %9319 = vrcp.f32 %v3385_v53  ;;  %v9059_v41 = vpack.c.bf16 %v11629_v22, %v11628_v26 }
 0x245   : > { %v9310_v48 = vpop.eup %9309  ;;  %9042 = vmatpush3.bf16.msra.mxu1 %v9039_v42  ;;  %v3382_v27 = vpop.xlane.xlu0 %3381 }
 0x246   : > { %9321 = vrcp.f32 %v3382_v27  ;;  %9048 = vmatprep.subr.bf16.mxu1 %v9047_v19  ;;  %v3403_v47 = vpop.xlane.xlu1 %3402  ;;  %v3478_v21 = vmul.f32 %v9310_v48, %v10407_v55  ;;  %v9312_v60 = vpop.eup %9311  ;;  %v11630_v55 = vld [vmem:[#allocation14_spill] sm:$0xff] }
 0x247   : > { %9323 = vrcp.f32 %v3403_v47  ;;  %v3477_v53 = vmul.f32 %v9312_v60, %v10401_v51  ;;  %v9055_v48 = vpack.c.bf16 %v11631_v18, %v11630_v55 }
 0x248   : > { %v9314_v32 = vpop.eup %9313  ;;  %8549 = vmatprep.mubr.msk.f32.mxu0 %vm3145_vm2, %v3478_v21 }
 0x249   : > { %8550 = vmatmul.mubr.msk.f32.vlgmr.msra.gmra.mrb[38].mxu0 %vm3145_vm2, %v3479_v6  ;;  %v3397_v33 = vpop.xlane.xlu0 %3396  ;;  %v3476_v42 = vmul.f32 %v9314_v32, %v10411_v52  ;;  %v9316_v43 = vpop.eup %9315  ;;  %v11632_v32 = vld [vmem:[#allocation25_spill] sm:$0xff] }
 0x24a   : > { %9054 = vmatpush3.bf16.msra.mxu0 %v9051_v54  ;;  %v3400_v27 = vpop.xlane.xlu1 %3399  ;;  %v3483_v47 = vmul.f32 %v9316_v43, %v10417_v61  ;;  %v11635_v43 = vld [vmem:[#allocation19_spill] sm:$0xff] }
 0x24b   : > { %9060 = vmatprep.subr.bf16.mxu0 %v9059_v41  ;;  %9325 = vrcp.f32 %v3400_v27  ;;  %8542 = vmatprep.mubr.msk.f32.mxu1 %vm3145_vm2, %v3476_v42  ;;  %v11633_v42 = vld [vmem:[#allocation27_spill] sm:$0xff] }
 0x24c   : > { %8543 = vmatmul.mubr.msk.f32.vlgmr.msra.gmra.mrb[36].mxu1 %vm3145_vm2, %v3477_v53  ;;  %9327 = vrcp.f32 %v3397_v33  ;;  %v9067_v27 = vpack.c.bf16 %v11633_v42, %v11632_v32 }
 0x24d   : > { %v9318_v21 = vpop.eup %9317  ;;  %9050 = vmatpush3.bf16.msra.mxu1 %v9047_v19  ;;  %v3394_v6 = vpop.xlane.xlu0 %3393 }
 0x24e   : > { %9329 = vrcp.f32 %v3394_v6  ;;  %9056 = vmatprep.subr.bf16.mxu1 %v9055_v48  ;;  %v3415_v52 = vpop.xlane.xlu1 %3414  ;;  %v3482_v54 = vmul.f32 %v9318_v21, %v10427_v14  ;;  %v9320_v51 = vpop.eup %9319  ;;  %v11634_v14 = vld [vmem:[#allocation18_spill] sm:$0xff] }
 0x24f   : > { %9331 = vrcp.f32 %v3415_v52  ;;  %v3481_v6 = vmul.f32 %v9320_v51, %v10421_v7  ;;  %v9063_v21 = vpack.c.bf16 %v11635_v43, %v11634_v14 }
 0x250   : > { %v9322_v60 = vpop.eup %9321  ;;  %8563 = vmatprep.mubr.msk.f32.mxu0 %vm3145_vm2, %v3482_v54  ;;  %v418_v54 = vcombine.high %v10694_v29, %v10694_v29  ;;  %v11637_v29 = vld [vmem:[#allocation46_spill] sm:$0xff] }
 0x251   : > { %8564 = vmatmul.mubr.msk.f32.vlgmr.msra.gmra.mrb[40].mxu0 %vm3145_vm2, %v3483_v47  ;;  %v3409_v53 = vpop.xlane.xlu0 %3408  ;;  %v3480_v19 = vmul.f32 %v9322_v60, %v10431_v38  ;;  %v9324_v61 = vpop.eup %9323 }
 0x252   : > { %9062 = vmatpush3.bf16.msra.mxu0 %v9059_v41  ;;  %v3412_v33 = vpop.xlane.xlu1 %3411  ;;  %v3487_v51 = vmul.f32 %v9324_v61, %v10437_v44  ;;  %v11639_v61 = vld [vmem:[#allocation38_spill] sm:$0xff] }
 0x253   : > { %9068 = vmatprep.subr.bf16.mxu0 %v9067_v27  ;;  %9333 = vrcp.f32 %v3412_v33  ;;  %8556 = vmatprep.mubr.msk.f32.mxu1 %vm3145_vm2, %v3480_v19  ;;  %v11636_v19 = vld [vmem:[#allocation44_spill] sm:$0xff] }
 0x254   : > { %8557 = vmatmul.mubr.msk.f32.vlgmr.msra.gmra.mrb[38].mxu1 %vm3145_vm2, %v3481_v6  ;;  %9335 = vrcp.f32 %v3409_v53  ;;  %v9075_v33 = vpack.c.bf16 %v11637_v29, %v11636_v19  ;;  %v11645_v29 = vld [vmem:[#allocation10_spill] sm:$0xff] }
 0x255   : > { %v9326_v47 = vpop.eup %9325  ;;  %9058 = vmatpush3.bf16.msra.mxu1 %v9055_v48  ;;  %v3406_v38 = vpop.xlane.xlu0 %3405 }
 0x256   : > { %9337 = vrcp.f32 %v3406_v38  ;;  %9064 = vmatprep.subr.bf16.mxu1 %v9063_v21  ;;  %v3427_v7 = vpop.xlane.xlu1 %3426  ;;  %v3486_v41 = vmul.f32 %v9326_v47, %v10447_v46  ;;  %v9328_v52 = vpop.eup %9327  ;;  %v11638_v46 = vld [vmem:[#allocation32_spill] sm:$0xff] }
 0x257   : > { %452 = vxpose.xlu1.b32.start.end [1/1] (short) %v418_v54, 128  ;;  %v3485_v38 = vmul.f32 %v9328_v52, %v10441_v57  ;;  %v9071_v54 = vpack.c.bf16 %v11639_v61, %v11638_v46  ;;  %9339 = vrcp.f32 %v3427_v7 }
 0x258   : > { %v9330_v60 = vpop.eup %9329  ;;  %8577 = vmatprep.mubr.msk.f32.mxu0 %vm3145_vm2, %v3486_v41 }
 0x259   : > { %8578 = vmatmul.mubr.msk.f32.vlgmr.msra.gmra.mrb[42].mxu0 %vm3145_vm2, %v3487_v51  ;;  %v3421_v53 = vpop.xlane.xlu0 %3420  ;;  %v3484_v48 = vmul.f32 %v9330_v60, %v10451_v40  ;;  %v9332_v44 = vpop.eup %9331 }
 0x25a   : > { %9070 = vmatpush3.bf16.msra.mxu0 %v9067_v27  ;;  %v3433_v6 = vpop.xlane.xlu1 %3432  ;;  %9341 = vrcp.f32 %v3421_v53  ;;  %v3491_v52 = vmul.f32 %v9332_v44, %v10457_v17  ;;  %v11641_v53 = vld [vmem:[#allocation50_spill] sm:$0xff] }
 0x25b   : > { %9076 = vmatprep.subr.bf16.mxu0 %v9075_v33  ;;  %8570 = vmatprep.mubr.msk.f32.mxu1 %vm3145_vm2, %v3484_v48 }
 0x25c   : > { %8571 = vmatmul.mubr.msk.f32.vlgmr.msra.gmra.mrb[40].mxu1 %vm3145_vm2, %v3485_v38 }
 0x25d   : > { %v9334_v47 = vpop.eup %9333  ;;  %9066 = vmatpush3.bf16.msra.mxu1 %v9063_v21  ;;  %v3418_v41 = vpop.xlane.xlu0 %3417 }
 0x25e   : > { %9343 = vrcp.f32 %v3418_v41  ;;  %9072 = vmatprep.subr.bf16.mxu1 %v9071_v54  ;;  %v3424_v40 = vpop.xlane.xlu1 %3423  ;;  %v3490_v27 = vmul.f32 %v9334_v47, %v10466_v1  ;;  %v9336_v57 = vpop.eup %9335  ;;  %v11640_v1 = vld [vmem:[#allocation48_spill] sm:$0xff] }
 0x25f   : > { %9345 = vrcp.f32 %v3424_v40  ;;  %v3489_v60 = vmul.f32 %v9336_v57, %v10461_v59  ;;  %v9079_v48 = vpack.c.bf16 %v11641_v53, %v11640_v1 }
 0x260   : > { %v9338_v51 = vpop.eup %9337  ;;  %8591 = vmatprep.mubr.msk.f32.mxu0 %vm3145_vm2, %v3490_v27  ;;  %9347 = vrcp.f32 %v3433_v6 }
 0x261   : > { %8592 = vmatmul.mubr.msk.f32.vlgmr.msra.gmra.mrb[44].mxu0 %vm3145_vm2, %v3491_v52  ;;  %v3488_v7 = vmul.f32 %v9338_v51, %v10471_v4  ;;  %v9340_v17 = vpop.eup %9339 }
 0x262   : > { %9078 = vmatpush3.bf16.msra.mxu0 %v9075_v33  ;;  %v3430_v21 = vpop.xlane.xlu1 %3429  ;;  %v3495_v40 = vmul.f32 %v9340_v17, %v10477_v2 }
 0x263   : > { %9349 = vrcp.f32 %v3430_v21  ;;  %8584 = vmatprep.mubr.msk.f32.mxu1 %vm3145_vm2, %v3488_v7 }
 0x264   : > { %8585 = vmatmul.mubr.msk.f32.vlgmr.msra.gmra.mrb[42].mxu1 %vm3145_vm2, %v3489_v60  ;;  %v9342_v44 = vpop.eup %9341 }
 0x265   : > { %9074 = vmatpush3.bf16.msra.mxu1 %v9071_v54  ;;  %v3493_v41 = vmul.f32 %v9342_v44, %v10475_v30 }
 0x266   : > { %9080 = vmatprep.subr.bf16.mxu1 %v9079_v48  ;;  %v3695_v38 = vpop.xlane.xlu1 %3694 }
 0x268   : > { %v9344_v47 = vpop.eup %9343 }
 0x269   : > { %v9346_v4 = vpop.eup %9345  ;;  %v3492_v33 = vmul.f32 %v9344_v47, %v10491_v10 }
 0x26a   : > { %v3701_v6 = vpop.xlane.xlu1 %3700  ;;  %v3494_v59 = vmul.f32 %v9346_v4, %v10493_v62  ;;  %v9348_v27 = vpop.eup %9347 }
 0x26b   : > { %8598 = vmatprep.mubr.msk.f32.mxu1 %vm3145_vm2, %v3492_v33  ;;  %v3497_v62 = vmul.f32 %v9348_v27, %v10484_v0 }
 0x26c   : > { %8605 = vmatprep.mubr.msk.f32.mxu0 %vm3145_vm2, %v3494_v59  ;;  %8599 = vmatmul.mubr.msk.f32.vlgmr.msra.gmra.mrb[44].mxu1 %vm3145_vm2, %v3493_v41 }
 0x26d   : > { %v9350_v54 = vpop.eup %9349  ;;  %8606 = vmatmul.mubr.msk.f32.vlgmr.msra.gmra.mrb[46].mxu0 %vm3145_vm2, %v3495_v40  ;;  %9082 = vmatpush3.bf16.msra.mxu1 %v9079_v48 }
 0x26e   : > { %v3692_v57 = vpop.xlane.xlu1 %3691  ;;  %v3496_v10 = vmul.f32 %v9350_v54, %v10500_v37 }
 0x26f   : > { %9351 = vrcp.f32 %v3692_v57 }
 0x270   : > { %8612 = vmatprep.mubr.msk.f32.mxu1 %vm3145_vm2, %v3496_v10 }
 0x271   : > { %8613 = vmatmul.mubr.msk.f32.vlgmr.msra.gmra.mrb[46].mxu1 %vm3145_vm2, %v3497_v62 }
 0x272   : > { %v3698_v30 = vpop.xlane.xlu1 %3697 }
 0x273   : > { %9353 = vrcp.f32 %v3698_v30  ;;  %v11642_v30 = vld [vmem:[#allocation2_spill] sm:$0xff] }
 0x274   : > { %9355 = vrcp.f32 %v3695_v38 }
 0x275   : > { %v10769_v7 = vpop.xlane.xlu0 %3724 }
 0x276   : > { %v3707_v52 = vpop.xlane.xlu1 %3706 }
 0x279   : > { %v9352_v2 = vpop.eup %9351  ;;  %v3716_v0 = vpop.xlane.xlu0 %3715 }
 0x27a   : > { %v3818_v51 = vmul.f32 %v9352_v2, %v10518_v16  ;;  %v10773_v60 = vpop.xlane.xlu1 %3712 }
 0x27c   : > { %8619 = vmatprep.mubr.msk.f32.mxu0 %vm3145_vm2, %v3818_v51  ;;  %v11643_v51 = vld [vmem:[#allocation7_spill] sm:$0xff] }
 0x27d   : > { %v9354_v21 = vpop.eup %9353  ;;  %v10776_v17 = vpop.xlane.xlu0 %3721 }
 0x27e   : > { %v3820_v37 = vmul.f32 %v9354_v21, %v10526_v15  ;;  %v3704_v48 = vpop.xlane.xlu1 %3703  ;;  %v9356_v38 = vpop.eup %9355 }
 0x27f   : > { %9357 = vrcp.f32 %v3704_v48 }
 0x280   : > { %8626 = vmatprep.mubr.msk.f32.mxu1 %vm3145_vm2, %v3820_v37  ;;  %v11644_v37 = vld [vmem:[#allocation9_spill] sm:$0xff]  ;;  %9359 = vrcp.f32 %v3701_v6  ;;  %v3819_v6 = vmul.f32 %v9356_v38, %v10505_v13 }
 0x281   : > { %v10778_v47 = vpop.xlane.xlu0 %3730 }
 0x282   : > { %v3710_v44 = vpop.xlane.xlu1 %3709 }
 0x283   : > { %9361 = vrcp.f32 %v3710_v44 }
 0x284   : > { %9363 = vrcp.f32 %v3707_v52 }
 0x285   : > { %v10782_v16 = vpop.xlane.xlu0 %3736  ;;  %9365 = vrcp.f32 %v3716_v0 }
 0x286   : > { %v10780_v4 = vpop.xlane.xlu1 %3718  ;;  %9367 = vrcp.f32 %v10773_v60  ;;  %v11648_v60 = vld [vmem:[#allocation5_spill] sm:$0xff] }
 0x287   : > { %9369 = vrcp.f32 %v10776_v17 }
 0x288   : > { %9371 = vrcp.f32 %v10780_v4  ;;  %v11649_v4 = vld [vmem:[#allocation6_spill] sm:$0xff] }
 0x289   : > { %v10786_v59 = vpop.xlane.xlu0 %3727  ;;  %v9358_v48 = vpop.eup %9357 }
 0x28a   : > { %v10784_v33 = vpop.xlane.xlu1 %3754  ;;  %v3822_v44 = vmul.f32 %v9358_v48, %v10557_v11  ;;  %v11647_v11 = vld [vmem:[#allocation4_spill] sm:$0xff]  ;;  %9373 = vrcp.f32 %v10786_v59 }
 0x28b   : > { %9375 = vrcp.f32 %v10769_v7 }
 0x28d   : > { %v10790_v41 = vpop.xlane.xlu0 %3733 }
 0x28e   : > { %v10788_v15 = vpop.xlane.xlu1 %3760  ;;  %9377 = vrcp.f32 %v10790_v41 }
 0x28f   : > { %9379 = vrcp.f32 %v10778_v47  ;;  %v11650_v47 = vld [vmem:[#allocation51_spill] sm:$0xff] }
 0x291   : > { %v10794_v27 = vpop.xlane.xlu0 %3742 }
 0x292   : > { %v10792_v40 = vpop.xlane.xlu1 %3757 }
 0x295   : > { %v10798_v57 = vpop.xlane.xlu0 %3748 }
 0x296   : > { %v10796_v54 = vpop.xlane.xlu1 %3766 }
 0x299   : > { %v10802_v62 = vpop.xlane.xlu0 %3739 }
 0x29a   : > { %v10800_v10 = vpop.xlane.xlu1 %3772  ;;  %9381 = vrcp.f32 %v10802_v62 }
 0x29b   : > { %9383 = vrcp.f32 %v10794_v27 }
 0x29d   : > { %v10810_v21 = vpop.xlane.xlu0 %3745 }
 0x29e   : > { %v10806_v2 = vpop.xlane.xlu1 %3763 }
 0x2a1   : > { %v10816_v1 = vpop.xlane.xlu0 %3751 }
 0x2a2   : > { %v10814_v53 = vpop.xlane.xlu1 %3769  ;;  %9385 = vrcp.f32 %v10816_v1 }
 0x2a3   : > { %9387 = vrcp.f32 %v10782_v16 }
 0x2a4   : > { %9389 = vrcp.f32 %v10784_v33 }
 0x2a6   : > { %v10820_v19 = vpop.xlane.xlu1 %3778 }
 0x2b1   : > { %6634 = vrot.lane.b32.xlu1 %v11642_v30, %s9423_s17 }
 0x2b5   : > { %6644 = vrot.lane.b32.xlu1 %v11643_v51, %s9423_s17 }
 0x2b9   : > { %6646 = vrot.lane.b32.xlu1 %v11644_v37, %s9423_s17 }
 0x2bd   : > { %6648 = vrot.lane.b32.xlu1 %v11645_v29, %s9423_s17  ;;  %v10828_v29 = vpop.xlane.xlu1 %3784 }
 0x2c1   : > { %v436_v30 = vpop.trf.xlu0  ;;  %6650 = vrot.lane.b32.xlu1 %v11616_v25, %s9423_s17  ;;  %v11646_v25 = vld [vmem:[#allocation3_spill] sm:$0xff] }
 0x2c2   : > { %6474 = vrot.lane.b32.xlu0 %v436_v30, %s9423_s17 }
 0x2c5   : > { %v437_v51 = vpop.trf.xlu0  ;;  %6652 = vrot.lane.b32.xlu1 %v11617_v3, %s9423_s17 }
 0x2c6   : > { %v9083_v37 = vpack.c.bf16 %v437_v51, %v436_v30  ;;  %6476 = vrot.lane.b32.xlu0 %v437_v51, %s9423_s17  ;;  %v10838_v30 = vpop.xlane.xlu1 %3775 }
 0x2c8   : > { %9084 = vmatprep.subr.bf16.mxu0 %v9083_v37 }
 0x2c9   : > { %v438_v61 = vpop.trf.xlu0  ;;  %9086 = vmatpush3.bf16.msra.mxu0 %v9083_v37  ;;  %6654 = vrot.lane.b32.xlu1 %v11619_v36, %s9423_s17  ;;  %v9360_v36 = vpop.eup %9359  ;;  %9391 = vrcp.f32 %v10810_v21 }
 0x2ca   : > { %6636 = vrot.lane.b32.xlu0 %v11646_v25, %s9423_s17  ;;  %v9362_v37 = vpop.eup %9361  ;;  %v3821_v52 = vmul.f32 %v9360_v36, %v10512_v8  ;;  %v10849_v38 = vpop.xlane.xlu1 %3781  ;;  %9393 = vrcp.f32 %v10806_v2 }
 0x2cb   : > { %v3824_v0 = vmul.f32 %v9362_v37, %v10568_v31  ;;  %v9364_v8 = vpop.eup %9363  ;;  %9395 = vrcp.f32 %v10798_v57 }
 0x2cc   : > { %8620 = vmatmul.mubr.msk.f32.vlgmr.msra.gmra.mrb[48].mxu0 %vm3145_vm2, %v3819_v6  ;;  %v3823_v17 = vmul.f32 %v9364_v8, %v10534_v63 }
 0x2cd   : > { %v439_v3 = vpop.trf.xlu0  ;;  %8633 = vmatprep.mubr.msk.f32.mxu0 %vm3145_vm2, %v3822_v44  ;;  %6656 = vrot.lane.b32.xlu1 %v11620_v34, %s9423_s17 }
 0x2ce   : > { %v9087_v51 = vpack.c.bf16 %v439_v3, %v438_v61  ;;  %6478 = vrot.lane.b32.xlu0 %v438_v61, %s9423_s17 }
 0x2d0   : > { %9088 = vmatprep.subr.bf16.mxu1 %v9087_v51 }
 0x2d1   : > { %v440_v13 = vpop.trf.xlu0  ;;  %9090 = vmatpush3.bf16.msra.mxu1 %v9087_v51  ;;  %6658 = vrot.lane.b32.xlu1 %v11622_v9, %s9423_s17  ;;  %v9366_v9 = vpop.eup %9365  ;;  %9397 = vrcp.f32 %v10796_v54 }
 0x2d2   : > { %6638 = vrot.lane.b32.xlu0 %v11647_v11, %s9423_s17  ;;  %v3826_v25 = vmul.f32 %v9366_v9, %v10541_v49  ;;  %v9368_v63 = vpop.eup %9367  ;;  %9399 = vrcp.f32 %v10792_v40 }
 0x2d3   : > { %v3825_v59 = vmul.f32 %v9368_v63, %v10547_v28  ;;  %v11654_v63 = vld [vmem:[#allocation29_spill] sm:$0xff] }
 0x2d4   : > { %8627 = vmatmul.mubr.msk.f32.vlgmr.msra.gmra.mrb[48].mxu1 %vm3145_vm2, %v3821_v52 }
 0x2d5   : > { %v441_v34 = vpop.trf.xlu0  ;;  %8640 = vmatprep.mubr.msk.f32.mxu1 %vm3145_vm2, %v3824_v0  ;;  %6660 = vrot.lane.b32.xlu1 %v11623_v5, %s9423_s17 }
 0x2d6   : > { %v9091_v61 = vpack.c.bf16 %v441_v34, %v440_v13  ;;  %6480 = vrot.lane.b32.xlu0 %v439_v3, %s9423_s17 }
 0x2d7   : > { %v10858_v31 = vpop.trf.xlu1 }
 0x2d8   : > { %9092 = vmatprep.subr.bf16.mxu0 %v9091_v61 }
 0x2d9   : > { %v442_v48 = vpop.trf.xlu0  ;;  %9094 = vmatpush3.bf16.msra.mxu0 %v9091_v61  ;;  %6662 = vrot.lane.b32.xlu1 %v11626_v24, %s9423_s17  ;;  %v9370_v24 = vpop.eup %9369  ;;  %9401 = vrcp.f32 %v10838_v30 }
 0x2da   : > { %6640 = vrot.lane.b32.xlu0 %v11648_v60, %s9423_s17  ;;  %v3828_v51 = vmul.f32 %v9370_v24, %v10552_v12  ;;  %v9372_v28 = vpop.eup %9371  ;;  %9403 = vrcp.f32 %v10788_v15 }
 0x2db   : > { %v10866_v5 = vpop.trf.xlu1  ;;  %v3827_v7 = vmul.f32 %v9372_v28, %v10578_v39 }
 0x2dc   : > { %8634 = vmatmul.mubr.msk.f32.vlgmr.msra.gmra.mrb[50].mxu0 %vm3145_vm2, %v3823_v17  ;;  %v9115_v1 = vpack.c.bf16 %v10866_v5, %v10858_v31 }
 0x2dd   : > { %v443_v6 = vpop.trf.xlu0  ;;  %8647 = vmatprep.mubr.msk.f32.mxu0 %vm3145_vm2, %v3826_v25  ;;  %6664 = vrot.lane.b32.xlu1 %v11627_v35, %s9423_s17 }
 0x2de   : > { %v9095_v44 = vpack.c.bf16 %v443_v6, %v442_v48  ;;  %6482 = vrot.lane.b32.xlu0 %v440_v13, %s9423_s17 }
 0x2df   : > { %v10875_v49 = vpop.trf.xlu1 }
 0x2e0   : > { %9096 = vmatprep.subr.bf16.mxu1 %v9095_v44 }
 0x2e1   : > { %v444_v3 = vpop.trf.xlu0  ;;  %9098 = vmatpush3.bf16.msra.mxu1 %v9095_v44  ;;  %6666 = vrot.lane.b32.xlu1 %v11624_v50, %s9423_s17  ;;  %v9374_v50 = vpop.eup %9373  ;;  %9405 = vrcp.f32 %v10814_v53  ;;  %v11653_v44 = vld [vmem:[#allocation30_spill] sm:$0xff] }
 0x2e2   : > { %6642 = vrot.lane.b32.xlu0 %v11649_v4, %s9423_s17  ;;  %v3830_v41 = vmul.f32 %v9374_v50, %v10582_v20  ;;  %v9376_v39 = vpop.eup %9375  ;;  %9407 = vrcp.f32 %v10800_v10  ;;  %v11656_v10 = vld [vmem:[#allocation28_spill] sm:$0xff] }
 0x2e3   : > { %v10883_v35 = vpop.trf.xlu1  ;;  %v3829_v62 = vmul.f32 %v9376_v39, %v11650_v47 }
 0x2e4   : > { %8641 = vmatmul.mubr.msk.f32.vlgmr.msra.gmra.mrb[50].mxu1 %vm3145_vm2, %v3825_v59  ;;  %v9119_v30 = vpack.c.bf16 %v10883_v35, %v10875_v49 }
 0x2e5   : > { %v445_v36 = vpop.trf.xlu0  ;;  %8654 = vmatprep.mubr.msk.f32.mxu1 %vm3145_vm2, %v3828_v51  ;;  %6668 = vrot.lane.b32.xlu1 %v11625_v23, %s9423_s17 }
 0x2e6   : > { %v9099_v37 = vpack.c.bf16 %v445_v36, %v444_v3  ;;  %6484 = vrot.lane.b32.xlu0 %v441_v34, %s9423_s17 }
 0x2e7   : > { %v10892_v12 = vpop.trf.xlu1 }
 0x2e8   : > { %9100 = vmatprep.subr.bf16.mxu0 %v9099_v37 }
 0x2e9   : > { %v446_v13 = vpop.trf.xlu0  ;;  %9102 = vmatpush3.bf16.msra.mxu0 %v9099_v37  ;;  %6670 = vrot.lane.b32.xlu1 %v11630_v55, %s9423_s17  ;;  %v9378_v55 = vpop.eup %9377  ;;  %9409 = vrcp.f32 %v10849_v38 }
 0x2ea   : > { %6486 = vrot.lane.b32.xlu0 %v442_v48, %s9423_s17 }
 0x2eb   : > { %v10899_v11 = vpop.trf.xlu1 }
 0x2ec   : > { %8648 = vmatmul.mubr.msk.f32.vlgmr.msra.gmra.mrb[52].mxu0 %vm3145_vm2, %v3827_v7  ;;  %v9123_v2 = vpack.c.bf16 %v10899_v11, %v10892_v12 }
 0x2ed   : > { %v447_v23 = vpop.trf.xlu0  ;;  %8661 = vmatprep.mubr.msk.f32.mxu0 %vm3145_vm2, %v3830_v41  ;;  %6672 = vrot.lane.b32.xlu1 %v11631_v18, %s9423_s17  ;;  %v3832_v18 = vmul.f32 %v9378_v55, %v10595_v56  ;;  %v9380_v56 = vpop.eup %9379  ;;  %9411 = vrcp.f32 %v10820_v19  ;;  %v11659_v55 = vld [vmem:[#allocation33_spill] sm:$0xff] }
 0x2ee   : > { %v9103_v52 = vpack.c.bf16 %v447_v23, %v446_v13  ;;  %6488 = vrot.lane.b32.xlu0 %v443_v6, %s9423_s17  ;;  %v9382_v16 = vpop.eup %9381  ;;  %9413 = vrcp.f32 %v10828_v29  ;;  %v11663_v29 = vld [vmem:[#allocation38_spill] sm:$0xff] }
 0x2ef   : > { %v10908_v20 = vpop.trf.xlu1  ;;  %v9384_v8 = vpop.eup %9383  ;;  %v3834_v9 = vmul.f32 %v9382_v16, %v10625_v45 }
 0x2f0   : > { %9104 = vmatprep.subr.bf16.mxu1 %v9103_v52  ;;  %v3835_v45 = vmul.f32 %v9384_v8, %v10609_v58 }
 0x2f1   : > { %v10911_v0 = vpop.trf.xlu0  ;;  %9106 = vmatpush3.bf16.msra.mxu1 %v9103_v52  ;;  %6674 = vrot.lane.b32.xlu1 %v11628_v26, %s9423_s17 }
 0x2f2   : > { %6490 = vrot.lane.b32.xlu0 %v444_v3, %s9423_s17  ;;  %v11655_v3 = vld [vmem:[#allocation35_spill] sm:$0xff] }
 0x2f3   : > { %v10920_v34 = vpop.trf.xlu1 }
 0x2f4   : > { %8655 = vmatmul.mubr.msk.f32.vlgmr.msra.gmra.mrb[52].mxu1 %vm3145_vm2, %v3829_v62  ;;  %v11660_v62 = vld [vmem:[#allocation43_spill] sm:$0xff] }
 0x2f5   : > { %v10924_v27 = vpop.trf.xlu0  ;;  %8668 = vmatprep.mubr.msk.f32.mxu1 %vm3145_vm2, %v3832_v18  ;;  %6676 = vrot.lane.b32.xlu1 %v11629_v22, %s9423_s17  ;;  %v11651_v22 = vld [vmem:[#allocation21_spill] sm:$0xff] }
 0x2f6   : > { %v9107_v26 = vpack.c.bf16 %v10924_v27, %v10911_v0  ;;  %6492 = vrot.lane.b32.xlu0 %v445_v36, %s9423_s17  ;;  %v3831_v21 = vmul.f32 %v9380_v56, %v11651_v22 }
 0x2f7   : > { %v10936_v33 = vpop.trf.xlu1 }
 0x2f8   : > { %9108 = vmatprep.subr.bf16.mxu0 %v9107_v26 }
 0x2f9   : > { %v10938_v61 = vpop.trf.xlu0  ;;  %9110 = vmatpush3.bf16.msra.mxu0 %v9107_v26  ;;  %6678 = vrot.lane.b32.xlu1 %v11634_v14, %s9423_s17  ;;  %v9386_v14 = vpop.eup %9385 }
 0x2fa   : > { %6494 = vrot.lane.b32.xlu0 %v446_v13, %s9423_s17  ;;  %9116 = vmatprep.subr.bf16.mxu0 %v9115_v1  ;;  %v9388_v54 = vpop.eup %9387  ;;  %v11657_v13 = vld [vmem:[#allocation22_spill] sm:$0xff] }
 0x2fb   : > { %v10950_v48 = vpop.trf.xlu1  ;;  %v9390_v40 = vpop.eup %9389  ;;  %v3833_v53 = vmul.f32 %v9388_v54, %v11653_v44 }
 0x2fc   : > { %8662 = vmatmul.mubr.msk.f32.vlgmr.msra.gmra.mrb[54].mxu0 %vm3145_vm2, %v3831_v21  ;;  %v9392_v17 = vpop.eup %9391  ;;  %v9131_v58 = vpack.c.bf16 %v10950_v48, %v10936_v33  ;;  %v3839_v24 = vmul.f32 %v9390_v40, %v11654_v63  ;;  %v11662_v21 = vld [vmem:[#allocation40_spill] sm:$0xff]  ;;  %v6762_v40 = vld [vmem:[%s11454_s4] sm:$0xff] }
 0x2fd   : > { %v10954_v57 = vpop.trf.xlu0  ;;  %9118 = vmatpush3.bf16.msra.mxu0 %v9115_v1  ;;  %8675 = vmatprep.mubr.msk.f32.mxu0 %vm3145_vm2, %v3834_v9  ;;  %v9394_v15 = vpop.eup %9393  ;;  %v3836_v4 = vmul.f32 %v9392_v17, %v11655_v3  ;;  %v11661_v1 = vld [vmem:[#allocation23_spill] sm:$0xff] }
 0x2fe   : > { %v9111_v60 = vpack.c.bf16 %v10954_v57, %v10938_v61  ;;  %6680 = vrot.lane.b32.xlu1 %v11635_v43, %s9423_s17  ;;  %6496 = vrot.lane.b32.xlu0 %v447_v23, %s9423_s17  ;;  %v11652_v43 = vld [vmem:[#allocation37_spill] sm:$0xff]  ;;  %v9396_v59 = vpop.eup %9395  ;;  %v3842_v37 = vmul.f32 %v9394_v15, %v11656_v10  ;;  %v11658_v23 = vld [vmem:[#allocation36_spill] sm:$0xff] }
 0x2ff   : > { %9124 = vmatprep.subr.bf16.mxu0 %v9123_v2  ;;  %v10967_v25 = vpop.trf.xlu1  ;;  %v3838_v6 = vmul.f32 %v9386_v14, %v11652_v43  ;;  %v9398_v36 = vpop.eup %9397  ;;  %v3837_v7 = vmul.f32 %v9396_v59, %v11657_v13  ;;  %v11666_v43 = vld [vmem:[#allocation44_spill] sm:$0xff] }
 0x300   : > { %9112 = vmatprep.subr.bf16.mxu1 %v9111_v60  ;;  %8676 = vmatmul.mubr.msk.f32.vlgmr.msra.gmra.mrb[56].mxu0 %vm3145_vm2, %v3835_v45  ;;  %v9400_v28 = vpop.eup %9399  ;;  %v3843_v52 = vmul.f32 %v9398_v36, %v11658_v23 }
 0x301   : > { %9114 = vmatpush3.bf16.msra.mxu1 %v9111_v60  ;;  %9126 = vmatpush3.bf16.msra.mxu0 %v9123_v2  ;;  %v9402_v38 = vpop.eup %9401  ;;  %v11664_v60 = vld [vmem:[#allocation24_spill] sm:$0xff] }
 0x302   : > { %6682 = vrot.lane.b32.xlu1 %v11632_v32, %s9423_s17  ;;  %8689 = vmatprep.mubr.msk.f32.mxu0 %vm3145_vm2, %v3838_v6  ;;  %v9127_v32 = vpack.c.bf16 %v10920_v34, %v10908_v20  ;;  %v3846_v18 = vmul.f32 %v9402_v38, %v11660_v62  ;;  %v11667_v6 = vld [vmem:[#allocation41_spill] sm:$0xff] }
 0x303   : > { %6498 = vrot.lane.b32.xlu0 %v10911_v0, %s9423_s17  ;;  %9120 = vmatprep.subr.bf16.mxu1 %v9119_v30  ;;  %v10985_v51 = vpop.trf.xlu1  ;;  %v3840_v0 = vmul.f32 %v9400_v28, %v11659_v55 }
 0x304   : > { %8669 = vmatmul.mubr.msk.f32.vlgmr.msra.gmra.mrb[54].mxu1 %vm3145_vm2, %v3833_v53  ;;  %8690 = vmatmul.mubr.msk.f32.vlgmr.msra.gmra.mrb[58].mxu0 %vm3145_vm2, %v3839_v24  ;;  %v9135_v39 = vpack.c.bf16 %v10985_v51, %v10967_v25  ;;  %v11668_v24 = vld [vmem:[#allocation46_spill] sm:$0xff] }
 0x305   : > { %9132 = vmatprep.subr.bf16.mxu0 %v9131_v58  ;;  %8682 = vmatprep.mubr.msk.f32.mxu1 %vm3145_vm2, %v3836_v4  ;;  %v11669_v4 = vld [vmem:[#allocation42_spill] sm:$0xff] }
 0x306   : > { %6684 = vrot.lane.b32.xlu1 %v11633_v42, %s9423_s17  ;;  %9122 = vmatpush3.bf16.msra.mxu1 %v9119_v30  ;;  %v9404_v42 = vpop.eup %9403  ;;  %v11665_v30 = vld [vmem:[#allocation52_spill] sm:$0xff] }
 0x307   : > { %9134 = vmatpush3.bf16.msra.mxu0 %v9131_v58  ;;  %8703 = vmatprep.mubr.msk.f32.mxu0 %vm3145_vm2, %v3842_v37  ;;  %v10995_v50 = vpop.f32.mrb[32].mxu0  ;;  %v11000_v19 = vpop.trf.xlu1 }
 0x308   : > { %6500 = vrot.lane.b32.xlu0 %v10924_v27, %s9423_s17  ;;  %v11002_v41 = vpop.f32.mrb[33].mxu0  ;;  %9128 = vmatprep.subr.bf16.mxu1 %v9127_v32  ;;  %v9406_v47 = vpop.eup %9405 }
 0x309   : > { %8683 = vmatmul.mubr.msk.f32.vlgmr.msra.gmra.mrb[56].mxu1 %vm3145_vm2, %v3837_v7  ;;  %v9408_v16 = vpop.eup %9407  ;;  %v3844_v8 = vmul.f32 %v9406_v47, %v11662_v21 }
 0x30a   : > { %8704 = vmatmul.mubr.msk.f32.vlgmr.msra.gmra.mrb[60].mxu0 %vm3145_vm2, %v3843_v52  ;;  %6686 = vrot.lane.b32.xlu1 %v11638_v46, %s9423_s17  ;;  %v3841_v46 = vmul.f32 %v9404_v42, %v11661_v1  ;;  %v9410_v2 = vpop.eup %9409  ;;  %v3845_v45 = vmul.f32 %v9408_v16, %v11664_v60 }
 0x30b   : > { %9130 = vmatpush3.bf16.msra.mxu1 %v9127_v32  ;;  %8696 = vmatprep.mubr.msk.f32.mxu1 %vm3145_vm2, %v3840_v0  ;;  %v11014_v27 = vpop.f32.mrb[32].mxu1  ;;  %v11020_v26 = vpop.trf.xlu1  ;;  %v3848_v17 = vmul.f32 %v9410_v2, %v11665_v30  ;;  %v11670_v32 = vld [vmem:[#allocation48_spill] sm:$0xff] }
 0x30c   : > { %8717 = vmatprep.mubr.msk.f32.mxu0 %vm3145_vm2, %v3846_v18  ;;  %6502 = vrot.lane.b32.xlu0 %v10938_v61, %s9423_s17  ;;  %v11022_v56 = vpop.f32.mrb[33].mxu1  ;;  %v9139_v22 = vpack.c.bf16 %v11020_v26, %v11000_v19  ;;  %v9412_v9 = vpop.eup %9411 }
 0x30d   : > { %9136 = vmatprep.subr.bf16.mxu1 %v9135_v39  ;;  %v3847_v58 = vmul.f32 %v9412_v9, %v11667_v6  ;;  %v9414_v63 = vpop.eup %9413 }
 0x30e   : > { %8697 = vmatmul.mubr.msk.f32.vlgmr.msra.gmra.mrb[58].mxu1 %vm3145_vm2, %v3841_v46  ;;  %6688 = vrot.lane.b32.xlu1 %v11663_v29, %s9423_s17  ;;  %v11031_v61 = vpop.f32.mrb[34].mxu0  ;;  %v3849_v59 = vmul.f32 %v9414_v63, %v11669_v4 }
 0x30f   : > { %9138 = vmatpush3.bf16.msra.mxu1 %v9135_v39  ;;  %8710 = vmatprep.mubr.msk.f32.mxu1 %vm3145_vm2, %v3844_v8  ;;  %v11034_v14 = vpop.f32.mrb[35].mxu0  ;;  %v11038_v54 = vpop.trf.xlu1 }
 0x310   : > { %6504 = vrot.lane.b32.xlu0 %v10954_v57, %s9423_s17  ;;  %9140 = vmatprep.subr.bf16.mxu0 %v9139_v22 }
 0x311   : > { %9142 = vmatpush3.bf16.msra.mxu0 %v9139_v22 }
 0x312   : > { %8711 = vmatmul.mubr.msk.f32.vlgmr.msra.gmra.mrb[60].mxu1 %vm3145_vm2, %v3845_v45  ;;  %6690 = vrot.lane.b32.xlu1 %v11666_v43, %s9423_s17 }
 0x313   : > { %8724 = vmatprep.mubr.msk.f32.mxu1 %vm3145_vm2, %v3848_v17  ;;  %8727 = vmatprep.subr.mxu0 %v6762_v40  ;;  %v11053_v57 = vpop.f32.mrb[36].mxu0  ;;  %v11055_v15 = vpop.trf.xlu1 }
 0x314   : > { %6506 = vrot.lane.b32.xlu0 %v10858_v31, %s9423_s17  ;;  %8718 = vmatmul.mubr.msk.f32.vlgmr.msra.gmra.mrb[62].mxu0 %vm3145_vm2, %v3847_v58  ;;  %v9143_v44 = vpack.c.bf16 %v11055_v15, %v11038_v54  ;;  %v11059_v53 = vpop.f32.mrb[37].mxu0 }
 0x315   : > { %8728 = vmatpush3.msra.mxu0 %v6762_v40 }
 0x316   : > { %6692 = vrot.lane.b32.xlu1 %v11668_v24, %s9423_s17  ;;  %9144 = vmatprep.subr.bf16.mxu1 %v9143_v44 }
 0x317   : > { %v11063_v3 = vpop.f32.mrb[34].mxu1  ;;  %9146 = vmatpush3.bf16.msra.mxu1 %v9143_v44 }
 0x318   : > { %6508 = vrot.lane.b32.xlu0 %v10866_v5, %s9423_s17  ;;  %v11067_v31 = vpop.f32.mrb[35].mxu1  ;;  %8777 = vmatprep.subr.mxu1 %v6762_v40  ;;  %v11671_v5 = vld [vmem:[#allocation50_spill] sm:$0xff] }
 0x31a   : > { %6694 = vrot.lane.b32.xlu1 %v11670_v32, %s9423_s17  ;;  %8725 = vmatmul.mubr.msk.f32.vlgmr.msra.gmra.mrb[62].mxu1 %vm3145_vm2, %v3849_v59 }
 0x31b   : > { %8778 = vmatpush3.msra.mxu1 %v6762_v40 }
 0x31c   : > { %6510 = vrot.lane.b32.xlu0 %v10875_v49, %s9423_s17  ;;  %v11075_v36 = vpop.f32.mrb[38].mxu0 }
 0x31d   : > { %v11077_v10 = vpop.f32.mrb[39].mxu0 }
 0x31e   : > { %6696 = vrot.lane.b32.xlu1 %v11671_v5, %s9423_s17 }
 0x31f   : > { %v11081_v37 = vpop.f32.mrb[36].mxu1 }
 0x320   : > { %6512 = vrot.lane.b32.xlu0 %v10883_v35, %s9423_s17  ;;  %v11085_v28 = vpop.f32.mrb[37].mxu1 }
 0x323   : > { %v11170_v8 = vpop.permute.xlu1 %6634 }
 0x324   : > { %6514 = vrot.lane.b32.xlu0 %v10892_v12, %s9423_s17  ;;  %v11089_v38 = vpop.f32.mrb[40].mxu0 }
 0x325   : > { %v11091_v49 = vpop.f32.mrb[41].mxu0 }
 0x327   : > { %v11093_v13 = vpop.f32.mrb[38].mxu1  ;;  %v11175_v29 = vpop.permute.xlu1 %6644 }
 0x328   : > { %6516 = vrot.lane.b32.xlu0 %v10899_v11, %s9423_s17  ;;  %v11097_v7 = vpop.f32.mrb[39].mxu1 }
 0x32b   : > { %v11182_v45 = vpop.permute.xlu1 %6646 }
 0x32c   : > { %6518 = vrot.lane.b32.xlu0 %v10908_v20, %s9423_s17  ;;  %v11101_v35 = vpop.f32.mrb[42].mxu0 }
 0x32d   : > { %v11103_v23 = vpop.f32.mrb[43].mxu0 }
 0x32f   : > { %v11105_v52 = vpop.f32.mrb[40].mxu1  ;;  %v11188_v30 = vpop.permute.xlu1 %6648 }
 0x330   : > { %6520 = vrot.lane.b32.xlu0 %v10920_v34, %s9423_s17  ;;  %v11109_v12 = vpop.f32.mrb[41].mxu1 }
 0x334   : > { %6522 = vrot.lane.b32.xlu0 %v10936_v33, %s9423_s17  ;;  %v11113_v11 = vpop.f32.mrb[44].mxu0  ;;  %v6475_v42 = vpop.permute.xlu0 %6474 }
 0x335   : > { %v11115_v39 = vpop.f32.mrb[45].mxu0  ;;  %v6570_v20 = vsel %vm552_vm0, %v11002_v41, %v6475_v42 }
 0x336   : > { %8729 = vmatprep.mubr.msk.f32.mxu0 %vm6770_vm3, %v6570_v20 }
 0x337   : > { %v11120_v55 = vpop.f32.mrb[42].mxu1 }
 0x338   : > { %6524 = vrot.lane.b32.xlu0 %v10950_v48, %s9423_s17  ;;  %v11124_v34 = vpop.f32.mrb[43].mxu1  ;;  %v6477_v0 = vpop.permute.xlu0 %6476 }
 0x339   : > { %v6571_v33 = vsel %vm552_vm0, %v10995_v50, %v6477_v0 }
 0x33a   : > { %8730 = vmatmul.mubr.msk.f32.vlgmr.msra.gmra.mrb[64].mxu0 %vm6770_vm3, %v6571_v33 }
 0x33c   : > { %6526 = vrot.lane.b32.xlu0 %v10967_v25, %s9423_s17  ;;  %v11131_v47 = vpop.permute.xlu0 %6636 }
 0x33f   : > { %v11133_v41 = vpop.f32.mrb[44].mxu1 }
 0x340   : > { %6528 = vrot.lane.b32.xlu0 %v10985_v51, %s9423_s17  ;;  %v11137_v62 = vpop.f32.mrb[46].mxu0  ;;  %v6479_v48 = vpop.permute.xlu0 %6478 }
 0x341   : > { %v11139_v18 = vpop.f32.mrb[45].mxu1  ;;  %v6572_v50 = vsel %vm552_vm0, %v11022_v56, %v6479_v48  ;;  %v11143_v1 = vpop.f32.mrb[47].mxu0 }
 0x342   : > { %8732 = vmatprep.mubr.msk.f32.mxu0 %vm6770_vm3, %v6572_v50 }
 0x344   : > { %6530 = vrot.lane.b32.xlu0 %v11000_v19, %s9423_s17  ;;  %v11148_v25 = vpop.f32.mrb[46].mxu1  ;;  %v11150_v46 = vpop.permute.xlu0 %6638 }
 0x345   : > { %v11152_v51 = vpop.f32.mrb[47].mxu1 }
 0x348   : > { %6532 = vrot.lane.b32.xlu0 %v11020_v26, %s9423_s17  ;;  %v6481_v16 = vpop.permute.xlu0 %6480 }
 0x349   : > { %v6573_v56 = vsel %vm552_vm0, %v11014_v27, %v6481_v16 }
 0x34a   : > { %8733 = vmatmul.mubr.msk.f32.gmra.mrb[66].mxu0 %vm6770_vm3, %v6573_v56 }
 0x34c   : > { %6534 = vrot.lane.b32.xlu0 %v11038_v54, %s9423_s17  ;;  %v11161_v22 = vpop.permute.xlu0 %6640 }
 0x350   : > { %6536 = vrot.lane.b32.xlu0 %v11055_v15, %s9423_s17  ;;  %v6483_v19 = vpop.permute.xlu0 %6482  ;;  %v11195_v15 = vpop.permute.xlu1 %6650 }
 0x351   : > { %v6574_v21 = vsel %vm552_vm0, %v11034_v14, %v6483_v19 }
 0x352   : > { %8735 = vmatprep.mubr.msk.f32.mxu0 %vm6770_vm3, %v6574_v21 }
 0x354   : > { %v11168_v26 = vpop.permute.xlu0 %6642  ;;  %v11201_v63 = vpop.permute.xlu1 %6652 }
 0x358   : > { %v6485_v27 = vpop.permute.xlu0 %6484 }
 0x359   : > { %v6575_v2 = vsel %vm552_vm0, %v11031_v61, %v6485_v27 }
 0x35a   : > { %8736 = vmatmul.mubr.msk.f32.gmra.mrb[68].mxu0 %vm6770_vm3, %v6575_v2 }
 0x35c   : > { %v6487_v9 = vpop.permute.xlu0 %6486 }
 0x35d   : > { %v6576_v54 = vsel %vm552_vm0, %v11067_v31, %v6487_v9  ;;  %v11206_v31 = vpop.permute.xlu1 %6654 }
 0x35e   : > { %8738 = vmatprep.mubr.msk.f32.mxu0 %vm6770_vm3, %v6576_v54 }
 0x360   : > { %v6489_v14 = vpop.permute.xlu0 %6488 }
 0x361   : > { %v6577_v60 = vsel %vm552_vm0, %v11063_v3, %v6489_v14  ;;  %v11214_v5 = vpop.permute.xlu1 %6656 }
 0x362   : > { %8739 = vmatmul.mubr.msk.f32.gmra.mrb[70].mxu0 %vm6770_vm3, %v6577_v60 }
 0x364   : > { %v6491_v40 = vpop.permute.xlu0 %6490 }
 0x365   : > { %v6578_v61 = vsel %vm552_vm0, %v11059_v53, %v6491_v40  ;;  %v11219_v42 = vpop.permute.xlu1 %6658 }
 0x366   : > { %8741 = vmatprep.mubr.msk.f32.mxu0 %vm6770_vm3, %v6578_v61 }
 0x368   : > { %v6493_v17 = vpop.permute.xlu0 %6492 }
 0x369   : > { %v6579_v43 = vsel %vm552_vm0, %v11053_v57, %v6493_v17  ;;  %v11227_v0 = vpop.permute.xlu1 %6660 }
 0x36a   : > { %8742 = vmatmul.mubr.msk.f32.gmra.mrb[72].mxu0 %vm6770_vm3, %v6579_v43 }
 0x36c   : > { %v6495_v6 = vpop.permute.xlu0 %6494 }
 0x36d   : > { %v6580_v58 = vsel %vm552_vm0, %v11085_v28, %v6495_v6  ;;  %v11232_v50 = vpop.permute.xlu1 %6662 }
 0x36e   : > { %8744 = vmatprep.mubr.msk.f32.mxu0 %vm6770_vm3, %v6580_v58 }
 0x370   : > { %v6497_v44 = vpop.permute.xlu0 %6496 }
 0x371   : > { %v6581_v53 = vsel %vm552_vm0, %v11081_v37, %v6497_v44  ;;  %v11240_v56 = vpop.permute.xlu1 %6664 }
 0x372   : > { %8745 = vmatmul.mubr.msk.f32.gmra.mrb[74].mxu0 %vm6770_vm3, %v6581_v53 }
 0x375   : > { %v6499_v24 = vpop.permute.xlu0 %6498  ;;  %v11245_v27 = vpop.permute.xlu1 %6666 }
 0x376   : > { %v6582_v57 = vsel %vm552_vm0, %v11077_v10, %v6499_v24 }
 0x377   : > { %8747 = vmatprep.mubr.msk.f32.mxu0 %vm6770_vm3, %v6582_v57 }
 0x37a   : > { %v6501_v3 = vpop.permute.xlu0 %6500 }
 0x37b   : > { %v6583_v4 = vsel %vm552_vm0, %v11075_v36, %v6501_v3 }
 0x37c   : > { %8748 = vmatmul.mubr.msk.f32.gmra.mrb[76].mxu0 %vm6770_vm3, %v6583_v4 }
 0x37e   : > { %v6503_v59 = vpop.permute.xlu0 %6502 }
 0x37f   : > { %v6584_v32 = vsel %vm552_vm0, %v11097_v7, %v6503_v59 }
 0x380   : > { %8750 = vmatprep.mubr.msk.f32.mxu0 %vm6770_vm3, %v6584_v32 }
 0x382   : > { %v6505_v37 = vpop.permute.xlu0 %6504 }
 0x383   : > { %v6585_v10 = vsel %vm552_vm0, %v11093_v13, %v6505_v37 }
 0x384   : > { %8751 = vmatmul.mubr.msk.f32.gmra.mrb[78].mxu0 %vm6770_vm3, %v6585_v10 }
 0x386   : > { %v6507_v28 = vpop.permute.xlu0 %6506 }
 0x387   : > { %v6586_v36 = vsel %vm552_vm0, %v11091_v49, %v6507_v28 }
 0x388   : > { %8753 = vmatprep.mubr.msk.f32.mxu0 %vm6770_vm3, %v6586_v36 }
 0x38a   : > { %v6509_v20 = vpop.permute.xlu0 %6508 }
 0x38b   : > { %v6587_v7 = vsel %vm552_vm0, %v11089_v38, %v6509_v20 }
 0x38c   : > { %8754 = vmatmul.mubr.msk.f32.gmra.mrb[80].mxu0 %vm6770_vm3, %v6587_v7 }
 0x38e   : > { %v6511_v33 = vpop.permute.xlu0 %6510 }
 0x38f   : > { %v6588_v13 = vsel %vm552_vm0, %v11109_v12, %v6511_v33 }
 0x390   : > { %8756 = vmatprep.mubr.msk.f32.mxu0 %vm6770_vm3, %v6588_v13 }
 0x392   : > { %v6513_v48 = vpop.permute.xlu0 %6512 }
 0x393   : > { %v6589_v49 = vsel %vm552_vm0, %v11105_v52, %v6513_v48 }
 0x394   : > { %8757 = vmatmul.mubr.msk.f32.gmra.mrb[82].mxu0 %vm6770_vm3, %v6589_v49 }
 0x396   : > { %v6515_v16 = vpop.permute.xlu0 %6514 }
 0x397   : > { %v6590_v38 = vsel %vm552_vm0, %v11103_v23, %v6515_v16 }
 0x398   : > { %8759 = vmatprep.mubr.msk.f32.mxu0 %vm6770_vm3, %v6590_v38 }
 0x39a   : > { %v6517_v19 = vpop.permute.xlu0 %6516 }
 0x39b   : > { %v6591_v12 = vsel %vm552_vm0, %v11101_v35, %v6517_v19 }
 0x39c   : > { %8760 = vmatmul.mubr.msk.f32.gmra.mrb[84].mxu0 %vm6770_vm3, %v6591_v12 }
 0x39e   : > { %v6519_v21 = vpop.permute.xlu0 %6518 }
 0x39f   : > { %v6592_v52 = vsel %vm552_vm0, %v11124_v34, %v6519_v21  ;;  %v8621_v2 = vpop.f32.mrb[48].mxu0  ;;  %v11259_v34 = vpop.permute.xlu1 %6668 }
 0x3a0   : > { %8762 = vmatprep.mubr.msk.f32.mxu0 %vm6770_vm3, %v6592_v52  ;;  %v5218_v23 = vpop.f32.mrb[49].mxu0  ;;  %v6731_v54 = vsel %vm552_vm0, %v8621_v2, %v11131_v47 }
 0x3a1   : > { %v6730_v9 = vsel %vm552_vm0, %v5218_v23, %v11170_v8 }
 0x3a2   : > { %v6521_v14 = vpop.permute.xlu0 %6520  ;;  %8779 = vmatprep.mubr.msk.f32.mxu1 %vm6770_vm3, %v6730_v9 }
 0x3a3   : > { %v6593_v35 = vsel %vm552_vm0, %v11120_v55, %v6521_v14  ;;  %8780 = vmatmul.mubr.msk.f32.vlgmr.msra.gmra.mrb[64].mxu1 %vm6770_vm3, %v6731_v54  ;;  %v11269_v43 = vpop.permute.xlu1 %6670 }
 0x3a4   : > { %8763 = vmatmul.mubr.msk.f32.gmra.mrb[86].mxu0 %vm6770_vm3, %v6593_v35 }
 0x3a6   : > { %v6523_v60 = vpop.permute.xlu0 %6522 }
 0x3a7   : > { %v6594_v40 = vsel %vm552_vm0, %v11115_v39, %v6523_v60  ;;  %v8628_v8 = vpop.f32.mrb[48].mxu1  ;;  %v11278_v44 = vpop.permute.xlu1 %6672 }
 0x3a8   : > { %8765 = vmatprep.mubr.msk.f32.mxu0 %vm6770_vm3, %v6594_v40  ;;  %v5299_v47 = vpop.f32.mrb[49].mxu1  ;;  %v6733_v55 = vsel %vm552_vm0, %v8628_v8, %v11161_v22 }
 0x3a9   : > { %v6732_v61 = vsel %vm552_vm0, %v5299_v47, %v11150_v46 }
 0x3aa   : > { %v6525_v17 = vpop.permute.xlu0 %6524  ;;  %8782 = vmatprep.mubr.msk.f32.mxu1 %vm6770_vm3, %v6732_v61 }
 0x3ab   : > { %v6595_v6 = vsel %vm552_vm0, %v11113_v11, %v6525_v17  ;;  %8783 = vmatmul.mubr.msk.f32.gmra.mrb[66].mxu1 %vm6770_vm3, %v6733_v55  ;;  %v11289_v3 = vpop.permute.xlu1 %6674 }
 0x3ac   : > { %8766 = vmatmul.mubr.msk.f32.gmra.mrb[88].mxu0 %vm6770_vm3, %v6595_v6 }
 0x3ae   : > { %v6527_v39 = vpop.permute.xlu0 %6526 }
 0x3af   : > { %v6596_v58 = vsel %vm552_vm0, %v11139_v18, %v6527_v39  ;;  %v8635_v46 = vpop.f32.mrb[50].mxu0 }
 0x3b0   : > { %8768 = vmatprep.mubr.msk.f32.mxu0 %vm6770_vm3, %v6596_v58  ;;  %v5380_v22 = vpop.f32.mrb[51].mxu0  ;;  %v6735_v11 = vsel %vm552_vm0, %v8635_v46, %v11175_v29 }
 0x3b1   : > { %v6734_v53 = vsel %vm552_vm0, %v5380_v22, %v11168_v26 }
 0x3b2   : > { %v6529_v24 = vpop.permute.xlu0 %6528  ;;  %8785 = vmatprep.mubr.msk.f32.mxu1 %vm6770_vm3, %v6734_v53 }
 0x3b3   : > { %v6597_v57 = vsel %vm552_vm0, %v11133_v41, %v6529_v24  ;;  %8786 = vmatmul.mubr.msk.f32.gmra.mrb[68].mxu1 %vm6770_vm3, %v6735_v11 }
 0x3b4   : > { %8769 = vmatmul.mubr.msk.f32.gmra.mrb[90].mxu0 %vm6770_vm3, %v6597_v57 }
 0x3b6   : > { %v6531_v18 = vpop.permute.xlu0 %6530 }
 0x3b7   : > { %v6598_v4 = vsel %vm552_vm0, %v11143_v1, %v6531_v18  ;;  %v8642_v26 = vpop.f32.mrb[50].mxu1  ;;  %v6677_v1 = vpop.permute.xlu1 %6676 }
 0x3b8   : > { %8771 = vmatprep.mubr.msk.f32.mxu0 %vm6770_vm3, %v6598_v4  ;;  %v5461_v29 = vpop.f32.mrb[51].mxu1  ;;  %v6737_v41 = vsel %vm552_vm0, %v8642_v26, %v11188_v30 }
 0x3b9   : > { %v6736_v59 = vsel %vm552_vm0, %v5461_v29, %v11182_v45 }
 0x3ba   : > { %v6533_v32 = vpop.permute.xlu0 %6532  ;;  %8788 = vmatprep.mubr.msk.f32.mxu1 %vm6770_vm3, %v6736_v59 }
 0x3bb   : > { %v6599_v37 = vsel %vm552_vm0, %v11137_v62, %v6533_v32  ;;  %8789 = vmatmul.mubr.msk.f32.gmra.mrb[70].mxu1 %vm6770_vm3, %v6737_v41  ;;  %v6679_v7 = vpop.permute.xlu1 %6678 }
 0x3bc   : > { %8772 = vmatmul.mubr.msk.f32.gmra.mrb[92].mxu0 %vm6770_vm3, %v6599_v37  ;;  %v11373_v37 = vld [vmem:[%s11455_s5] ss:$0 sm:$0xff] }
 0x3be   : > { %v6535_v10 = vpop.permute.xlu0 %6534 }
 0x3bf   : > { %v6600_v28 = vsel %vm552_vm0, %v11152_v51, %v6535_v10  ;;  %v8649_v36 = vpop.f32.mrb[52].mxu0  ;;  %v6681_v48 = vpop.permute.xlu1 %6680 }
 0x3c0   : > { %8774 = vmatprep.mubr.msk.f32.mxu0 %vm6770_vm3, %v6600_v28  ;;  %v5542_v45 = vpop.f32.mrb[53].mxu0  ;;  %v6739_v20 = vsel %vm552_vm0, %v8649_v36, %v11201_v63 }
 0x3c1   : > { %v6738_v30 = vsel %vm552_vm0, %v5542_v45, %v11195_v15 }
 0x3c2   : > { %v6537_v62 = vpop.permute.xlu0 %6536  ;;  %8791 = vmatprep.mubr.msk.f32.mxu1 %vm6770_vm3, %v6738_v30 }
 0x3c3   : > { %v6601_v33 = vsel %vm552_vm0, %v11148_v25, %v6537_v62  ;;  %8792 = vmatmul.mubr.msk.f32.gmra.mrb[72].mxu1 %vm6770_vm3, %v6739_v20  ;;  %v6683_v49 = vpop.permute.xlu1 %6682 }
 0x3c4   : > { %8775 = vmatmul.mubr.msk.f32.gmra.mrb[94].mxu0 %vm6770_vm3, %v6601_v33 }
 0x3c7   : > { %v8656_v51 = vpop.f32.mrb[52].mxu1 }
 0x3c8   : > { %v5623_v13 = vpop.f32.mrb[53].mxu1  ;;  %v6741_v63 = vsel %vm552_vm0, %v8656_v51, %v11214_v5  ;;  %v6685_v5 = vpop.permute.xlu1 %6684 }
 0x3c9   : > { %v6740_v15 = vsel %vm552_vm0, %v5623_v13, %v11206_v31 }
 0x3ca   : > { %8794 = vmatprep.mubr.msk.f32.mxu1 %vm6770_vm3, %v6740_v15 }
 0x3cb   : > { %8795 = vmatmul.mubr.msk.f32.gmra.mrb[74].mxu1 %vm6770_vm3, %v6741_v63 }
 0x3cf   : > { %v8663_v16 = vpop.f32.mrb[54].mxu0 }
 0x3d0   : > { %v5704_v25 = vpop.f32.mrb[55].mxu0  ;;  %v6743_v19 = vsel %vm552_vm0, %v8663_v16, %v11227_v0  ;;  %v6687_v0 = vpop.permute.xlu1 %6686 }
 0x3d1   : > { %v6742_v38 = vsel %vm552_vm0, %v5704_v25, %v11219_v42 }
 0x3d2   : > { %8797 = vmatprep.mubr.msk.f32.mxu1 %vm6770_vm3, %v6742_v38 }
 0x3d3   : > { %v8677_v12 = vpop.f32.mrb[56].mxu0  ;;  %8798 = vmatmul.mubr.msk.f32.gmra.mrb[76].mxu1 %vm6770_vm3, %v6743_v19 }
 0x3d4   : > { %v5866_v31 = vpop.f32.mrb[57].mxu0  ;;  %v6747_v40 = vsel %vm552_vm0, %v8677_v12, %v11259_v34  ;;  %v6689_v8 = vpop.permute.xlu1 %6688 }
 0x3d5   : > { %v6746_v54 = vsel %vm552_vm0, %v5866_v31, %v11245_v27 }
 0x3d7   : > { %v8670_v21 = vpop.f32.mrb[54].mxu1  ;;  %v8691_v52 = vpop.f32.mrb[58].mxu0 }
 0x3d8   : > { %v5785_v2 = vpop.f32.mrb[55].mxu1  ;;  %v6028_v23 = vpop.f32.mrb[59].mxu0  ;;  %v6745_v42 = vsel %vm552_vm0, %v8670_v21, %v11240_v56  ;;  %v6751_v17 = vsel %vm552_vm0, %v8691_v52, %v6677_v1 }
 0x3d9   : > { %v6744_v9 = vsel %vm552_vm0, %v5785_v2, %v11232_v50  ;;  %v6750_v55 = vsel %vm552_vm0, %v6028_v23, %v11289_v3  ;;  %v6691_v6 = vpop.permute.xlu1 %6690 }
 0x3da   : > { %8800 = vmatprep.mubr.msk.f32.mxu1 %vm6770_vm3, %v6744_v9 }
 0x3db   : > { %8801 = vmatmul.mubr.msk.f32.gmra.mrb[78].mxu1 %vm6770_vm3, %v6745_v42 }
 0x3dc   : > { %v8684_v14 = vpop.f32.mrb[56].mxu1  ;;  %8803 = vmatprep.mubr.msk.f32.mxu1 %vm6770_vm3, %v6746_v54 }
 0x3dd   : > { %v8705_v35 = vpop.f32.mrb[60].mxu0  ;;  %v5947_v60 = vpop.f32.mrb[57].mxu1  ;;  %v6749_v47 = vsel %vm552_vm0, %v8684_v14, %v11278_v44 }
 0x3de   : > { %v6190_v50 = vpop.f32.mrb[61].mxu0  ;;  %v6748_v56 = vsel %vm552_vm0, %v5947_v60, %v11269_v43  ;;  %v6693_v53 = vpop.permute.xlu1 %6692  ;;  %v6755_v11 = vsel %vm552_vm0, %v8705_v35, %v6685_v5 }
 0x3df   : > { %8804 = vmatmul.mubr.msk.f32.gmra.mrb[80].mxu1 %vm6770_vm3, %v6747_v40  ;;  %v6754_v44 = vsel %vm552_vm0, %v6190_v50, %v6683_v49 }
 0x3e0   : > { %8806 = vmatprep.mubr.msk.f32.mxu1 %vm6770_vm3, %v6748_v56 }
 0x3e1   : > { %v8698_v27 = vpop.f32.mrb[58].mxu1 }
 0x3e2   : > { %v6109_v61 = vpop.f32.mrb[59].mxu1  ;;  %v6753_v22 = vsel %vm552_vm0, %v8698_v27, %v6681_v48  ;;  %v6695_v4 = vpop.permute.xlu1 %6694 }
 0x3e3   : > { %8807 = vmatmul.mubr.msk.f32.gmra.mrb[82].mxu1 %vm6770_vm3, %v6749_v47  ;;  %v6752_v39 = vsel %vm552_vm0, %v6109_v61, %v6679_v7 }
 0x3e4   : > { %8809 = vmatprep.mubr.msk.f32.mxu1 %vm6770_vm3, %v6750_v55 }
 0x3e5   : > { %v8712_v34 = vpop.f32.mrb[60].mxu1 }
 0x3e6   : > { %v6271_v43 = vpop.f32.mrb[61].mxu1  ;;  %v6757_v3 = vsel %vm552_vm0, %v8712_v34, %v6689_v8  ;;  %v6697_v41 = vpop.permute.xlu1 %6696 }
 0x3e7   : > { %v8719_v58 = vpop.f32.mrb[62].mxu0  ;;  %8810 = vmatmul.mubr.msk.f32.gmra.mrb[84].mxu1 %vm6770_vm3, %v6751_v17  ;;  %v6756_v57 = vsel %vm552_vm0, %v6271_v43, %v6687_v0 }
 0x3e8   : > { %v6352_v46 = vpop.f32.mrb[63].mxu0  ;;  %8812 = vmatprep.mubr.msk.f32.mxu1 %vm6770_vm3, %v6752_v39  ;;  %v6759_v29 = vsel %vm552_vm0, %v8719_v58, %v6693_v53 }
 0x3e9   : > { %v6758_v26 = vsel %vm552_vm0, %v6352_v46, %v6691_v6 }
 0x3eb   : > { %8813 = vmatmul.mubr.msk.f32.gmra.mrb[86].mxu1 %vm6770_vm3, %v6753_v22 }
 0x3ec   : > { %8815 = vmatprep.mubr.msk.f32.mxu1 %vm6770_vm3, %v6754_v44 }
 0x3ed   : > { %v8726_v24 = vpop.f32.mrb[62].mxu1 }
 0x3ee   : > { %v6433_v18 = vpop.f32.mrb[63].mxu1  ;;  %v6761_v32 = vsel %vm552_vm0, %v8726_v24, %v6697_v41 }
 0x3ef   : > { %8816 = vmatmul.mubr.msk.f32.gmra.mrb[88].mxu1 %vm6770_vm3, %v6755_v11  ;;  %v6760_v59 = vsel %vm552_vm0, %v6433_v18, %v6695_v4 }
 0x3f0   : > { %8818 = vmatprep.mubr.msk.f32.mxu1 %vm6770_vm3, %v6756_v57 }
 0x3f3   : > { %8819 = vmatmul.mubr.msk.f32.gmra.mrb[90].mxu1 %vm6770_vm3, %v6757_v3 }
 0x3f4   : > { %8821 = vmatprep.mubr.msk.f32.mxu1 %vm6770_vm3, %v6758_v26 }
 0x3f7   : > { %8822 = vmatmul.mubr.msk.f32.gmra.mrb[92].mxu1 %vm6770_vm3, %v6759_v29 }
 0x3f8   : > { %8824 = vmatprep.mubr.msk.f32.mxu1 %vm6770_vm3, %v6760_v59 }
 0x3fb   : > { %8825 = vmatmul.mubr.msk.f32.gmra.mrb[94].mxu1 %vm6770_vm3, %v6761_v32 }
 0x40d   : > { %v8731_v1 = vpop.f32.mrb[64].mxu0 }
 0x40e   : > { %v6933_v10 = vpop.f32.mrb[65].mxu0  ;;  %v6939_v36 = vadd.f32 %v8731_v1, %v11373_v37 }
 0x40f   : > { %v6934_v28 = vadd.f32 %v11373_v37, %v6933_v10 }
 0x411   : > { %7413 = vxpose.xlu0.b32.start [1/16] (narrow) %v6934_v28, 8 }
 0x415   : > { %7414 = vxpose.xlu0.b32.cont [2/16] (narrow) %v6939_v36, 8 }
 0x41d   : > { %v8734_v45 = vpop.f32.mrb[66].mxu0 }
 0x41e   : > { %v6943_v30 = vpop.f32.mrb[67].mxu0  ;;  %v6949_v62 = vadd.f32 %v8734_v45, %v11373_v37 }
 0x41f   : > { %v6944_v20 = vadd.f32 %v11373_v37, %v6943_v30 }
 0x421   : > { %7415 = vxpose.xlu0.b32.cont [3/16] (narrow) %v6944_v20, 8 }
 0x425   : > { %7416 = vxpose.xlu0.b32.cont [4/16] (narrow) %v6949_v62, 8 }
 0x42d   : > { %v8737_v7 = vpop.f32.mrb[68].mxu0 }
 0x42e   : > { %v6953_v33 = vpop.f32.mrb[69].mxu0  ;;  %v6959_v13 = vadd.f32 %v8737_v7, %v11373_v37 }
 0x42f   : > { %v6954_v51 = vadd.f32 %v11373_v37, %v6953_v33 }
 0x431   : > { %7417 = vxpose.xlu0.b32.cont [5/16] (narrow) %v6954_v51, 8 }
 0x435   : > { %v8740_v48 = vpop.f32.mrb[70].mxu0  ;;  %7418 = vxpose.xlu0.b32.cont [6/16] (narrow) %v6959_v13, 8 }
 0x436   : > { %v6963_v15 = vpop.f32.mrb[71].mxu0  ;;  %v6969_v49 = vadd.f32 %v8740_v48, %v11373_v37 }
 0x437   : > { %v6964_v63 = vadd.f32 %v11373_v37, %v6963_v15 }
 0x439   : > { %7419 = vxpose.xlu0.b32.cont [7/16] (narrow) %v6964_v63, 8 }
 0x43d   : > { %v8743_v16 = vpop.f32.mrb[72].mxu0  ;;  %7420 = vxpose.xlu0.b32.cont [8/16] (narrow) %v6969_v49, 8 }
 0x43e   : > { %v6973_v25 = vpop.f32.mrb[73].mxu0  ;;  %v6979_v19 = vadd.f32 %v8743_v16, %v11373_v37 }
 0x43f   : > { %v6974_v38 = vadd.f32 %v11373_v37, %v6973_v25 }
 0x441   : > { %7421 = vxpose.xlu0.b32.cont [9/16] (narrow) %v6974_v38, 8 }
 0x445   : > { %v8746_v12 = vpop.f32.mrb[74].mxu0  ;;  %7422 = vxpose.xlu0.b32.cont [10/16] (narrow) %v6979_v19, 8 }
 0x446   : > { %v6983_v31 = vpop.f32.mrb[75].mxu0  ;;  %v6989_v21 = vadd.f32 %v8746_v12, %v11373_v37 }
 0x447   : > { %v6984_v5 = vadd.f32 %v11373_v37, %v6983_v31 }
 0x449   : > { %7423 = vxpose.xlu0.b32.cont [11/16] (narrow) %v6984_v5, 8 }
 0x44d   : > { %7424 = vxpose.xlu0.b32.cont [12/16] (narrow) %v6989_v21, 8 }
 0x44f   : > { %v8749_v52 = vpop.f32.mrb[76].mxu0 }
 0x450   : > { %v6993_v2 = vpop.f32.mrb[77].mxu0  ;;  %v6999_v9 = vadd.f32 %v8749_v52, %v11373_v37 }
 0x451   : > { %v6994_v23 = vadd.f32 %v11373_v37, %v6993_v2 }
 0x453   : > { %7425 = vxpose.xlu0.b32.cont [13/16] (narrow) %v6994_v23, 8 }
 0x457   : > { %v8752_v42 = vpop.f32.mrb[78].mxu0  ;;  %7426 = vxpose.xlu0.b32.cont [14/16] (narrow) %v6999_v9, 8 }
 0x458   : > { %v7003_v0 = vpop.f32.mrb[79].mxu0  ;;  %v7009_v14 = vadd.f32 %v8752_v42, %v11373_v37 }
 0x459   : > { %v7004_v54 = vadd.f32 %v11373_v37, %v7003_v0 }
 0x45b   : > { %7427 = vxpose.xlu0.b32.cont [15/16] (narrow) %v7004_v54, 8 }
 0x45f   : > { %v8755_v35 = vpop.f32.mrb[80].mxu0  ;;  %7428 = vxpose.xlu0.b32.end [16/16] (narrow) %v7009_v14, 8 }
 0x460   : > { %v7013_v60 = vpop.f32.mrb[81].mxu0  ;;  %v7019_v50 = vadd.f32 %v8755_v35, %v11373_v37 }
 0x461   : > { %v7014_v40 = vadd.f32 %v11373_v37, %v7013_v60 }
 0x463   : > { %7445 = vxpose.xlu1.b32.start [1/16] (narrow) %v7014_v40, 8 }
 0x467   : > { %v8758_v56 = vpop.f32.mrb[82].mxu0  ;;  %7446 = vxpose.xlu1.b32.cont [2/16] (narrow) %v7019_v50, 8 }
 0x468   : > { %v7023_v8 = vpop.f32.mrb[83].mxu0  ;;  %v7029_v47 = vadd.f32 %v8758_v56, %v11373_v37 }
 0x469   : > { %v7024_v27 = vadd.f32 %v11373_v37, %v7023_v8 }
 0x46b   : > { %7447 = vxpose.xlu1.b32.cont [3/16] (narrow) %v7024_v27, 8 }
 0x46f   : > { %v8761_v61 = vpop.f32.mrb[84].mxu0  ;;  %7448 = vxpose.xlu1.b32.cont [4/16] (narrow) %v7029_v47, 8 }
 0x470   : > { %v7033_v55 = vpop.f32.mrb[85].mxu0  ;;  %v7039_v17 = vadd.f32 %v8761_v61, %v11373_v37 }
 0x471   : > { %v7034_v34 = vadd.f32 %v11373_v37, %v7033_v55 }
 0x473   : > { %7449 = vxpose.xlu1.b32.cont [5/16] (narrow) %v7034_v34, 8 }
 0x476   : > { %v8781_v43 = vpop.f32.mrb[64].mxu1 }
 0x477   : > { %v8764_v6 = vpop.f32.mrb[86].mxu0  ;;  %7450 = vxpose.xlu1.b32.cont [6/16] (narrow) %v7039_v17, 8  ;;  %v7254_v39 = vpop.f32.mrb[65].mxu1  ;;  %v7260_v44 = vadd.f32 %v8781_v43, %v11373_v37 }
 0x478   : > { %v7043_v58 = vpop.f32.mrb[87].mxu0  ;;  %v7255_v46 = vadd.f32 %v11373_v37, %v7254_v39  ;;  %v7049_v53 = vadd.f32 %v8764_v6, %v11373_v37 }
 0x479   : > { %v7044_v22 = vadd.f32 %v11373_v37, %v7043_v58 }
 0x47a   : > { %7482 = vxpose.xlu0.b32.start [1/16] (narrow) %v7255_v46, 8 }
 0x47b   : > { %7451 = vxpose.xlu1.b32.cont [7/16] (narrow) %v7044_v22, 8 }
 0x47e   : > { %v8784_v11 = vpop.f32.mrb[66].mxu1  ;;  %7483 = vxpose.xlu0.b32.cont [2/16] (narrow) %v7260_v44, 8 }
 0x47f   : > { %v8767_v24 = vpop.f32.mrb[88].mxu0  ;;  %7452 = vxpose.xlu1.b32.cont [8/16] (narrow) %v7049_v53, 8  ;;  %v7264_v57 = vpop.f32.mrb[67].mxu1  ;;  %v7270_v26 = vadd.f32 %v8784_v11, %v11373_v37 }
 0x480   : > { %v7053_v18 = vpop.f32.mrb[89].mxu0  ;;  %v7265_v3 = vadd.f32 %v11373_v37, %v7264_v57  ;;  %v7059_v29 = vadd.f32 %v8767_v24, %v11373_v37 }
 0x481   : > { %v7054_v4 = vadd.f32 %v11373_v37, %v7053_v18 }
 0x482   : > { %7484 = vxpose.xlu0.b32.cont [3/16] (narrow) %v7265_v3, 8 }
 0x483   : > { %7453 = vxpose.xlu1.b32.cont [9/16] (narrow) %v7054_v4, 8 }
 0x486   : > { %7485 = vxpose.xlu0.b32.cont [4/16] (narrow) %v7270_v26, 8  ;;  %v8787_v59 = vpop.f32.mrb[68].mxu1 }
 0x487   : > { %v8770_v41 = vpop.f32.mrb[90].mxu0  ;;  %7454 = vxpose.xlu1.b32.cont [10/16] (narrow) %v7059_v29, 8  ;;  %v7274_v32 = vpop.f32.mrb[69].mxu1  ;;  %v7280_v36 = vadd.f32 %v8787_v59, %v11373_v37 }
 0x488   : > { %v7063_v1 = vpop.f32.mrb[91].mxu0  ;;  %v7275_v10 = vadd.f32 %v11373_v37, %v7274_v32  ;;  %v7069_v45 = vadd.f32 %v8770_v41, %v11373_v37 }
 0x489   : > { %v7064_v28 = vadd.f32 %v11373_v37, %v7063_v1 }
 0x48a   : > { %7486 = vxpose.xlu0.b32.cont [5/16] (narrow) %v7275_v10, 8 }
 0x48b   : > { %7455 = vxpose.xlu1.b32.cont [11/16] (narrow) %v7064_v28, 8 }
 0x48e   : > { %7487 = vxpose.xlu0.b32.cont [6/16] (narrow) %v7280_v36, 8  ;;  %v8790_v30 = vpop.f32.mrb[70].mxu1 }
 0x48f   : > { %7456 = vxpose.xlu1.b32.cont [12/16] (narrow) %v7069_v45, 8  ;;  %v8773_v20 = vpop.f32.mrb[92].mxu0  ;;  %v7284_v62 = vpop.f32.mrb[71].mxu1  ;;  %v7290_v13 = vadd.f32 %v8790_v30, %v11373_v37 }
 0x490   : > { %v7073_v7 = vpop.f32.mrb[93].mxu0  ;;  %v7285_v33 = vadd.f32 %v11373_v37, %v7284_v62  ;;  %v7079_v48 = vadd.f32 %v8773_v20, %v11373_v37 }
 0x491   : > { %v7074_v51 = vadd.f32 %v11373_v37, %v7073_v7 }
 0x492   : > { %7488 = vxpose.xlu0.b32.cont [7/16] (narrow) %v7285_v33, 8 }
 0x493   : > { %7457 = vxpose.xlu1.b32.cont [13/16] (narrow) %v7074_v51, 8 }
 0x496   : > { %7489 = vxpose.xlu0.b32.cont [8/16] (narrow) %v7290_v13, 8  ;;  %v8793_v15 = vpop.f32.mrb[72].mxu1 }
 0x497   : > { %7458 = vxpose.xlu1.b32.cont [14/16] (narrow) %v7079_v48, 8  ;;  %v8776_v63 = vpop.f32.mrb[94].mxu0  ;;  %v7294_v49 = vpop.f32.mrb[73].mxu1  ;;  %v7300_v19 = vadd.f32 %v8793_v15, %v11373_v37 }
 0x498   : > { %v7083_v16 = vpop.f32.mrb[95].mxu0  ;;  %v7295_v25 = vadd.f32 %v11373_v37, %v7294_v49  ;;  %v7089_v12 = vadd.f32 %v8776_v63, %v11373_v37 }
 0x499   : > { %v7084_v38 = vadd.f32 %v11373_v37, %v7083_v16 }
 0x49a   : > { %7490 = vxpose.xlu0.b32.cont [9/16] (narrow) %v7295_v25, 8 }
 0x49b   : > { %7459 = vxpose.xlu1.b32.cont [15/16] (narrow) %v7084_v38, 8 }
 0x49e   : > { %7491 = vxpose.xlu0.b32.cont [10/16] (narrow) %v7300_v19, 8  ;;  %v8796_v31 = vpop.f32.mrb[74].mxu1 }
 0x49f   : > { %7460 = vxpose.xlu1.b32.end [16/16] (narrow) %v7089_v12, 8  ;;  %v7304_v5 = vpop.f32.mrb[75].mxu1  ;;  %v7310_v52 = vadd.f32 %v8796_v31, %v11373_v37 }
 0x4a0   : > { %v7305_v21 = vadd.f32 %v11373_v37, %v7304_v5 }
 0x4a2   : > { %7492 = vxpose.xlu0.b32.cont [11/16] (narrow) %v7305_v21, 8 }
 0x4a3   : > { %v7429_v41 = vpop.trf.xlu0 }
 0x4a6   : > { %7493 = vxpose.xlu0.b32.cont [12/16] (narrow) %v7310_v52, 8  ;;  %v8799_v2 = vpop.f32.mrb[76].mxu1 }
 0x4a7   : > { %v7314_v23 = vpop.f32.mrb[77].mxu1  ;;  %v7320_v42 = vadd.f32 %v8799_v2, %v11373_v37 }
 0x4a8   : > { %v7315_v9 = vadd.f32 %v11373_v37, %v7314_v23 }
 0x4aa   : > { %7494 = vxpose.xlu0.b32.cont [13/16] (narrow) %v7315_v9, 8 }
 0x4ae   : > { %7495 = vxpose.xlu0.b32.cont [14/16] (narrow) %v7320_v42, 8  ;;  %v8802_v0 = vpop.f32.mrb[78].mxu1 }
 0x4af   : > { %v7324_v54 = vpop.f32.mrb[79].mxu1  ;;  %v7330_v40 = vadd.f32 %v8802_v0, %v11373_v37 }
 0x4b0   : > { %v7325_v14 = vadd.f32 %v11373_v37, %v7324_v54 }
 0x4b2   : > { %7496 = vxpose.xlu0.b32.cont [15/16] (narrow) %v7325_v14, 8  ;;  %v8805_v35 = vpop.f32.mrb[80].mxu1 }
 0x4b3   : > { %v7334_v60 = vpop.f32.mrb[81].mxu1  ;;  %v7340_v27 = vadd.f32 %v8805_v35, %v11373_v37 }
 0x4b4   : > { %v7335_v50 = vadd.f32 %v11373_v37, %v7334_v60 }
 0x4b6   : > { %7497 = vxpose.xlu0.b32.end [16/16] (narrow) %v7330_v40, 8  ;;  %7514 = vxpose.xlu1.b32.start [1/16] (narrow) %v7335_v50, 8  ;;  %v8808_v56 = vpop.f32.mrb[82].mxu1 }
 0x4b7   : > { %v7344_v8 = vpop.f32.mrb[83].mxu1  ;;  %v7350_v43 = vadd.f32 %v8808_v56, %v11373_v37 }
 0x4b8   : > { %v7345_v55 = vadd.f32 %v11373_v37, %v7344_v8 }
 0x4ba   : > { %7515 = vxpose.xlu1.b32.cont [2/16] (narrow) %v7340_v27, 8  ;;  %v8811_v47 = vpop.f32.mrb[84].mxu1 }
 0x4bb   : > { %v7354_v61 = vpop.f32.mrb[85].mxu1  ;;  %v7360_v44 = vadd.f32 %v8811_v47, %v11373_v37 }
 0x4bc   : > { %v7355_v58 = vadd.f32 %v11373_v37, %v7354_v61 }
 0x4be   : > { %7516 = vxpose.xlu1.b32.cont [3/16] (narrow) %v7345_v55, 8  ;;  %v8814_v34 = vpop.f32.mrb[86].mxu1 }
 0x4bf   : > { %v7364_v17 = vpop.f32.mrb[87].mxu1  ;;  %v7370_v3 = vadd.f32 %v8814_v34, %v11373_v37 }
 0x4c0   : > { %v7365_v24 = vadd.f32 %v11373_v37, %v7364_v17 }
 0x4c2   : > { %7517 = vxpose.xlu1.b32.cont [4/16] (narrow) %v7350_v43, 8  ;;  %v8817_v6 = vpop.f32.mrb[88].mxu1 }
 0x4c3   : > { %v7374_v39 = vpop.f32.mrb[89].mxu1  ;;  %v7380_v26 = vadd.f32 %v8817_v6, %v11373_v37 }
 0x4c4   : > { %v7375_v4 = vadd.f32 %v11373_v37, %v7374_v39 }
 0x4c6   : > { %7518 = vxpose.xlu1.b32.cont [5/16] (narrow) %v7355_v58, 8  ;;  %v8820_v46 = vpop.f32.mrb[90].mxu1 }
 0x4c7   : > { %v7384_v22 = vpop.f32.mrb[91].mxu1  ;;  %v7390_v59 = vadd.f32 %v8820_v46, %v11373_v37 }
 0x4c8   : > { %v7385_v29 = vadd.f32 %v11373_v37, %v7384_v22 }
 0x4ca   : > { %7519 = vxpose.xlu1.b32.cont [6/16] (narrow) %v7360_v44, 8  ;;  %v8823_v53 = vpop.f32.mrb[92].mxu1 }
 0x4cb   : > { %v7394_v11 = vpop.f32.mrb[93].mxu1  ;;  %v7400_v28 = vadd.f32 %v8823_v53, %v11373_v37 }
 0x4cc   : > { %v7395_v1 = vadd.f32 %v11373_v37, %v7394_v11 }
 0x4ce   : > { %7520 = vxpose.xlu1.b32.cont [7/16] (narrow) %v7365_v24, 8  ;;  %v8826_v57 = vpop.f32.mrb[94].mxu1 }
 0x4cf   : > { %v7404_v18 = vpop.f32.mrb[95].mxu1  ;;  %v7410_v45 = vadd.f32 %v8826_v57, %v11373_v37 }
 0x4d0   : > { %v7405_v36 = vadd.f32 %v11373_v37, %v7404_v18 }
 0x4d2   : > { %7521 = vxpose.xlu1.b32.cont [8/16] (narrow) %v7370_v3, 8 }
 0x4d6   : > { %7522 = vxpose.xlu1.b32.cont [9/16] (narrow) %v7375_v4, 8 }
 0x4da   : > { %7523 = vxpose.xlu1.b32.cont [10/16] (narrow) %v7380_v26, 8 }
 0x4de   : > { %7524 = vxpose.xlu1.b32.cont [11/16] (narrow) %v7385_v29, 8 }
 0x4e2   : > { %7525 = vxpose.xlu1.b32.cont [12/16] (narrow) %v7390_v59, 8 }
 0x4e3   : > { %v7461_v32 = vpop.trf.xlu1 }
 0x4e4   : > { %v7479_v10 = vcombine.low %v7429_v41, %v7461_v32 }
 0x4e6   : > { %7526 = vxpose.xlu1.b32.cont [13/16] (narrow) %v7395_v1, 8  ;;  %7481 = vst [vmem:[%s346_s25] sm:$0xff] %v7479_v10 }
 0x4ea   : > { %7527 = vxpose.xlu1.b32.cont [14/16] (narrow) %v7400_v28, 8 }
 0x4ee   : > { %7528 = vxpose.xlu1.b32.cont [15/16] (narrow) %v7405_v36, 8 }
 0x4f2   : > { %7529 = vxpose.xlu1.b32.end [16/16] (narrow) %v7410_v45, 8 }
 0x4fa   : > { %v7498_v30 = vpop.trf.xlu0 }
 0x536   : > { %v7530_v20 = vpop.trf.xlu1 }
 0x537   : > { %v7548_v62 = vcombine.low %v7498_v30, %v7530_v20 }
 0x539   : > { %7550 = vst [vmem:[%s351_s28] sm:$0xff] %v7548_v62 }
 0x53a PF: > { %s18_s24 = sadd.s32 1, %s9421_s24  }
 0x53b   : > { %p15_p4 = scmp.ge.s32.totalorder %s18_s24, 4  }
 0x53d   :  { %17 = sbr.rel (!%p15_p4) target bundleno = 1 (0x1), region = 95 }

// kernel: pam3_forward.2
= control target key start
LH: loop header
LB: loop body
LE: loop exit
PB: predicated region body
PF: predicated region fallthrough
CT: control target
= control target key end

     0   :  { %s21409_s30 = smov 0   ;;  %s25451_s0 = inlined_call_operand.vmem [shape: f32[2,4,256], index: 0, kind: input, shape index: {}]   ;;  %s25452_s1 = inlined_call_operand.vmem [shape: f32[2,4,256], index: 1, kind: input, shape index: {}]   ;;  %s25453_s2 = inlined_call_operand.vmem [shape: f32[3,3,4,4], index: 2, kind: input, shape index: {}]   ;;  %s25454_s3 = inlined_call_operand.vmem [shape: f32[3,3,4,4], index: 3, kind: input, shape index: {}]   ;;  %s25455_s4 = inlined_call_operand.vmem [shape: f32[4,4], index: 4, kind: input, shape index: {}]   ;;  %s25456_s5 = inlined_call_operand.vmem [shape: f32[1,4], index: 5, kind: input, shape index: {}]   ;;  %s25457_s6 = inlined_call_operand.vmem [shape: f32[4,4], index: 6, kind: input, shape index: {}]   ;;  %s25458_s7 = inlined_call_operand.vmem [shape: f32[1,4], index: 7, kind: input, shape index: {}]   ;;  %s25459_s8 = inlined_call_operand.vmem [shape: f32[2,256,4], index: 8, kind: output, shape index: {0}]   ;;  %s25460_s9 = inlined_call_operand.vmem [shape: f32[2,256,4], index: 9, kind: output, shape index: {1}]  }
   0x1 LB: > { %s15829_s10 = sadd.s32 4294967295, %s21356_s30   ;;  %p15833_p0 = scmp.ge.s32.totalorder %s21356_s30, 1  ;;  %s21356_s30 = sphi %s21409_s30, %s20_s30  }
   0x2   : > { %p300_p1 = scmp.lt.s32.totalorder %s21356_s30, 3 }
   0x4   : > { %p301_p2 = pnand %p15833_p0, %p300_p1 }
   0x6   : > { %304 = sbr.rel (%p301_p2) target bundleno = 2563 (0xa03), region = 52 }
   0xd   : > { %p21419_p3 = scmp.lt.s32.totalorder %s15829_s10, 1  ;;  %vm434_vm0 = vcmask 31744   ;;  %v25461_v0 = vmov 0.0   ;;  %vm437_vm1 = vcmask 25600   ;;  %v15842_v2 = vld [vmem:[%s25453_s2 + $0x4] sm:$0xf] }
   0xe   : > { %439 = vst.msk [vmem:[#allocation2 + $0x18] sm:$0xff] %vm434_vm0, %v25461_v0  ;;  %440 = vst.msk [vmem:[#allocation2 + $0x20] sm:$0xff] %vm434_vm0, %v25461_v0  ;;  %vm686_vm2 = vcmask 1043456   ;;  %v555_v6 = vld [vmem:[%s25453_s2] sm:$0xf] }
   0xf   : > { %435 = vst.msk [vmem:[#allocation2] sm:$0xff] %vm434_vm0, %v25461_v0  ;;  %436 = vst.msk [vmem:[#allocation2 + $0x8] sm:$0xff] %vm434_vm0, %v25461_v0  ;;  %s26124_s10 = smov (!%p21419_p3, %s15829_s10), 1  ;;  %18390 = vmatprep.subr.msk.mxu0 %vm686_vm2, %v15842_v2  ;;  %v21666_v7 = vld [vmem:[%s25453_s2 + $0x8] sm:$0xf] }
  0x10   : > { %442 = vst.msk [vmem:[#allocation2 + $0x30] sm:$0xff] %vm434_vm0, %v25461_v0  ;;  %443 = vst.msk [vmem:[#allocation2 + $0x38] sm:$0xff] %vm434_vm0, %v25461_v0  ;;  %s17132_s12 = sshll.u32 %s26124_s10, 3  ;;  %18391 = vmatpush3.msk.msra.mxu0 %vm686_vm2, %v15842_v2  ;;  %s17134_s17 = sshll.u32 %s26124_s10, 8 }
  0x11   : > { %445 = vst.msk [vmem:[#allocation2 + $0x48] sm:$0xff] %vm434_vm0, %v25461_v0  ;;  %446 = vst.msk [vmem:[#allocation2 + $0x50] sm:$0xff] %vm434_vm0, %v25461_v0  ;;  %s350_s15 = scalar_lea.vmem %s25451_s0, %s17132_s12  ;;  %18440 = vmatprep.subr.msk.mxu0 %vm686_vm2, %v555_v6  ;;  %s355_s11 = scalar_lea.vmem %s25452_s1, %s17132_s12 }
  0x12   : > { %448 = vst.msk [vmem:[#allocation2 + $0x60] sm:$0xff] %vm434_vm0, %v25461_v0  ;;  %449 = vst.msk [vmem:[#allocation2 + $0x68] sm:$0xff] %vm434_vm0, %v25461_v0  ;;  %v366_v1 = vld [vmem:[%s350_s15] sm:$0xff]  ;;  %s25060_s22 = scalar_lea.vmem %s25459_s8, %s17134_s17  ;;  %s25350_s13 = scalar_lea.vmem %s25460_s9, %s17134_s17 }
  0x13   : > { %451 = vst.msk [vmem:[#allocation2 + $0x78] sm:$0xff] %vm434_vm0, %v25461_v0  ;;  %452 = vst.msk [vmem:[#allocation2 + $0x80] sm:$0xff] %vm434_vm0, %v25461_v0  ;;  %370 = vxpose.xlu0.b32.start.end [1/1] (short) %v366_v1, 128  ;;  %v368_v5 = vcombine.high %v366_v1, %v366_v1 }
  0x14   : > { %454 = vst.msk [vmem:[#allocation2 + $0x90] sm:$0xff] %vm434_vm0, %v25461_v0  ;;  %455 = vst.msk [vmem:[#allocation2 + $0x98] sm:$0xff] %vm434_vm0, %v25461_v0 }
  0x15   : > { %457 = vst.msk [vmem:[#allocation2 + $0xa8] sm:$0xff] %vm434_vm0, %v25461_v0  ;;  %458 = vst.msk [vmem:[#allocation2 + $0xb0] sm:$0xff] %vm434_vm0, %v25461_v0 }
  0x16   : > { %460 = vst.msk [vmem:[#allocation2 + $0xc0] sm:$0xff] %vm434_vm0, %v25461_v0  ;;  %461 = vst.msk [vmem:[#allocation2 + $0xc8] sm:$0xff] %vm434_vm0, %v25461_v0  ;;  %v556_v3 = vld [vmem:[#allocation2 + $0x1] sm:$0xff] }
  0x17   : > { %463 = vst.msk [vmem:[#allocation2 + $0xd8] sm:$0xff] %vm434_vm0, %v25461_v0  ;;  %464 = vst.msk [vmem:[#allocation2 + $0xe0] sm:$0xff] %vm434_vm0, %v25461_v0  ;;  %18392 = vmatprep.mubr.msk.f32.mxu0 %vm434_vm0, %v556_v3 }
  0x18   : > { %466 = vst.msk [vmem:[#allocation2 + $0xf0] sm:$0xff] %vm434_vm0, %v25461_v0  ;;  %467 = vst.msk [vmem:[#allocation2 + $0xf8] sm:$0xff] %vm434_vm0, %v25461_v0 }
  0x19   : > { %469 = vst.msk [vmem:[#allocation2 + $0x108] sm:$0xff] %vm434_vm0, %v25461_v0  ;;  %470 = vst.msk [vmem:[#allocation2 + $0x110] sm:$0xff] %vm434_vm0, %v25461_v0 }
  0x1a   : > { %472 = vst.msk [vmem:[#allocation2 + $0x120] sm:$0xff] %vm434_vm0, %v25461_v0  ;;  %473 = vst.msk [vmem:[#allocation2 + $0x128] sm:$0xff] %vm434_vm0, %v25461_v0 }
  0x1b   : > { %475 = vst.msk [vmem:[#allocation2 + $0x138] sm:$0xff] %vm434_vm0, %v25461_v0  ;;  %476 = vst.msk [vmem:[#allocation2 + $0x140] sm:$0xff] %vm434_vm0, %v25461_v0 }
  0x1c   : > { %478 = vst.msk [vmem:[#allocation2 + $0x150] sm:$0xff] %vm434_vm0, %v25461_v0  ;;  %479 = vst.msk [vmem:[#allocation2 + $0x158] sm:$0xff] %vm434_vm0, %v25461_v0 }
  0x1d   : > { %481 = vst.msk [vmem:[#allocation2 + $0x168] sm:$0xff] %vm434_vm0, %v25461_v0  ;;  %482 = vst.msk [vmem:[#allocation2 + $0x170] sm:$0xff] %vm434_vm0, %v25461_v0 }
  0x1e   : > { %484 = vst.msk [vmem:[#allocation2 + $0x180] sm:$0xff] %vm434_vm0, %v25461_v0  ;;  %485 = vst.msk [vmem:[#allocation2 + $0x188] sm:$0xff] %vm434_vm0, %v25461_v0 }
  0x1f   : > { %487 = vst.msk [vmem:[#allocation2 + $0x198] sm:$0xff] %vm434_vm0, %v25461_v0  ;;  %488 = vst.msk [vmem:[#allocation2 + $0x1a0] sm:$0xff] %vm434_vm0, %v25461_v0 }
  0x20   : > { %4066 = vst.msk [vmem:[#allocation3] sm:$0xff] %vm434_vm0, %v25461_v0  ;;  %4067 = vst.msk [vmem:[#allocation3 + $0x8] sm:$0xff] %vm434_vm0, %v25461_v0 }
  0x21   : > { %4069 = vst.msk [vmem:[#allocation3 + $0x18] sm:$0xff] %vm434_vm0, %v25461_v0  ;;  %4070 = vst.msk [vmem:[#allocation3 + $0x20] sm:$0xff] %vm434_vm0, %v25461_v0 }
  0x22   : > { %4072 = vst.msk [vmem:[#allocation3 + $0x30] sm:$0xff] %vm434_vm0, %v25461_v0  ;;  %4073 = vst.msk [vmem:[#allocation3 + $0x38] sm:$0xff] %vm434_vm0, %v25461_v0 }
  0x23   : > { %4075 = vst.msk [vmem:[#allocation3 + $0x48] sm:$0xff] %vm434_vm0, %v25461_v0  ;;  %4076 = vst.msk [vmem:[#allocation3 + $0x50] sm:$0xff] %vm434_vm0, %v25461_v0 }
  0x24   : > { %4078 = vst.msk [vmem:[#allocation3 + $0x60] sm:$0xff] %vm434_vm0, %v25461_v0  ;;  %4079 = vst.msk [vmem:[#allocation3 + $0x68] sm:$0xff] %vm434_vm0, %v25461_v0 }
  0x25   : > { %4081 = vst.msk [vmem:[#allocation3 + $0x78] sm:$0xff] %vm434_vm0, %v25461_v0  ;;  %4082 = vst.msk [vmem:[#allocation3 + $0x80] sm:$0xff] %vm434_vm0, %v25461_v0 }
  0x26   : > { %4084 = vst.msk [vmem:[#allocation3 + $0x90] sm:$0xff] %vm434_vm0, %v25461_v0  ;;  %4085 = vst.msk [vmem:[#allocation3 + $0x98] sm:$0xff] %vm434_vm0, %v25461_v0 }
  0x27   : > { %4087 = vst.msk [vmem:[#allocation3 + $0xa8] sm:$0xff] %vm434_vm0, %v25461_v0  ;;  %4088 = vst.msk [vmem:[#allocation3 + $0xb0] sm:$0xff] %vm434_vm0, %v25461_v0 }
  0x28   : > { %4090 = vst.msk [vmem:[#allocation3 + $0xc0] sm:$0xff] %vm434_vm0, %v25461_v0  ;;  %4091 = vst.msk [vmem:[#allocation3 + $0xc8] sm:$0xff] %vm434_vm0, %v25461_v0 }
  0x29   : > { %4093 = vst.msk [vmem:[#allocation3 + $0xd8] sm:$0xff] %vm434_vm0, %v25461_v0  ;;  %4094 = vst.msk [vmem:[#allocation3 + $0xe0] sm:$0xff] %vm434_vm0, %v25461_v0 }
  0x2a   : > { %4096 = vst.msk [vmem:[#allocation3 + $0xf0] sm:$0xff] %vm434_vm0, %v25461_v0  ;;  %4097 = vst.msk [vmem:[#allocation3 + $0xf8] sm:$0xff] %vm434_vm0, %v25461_v0 }
  0x2b   : > { %4099 = vst.msk [vmem:[#allocation3 + $0x108] sm:$0xff] %vm434_vm0, %v25461_v0  ;;  %4100 = vst.msk [vmem:[#allocation3 + $0x110] sm:$0xff] %vm434_vm0, %v25461_v0 }
  0x2c   : > { %4102 = vst.msk [vmem:[#allocation3 + $0x120] sm:$0xff] %vm434_vm0, %v25461_v0  ;;  %4103 = vst.msk [vmem:[#allocation3 + $0x128] sm:$0xff] %vm434_vm0, %v25461_v0 }
  0x2d   : > { %4105 = vst.msk [vmem:[#allocation3 + $0x138] sm:$0xff] %vm434_vm0, %v25461_v0  ;;  %4106 = vst.msk [vmem:[#allocation3 + $0x140] sm:$0xff] %vm434_vm0, %v25461_v0 }
  0x2e   : > { %4108 = vst.msk [vmem:[#allocation3 + $0x150] sm:$0xff] %vm434_vm0, %v25461_v0  ;;  %4109 = vst.msk [vmem:[#allocation3 + $0x158] sm:$0xff] %vm434_vm0, %v25461_v0 }
  0x2f   : > { %4111 = vst.msk [vmem:[#allocation3 + $0x168] sm:$0xff] %vm434_vm0, %v25461_v0  ;;  %4112 = vst.msk [vmem:[#allocation3 + $0x170] sm:$0xff] %vm434_vm0, %v25461_v0 }
  0x30   : > { %4114 = vst.msk [vmem:[#allocation3 + $0x180] sm:$0xff] %vm434_vm0, %v25461_v0  ;;  %4115 = vst.msk [vmem:[#allocation3 + $0x188] sm:$0xff] %vm434_vm0, %v25461_v0 }
  0x31   : > { %4117 = vst.msk [vmem:[#allocation3 + $0x198] sm:$0xff] %vm434_vm0, %v25461_v0  ;;  %4118 = vst.msk [vmem:[#allocation3 + $0x1a0] sm:$0xff] %vm434_vm0, %v25461_v0 }
  0x32   : > { %441 = vst.msk [vmem:[#allocation2 + $0x28] sm:$0x3] %vm437_vm1, %v25461_v0  ;;  %438 = vst.msk [vmem:[#allocation2 + $0x10] sm:$0x3] %vm437_vm1, %v25461_v0 }
  0x33   : > { %444 = vst.msk [vmem:[#allocation2 + $0x40] sm:$0x3] %vm437_vm1, %v25461_v0  ;;  %447 = vst.msk [vmem:[#allocation2 + $0x58] sm:$0x3] %vm437_vm1, %v25461_v0 }
  0x34   : > { %450 = vst.msk [vmem:[#allocation2 + $0x70] sm:$0x3] %vm437_vm1, %v25461_v0  ;;  %453 = vst.msk [vmem:[#allocation2 + $0x88] sm:$0x3] %vm437_vm1, %v25461_v0 }
  0x35   : > { %456 = vst.msk [vmem:[#allocation2 + $0xa0] sm:$0x3] %vm437_vm1, %v25461_v0  ;;  %459 = vst.msk [vmem:[#allocation2 + $0xb8] sm:$0x3] %vm437_vm1, %v25461_v0 }
  0x36   : > { %462 = vst.msk [vmem:[#allocation2 + $0xd0] sm:$0x3] %vm437_vm1, %v25461_v0  ;;  %465 = vst.msk [vmem:[#allocation2 + $0xe8] sm:$0x3] %vm437_vm1, %v25461_v0 }
  0x37   : > { %468 = vst.msk [vmem:[#allocation2 + $0x100] sm:$0x3] %vm437_vm1, %v25461_v0  ;;  %471 = vst.msk [vmem:[#allocation2 + $0x118] sm:$0x3] %vm437_vm1, %v25461_v0 }
  0x38   : > { %474 = vst.msk [vmem:[#allocation2 + $0x130] sm:$0x3] %vm437_vm1, %v25461_v0  ;;  %477 = vst.msk [vmem:[#allocation2 + $0x148] sm:$0x3] %vm437_vm1, %v25461_v0 }
  0x39   : > { %480 = vst.msk [vmem:[#allocation2 + $0x160] sm:$0x3] %vm437_vm1, %v25461_v0  ;;  %483 = vst.msk [vmem:[#allocation2 + $0x178] sm:$0x3] %vm437_vm1, %v25461_v0  ;;  %v557_v4 = vld [vmem:[#allocation2 + $0x9] sm:$0xff] }
  0x3a   : > { %486 = vst.msk [vmem:[#allocation2 + $0x190] sm:$0x3] %vm437_vm1, %v25461_v0  ;;  %489 = vst.msk [vmem:[#allocation2 + $0x1a8] sm:$0x3] %vm437_vm1, %v25461_v0  ;;  %18393 = vmatmul.mubr.msk.f32.vlgmr.msra.gmra.mrb[0].mxu0 %vm434_vm0, %v557_v4 }
  0x3b   : > { %4068 = vst.msk [vmem:[#allocation3 + $0x10] sm:$0x3] %vm437_vm1, %v25461_v0  ;;  %4071 = vst.msk [vmem:[#allocation3 + $0x28] sm:$0x3] %vm437_vm1, %v25461_v0  ;;  %18441 = vmatpush3.msk.msra.mxu0 %vm686_vm2, %v555_v6  ;;  %v21839_v6 = vld [vmem:[#allocation2] sm:$0xff] }
  0x3c   : > { %4074 = vst.msk [vmem:[#allocation3 + $0x40] sm:$0x3] %vm437_vm1, %v25461_v0  ;;  %4077 = vst.msk [vmem:[#allocation3 + $0x58] sm:$0x3] %vm437_vm1, %v25461_v0  ;;  %18490 = vmatprep.subr.msk.mxu0 %vm686_vm2, %v21666_v7 }
  0x3d   : > { %4080 = vst.msk [vmem:[#allocation3 + $0x70] sm:$0x3] %vm437_vm1, %v25461_v0  ;;  %4083 = vst.msk [vmem:[#allocation3 + $0x88] sm:$0x3] %vm437_vm1, %v25461_v0 }
  0x3e   : > { %4086 = vst.msk [vmem:[#allocation3 + $0xa0] sm:$0x3] %vm437_vm1, %v25461_v0  ;;  %4089 = vst.msk [vmem:[#allocation3 + $0xb8] sm:$0x3] %vm437_vm1, %v25461_v0 }
  0x3f   : > { %4092 = vst.msk [vmem:[#allocation3 + $0xd0] sm:$0x3] %vm437_vm1, %v25461_v0  ;;  %4095 = vst.msk [vmem:[#allocation3 + $0xe8] sm:$0x3] %vm437_vm1, %v25461_v0 }
  0x40   : > { %4098 = vst.msk [vmem:[#allocation3 + $0x100] sm:$0x3] %vm437_vm1, %v25461_v0  ;;  %4101 = vst.msk [vmem:[#allocation3 + $0x118] sm:$0x3] %vm437_vm1, %v25461_v0 }
  0x41   : > { %4104 = vst.msk [vmem:[#allocation3 + $0x130] sm:$0x3] %vm437_vm1, %v25461_v0  ;;  %4107 = vst.msk [vmem:[#allocation3 + $0x148] sm:$0x3] %vm437_vm1, %v25461_v0 }
  0x42   : > { %4110 = vst.msk [vmem:[#allocation3 + $0x160] sm:$0x3] %vm437_vm1, %v25461_v0  ;;  %4113 = vst.msk [vmem:[#allocation3 + $0x178] sm:$0x3] %vm437_vm1, %v25461_v0 }
  0x43   : > { %4116 = vst.msk [vmem:[#allocation3 + $0x190] sm:$0x3] %vm437_vm1, %v25461_v0  ;;  %4119 = vst.msk [vmem:[#allocation3 + $0x1a8] sm:$0x3] %vm437_vm1, %v25461_v0 }
  0x50   : > { %402 = vxpose.xlu0.b32.start.end [1/1] (short) %v368_v5, 128 }
  0x93   : > { %v386_v8 = vpop.trf.xlu0 }
  0x94   : > { %491 = vst.msk [vmem:[#allocation2 + $0x19] sm:$0xff] %vm434_vm0, %v386_v8 }
  0x97   : > { %v387_v9 = vpop.trf.xlu0 }
  0x98   : > { %492 = vst.msk [vmem:[#allocation2 + $0x21] sm:$0xff] %vm434_vm0, %v387_v9 }
  0x9b   : > { %v388_v10 = vpop.trf.xlu0  ;;  %v21672_v11 = vld [vmem:[#allocation2 + $0x19] sm:$0xff] }
  0x9c   : > { %25646 = vst [vmem:[#allocation4_spill] sm:$0xff] %v21672_v11  ;;  %493 = vst.msk [vmem:[#allocation2 + $0x31] sm:$0xff] %vm434_vm0, %v388_v10  ;;  %18395 = vmatprep.mubr.msk.f32.mxu0 %vm434_vm0, %v21672_v11  ;;  %v21679_v14 = vld [vmem:[#allocation2 + $0x18] sm:$0xff] }
  0x9f   : > { %v389_v12 = vpop.trf.xlu0  ;;  %v21677_v13 = vld [vmem:[#allocation2 + $0x21] sm:$0xff] }
  0xa0   : > { %25647 = vst [vmem:[#allocation5_spill] sm:$0xff] %v21677_v13  ;;  %v21681_v15 = vld [vmem:[#allocation2 + $0x1a] sm:$0xff]  ;;  %494 = vst.msk [vmem:[#allocation2 + $0x39] sm:$0xff] %vm434_vm0, %v389_v12  ;;  %18396 = vmatmul.mubr.msk.f32.gmra.mrb[2].mxu0 %vm434_vm0, %v21677_v13  ;;  %v21688_v17 = vld [vmem:[#allocation2 + $0x22] sm:$0xff] }
  0xa1   : > { %v21686_v16 = vld [vmem:[#allocation2 + $0x20] sm:$0xff]  ;;  %7766 = vst.msk [vmem:[#allocation2 + $0x18] sm:$0xff] %vm434_vm0, %v25461_v0 }
  0xa2   : > { %7768 = vst.msk [vmem:[#allocation2 + $0x28] sm:$0x3] %vm437_vm1, %v25461_v0 }
  0xa3   : > { %7767 = vst.msk [vmem:[#allocation2 + $0x20] sm:$0xff] %vm434_vm0, %v25461_v0  ;;  %v390_v18 = vpop.trf.xlu0  ;;  %v21696_v19 = vld [vmem:[#allocation2 + $0x31] sm:$0xff] }
  0xa4   : > { %25648 = vst [vmem:[#allocation6_spill] sm:$0xff] %v21696_v19  ;;  %495 = vst.msk [vmem:[#allocation2 + $0x49] sm:$0xff] %vm434_vm0, %v390_v18  ;;  %18398 = vmatprep.mubr.msk.f32.mxu0 %vm434_vm0, %v21696_v19  ;;  %v21701_v20 = vld [vmem:[#allocation2 + $0x30] sm:$0xff] }
  0xa5   : > { %v21707_v24 = vld [vmem:[#allocation2 + $0x31] sm:$0xff] }
  0xa6   : > { %25650 = vst [vmem:[#allocation8_spill] sm:$0xff] %v21707_v24 }
  0xa7   : > { %v391_v21 = vpop.trf.xlu0  ;;  %v21703_v22 = vld [vmem:[#allocation2 + $0x39] sm:$0xff] }
  0xa8   : > { %25649 = vst [vmem:[#allocation7_spill] sm:$0xff] %v21703_v22  ;;  %v21705_v23 = vld [vmem:[#allocation2 + $0x32] sm:$0xff]  ;;  %496 = vst.msk [vmem:[#allocation2 + $0x51] sm:$0xff] %vm434_vm0, %v391_v21  ;;  %18399 = vmatmul.mubr.msk.f32.gmra.mrb[4].mxu0 %vm434_vm0, %v21703_v22  ;;  %v21714_v26 = vld [vmem:[#allocation2 + $0x3a] sm:$0xff] }
  0xa9   : > { %v21712_v25 = vld [vmem:[#allocation2 + $0x38] sm:$0xff]  ;;  %7769 = vst.msk [vmem:[#allocation2 + $0x30] sm:$0xff] %vm434_vm0, %v25461_v0  ;;  %v21852_v21 = vld [vmem:[#allocation2 + $0x2] sm:$0xff] }
  0xaa   : > { %v21716_v27 = vld [vmem:[#allocation2 + $0x39] sm:$0xff]  ;;  %7763 = vst.msk [vmem:[#allocation2] sm:$0xff] %vm434_vm0, %v25461_v0 }
  0xab   : > { %25651 = vst [vmem:[#allocation9_spill] sm:$0xff] %v21716_v27  ;;  %7771 = vst.msk [vmem:[#allocation2 + $0x40] sm:$0x3] %vm437_vm1, %v25461_v0  ;;  %v392_v28 = vpop.trf.xlu0  ;;  %v21724_v29 = vld [vmem:[#allocation2 + $0x49] sm:$0xff] }
  0xac   : > { %7770 = vst.msk [vmem:[#allocation2 + $0x38] sm:$0xff] %vm434_vm0, %v25461_v0  ;;  %25652 = vst [vmem:[#allocation10_spill] sm:$0xff] %v21724_v29  ;;  %18401 = vmatprep.mubr.msk.f32.mxu0 %vm434_vm0, %v21724_v29  ;;  %v21729_v30 = vld [vmem:[#allocation2 + $0x48] sm:$0xff] }
  0xad   : > { %497 = vst.msk [vmem:[#allocation2 + $0x61] sm:$0xff] %vm434_vm0, %v392_v28  ;;  %v21735_v34 = vld [vmem:[#allocation2 + $0x49] sm:$0xff] }
  0xae   : > { %25654 = vst [vmem:[#allocation12_spill] sm:$0xff] %v21735_v34 }
  0xaf   : > { %v393_v31 = vpop.trf.xlu0  ;;  %v21731_v32 = vld [vmem:[#allocation2 + $0x51] sm:$0xff] }
  0xb0   : > { %25653 = vst [vmem:[#allocation11_spill] sm:$0xff] %v21731_v32  ;;  %v21733_v33 = vld [vmem:[#allocation2 + $0x4a] sm:$0xff]  ;;  %498 = vst.msk [vmem:[#allocation2 + $0x69] sm:$0xff] %vm434_vm0, %v393_v31  ;;  %18402 = vmatmul.mubr.msk.f32.gmra.mrb[6].mxu0 %vm434_vm0, %v21731_v32  ;;  %v21742_v36 = vld [vmem:[#allocation2 + $0x52] sm:$0xff] }
  0xb1   : > { %v21740_v35 = vld [vmem:[#allocation2 + $0x50] sm:$0xff]  ;;  %7772 = vst.msk [vmem:[#allocation2 + $0x48] sm:$0xff] %vm434_vm0, %v25461_v0  ;;  %v21858_v31 = vld [vmem:[#allocation2 + $0x8] sm:$0xff] }
  0xb2   : > { %v21744_v37 = vld [vmem:[#allocation2 + $0x51] sm:$0xff] }
  0xb3   : > { %25655 = vst [vmem:[#allocation13_spill] sm:$0xff] %v21744_v37  ;;  %7774 = vst.msk [vmem:[#allocation2 + $0x58] sm:$0x3] %vm437_vm1, %v25461_v0  ;;  %v394_v38 = vpop.trf.xlu0 }
  0xb4   : > { %7773 = vst.msk [vmem:[#allocation2 + $0x50] sm:$0xff] %vm434_vm0, %v25461_v0  ;;  %v21752_v39 = vld [vmem:[#allocation2 + $0x61] sm:$0xff]  ;;  %499 = vst.msk [vmem:[#allocation2 + $0x79] sm:$0xff] %vm434_vm0, %v394_v38  ;;  %v21862_v38 = vld [vmem:[#allocation2 + $0xa] sm:$0xff] }
  0xb5   : > { %25656 = vst [vmem:[#allocation14_spill] sm:$0xff] %v21752_v39  ;;  %18404 = vmatprep.mubr.msk.f32.mxu0 %vm434_vm0, %v21752_v39  ;;  %v21757_v40 = vld [vmem:[#allocation2 + $0x60] sm:$0xff]  ;;  %7764 = vst.msk [vmem:[#allocation2 + $0x8] sm:$0xff] %vm434_vm0, %v25461_v0 }
  0xb6   : > { %v21763_v44 = vld [vmem:[#allocation2 + $0x61] sm:$0xff]  ;;  %7765 = vst.msk [vmem:[#allocation2 + $0x10] sm:$0x3] %vm437_vm1, %v25461_v0 }
  0xb7   : > { %v395_v41 = vpop.trf.xlu0  ;;  %v21759_v42 = vld [vmem:[#allocation2 + $0x69] sm:$0xff]  ;;  %25658 = vst [vmem:[#allocation16_spill] sm:$0xff] %v21763_v44 }
  0xb8   : > { %25657 = vst [vmem:[#allocation15_spill] sm:$0xff] %v21759_v42  ;;  %v21761_v43 = vld [vmem:[#allocation2 + $0x62] sm:$0xff]  ;;  %500 = vst.msk [vmem:[#allocation2 + $0x81] sm:$0xff] %vm434_vm0, %v395_v41  ;;  %18405 = vmatmul.mubr.msk.f32.gmra.mrb[8].mxu0 %vm434_vm0, %v21759_v42  ;;  %v21770_v46 = vld [vmem:[#allocation2 + $0x6a] sm:$0xff] }
  0xb9   : > { %v21768_v45 = vld [vmem:[#allocation2 + $0x68] sm:$0xff]  ;;  %7775 = vst.msk [vmem:[#allocation2 + $0x60] sm:$0xff] %vm434_vm0, %v25461_v0 }
  0xba   : > { %v21772_v47 = vld [vmem:[#allocation2 + $0x69] sm:$0xff] }
  0xbb   : > { %25659 = vst [vmem:[#allocation17_spill] sm:$0xff] %v21772_v47  ;;  %7777 = vst.msk [vmem:[#allocation2 + $0x70] sm:$0x3] %vm437_vm1, %v25461_v0  ;;  %v396_v48 = vpop.trf.xlu0  ;;  %v21780_v49 = vld [vmem:[#allocation2 + $0x79] sm:$0xff] }
  0xbc   : > { %7776 = vst.msk [vmem:[#allocation2 + $0x68] sm:$0xff] %vm434_vm0, %v25461_v0  ;;  %25660 = vst [vmem:[#allocation18_spill] sm:$0xff] %v21780_v49  ;;  %18407 = vmatprep.mubr.msk.f32.mxu0 %vm434_vm0, %v21780_v49  ;;  %v21785_v50 = vld [vmem:[#allocation2 + $0x78] sm:$0xff] }
  0xbd   : > { %501 = vst.msk [vmem:[#allocation2 + $0x91] sm:$0xff] %vm434_vm0, %v396_v48  ;;  %v21791_v54 = vld [vmem:[#allocation2 + $0x79] sm:$0xff] }
  0xbe   : > { %25662 = vst [vmem:[#allocation20_spill] sm:$0xff] %v21791_v54 }
  0xbf   : > { %v397_v51 = vpop.trf.xlu0  ;;  %v21787_v52 = vld [vmem:[#allocation2 + $0x81] sm:$0xff] }
  0xc0   : > { %25661 = vst [vmem:[#allocation19_spill] sm:$0xff] %v21787_v52  ;;  %v21789_v53 = vld [vmem:[#allocation2 + $0x7a] sm:$0xff]  ;;  %502 = vst.msk [vmem:[#allocation2 + $0x99] sm:$0xff] %vm434_vm0, %v397_v51  ;;  %18408 = vmatmul.mubr.msk.f32.gmra.mrb[10].mxu0 %vm434_vm0, %v21787_v52  ;;  %v21798_v56 = vld [vmem:[#allocation2 + $0x82] sm:$0xff] }
  0xc1   : > { %v21796_v55 = vld [vmem:[#allocation2 + $0x80] sm:$0xff]  ;;  %7778 = vst.msk [vmem:[#allocation2 + $0x78] sm:$0xff] %vm434_vm0, %v25461_v0 }
  0xc2   : > { %v21800_v57 = vld [vmem:[#allocation2 + $0x81] sm:$0xff] }
  0xc3   : > { %25663 = vst [vmem:[#allocation21_spill] sm:$0xff] %v21800_v57  ;;  %7780 = vst.msk [vmem:[#allocation2 + $0x88] sm:$0x3] %vm437_vm1, %v25461_v0  ;;  %v398_v58 = vpop.trf.xlu0 }
  0xc4   : > { %7779 = vst.msk [vmem:[#allocation2 + $0x80] sm:$0xff] %vm434_vm0, %v25461_v0  ;;  %v21808_v59 = vld [vmem:[#allocation2 + $0x91] sm:$0xff]  ;;  %503 = vst.msk [vmem:[#allocation2 + $0xa9] sm:$0xff] %vm434_vm0, %v398_v58 }
  0xc5   : > { %25664 = vst [vmem:[#allocation22_spill] sm:$0xff] %v21808_v59  ;;  %18410 = vmatprep.mubr.msk.f32.mxu0 %vm434_vm0, %v21808_v59  ;;  %v21813_v60 = vld [vmem:[#allocation2 + $0x90] sm:$0xff] }
  0xc6   : > { %v21819_v1 = vld [vmem:[#allocation2 + $0x91] sm:$0xff] }
  0xc7   : > { %v399_v61 = vpop.trf.xlu0  ;;  %v21815_v62 = vld [vmem:[#allocation2 + $0x99] sm:$0xff]  ;;  %25666 = vst [vmem:[#allocation24_spill] sm:$0xff] %v21819_v1 }
  0xc8   : > { %25665 = vst [vmem:[#allocation23_spill] sm:$0xff] %v21815_v62  ;;  %v21817_v63 = vld [vmem:[#allocation2 + $0x92] sm:$0xff]  ;;  %504 = vst.msk [vmem:[#allocation2 + $0xb1] sm:$0xff] %vm434_vm0, %v399_v61  ;;  %18411 = vmatmul.mubr.msk.f32.gmra.mrb[12].mxu0 %vm434_vm0, %v21815_v62  ;;  %v21826_v3 = vld [vmem:[#allocation2 + $0x9a] sm:$0xff] }
  0xc9   : > { %v21824_v2 = vld [vmem:[#allocation2 + $0x98] sm:$0xff]  ;;  %7781 = vst.msk [vmem:[#allocation2 + $0x90] sm:$0xff] %vm434_vm0, %v25461_v0 }
  0xca   : > { %7783 = vst.msk [vmem:[#allocation2 + $0xa0] sm:$0x3] %vm437_vm1, %v25461_v0 }
  0xcb   : > { %7782 = vst.msk [vmem:[#allocation2 + $0x98] sm:$0xff] %vm434_vm0, %v25461_v0  ;;  %v400_v4 = vpop.trf.xlu0  ;;  %v21834_v5 = vld [vmem:[#allocation2 + $0xa9] sm:$0xff] }
  0xcc   : > { %25667 = vst [vmem:[#allocation25_spill] sm:$0xff] %v21834_v5  ;;  %505 = vst.msk [vmem:[#allocation2 + $0xc1] sm:$0xff] %vm434_vm0, %v400_v4  ;;  %18413 = vmatprep.mubr.msk.f32.mxu0 %vm434_vm0, %v21834_v5  ;;  %v21843_v10 = vld [vmem:[#allocation2 + $0xa8] sm:$0xff] }
  0xcf   : > { %v401_v8 = vpop.trf.xlu0  ;;  %v21841_v9 = vld [vmem:[#allocation2 + $0xb1] sm:$0xff] }
  0xd0   : > { %25668 = vst [vmem:[#allocation26_spill] sm:$0xff] %v21841_v9  ;;  %v21845_v12 = vld [vmem:[#allocation2 + $0xaa] sm:$0xff]  ;;  %506 = vst.msk [vmem:[#allocation2 + $0xc9] sm:$0xff] %vm434_vm0, %v401_v8  ;;  %18414 = vmatmul.mubr.msk.f32.gmra.mrb[14].mxu0 %vm434_vm0, %v21841_v9  ;;  %v21854_v28 = vld [vmem:[#allocation2 + $0xb2] sm:$0xff] }
  0xd1   : > { %v21850_v18 = vld [vmem:[#allocation2 + $0xb0] sm:$0xff]  ;;  %7784 = vst.msk [vmem:[#allocation2 + $0xa8] sm:$0xff] %vm434_vm0, %v25461_v0 }
  0xd2   : > { %7786 = vst.msk [vmem:[#allocation2 + $0xb8] sm:$0x3] %vm437_vm1, %v25461_v0 }
  0xd3   : > { %7785 = vst.msk [vmem:[#allocation2 + $0xb0] sm:$0xff] %vm434_vm0, %v25461_v0  ;;  %v418_v41 = vpop.trf.xlu0  ;;  %v21872_v48 = vld [vmem:[#allocation2 + $0xc1] sm:$0xff] }
  0xd4   : > { %25669 = vst [vmem:[#allocation27_spill] sm:$0xff] %v21872_v48  ;;  %507 = vst.msk [vmem:[#allocation2 + $0xd9] sm:$0xff] %vm434_vm0, %v418_v41  ;;  %18416 = vmatprep.mubr.msk.f32.mxu0 %vm434_vm0, %v21872_v48  ;;  %v21879_v61 = vld [vmem:[#allocation2 + $0xc0] sm:$0xff]  ;;  %v25671_v41 = vmov 0.0  }
  0xd7   : > { %v419_v51 = vpop.trf.xlu0  ;;  %v21877_v58 = vld [vmem:[#allocation2 + $0xc9] sm:$0xff] }
  0xd8   : > { %25670 = vst [vmem:[#allocation28_spill] sm:$0xff] %v21877_v58  ;;  %v21881_v4 = vld [vmem:[#allocation2 + $0xc2] sm:$0xff]  ;;  %508 = vst.msk [vmem:[#allocation2 + $0xe1] sm:$0xff] %vm434_vm0, %v419_v51  ;;  %18417 = vmatmul.mubr.msk.f32.gmra.mrb[16].mxu0 %vm434_vm0, %v21877_v58  ;;  %v21888_v0 = vld [vmem:[#allocation2 + $0xca] sm:$0xff] }
  0xd9   : > { %v21886_v8 = vld [vmem:[#allocation2 + $0xc8] sm:$0xff]  ;;  %7787 = vst.msk [vmem:[#allocation2 + $0xc0] sm:$0xff] %vm434_vm0, %v25671_v41 }
  0xda   : > { %7789 = vst.msk [vmem:[#allocation2 + $0xd0] sm:$0x3] %vm437_vm1, %v25671_v41 }
  0xdb   : > { %7788 = vst.msk [vmem:[#allocation2 + $0xc8] sm:$0xff] %vm434_vm0, %v25671_v41  ;;  %v420_v1 = vpop.trf.xlu0  ;;  %v21896_v57 = vld [vmem:[#allocation2 + $0xd9] sm:$0xff] }
  0xdc   : > { %25672 = vst [vmem:[#allocation29_spill] sm:$0xff] %v21896_v57  ;;  %509 = vst.msk [vmem:[#allocation2 + $0xf1] sm:$0xff] %vm434_vm0, %v420_v1  ;;  %18419 = vmatprep.mubr.msk.f32.mxu0 %vm434_vm0, %v21896_v57  ;;  %v21903_v47 = vld [vmem:[#allocation2 + $0xd8] sm:$0xff] }
  0xdf   : > { %v421_v51 = vpop.trf.xlu0  ;;  %v21901_v54 = vld [vmem:[#allocation2 + $0xe1] sm:$0xff] }
  0xe0   : > { %25673 = vst [vmem:[#allocation30_spill] sm:$0xff] %v21901_v54  ;;  %v21905_v44 = vld [vmem:[#allocation2 + $0xda] sm:$0xff]  ;;  %510 = vst.msk [vmem:[#allocation2 + $0xf9] sm:$0xff] %vm434_vm0, %v421_v51  ;;  %18420 = vmatmul.mubr.msk.f32.gmra.mrb[18].mxu0 %vm434_vm0, %v21901_v54  ;;  %v21912_v34 = vld [vmem:[#allocation2 + $0xe2] sm:$0xff] }
  0xe1   : > { %v21910_v37 = vld [vmem:[#allocation2 + $0xe0] sm:$0xff]  ;;  %7790 = vst.msk [vmem:[#allocation2 + $0xd8] sm:$0xff] %vm434_vm0, %v25671_v41 }
  0xe2   : > { %7792 = vst.msk [vmem:[#allocation2 + $0xe8] sm:$0x3] %vm437_vm1, %v25671_v41 }
  0xe3   : > { %7791 = vst.msk [vmem:[#allocation2 + $0xe0] sm:$0xff] %vm434_vm0, %v25671_v41  ;;  %v422_v1 = vpop.trf.xlu0  ;;  %v21920_v27 = vld [vmem:[#allocation2 + $0xf1] sm:$0xff] }
  0xe4   : > { %25674 = vst [vmem:[#allocation31_spill] sm:$0xff] %v21920_v27  ;;  %511 = vst.msk [vmem:[#allocation2 + $0x109] sm:$0xff] %vm434_vm0, %v422_v1  ;;  %18422 = vmatprep.mubr.msk.f32.mxu0 %vm434_vm0, %v21920_v27  ;;  %v21927_v54 = vld [vmem:[#allocation2 + $0xf0] sm:$0xff] }
  0xe7   : > { %v423_v51 = vpop.trf.xlu0  ;;  %v21925_v24 = vld [vmem:[#allocation2 + $0xf9] sm:$0xff] }
  0xe8   : > { %25675 = vst [vmem:[#allocation32_spill] sm:$0xff] %v21925_v24  ;;  %v21929_v57 = vld [vmem:[#allocation2 + $0xf2] sm:$0xff]  ;;  %512 = vst.msk [vmem:[#allocation2 + $0x111] sm:$0xff] %vm434_vm0, %v423_v51  ;;  %18423 = vmatmul.mubr.msk.f32.gmra.mrb[20].mxu0 %vm434_vm0, %v21925_v24  ;;  %v21936_v48 = vld [vmem:[#allocation2 + $0xfa] sm:$0xff] }
  0xe9   : > { %v21934_v58 = vld [vmem:[#allocation2 + $0xf8] sm:$0xff]  ;;  %7793 = vst.msk [vmem:[#allocation2 + $0xf0] sm:$0xff] %vm434_vm0, %v25671_v41 }
  0xea   : > { %7795 = vst.msk [vmem:[#allocation2 + $0x100] sm:$0x3] %vm437_vm1, %v25671_v41 }
  0xeb   : > { %7794 = vst.msk [vmem:[#allocation2 + $0xf8] sm:$0xff] %vm434_vm0, %v25671_v41  ;;  %v424_v1 = vpop.trf.xlu0  ;;  %v21944_v27 = vld [vmem:[#allocation2 + $0x109] sm:$0xff] }
  0xec   : > { %25676 = vst [vmem:[#allocation33_spill] sm:$0xff] %v21944_v27  ;;  %513 = vst.msk [vmem:[#allocation2 + $0x121] sm:$0xff] %vm434_vm0, %v424_v1  ;;  %18425 = vmatprep.mubr.msk.f32.mxu0 %vm434_vm0, %v21944_v27  ;;  %v21951_v9 = vld [vmem:[#allocation2 + $0x108] sm:$0xff] }
  0xef   : > { %v425_v51 = vpop.trf.xlu0  ;;  %v21949_v24 = vld [vmem:[#allocation2 + $0x111] sm:$0xff] }
  0xf0   : > { %25677 = vst [vmem:[#allocation34_spill] sm:$0xff] %v21949_v24  ;;  %v21953_v5 = vld [vmem:[#allocation2 + $0x10a] sm:$0xff]  ;;  %514 = vst.msk [vmem:[#allocation2 + $0x129] sm:$0xff] %vm434_vm0, %v425_v51  ;;  %18426 = vmatmul.mubr.msk.f32.gmra.mrb[22].mxu0 %vm434_vm0, %v21949_v24  ;;  %v21960_v59 = vld [vmem:[#allocation2 + $0x112] sm:$0xff] }
  0xf1   : > { %v21958_v62 = vld [vmem:[#allocation2 + $0x110] sm:$0xff]  ;;  %7796 = vst.msk [vmem:[#allocation2 + $0x108] sm:$0xff] %vm434_vm0, %v25671_v41 }
  0xf2   : > { %7798 = vst.msk [vmem:[#allocation2 + $0x118] sm:$0x3] %vm437_vm1, %v25671_v41 }
  0xf3   : > { %7797 = vst.msk [vmem:[#allocation2 + $0x110] sm:$0xff] %vm434_vm0, %v25671_v41  ;;  %v426_v1 = vpop.trf.xlu0  ;;  %v21968_v27 = vld [vmem:[#allocation2 + $0x121] sm:$0xff] }
  0xf4   : > { %25678 = vst [vmem:[#allocation35_spill] sm:$0xff] %v21968_v27  ;;  %515 = vst.msk [vmem:[#allocation2 + $0x139] sm:$0xff] %vm434_vm0, %v426_v1  ;;  %18428 = vmatprep.mubr.msk.f32.mxu0 %vm434_vm0, %v21968_v27  ;;  %v21975_v52 = vld [vmem:[#allocation2 + $0x120] sm:$0xff] }
  0xf7   : > { %v427_v51 = vpop.trf.xlu0  ;;  %v21973_v24 = vld [vmem:[#allocation2 + $0x129] sm:$0xff] }
  0xf8   : > { %25679 = vst [vmem:[#allocation36_spill] sm:$0xff] %v21973_v24  ;;  %v21977_v49 = vld [vmem:[#allocation2 + $0x122] sm:$0xff]  ;;  %516 = vst.msk [vmem:[#allocation2 + $0x141] sm:$0xff] %vm434_vm0, %v427_v51  ;;  %18429 = vmatmul.mubr.msk.f32.gmra.mrb[24].mxu0 %vm434_vm0, %v21973_v24  ;;  %v21984_v39 = vld [vmem:[#allocation2 + $0x12a] sm:$0xff] }
  0xf9   : > { %v21982_v42 = vld [vmem:[#allocation2 + $0x128] sm:$0xff]  ;;  %7799 = vst.msk [vmem:[#allocation2 + $0x120] sm:$0xff] %vm434_vm0, %v25671_v41 }
  0xfa   : > { %7801 = vst.msk [vmem:[#allocation2 + $0x130] sm:$0x3] %vm437_vm1, %v25671_v41 }
  0xfb   : > { %7800 = vst.msk [vmem:[#allocation2 + $0x128] sm:$0xff] %vm434_vm0, %v25671_v41  ;;  %v428_v1 = vpop.trf.xlu0  ;;  %v21992_v27 = vld [vmem:[#allocation2 + $0x139] sm:$0xff] }
  0xfc   : > { %25680 = vst [vmem:[#allocation37_spill] sm:$0xff] %v21992_v27  ;;  %517 = vst.msk [vmem:[#allocation2 + $0x151] sm:$0xff] %vm434_vm0, %v428_v1  ;;  %18431 = vmatprep.mubr.msk.f32.mxu0 %vm434_vm0, %v21992_v27  ;;  %v21999_v32 = vld [vmem:[#allocation2 + $0x138] sm:$0xff] }
  0xfd   : > { %25682 = vst [vmem:[#allocation39_spill] sm:$0xff] %v21999_v32 }
  0xff   : > { %v429_v51 = vpop.trf.xlu0  ;;  %v21997_v24 = vld [vmem:[#allocation2 + $0x141] sm:$0xff] }
 0x100   : > { %25681 = vst [vmem:[#allocation38_spill] sm:$0xff] %v21997_v24  ;;  %v22001_v29 = vld [vmem:[#allocation2 + $0x13a] sm:$0xff]  ;;  %518 = vst.msk [vmem:[#allocation2 + $0x159] sm:$0xff] %vm434_vm0, %v429_v51  ;;  %18432 = vmatmul.mubr.msk.f32.gmra.mrb[26].mxu0 %vm434_vm0, %v21997_v24  ;;  %v22008_v19 = vld [vmem:[#allocation2 + $0x142] sm:$0xff] }
 0x101   : > { %25683 = vst [vmem:[#allocation40_spill] sm:$0xff] %v22001_v29  ;;  %v22006_v22 = vld [vmem:[#allocation2 + $0x140] sm:$0xff]  ;;  %25685 = vst [vmem:[#allocation42_spill] sm:$0xff] %v22008_v19 }
 0x102   : > { %25684 = vst [vmem:[#allocation41_spill] sm:$0xff] %v22006_v22  ;;  %7802 = vst.msk [vmem:[#allocation2 + $0x138] sm:$0xff] %vm434_vm0, %v25671_v41 }
 0x103   : > { %7804 = vst.msk [vmem:[#allocation2 + $0x148] sm:$0x3] %vm437_vm1, %v25671_v41  ;;  %v430_v1 = vpop.trf.xlu0  ;;  %v22016_v27 = vld [vmem:[#allocation2 + $0x151] sm:$0xff] }
 0x104   : > { %7803 = vst.msk [vmem:[#allocation2 + $0x140] sm:$0xff] %vm434_vm0, %v25671_v41  ;;  %25686 = vst [vmem:[#allocation43_spill] sm:$0xff] %v22016_v27  ;;  %18434 = vmatprep.mubr.msk.f32.mxu0 %vm434_vm0, %v22016_v27  ;;  %v22023_v13 = vld [vmem:[#allocation2 + $0x150] sm:$0xff] }
 0x105   : > { %519 = vst.msk [vmem:[#allocation2 + $0x169] sm:$0xff] %vm434_vm0, %v430_v1  ;;  %25688 = vst [vmem:[#allocation45_spill] sm:$0xff] %v22023_v13 }
 0x107   : > { %v431_v51 = vpop.trf.xlu0  ;;  %v22021_v24 = vld [vmem:[#allocation2 + $0x159] sm:$0xff] }
 0x108   : > { %25687 = vst [vmem:[#allocation44_spill] sm:$0xff] %v22021_v24  ;;  %v22025_v11 = vld [vmem:[#allocation2 + $0x152] sm:$0xff]  ;;  %520 = vst.msk [vmem:[#allocation2 + $0x171] sm:$0xff] %vm434_vm0, %v431_v51  ;;  %18435 = vmatmul.mubr.msk.f32.gmra.mrb[28].mxu0 %vm434_vm0, %v22021_v24  ;;  %v22032_v29 = vld [vmem:[#allocation2 + $0x15a] sm:$0xff] }
 0x109   : > { %25689 = vst [vmem:[#allocation46_spill] sm:$0xff] %v22025_v11  ;;  %v22030_v19 = vld [vmem:[#allocation2 + $0x158] sm:$0xff]  ;;  %25691 = vst [vmem:[#allocation48_spill] sm:$0xff] %v22032_v29 }
 0x10a   : > { %25690 = vst [vmem:[#allocation47_spill] sm:$0xff] %v22030_v19  ;;  %7805 = vst.msk [vmem:[#allocation2 + $0x150] sm:$0xff] %vm434_vm0, %v25671_v41 }
 0x10b   : > { %7807 = vst.msk [vmem:[#allocation2 + $0x160] sm:$0x3] %vm437_vm1, %v25671_v41 }
 0x10c   : > { %7806 = vst.msk [vmem:[#allocation2 + $0x158] sm:$0xff] %vm434_vm0, %v25671_v41  ;;  %v22040_v1 = vld [vmem:[#allocation2 + $0x169] sm:$0xff] }
 0x10d   : > { %25692 = vst [vmem:[#allocation49_spill] sm:$0xff] %v22040_v1  ;;  %18437 = vmatprep.mubr.msk.f32.mxu0 %vm434_vm0, %v22040_v1  ;;  %v22046_v24 = vld [vmem:[#allocation2 + $0x168] sm:$0xff] }
 0x10e   : > { %25694 = vst [vmem:[#allocation51_spill] sm:$0xff] %v22046_v24 }
 0x10f   : > { %v22044_v51 = vld [vmem:[#allocation2 + $0x171] sm:$0xff] }
 0x110   : > { %25693 = vst [vmem:[#allocation50_spill] sm:$0xff] %v22044_v51  ;;  %v22048_v27 = vld [vmem:[#allocation2 + $0x16a] sm:$0xff]  ;;  %18438 = vmatmul.mubr.msk.f32.gmra.mrb[30].mxu0 %vm434_vm0, %v22044_v51  ;;  %v22054_v11 = vld [vmem:[#allocation2 + $0x172] sm:$0xff] }
 0x111   : > { %v22052_v29 = vld [vmem:[#allocation2 + $0x170] sm:$0xff]  ;;  %7808 = vst.msk [vmem:[#allocation2 + $0x168] sm:$0xff] %vm434_vm0, %v25671_v41  ;;  %18442 = vmatprep.mubr.msk.f32.mxu0 %vm434_vm0, %v21839_v6  ;;  %v15943_v51 = vld [vmem:[%s25453_s2 + $0xc] sm:$0xf] }
 0x112   : > { %25695 = vst [vmem:[#allocation52_spill] sm:$0xff] %v22052_v29  ;;  %7810 = vst.msk [vmem:[#allocation2 + $0x178] sm:$0x3] %vm437_vm1, %v25671_v41 }
 0x113   : > { %7809 = vst.msk [vmem:[#allocation2 + $0x170] sm:$0xff] %vm434_vm0, %v25671_v41 }
 0x114   : > { %18443 = vmatmul.mubr.msk.f32.vlgmr.msra.gmra.mrb[0].mxu0 %vm434_vm0, %v21858_v31 }
 0x115   : > { %18491 = vmatpush3.msk.msra.mxu0 %vm686_vm2, %v21666_v7  ;;  %18445 = vmatprep.mubr.msk.f32.mxu0 %vm434_vm0, %v21679_v14  ;;  %v432_v7 = vpop.trf.xlu0 }
 0x116   : > { %18540 = vmatprep.subr.msk.mxu0 %vm686_vm2, %v15943_v51  ;;  %521 = vst.msk [vmem:[#allocation2 + $0x181] sm:$0xff] %vm434_vm0, %v432_v7 }
 0x118   : > { %18446 = vmatmul.mubr.msk.f32.gmra.mrb[2].mxu0 %vm434_vm0, %v21686_v16 }
 0x119   : > { %18448 = vmatprep.mubr.msk.f32.mxu0 %vm434_vm0, %v21701_v20  ;;  %v433_v6 = vpop.trf.xlu0 }
 0x11a   : > { %522 = vst.msk [vmem:[#allocation2 + $0x189] sm:$0xff] %vm434_vm0, %v433_v6 }
 0x11c   : > { %18449 = vmatmul.mubr.msk.f32.gmra.mrb[4].mxu0 %vm434_vm0, %v21712_v25 }
 0x11d   : > { %18451 = vmatprep.mubr.msk.f32.mxu0 %vm434_vm0, %v21729_v30  ;;  %v22132_v31 = vld [vmem:[#allocation2 + $0x180] sm:$0xff] }
 0x11e   : > { %25696 = vst [vmem:[#allocation53_spill] sm:$0xff] %v22132_v31  ;;  %v22134_v7 = vld [vmem:[#allocation2 + $0x181] sm:$0xff] }
 0x120   : > { %18452 = vmatmul.mubr.msk.f32.gmra.mrb[6].mxu0 %vm434_vm0, %v21740_v35 }
 0x121   : > { %18454 = vmatprep.mubr.msk.f32.mxu0 %vm434_vm0, %v21757_v40  ;;  %v22136_v6 = vld [vmem:[#allocation2 + $0x182] sm:$0xff] }
 0x122   : > { %25697 = vst [vmem:[#allocation54_spill] sm:$0xff] %v22136_v6  ;;  %7811 = vst.msk [vmem:[#allocation2 + $0x180] sm:$0xff] %vm434_vm0, %v25671_v41  ;;  %v22142_v1 = vld [vmem:[#allocation2 + $0x188] sm:$0xff]  ;;  %v15977_v6 = vld [vmem:[%s25453_s2 + $0x10] sm:$0xf] }
 0x123   : > { %25698 = vst [vmem:[#allocation55_spill] sm:$0xff] %v22142_v1 }
 0x124   : > { %18455 = vmatmul.mubr.msk.f32.gmra.mrb[8].mxu0 %vm434_vm0, %v21768_v45 }
 0x125   : > { %18457 = vmatprep.mubr.msk.f32.mxu0 %vm434_vm0, %v21785_v50 }
 0x128   : > { %18458 = vmatmul.mubr.msk.f32.gmra.mrb[10].mxu0 %vm434_vm0, %v21796_v55 }
 0x129   : > { %18460 = vmatprep.mubr.msk.f32.mxu0 %vm434_vm0, %v21813_v60 }
 0x12c   : > { %18461 = vmatmul.mubr.msk.f32.gmra.mrb[12].mxu0 %vm434_vm0, %v21824_v2 }
 0x12d   : > { %18463 = vmatprep.mubr.msk.f32.mxu0 %vm434_vm0, %v21843_v10 }
 0x130   : > { %18464 = vmatmul.mubr.msk.f32.gmra.mrb[14].mxu0 %vm434_vm0, %v21850_v18 }
 0x131   : > { %18466 = vmatprep.mubr.msk.f32.mxu0 %vm434_vm0, %v21879_v61 }
 0x134   : > { %18467 = vmatmul.mubr.msk.f32.gmra.mrb[16].mxu0 %vm434_vm0, %v21886_v8 }
 0x135   : > { %18469 = vmatprep.mubr.msk.f32.mxu0 %vm434_vm0, %v21903_v47 }
 0x138   : > { %18470 = vmatmul.mubr.msk.f32.gmra.mrb[18].mxu0 %vm434_vm0, %v21910_v37 }
 0x139   : > { %18472 = vmatprep.mubr.msk.f32.mxu0 %vm434_vm0, %v21927_v54 }
 0x13c   : > { %18473 = vmatmul.mubr.msk.f32.gmra.mrb[20].mxu0 %vm434_vm0, %v21934_v58 }
 0x13d   : > { %18475 = vmatprep.mubr.msk.f32.mxu0 %vm434_vm0, %v21951_v9 }
 0x140   : > { %18476 = vmatmul.mubr.msk.f32.gmra.mrb[22].mxu0 %vm434_vm0, %v21958_v62 }
 0x141   : > { %18478 = vmatprep.mubr.msk.f32.mxu0 %vm434_vm0, %v21975_v52 }
 0x144   : > { %18479 = vmatmul.mubr.msk.f32.gmra.mrb[24].mxu0 %vm434_vm0, %v21982_v42 }
 0x145   : > { %18481 = vmatprep.mubr.msk.f32.mxu0 %vm434_vm0, %v21999_v32 }
 0x148   : > { %18482 = vmatmul.mubr.msk.f32.gmra.mrb[26].mxu0 %vm434_vm0, %v22006_v22 }
 0x149   : > { %18484 = vmatprep.mubr.msk.f32.mxu0 %vm434_vm0, %v22023_v13  ;;  %v22144_v13 = vld [vmem:[#allocation2 + $0x189] sm:$0xff] }
 0x14c   : > { %18485 = vmatmul.mubr.msk.f32.gmra.mrb[28].mxu0 %vm434_vm0, %v22030_v19  ;;  %v22146_v19 = vld [vmem:[#allocation2 + $0x18a] sm:$0xff] }
 0x14d   : > { %18487 = vmatprep.mubr.msk.f32.mxu0 %vm434_vm0, %v22046_v24  ;;  %25699 = vst [vmem:[#allocation56_spill] sm:$0xff] %v22146_v19  ;;  %7813 = vst.msk [vmem:[#allocation2 + $0x190] sm:$0x3] %vm437_vm1, %v25671_v41  ;;  %v16011_v19 = vld [vmem:[%s25453_s2 + $0x14] sm:$0xf] }
 0x14e   : > { %7812 = vst.msk [vmem:[#allocation2 + $0x188] sm:$0xff] %vm434_vm0, %v25671_v41  ;;  %v25703_v41 = vld [vmem:[#allocation48_spill] sm:$0xff] }
 0x150   : > { %18488 = vmatmul.mubr.msk.f32.gmra.mrb[30].mxu0 %vm434_vm0, %v22052_v29 }
 0x151   : > { %18492 = vmatprep.mubr.msk.f32.mxu0 %vm434_vm0, %v21852_v21  ;;  %v25700_v21 = vld [vmem:[#allocation40_spill] sm:$0xff] }
 0x154   : > { %18493 = vmatmul.mubr.msk.f32.vlgmr.msra.gmra.mrb[0].mxu0 %vm434_vm0, %v21862_v38  ;;  %v25701_v38 = vld [vmem:[#allocation42_spill] sm:$0xff] }
 0x155   : > { %18541 = vmatpush3.msk.msra.mxu0 %vm686_vm2, %v15943_v51  ;;  %18495 = vmatprep.mubr.msk.f32.mxu0 %vm434_vm0, %v21681_v15  ;;  %v25702_v51 = vld [vmem:[#allocation46_spill] sm:$0xff] }
 0x156   : > { %18590 = vmatprep.subr.msk.mxu0 %vm686_vm2, %v15977_v6 }
 0x158   : > { %18496 = vmatmul.mubr.msk.f32.gmra.mrb[2].mxu0 %vm434_vm0, %v21688_v17 }
 0x159   : > { %18498 = vmatprep.mubr.msk.f32.mxu0 %vm434_vm0, %v21705_v23 }
 0x15c   : > { %18499 = vmatmul.mubr.msk.f32.gmra.mrb[4].mxu0 %vm434_vm0, %v21714_v26 }
 0x15d   : > { %18501 = vmatprep.mubr.msk.f32.mxu0 %vm434_vm0, %v21733_v33 }
 0x160   : > { %18502 = vmatmul.mubr.msk.f32.gmra.mrb[6].mxu0 %vm434_vm0, %v21742_v36 }
 0x161   : > { %18504 = vmatprep.mubr.msk.f32.mxu0 %vm434_vm0, %v21761_v43 }
 0x164   : > { %18505 = vmatmul.mubr.msk.f32.gmra.mrb[8].mxu0 %vm434_vm0, %v21770_v46 }
 0x165   : > { %18507 = vmatprep.mubr.msk.f32.mxu0 %vm434_vm0, %v21789_v53 }
 0x168   : > { %18508 = vmatmul.mubr.msk.f32.gmra.mrb[10].mxu0 %vm434_vm0, %v21798_v56 }
 0x169   : > { %18510 = vmatprep.mubr.msk.f32.mxu0 %vm434_vm0, %v21817_v63 }
 0x16c   : > { %18511 = vmatmul.mubr.msk.f32.gmra.mrb[12].mxu0 %vm434_vm0, %v21826_v3 }
 0x16d   : > { %18513 = vmatprep.mubr.msk.f32.mxu0 %vm434_vm0, %v21845_v12 }
 0x170   : > { %18514 = vmatmul.mubr.msk.f32.gmra.mrb[14].mxu0 %vm434_vm0, %v21854_v28 }
 0x171   : > { %18516 = vmatprep.mubr.msk.f32.mxu0 %vm434_vm0, %v21881_v4 }
 0x174   : > { %18517 = vmatmul.mubr.msk.f32.gmra.mrb[16].mxu0 %vm434_vm0, %v21888_v0 }
 0x175   : > { %18519 = vmatprep.mubr.msk.f32.mxu0 %vm434_vm0, %v21905_v44 }
 0x178   : > { %18520 = vmatmul.mubr.msk.f32.gmra.mrb[18].mxu0 %vm434_vm0, %v21912_v34 }
 0x179   : > { %18522 = vmatprep.mubr.msk.f32.mxu0 %vm434_vm0, %v21929_v57 }
 0x17c   : > { %18523 = vmatmul.mubr.msk.f32.gmra.mrb[20].mxu0 %vm434_vm0, %v21936_v48 }
 0x17d   : > { %18525 = vmatprep.mubr.msk.f32.mxu0 %vm434_vm0, %v21953_v5 }
 0x180   : > { %18526 = vmatmul.mubr.msk.f32.gmra.mrb[22].mxu0 %vm434_vm0, %v21960_v59 }
 0x181   : > { %18528 = vmatprep.mubr.msk.f32.mxu0 %vm434_vm0, %v21977_v49 }
 0x184   : > { %18529 = vmatmul.mubr.msk.f32.gmra.mrb[24].mxu0 %vm434_vm0, %v21984_v39 }
 0x185   : > { %18531 = vmatprep.mubr.msk.f32.mxu0 %vm434_vm0, %v25700_v21 }
 0x188   : > { %18532 = vmatmul.mubr.msk.f32.gmra.mrb[26].mxu0 %vm434_vm0, %v25701_v38 }
 0x189   : > { %18534 = vmatprep.mubr.msk.f32.mxu0 %vm434_vm0, %v25702_v51 }
 0x18c   : > { %18535 = vmatmul.mubr.msk.f32.gmra.mrb[28].mxu0 %vm434_vm0, %v25703_v41 }
 0x18d   : > { %18537 = vmatprep.mubr.msk.f32.mxu0 %vm434_vm0, %v22048_v27 }
 0x190   : > { %18538 = vmatmul.mubr.msk.f32.gmra.mrb[30].mxu0 %vm434_vm0, %v22054_v11 }
 0x191   : > { %18542 = vmatprep.mubr.msk.f32.mxu0 %vm434_vm0, %v21679_v14  ;;  %v25704_v14 = vld [vmem:[#allocation45_spill] sm:$0xff] }
 0x194   : > { %18543 = vmatmul.mubr.msk.f32.vlgmr.msra.gmra.mrb[0].mxu0 %vm434_vm0, %v21686_v16  ;;  %v25705_v16 = vld [vmem:[#allocation47_spill] sm:$0xff] }
 0x195   : > { %18591 = vmatpush3.msk.msra.mxu0 %vm686_vm2, %v15977_v6  ;;  %18545 = vmatprep.mubr.msk.f32.mxu0 %vm434_vm0, %v21701_v20  ;;  %v7695_v6 = vld [vmem:[%s355_s11] sm:$0xff] }
 0x196   : > { %18640 = vmatprep.subr.msk.mxu0 %vm686_vm2, %v16011_v19  ;;  %7699 = vxpose.xlu1.b32.start.end [1/1] (short) %v7695_v6, 128 }
 0x198   : > { %18546 = vmatmul.mubr.msk.f32.gmra.mrb[2].mxu0 %vm434_vm0, %v21712_v25 }
 0x199   : > { %18548 = vmatprep.mubr.msk.f32.mxu0 %vm434_vm0, %v21729_v30 }
 0x19c   : > { %18549 = vmatmul.mubr.msk.f32.gmra.mrb[4].mxu0 %vm434_vm0, %v21740_v35 }
 0x19d   : > { %18551 = vmatprep.mubr.msk.f32.mxu0 %vm434_vm0, %v21757_v40 }
 0x1a0   : > { %18552 = vmatmul.mubr.msk.f32.gmra.mrb[6].mxu0 %vm434_vm0, %v21768_v45 }
 0x1a1   : > { %18554 = vmatprep.mubr.msk.f32.mxu0 %vm434_vm0, %v21785_v50 }
 0x1a4   : > { %18555 = vmatmul.mubr.msk.f32.gmra.mrb[8].mxu0 %vm434_vm0, %v21796_v55 }
 0x1a5   : > { %18557 = vmatprep.mubr.msk.f32.mxu0 %vm434_vm0, %v21813_v60 }
 0x1a8   : > { %18558 = vmatmul.mubr.msk.f32.gmra.mrb[10].mxu0 %vm434_vm0, %v21824_v2 }
 0x1a9   : > { %18560 = vmatprep.mubr.msk.f32.mxu0 %vm434_vm0, %v21843_v10 }
 0x1ac   : > { %18561 = vmatmul.mubr.msk.f32.gmra.mrb[12].mxu0 %vm434_vm0, %v21850_v18 }
 0x1ad   : > { %18563 = vmatprep.mubr.msk.f32.mxu0 %vm434_vm0, %v21879_v61 }
 0x1b0   : > { %18564 = vmatmul.mubr.msk.f32.gmra.mrb[14].mxu0 %vm434_vm0, %v21886_v8 }
 0x1b1   : > { %18566 = vmatprep.mubr.msk.f32.mxu0 %vm434_vm0, %v21903_v47 }
 0x1b4   : > { %18567 = vmatmul.mubr.msk.f32.gmra.mrb[16].mxu0 %vm434_vm0, %v21910_v37 }
 0x1b5   : > { %18569 = vmatprep.mubr.msk.f32.mxu0 %vm434_vm0, %v21927_v54 }
 0x1b8   : > { %18570 = vmatmul.mubr.msk.f32.gmra.mrb[18].mxu0 %vm434_vm0, %v21934_v58 }
 0x1b9   : > { %18572 = vmatprep.mubr.msk.f32.mxu0 %vm434_vm0, %v21951_v9 }
 0x1bc   : > { %18573 = vmatmul.mubr.msk.f32.gmra.mrb[20].mxu0 %vm434_vm0, %v21958_v62 }
 0x1bd   : > { %18575 = vmatprep.mubr.msk.f32.mxu0 %vm434_vm0, %v21975_v52 }
 0x1c0   : > { %18576 = vmatmul.mubr.msk.f32.gmra.mrb[22].mxu0 %vm434_vm0, %v21982_v42 }
 0x1c1   : > { %18578 = vmatprep.mubr.msk.f32.mxu0 %vm434_vm0, %v21999_v32  ;;  %v25716_v32 = vld [vmem:[#allocation22_spill] sm:$0xff] }
 0x1c4   : > { %18579 = vmatmul.mubr.msk.f32.gmra.mrb[24].mxu0 %vm434_vm0, %v22006_v22  ;;  %v25712_v22 = vld [vmem:[#allocation14_spill] sm:$0xff] }
 0x1c5   : > { %18581 = vmatprep.mubr.msk.f32.mxu0 %vm434_vm0, %v25704_v14  ;;  %v25709_v14 = vld [vmem:[#allocation7_spill] sm:$0xff] }
 0x1c8   : > { %18582 = vmatmul.mubr.msk.f32.gmra.mrb[26].mxu0 %vm434_vm0, %v25705_v16  ;;  %v25706_v16 = vld [vmem:[#allocation4_spill] sm:$0xff] }
 0x1c9   : > { %18584 = vmatprep.mubr.msk.f32.mxu0 %vm434_vm0, %v22046_v24  ;;  %v25707_v24 = vld [vmem:[#allocation5_spill] sm:$0xff] }
 0x1cc   : > { %18585 = vmatmul.mubr.msk.f32.gmra.mrb[28].mxu0 %vm434_vm0, %v22052_v29  ;;  %v16045_v29 = vld [vmem:[%s25453_s2 + $0x18] sm:$0xf] }
 0x1cd   : > { %18587 = vmatprep.mubr.msk.f32.mxu0 %vm434_vm0, %v22132_v31  ;;  %v25708_v31 = vld [vmem:[#allocation6_spill] sm:$0xff] }
 0x1d0   : > { %18588 = vmatmul.mubr.msk.f32.gmra.mrb[30].mxu0 %vm434_vm0, %v22142_v1  ;;  %v25710_v1 = vld [vmem:[#allocation10_spill] sm:$0xff] }
 0x1d1   : > { %18592 = vmatprep.mubr.msk.f32.mxu0 %vm434_vm0, %v25706_v16  ;;  %v25711_v16 = vld [vmem:[#allocation11_spill] sm:$0xff] }
 0x1d4   : > { %18593 = vmatmul.mubr.msk.f32.vlgmr.msra.gmra.mrb[0].mxu0 %vm434_vm0, %v25707_v24  ;;  %v25713_v24 = vld [vmem:[#allocation15_spill] sm:$0xff] }
 0x1d5   : > { %18641 = vmatpush3.msk.msra.mxu0 %vm686_vm2, %v16011_v19  ;;  %18595 = vmatprep.mubr.msk.f32.mxu0 %vm434_vm0, %v25708_v31  ;;  %v25714_v19 = vld [vmem:[#allocation18_spill] sm:$0xff]  ;;  %v25715_v31 = vld [vmem:[#allocation19_spill] sm:$0xff] }
 0x1d6   : > { %18690 = vmatprep.subr.msk.mxu0 %vm686_vm2, %v16045_v29 }
 0x1d8   : > { %18596 = vmatmul.mubr.msk.f32.gmra.mrb[2].mxu0 %vm434_vm0, %v25709_v14  ;;  %v25717_v14 = vld [vmem:[#allocation23_spill] sm:$0xff] }
 0x1d9   : > { %18598 = vmatprep.mubr.msk.f32.mxu0 %vm434_vm0, %v25710_v1  ;;  %v25718_v1 = vld [vmem:[#allocation25_spill] sm:$0xff] }
 0x1dc   : > { %18599 = vmatmul.mubr.msk.f32.gmra.mrb[4].mxu0 %vm434_vm0, %v25711_v16  ;;  %v25719_v16 = vld [vmem:[#allocation26_spill] sm:$0xff] }
 0x1dd   : > { %18601 = vmatprep.mubr.msk.f32.mxu0 %vm434_vm0, %v25712_v22  ;;  %v25720_v22 = vld [vmem:[#allocation27_spill] sm:$0xff] }
 0x1e0   : > { %18602 = vmatmul.mubr.msk.f32.gmra.mrb[6].mxu0 %vm434_vm0, %v25713_v24  ;;  %v25721_v24 = vld [vmem:[#allocation28_spill] sm:$0xff] }
 0x1e1   : > { %18604 = vmatprep.mubr.msk.f32.mxu0 %vm434_vm0, %v25714_v19  ;;  %v25722_v19 = vld [vmem:[#allocation29_spill] sm:$0xff] }
 0x1e4   : > { %18605 = vmatmul.mubr.msk.f32.gmra.mrb[8].mxu0 %vm434_vm0, %v25715_v31  ;;  %v25723_v31 = vld [vmem:[#allocation30_spill] sm:$0xff] }
 0x1e5   : > { %18607 = vmatprep.mubr.msk.f32.mxu0 %vm434_vm0, %v25716_v32  ;;  %v25724_v32 = vld [vmem:[#allocation31_spill] sm:$0xff] }
 0x1e8   : > { %18608 = vmatmul.mubr.msk.f32.gmra.mrb[10].mxu0 %vm434_vm0, %v25717_v14  ;;  %v25725_v14 = vld [vmem:[#allocation32_spill] sm:$0xff] }
 0x1e9   : > { %18610 = vmatprep.mubr.msk.f32.mxu0 %vm434_vm0, %v25718_v1  ;;  %v25726_v1 = vld [vmem:[#allocation33_spill] sm:$0xff] }
 0x1ec   : > { %18611 = vmatmul.mubr.msk.f32.gmra.mrb[12].mxu0 %vm434_vm0, %v25719_v16  ;;  %v25727_v16 = vld [vmem:[#allocation34_spill] sm:$0xff] }
 0x1ed   : > { %18613 = vmatprep.mubr.msk.f32.mxu0 %vm434_vm0, %v25720_v22  ;;  %v25728_v22 = vld [vmem:[#allocation35_spill] sm:$0xff] }
 0x1f0   : > { %18614 = vmatmul.mubr.msk.f32.gmra.mrb[14].mxu0 %vm434_vm0, %v25721_v24  ;;  %v25729_v24 = vld [vmem:[#allocation36_spill] sm:$0xff] }
 0x1f1   : > { %18616 = vmatprep.mubr.msk.f32.mxu0 %vm434_vm0, %v25722_v19  ;;  %v25730_v19 = vld [vmem:[#allocation37_spill] sm:$0xff] }
 0x1f4   : > { %18617 = vmatmul.mubr.msk.f32.gmra.mrb[16].mxu0 %vm434_vm0, %v25723_v31  ;;  %v25731_v31 = vld [vmem:[#allocation38_spill] sm:$0xff] }
 0x1f5   : > { %18619 = vmatprep.mubr.msk.f32.mxu0 %vm434_vm0, %v25724_v32  ;;  %v25732_v32 = vld [vmem:[#allocation43_spill] sm:$0xff] }
 0x1f8   : > { %18620 = vmatmul.mubr.msk.f32.gmra.mrb[18].mxu0 %vm434_vm0, %v25725_v14  ;;  %v25733_v14 = vld [vmem:[#allocation44_spill] sm:$0xff] }
 0x1f9   : > { %18622 = vmatprep.mubr.msk.f32.mxu0 %vm434_vm0, %v25726_v1  ;;  %v25734_v1 = vld [vmem:[#allocation49_spill] sm:$0xff] }
 0x1fc   : > { %18623 = vmatmul.mubr.msk.f32.gmra.mrb[20].mxu0 %vm434_vm0, %v25727_v16  ;;  %v25735_v16 = vld [vmem:[#allocation50_spill] sm:$0xff] }
 0x1fd   : > { %18625 = vmatprep.mubr.msk.f32.mxu0 %vm434_vm0, %v25728_v22  ;;  %v7697_v22 = vcombine.high %v7695_v6, %v7695_v6  ;;  %v22439_v6 = vld [vmem:[%s25453_s2 + $0x20] sm:$0xf] }
 0x1ff   : > { %7731 = vxpose.xlu1.b32.start.end [1/1] (short) %v7697_v22, 128 }
 0x200   : > { %18626 = vmatmul.mubr.msk.f32.gmra.mrb[22].mxu0 %vm434_vm0, %v25729_v24 }
 0x201   : > { %18628 = vmatprep.mubr.msk.f32.mxu0 %vm434_vm0, %v25730_v19 }
 0x204   : > { %18629 = vmatmul.mubr.msk.f32.gmra.mrb[24].mxu0 %vm434_vm0, %v25731_v31 }
 0x205   : > { %18631 = vmatprep.mubr.msk.f32.mxu0 %vm434_vm0, %v25732_v32 }
 0x208   : > { %18632 = vmatmul.mubr.msk.f32.gmra.mrb[26].mxu0 %vm434_vm0, %v25733_v14  ;;  %v16079_v14 = vld [vmem:[%s25453_s2 + $0x1c] sm:$0xf] }
 0x209   : > { %18634 = vmatprep.mubr.msk.f32.mxu0 %vm434_vm0, %v25734_v1 }
 0x20c   : > { %18635 = vmatmul.mubr.msk.f32.gmra.mrb[28].mxu0 %vm434_vm0, %v25735_v16 }
 0x20d   : > { %18637 = vmatprep.mubr.msk.f32.mxu0 %vm434_vm0, %v22134_v7 }
 0x210   : > { %18638 = vmatmul.mubr.msk.f32.gmra.mrb[30].mxu0 %vm434_vm0, %v22144_v13 }
 0x211   : > { %18642 = vmatprep.mubr.msk.f32.mxu0 %vm434_vm0, %v21681_v15  ;;  %v25736_v15 = vld [vmem:[#allocation54_spill] sm:$0xff] }
 0x214   : > { %18643 = vmatmul.mubr.msk.f32.vlgmr.msra.gmra.mrb[0].mxu0 %vm434_vm0, %v21688_v17 }
 0x215   : > { %18691 = vmatpush3.msk.msra.mxu0 %vm686_vm2, %v16045_v29  ;;  %18645 = vmatprep.mubr.msk.f32.mxu0 %vm434_vm0, %v21705_v23  ;;  %v25737_v29 = vld [vmem:[#allocation56_spill] sm:$0xff] }
 0x216   : > { %18740 = vmatprep.subr.msk.mxu0 %vm686_vm2, %v16079_v14  ;;  %v7715_v17 = vpop.trf.xlu1 }
 0x217   : > { %7817 = vst.msk [vmem:[#allocation2 + $0x19] sm:$0xff] %vm434_vm0, %v7715_v17  ;;  %v22516_v17 = vld [vmem:[#allocation2 + $0x199] sm:$0xff] }
 0x218   : > { %18646 = vmatmul.mubr.msk.f32.gmra.mrb[2].mxu0 %vm434_vm0, %v21714_v26 }
 0x219   : > { %18648 = vmatprep.mubr.msk.f32.mxu0 %vm434_vm0, %v21733_v33 }
 0x21a   : > { %v7716_v22 = vpop.trf.xlu1 }
 0x21b   : > { %7818 = vst.msk [vmem:[#allocation2 + $0x21] sm:$0xff] %vm434_vm0, %v7716_v22  ;;  %v22519_v22 = vld [vmem:[#allocation2 + $0x19a] sm:$0xff] }
 0x21c   : > { %18649 = vmatmul.mubr.msk.f32.gmra.mrb[4].mxu0 %vm434_vm0, %v21742_v36 }
 0x21d   : > { %18651 = vmatprep.mubr.msk.f32.mxu0 %vm434_vm0, %v21761_v43 }
 0x220   : > { %18652 = vmatmul.mubr.msk.f32.gmra.mrb[6].mxu0 %vm434_vm0, %v21770_v46 }
 0x221   : > { %18654 = vmatprep.mubr.msk.f32.mxu0 %vm434_vm0, %v21789_v53 }
 0x224   : > { %18655 = vmatmul.mubr.msk.f32.gmra.mrb[8].mxu0 %vm434_vm0, %v21798_v56 }
 0x225   : > { %18657 = vmatprep.mubr.msk.f32.mxu0 %vm434_vm0, %v21817_v63 }
 0x228   : > { %18658 = vmatmul.mubr.msk.f32.gmra.mrb[10].mxu0 %vm434_vm0, %v21826_v3 }
 0x229   : > { %18660 = vmatprep.mubr.msk.f32.mxu0 %vm434_vm0, %v21845_v12 }
 0x22c   : > { %18661 = vmatmul.mubr.msk.f32.gmra.mrb[12].mxu0 %vm434_vm0, %v21854_v28 }
 0x22d   : > { %18663 = vmatprep.mubr.msk.f32.mxu0 %vm434_vm0, %v21881_v4 }
 0x230   : > { %18664 = vmatmul.mubr.msk.f32.gmra.mrb[14].mxu0 %vm434_vm0, %v21888_v0 }
 0x231   : > { %18666 = vmatprep.mubr.msk.f32.mxu0 %vm434_vm0, %v21905_v44 }
 0x234   : > { %18667 = vmatmul.mubr.msk.f32.gmra.mrb[16].mxu0 %vm434_vm0, %v21912_v34 }
 0x235   : > { %18669 = vmatprep.mubr.msk.f32.mxu0 %vm434_vm0, %v21929_v57 }
 0x238   : > { %18670 = vmatmul.mubr.msk.f32.gmra.mrb[18].mxu0 %vm434_vm0, %v21936_v48 }
 0x239   : > { %18672 = vmatprep.mubr.msk.f32.mxu0 %vm434_vm0, %v21953_v5 }
 0x23c   : > { %18673 = vmatmul.mubr.msk.f32.gmra.mrb[20].mxu0 %vm434_vm0, %v21960_v59 }
 0x23d   : > { %18675 = vmatprep.mubr.msk.f32.mxu0 %vm434_vm0, %v21977_v49 }
 0x240   : > { %18676 = vmatmul.mubr.msk.f32.gmra.mrb[22].mxu0 %vm434_vm0, %v21984_v39 }
 0x241   : > { %18678 = vmatprep.mubr.msk.f32.mxu0 %vm434_vm0, %v25700_v21 }
 0x244   : > { %18679 = vmatmul.mubr.msk.f32.gmra.mrb[24].mxu0 %vm434_vm0, %v25701_v38 }
 0x245   : > { %18681 = vmatprep.mubr.msk.f32.mxu0 %vm434_vm0, %v25702_v51 }
 0x248   : > { %18682 = vmatmul.mubr.msk.f32.gmra.mrb[26].mxu0 %vm434_vm0, %v25703_v41 }
 0x249   : > { %18684 = vmatprep.mubr.msk.f32.mxu0 %vm434_vm0, %v22048_v27 }
 0x24c   : > { %18685 = vmatmul.mubr.msk.f32.gmra.mrb[28].mxu0 %vm434_vm0, %v22054_v11 }
 0x24d   : > { %18687 = vmatprep.mubr.msk.f32.mxu0 %vm434_vm0, %v25736_v15 }
 0x250   : > { %18688 = vmatmul.mubr.msk.f32.gmra.mrb[30].mxu0 %vm434_vm0, %v25737_v29 }
 0x251   : > { %18692 = vmatprep.mubr.msk.f32.mxu0 %vm434_vm0, %v21701_v20  ;;  %v7717_v20 = vpop.trf.xlu1 }
 0x252   : > { %7819 = vst.msk [vmem:[#allocation2 + $0x31] sm:$0xff] %vm434_vm0, %v7717_v20  ;;  %v2831_v20 = vld [vmem:[#allocation2 + $0x1a0] sm:$0xff] }
 0x254   : > { %18693 = vmatmul.mubr.msk.f32.vlgmr.msra.gmra.mrb[0].mxu0 %vm434_vm0, %v21712_v25 }
 0x255   : > { %18741 = vmatpush3.msk.msra.mxu0 %vm686_vm2, %v16079_v14  ;;  %18695 = vmatprep.mubr.msk.f32.mxu0 %vm434_vm0, %v21729_v30  ;;  %v7718_v25 = vpop.trf.xlu1  ;;  %v25745_v14 = vld [vmem:[#allocation55_spill] sm:$0xff] }
 0x256   : > { %18790 = vmatprep.subr.msk.mxu0 %vm686_vm2, %v22439_v6  ;;  %7820 = vst.msk [vmem:[#allocation2 + $0x39] sm:$0xff] %vm434_vm0, %v7718_v25  ;;  %v22522_v25 = vld [vmem:[#allocation2 + $0x1a1] sm:$0xff] }
 0x258   : > { %18696 = vmatmul.mubr.msk.f32.gmra.mrb[2].mxu0 %vm434_vm0, %v21740_v35 }
 0x259   : > { %18698 = vmatprep.mubr.msk.f32.mxu0 %vm434_vm0, %v21757_v40  ;;  %v7719_v30 = vpop.trf.xlu1 }
 0x25a   : > { %7821 = vst.msk [vmem:[#allocation2 + $0x49] sm:$0xff] %vm434_vm0, %v7719_v30  ;;  %v25746_v30 = vmov 0.0  }
 0x25c   : > { %18699 = vmatmul.mubr.msk.f32.gmra.mrb[4].mxu0 %vm434_vm0, %v21768_v45 }
 0x25d   : > { %18701 = vmatprep.mubr.msk.f32.mxu0 %vm434_vm0, %v21785_v50  ;;  %v7720_v35 = vpop.trf.xlu1 }
 0x25e   : > { %7822 = vst.msk [vmem:[#allocation2 + $0x51] sm:$0xff] %vm434_vm0, %v7720_v35  ;;  %v22526_v35 = vld [vmem:[#allocation2 + $0x1a2] sm:$0xff] }
 0x25f   : > { %7815 = vst.msk [vmem:[#allocation2 + $0x1a0] sm:$0xff] %vm434_vm0, %v25746_v30 }
 0x260   : > { %18702 = vmatmul.mubr.msk.f32.gmra.mrb[6].mxu0 %vm434_vm0, %v21796_v55  ;;  %7816 = vst.msk [vmem:[#allocation2 + $0x1a8] sm:$0x3] %vm437_vm1, %v25746_v30 }
 0x261   : > { %18704 = vmatprep.mubr.msk.f32.mxu0 %vm434_vm0, %v21813_v60  ;;  %v7721_v40 = vpop.trf.xlu1 }
 0x262   : > { %7823 = vst.msk [vmem:[#allocation2 + $0x61] sm:$0xff] %vm434_vm0, %v7721_v40 }
 0x264   : > { %18705 = vmatmul.mubr.msk.f32.gmra.mrb[8].mxu0 %vm434_vm0, %v21824_v2  ;;  %v25739_v2 = vld [vmem:[#allocation41_spill] sm:$0xff] }
 0x265   : > { %18707 = vmatprep.mubr.msk.f32.mxu0 %vm434_vm0, %v21843_v10  ;;  %v7722_v45 = vpop.trf.xlu1 }
 0x266   : > { %7824 = vst.msk [vmem:[#allocation2 + $0x69] sm:$0xff] %vm434_vm0, %v7722_v45  ;;  %v25747_v45 = vld [vmem:[#allocation8_spill] sm:$0xff] }
 0x268   : > { %18708 = vmatmul.mubr.msk.f32.gmra.mrb[10].mxu0 %vm434_vm0, %v21850_v18  ;;  %v25743_v18 = vld [vmem:[#allocation52_spill] sm:$0xff] }
 0x269   : > { %18710 = vmatprep.mubr.msk.f32.mxu0 %vm434_vm0, %v21879_v61  ;;  %v7723_v50 = vpop.trf.xlu1  ;;  %v2830_v61 = vld [vmem:[#allocation2 + $0x198] sm:$0xff] }
 0x26a   : > { %7825 = vst.msk [vmem:[#allocation2 + $0x79] sm:$0xff] %vm434_vm0, %v7723_v50  ;;  %7814 = vst.msk [vmem:[#allocation2 + $0x198] sm:$0xff] %vm434_vm0, %v25746_v30  ;;  %v22539_v50 = vld [vmem:[%s25453_s2 + $0x4] sm:$0xf] }
 0x26c   : > { %18711 = vmatmul.mubr.msk.f32.gmra.mrb[12].mxu0 %vm434_vm0, %v21886_v8 }
 0x26d   : > { %18713 = vmatprep.mubr.msk.f32.mxu0 %vm434_vm0, %v21903_v47  ;;  %v7724_v55 = vpop.trf.xlu1  ;;  %v25738_v47 = vld [vmem:[#allocation39_spill] sm:$0xff] }
 0x26e   : > { %7826 = vst.msk [vmem:[#allocation2 + $0x81] sm:$0xff] %vm434_vm0, %v7724_v55 }
 0x270   : > { %18714 = vmatmul.mubr.msk.f32.gmra.mrb[14].mxu0 %vm434_vm0, %v21910_v37 }
 0x271   : > { %18716 = vmatprep.mubr.msk.f32.mxu0 %vm434_vm0, %v21927_v54  ;;  %v7725_v60 = vpop.trf.xlu1 }
 0x272   : > { %7827 = vst.msk [vmem:[#allocation2 + $0x91] sm:$0xff] %vm434_vm0, %v7725_v60  ;;  %v25748_v60 = vld [vmem:[#allocation9_spill] sm:$0xff] }
 0x274   : > { %18717 = vmatmul.mubr.msk.f32.gmra.mrb[16].mxu0 %vm434_vm0, %v21934_v58  ;;  %v25744_v58 = vld [vmem:[#allocation53_spill] sm:$0xff] }
 0x275   : > { %18719 = vmatprep.mubr.msk.f32.mxu0 %vm434_vm0, %v21951_v9  ;;  %v7726_v37 = vpop.trf.xlu1 }
 0x276   : > { %7828 = vst.msk [vmem:[#allocation2 + $0x99] sm:$0xff] %vm434_vm0, %v7726_v37  ;;  %v25749_v37 = vld [vmem:[#allocation12_spill] sm:$0xff] }
 0x278   : > { %18720 = vmatmul.mubr.msk.f32.gmra.mrb[18].mxu0 %vm434_vm0, %v21958_v62  ;;  %v25740_v62 = vld [vmem:[#allocation45_spill] sm:$0xff] }
 0x279   : > { %18722 = vmatprep.mubr.msk.f32.mxu0 %vm434_vm0, %v21975_v52  ;;  %v7727_v54 = vpop.trf.xlu1  ;;  %v25741_v52 = vld [vmem:[#allocation47_spill] sm:$0xff] }
 0x27a   : > { %7829 = vst.msk [vmem:[#allocation2 + $0xa9] sm:$0xff] %vm434_vm0, %v7727_v54  ;;  %v25750_v54 = vld [vmem:[#allocation13_spill] sm:$0xff] }
 0x27c   : > { %18723 = vmatmul.mubr.msk.f32.gmra.mrb[20].mxu0 %vm434_vm0, %v21982_v42  ;;  %v25742_v42 = vld [vmem:[#allocation51_spill] sm:$0xff] }
 0x27d   : > { %18725 = vmatprep.mubr.msk.f32.mxu0 %vm434_vm0, %v25738_v47  ;;  %v7728_v9 = vpop.trf.xlu1 }
 0x27e   : > { %7830 = vst.msk [vmem:[#allocation2 + $0xb1] sm:$0xff] %vm434_vm0, %v7728_v9  ;;  %v25752_v9 = vld [vmem:[#allocation17_spill] sm:$0xff] }
 0x280   : > { %18726 = vmatmul.mubr.msk.f32.gmra.mrb[22].mxu0 %vm434_vm0, %v25739_v2  ;;  %v25751_v2 = vld [vmem:[#allocation16_spill] sm:$0xff] }
 0x281   : > { %18728 = vmatprep.mubr.msk.f32.mxu0 %vm434_vm0, %v25740_v62  ;;  %v7729_v10 = vpop.trf.xlu1 }
 0x282   : > { %7831 = vst.msk [vmem:[#allocation2 + $0xc1] sm:$0xff] %vm434_vm0, %v7729_v10  ;;  %v25755_v10 = vld [vmem:[#allocation24_spill] sm:$0xff] }
 0x284   : > { %18729 = vmatmul.mubr.msk.f32.gmra.mrb[24].mxu0 %vm434_vm0, %v25741_v52 }
 0x285   : > { %18731 = vmatprep.mubr.msk.f32.mxu0 %vm434_vm0, %v25742_v42  ;;  %v7730_v8 = vpop.trf.xlu1  ;;  %v25754_v42 = vld [vmem:[#allocation21_spill] sm:$0xff] }
 0x286   : > { %7832 = vst.msk [vmem:[#allocation2 + $0xc9] sm:$0xff] %vm434_vm0, %v7730_v8 }
 0x288   : > { %18732 = vmatmul.mubr.msk.f32.gmra.mrb[26].mxu0 %vm434_vm0, %v25743_v18 }
 0x289   : > { %18734 = vmatprep.mubr.msk.f32.mxu0 %vm434_vm0, %v25744_v58  ;;  %v7747_v40 = vpop.trf.xlu1  ;;  %v25756_v58 = vld [vmem:[#allocation23_spill] sm:$0xff] }
 0x28a   : > { %7833 = vst.msk [vmem:[#allocation2 + $0xd9] sm:$0xff] %vm434_vm0, %v7747_v40 }
 0x28c   : > { %18735 = vmatmul.mubr.msk.f32.gmra.mrb[28].mxu0 %vm434_vm0, %v25745_v14  ;;  %v25758_v14 = vld [vmem:[#allocation26_spill] sm:$0xff] }
 0x28d   : > { %18737 = vmatprep.mubr.msk.f32.mxu0 %vm434_vm0, %v2830_v61  ;;  %v7748_v55 = vpop.trf.xlu1  ;;  %v25757_v61 = vld [vmem:[#allocation25_spill] sm:$0xff] }
 0x28e   : > { %7834 = vst.msk [vmem:[#allocation2 + $0xe1] sm:$0xff] %vm434_vm0, %v7748_v55  ;;  %v25761_v55 = vld [vmem:[#allocation29_spill] sm:$0xff] }
 0x290   : > { %18738 = vmatmul.mubr.msk.f32.gmra.mrb[30].mxu0 %vm434_vm0, %v2831_v20  ;;  %v25759_v20 = vld [vmem:[#allocation27_spill] sm:$0xff] }
 0x291   : > { %18742 = vmatprep.mubr.msk.f32.mxu0 %vm434_vm0, %v25747_v45  ;;  %v7749_v47 = vpop.trf.xlu1  ;;  %v25760_v45 = vld [vmem:[#allocation28_spill] sm:$0xff] }
 0x292   : > { %7835 = vst.msk [vmem:[#allocation2 + $0xf1] sm:$0xff] %vm434_vm0, %v7749_v47  ;;  %v25763_v47 = vld [vmem:[#allocation31_spill] sm:$0xff] }
 0x294   : > { %18743 = vmatmul.mubr.msk.f32.vlgmr.msra.gmra.mrb[0].mxu0 %vm434_vm0, %v25748_v60 }
 0x295   : > { %18791 = vmatpush3.msk.msra.mxu0 %vm686_vm2, %v22439_v6  ;;  %18745 = vmatprep.mubr.msk.f32.mxu0 %vm434_vm0, %v25749_v37  ;;  %v7750_v62 = vpop.trf.xlu1  ;;  %v25753_v6 = vld [vmem:[#allocation20_spill] sm:$0xff]  ;;  %v25762_v37 = vld [vmem:[#allocation30_spill] sm:$0xff] }
 0x296   : > { %19290 = vmatprep.subr.msk.mxu0 %vm686_vm2, %v22539_v50  ;;  %7836 = vst.msk [vmem:[#allocation2 + $0xf9] sm:$0xff] %vm434_vm0, %v7750_v62  ;;  %v25765_v62 = vld [vmem:[#allocation33_spill] sm:$0xff] }
 0x298   : > { %18746 = vmatmul.mubr.msk.f32.gmra.mrb[2].mxu0 %vm434_vm0, %v25750_v54 }
 0x299   : > { %18748 = vmatprep.mubr.msk.f32.mxu0 %vm434_vm0, %v25751_v2  ;;  %v7751_v52 = vpop.trf.xlu1  ;;  %v25764_v2 = vld [vmem:[#allocation32_spill] sm:$0xff] }
 0x29a   : > { %7837 = vst.msk [vmem:[#allocation2 + $0x109] sm:$0xff] %vm434_vm0, %v7751_v52  ;;  %v25767_v52 = vld [vmem:[#allocation35_spill] sm:$0xff] }
 0x29c   : > { %18749 = vmatmul.mubr.msk.f32.gmra.mrb[4].mxu0 %vm434_vm0, %v25752_v9 }
 0x29d   : > { %18751 = vmatprep.mubr.msk.f32.mxu0 %vm434_vm0, %v25753_v6  ;;  %v7752_v18 = vpop.trf.xlu1  ;;  %v25766_v6 = vld [vmem:[#allocation34_spill] sm:$0xff] }
 0x29e   : > { %7838 = vst.msk [vmem:[#allocation2 + $0x111] sm:$0xff] %vm434_vm0, %v7752_v18 }
 0x2a0   : > { %18752 = vmatmul.mubr.msk.f32.gmra.mrb[6].mxu0 %vm434_vm0, %v25754_v42 }
 0x2a1   : > { %18754 = vmatprep.mubr.msk.f32.mxu0 %vm434_vm0, %v25755_v10  ;;  %v7753_v8 = vpop.trf.xlu1 }
 0x2a2   : > { %7839 = vst.msk [vmem:[#allocation2 + $0x121] sm:$0xff] %vm434_vm0, %v7753_v8  ;;  %v22765_v8 = vld [vmem:[#allocation2 + $0x38] sm:$0xff] }
 0x2a4   : > { %18755 = vmatmul.mubr.msk.f32.gmra.mrb[8].mxu0 %vm434_vm0, %v25756_v58  ;;  %v25768_v58 = vld [vmem:[#allocation44_spill] sm:$0xff] }
 0x2a5   : > { %18757 = vmatprep.mubr.msk.f32.mxu0 %vm434_vm0, %v25757_v61  ;;  %v7754_v40 = vpop.trf.xlu1  ;;  %v22761_v61 = vld [vmem:[#allocation2 + $0x30] sm:$0xff] }
 0x2a6   : > { %7840 = vst.msk [vmem:[#allocation2 + $0x129] sm:$0xff] %vm434_vm0, %v7754_v40  ;;  %v22777_v40 = vld [vmem:[#allocation2 + $0x60] sm:$0xff] }
 0x2a8   : > { %18758 = vmatmul.mubr.msk.f32.gmra.mrb[10].mxu0 %vm434_vm0, %v25758_v14  ;;  %v22769_v14 = vld [vmem:[#allocation2 + $0x48] sm:$0xff] }
 0x2a9   : > { %18760 = vmatprep.mubr.msk.f32.mxu0 %vm434_vm0, %v25759_v20  ;;  %v7755_v60 = vpop.trf.xlu1  ;;  %v22773_v20 = vld [vmem:[#allocation2 + $0x50] sm:$0xff] }
 0x2aa   : > { %7841 = vst.msk [vmem:[#allocation2 + $0x139] sm:$0xff] %vm434_vm0, %v7755_v60  ;;  %v22789_v60 = vld [vmem:[#allocation2 + $0x80] sm:$0xff] }
 0x2ac   : > { %18761 = vmatmul.mubr.msk.f32.gmra.mrb[12].mxu0 %vm434_vm0, %v25760_v45  ;;  %v22781_v45 = vld [vmem:[#allocation2 + $0x68] sm:$0xff] }
 0x2ad   : > { %18763 = vmatprep.mubr.msk.f32.mxu0 %vm434_vm0, %v25761_v55  ;;  %v7756_v54 = vpop.trf.xlu1  ;;  %v22785_v55 = vld [vmem:[#allocation2 + $0x78] sm:$0xff] }
 0x2ae   : > { %7842 = vst.msk [vmem:[#allocation2 + $0x141] sm:$0xff] %vm434_vm0, %v7756_v54  ;;  %v22801_v54 = vld [vmem:[#allocation2 + $0xa8] sm:$0xff] }
 0x2b0   : > { %18764 = vmatmul.mubr.msk.f32.gmra.mrb[14].mxu0 %vm434_vm0, %v25762_v37  ;;  %v22793_v37 = vld [vmem:[#allocation2 + $0x90] sm:$0xff] }
 0x2b1   : > { %18766 = vmatprep.mubr.msk.f32.mxu0 %vm434_vm0, %v25763_v47  ;;  %v7757_v9 = vpop.trf.xlu1  ;;  %v22797_v47 = vld [vmem:[#allocation2 + $0x98] sm:$0xff] }
 0x2b2   : > { %7843 = vst.msk [vmem:[#allocation2 + $0x151] sm:$0xff] %vm434_vm0, %v7757_v9  ;;  %v22813_v9 = vld [vmem:[#allocation2 + $0xc0] sm:$0xff] }
 0x2b4   : > { %18767 = vmatmul.mubr.msk.f32.gmra.mrb[16].mxu0 %vm434_vm0, %v25764_v2  ;;  %v16214_v2 = vld [vmem:[%s25454_s3 + $0x8] sm:$0xf] }
 0x2b5   : > { %18769 = vmatprep.mubr.msk.f32.mxu0 %vm434_vm0, %v25765_v62  ;;  %v7758_v42 = vpop.trf.xlu1  ;;  %v22808_v62 = vld [vmem:[#allocation2 + $0xb0] sm:$0xff] }
 0x2b6   : > { %7844 = vst.msk [vmem:[#allocation2 + $0x159] sm:$0xff] %vm434_vm0, %v7758_v42  ;;  %v7868_v42 = vld [vmem:[#allocation2 + $0xe0] sm:$0xff] }
 0x2b8   : > { %18770 = vmatmul.mubr.msk.f32.gmra.mrb[18].mxu0 %vm434_vm0, %v25766_v6  ;;  %v22817_v6 = vld [vmem:[#allocation2 + $0xc8] sm:$0xff] }
 0x2b9   : > { %18772 = vmatprep.mubr.msk.f32.mxu0 %vm434_vm0, %v25767_v52  ;;  %v7759_v10 = vpop.trf.xlu1  ;;  %v22821_v52 = vld [vmem:[#allocation2 + $0xd8] sm:$0xff] }
 0x2ba   : > { %7845 = vst.msk [vmem:[#allocation2 + $0x169] sm:$0xff] %vm434_vm0, %v7759_v10  ;;  %v7869_v10 = vld [vmem:[#allocation2 + $0xf0] sm:$0xff] }
 0x2bc   : > { %18773 = vmatmul.mubr.msk.f32.gmra.mrb[20].mxu0 %vm434_vm0, %v25729_v24  ;;  %v7908_v24 = vld [vmem:[#allocation2 + $0x139] sm:$0xff] }
 0x2bd   : > { %18775 = vmatprep.mubr.msk.f32.mxu0 %vm434_vm0, %v25730_v19  ;;  %v7760_v18 = vpop.trf.xlu1  ;;  %v7909_v19 = vld [vmem:[#allocation2 + $0x141] sm:$0xff] }
 0x2be   : > { %7846 = vst.msk [vmem:[#allocation2 + $0x171] sm:$0xff] %vm434_vm0, %v7760_v18  ;;  %v7870_v18 = vld [vmem:[#allocation2 + $0xf8] sm:$0xff] }
 0x2c0   : > { %18776 = vmatmul.mubr.msk.f32.gmra.mrb[22].mxu0 %vm434_vm0, %v25731_v31  ;;  %v7910_v31 = vld [vmem:[#allocation2 + $0x151] sm:$0xff] }
 0x2c1   : > { %18778 = vmatprep.mubr.msk.f32.mxu0 %vm434_vm0, %v25732_v32  ;;  %v7912_v32 = vld [vmem:[#allocation2 + $0x169] sm:$0xff] }
 0x2c4   : > { %18779 = vmatmul.mubr.msk.f32.gmra.mrb[24].mxu0 %vm434_vm0, %v25768_v58  ;;  %v7871_v58 = vld [vmem:[#allocation2 + $0x108] sm:$0xff] }
 0x2c5   : > { %18781 = vmatprep.mubr.msk.f32.mxu0 %vm434_vm0, %v25734_v1  ;;  %v7881_v1 = vld [vmem:[%s25453_s2] sm:$0xf] }
 0x2c8   : > { %18782 = vmatmul.mubr.msk.f32.gmra.mrb[26].mxu0 %vm434_vm0, %v25735_v16  ;;  %v7907_v16 = vld [vmem:[#allocation2 + $0x129] sm:$0xff] }
 0x2c9   : > { %18784 = vmatprep.mubr.msk.f32.mxu0 %vm434_vm0, %v22134_v7  ;;  %v7903_v7 = vld [vmem:[#allocation2 + $0xf9] sm:$0xff] }
 0x2cc   : > { %18785 = vmatmul.mubr.msk.f32.gmra.mrb[28].mxu0 %vm434_vm0, %v22144_v13  ;;  %v7883_v13 = vld [vmem:[#allocation2 + $0x9] sm:$0xff] }
 0x2cd   : > { %18787 = vmatprep.mubr.msk.f32.mxu0 %vm434_vm0, %v22516_v17  ;;  %v7849_v17 = vld [vmem:[#allocation2] sm:$0xff] }
 0x2d0   : > { %18788 = vmatmul.mubr.msk.f32.gmra.mrb[30].mxu0 %vm434_vm0, %v22522_v25  ;;  %v22746_v25 = vld [vmem:[%s25453_s2 + $0xc] sm:$0xf] }
 0x2d1   : > { %18792 = vmatprep.mubr.msk.f32.mxu0 %vm434_vm0, %v21705_v23  ;;  %v7884_v23 = vld [vmem:[#allocation2 + $0x19] sm:$0xff] }
 0x2d4   : > { %18793 = vmatmul.mubr.msk.f32.vlgmr.msra.gmra.mrb[0].mxu0 %vm434_vm0, %v21714_v26  ;;  %v7885_v26 = vld [vmem:[#allocation2 + $0x21] sm:$0xff] }
 0x2d5   : > { %19291 = vmatpush3.msk.msra.mxu0 %vm686_vm2, %v22539_v50  ;;  %18795 = vmatprep.mubr.msk.f32.mxu0 %vm434_vm0, %v21733_v33  ;;  %v7887_v33 = vld [vmem:[#allocation2 + $0x39] sm:$0xff] }
 0x2d6   : > { %19340 = vmatprep.subr.msk.mxu0 %vm686_vm2, %v7881_v1  ;;  %v22757_v50 = vld [vmem:[#allocation2 + $0x20] sm:$0xff] }
 0x2d8   : > { %18796 = vmatmul.mubr.msk.f32.gmra.mrb[2].mxu0 %vm434_vm0, %v21742_v36  ;;  %v7889_v36 = vld [vmem:[#allocation2 + $0x51] sm:$0xff] }
 0x2d9   : > { %18798 = vmatprep.mubr.msk.f32.mxu0 %vm434_vm0, %v21761_v43  ;;  %v7891_v43 = vld [vmem:[#allocation2 + $0x69] sm:$0xff] }
 0x2dc   : > { %18799 = vmatmul.mubr.msk.f32.gmra.mrb[4].mxu0 %vm434_vm0, %v21770_v46  ;;  %v7893_v46 = vld [vmem:[#allocation2 + $0x81] sm:$0xff] }
 0x2dd   : > { %18801 = vmatprep.mubr.msk.f32.mxu0 %vm434_vm0, %v21789_v53  ;;  %v7895_v53 = vld [vmem:[#allocation2 + $0x99] sm:$0xff] }
 0x2e0   : > { %18802 = vmatmul.mubr.msk.f32.gmra.mrb[6].mxu0 %vm434_vm0, %v21798_v56  ;;  %v7896_v56 = vld [vmem:[#allocation2 + $0xa9] sm:$0xff] }
 0x2e1   : > { %18804 = vmatprep.mubr.msk.f32.mxu0 %vm434_vm0, %v21817_v63  ;;  %v7898_v63 = vld [vmem:[#allocation2 + $0xc1] sm:$0xff] }
 0x2e4   : > { %18805 = vmatmul.mubr.msk.f32.gmra.mrb[8].mxu0 %vm434_vm0, %v21826_v3  ;;  %v4186_v3 = vld [vmem:[#allocation3 + $0x1] sm:$0xff] }
 0x2e5   : > { %18807 = vmatprep.mubr.msk.f32.mxu0 %vm434_vm0, %v21845_v12  ;;  %18842 = vmatprep.mubr.msk.f32.mxu1 %vm434_vm0, %v4186_v3  ;;  %v7899_v12 = vld [vmem:[#allocation2 + $0xc9] sm:$0xff] }
 0x2e6   : > { %v8571_v3 = vld [vmem:[#allocation2 + $0x62] sm:$0xff] }
 0x2e8   : > { %18808 = vmatmul.mubr.msk.f32.gmra.mrb[10].mxu0 %vm434_vm0, %v21854_v28  ;;  %v7900_v28 = vld [vmem:[#allocation2 + $0xd9] sm:$0xff] }
 0x2e9   : > { %18810 = vmatprep.mubr.msk.f32.mxu0 %vm434_vm0, %v21881_v4  ;;  %v7901_v4 = vld [vmem:[#allocation2 + $0xe1] sm:$0xff] }
 0x2ec   : > { %18811 = vmatmul.mubr.msk.f32.gmra.mrb[12].mxu0 %vm434_vm0, %v21888_v0  ;;  %v7882_v0 = vld [vmem:[#allocation2 + $0x1] sm:$0xff] }
 0x2ed   : > { %18813 = vmatprep.mubr.msk.f32.mxu0 %vm434_vm0, %v21905_v44  ;;  %v7892_v44 = vld [vmem:[#allocation2 + $0x79] sm:$0xff] }
 0x2f0   : > { %18814 = vmatmul.mubr.msk.f32.gmra.mrb[14].mxu0 %vm434_vm0, %v21912_v34  ;;  %v7888_v34 = vld [vmem:[#allocation2 + $0x49] sm:$0xff] }
 0x2f1   : > { %18816 = vmatprep.mubr.msk.f32.mxu0 %vm434_vm0, %v21929_v57  ;;  %v7897_v57 = vld [vmem:[#allocation2 + $0xb1] sm:$0xff] }
 0x2f4   : > { %18817 = vmatmul.mubr.msk.f32.gmra.mrb[16].mxu0 %vm434_vm0, %v21936_v48  ;;  %v4185_v48 = vld [vmem:[%s25454_s3] sm:$0xf] }
 0x2f5   : > { %18819 = vmatprep.mubr.msk.f32.mxu0 %vm434_vm0, %v21953_v5  ;;  %v4187_v5 = vld [vmem:[#allocation3 + $0x9] sm:$0xff] }
 0x2f8   : > { %18820 = vmatmul.mubr.msk.f32.gmra.mrb[18].mxu0 %vm434_vm0, %v21960_v59  ;;  %v16147_v59 = vld [vmem:[%s25454_s3 + $0x4] sm:$0xf] }
 0x2f9   : > { %18822 = vmatprep.mubr.msk.f32.mxu0 %vm434_vm0, %v21977_v49  ;;  %v7894_v49 = vld [vmem:[#allocation2 + $0x91] sm:$0xff]  ;;  %18840 = vmatprep.subr.msk.mxu1 %vm686_vm2, %v16147_v59 }
 0x2fa   : > { %18841 = vmatpush3.msk.msra.mxu1 %vm686_vm2, %v16147_v59  ;;  %v8569_v59 = vld [vmem:[#allocation2 + $0x4a] sm:$0xff] }
 0x2fb   : > { %18843 = vmatmul.mubr.msk.f32.vlgmr.msra.gmra.mrb[0].mxu1 %vm434_vm0, %v4187_v5  ;;  %18890 = vmatprep.subr.msk.mxu1 %vm686_vm2, %v4185_v48  ;;  %v8572_v5 = vld [vmem:[#allocation2 + $0x6a] sm:$0xff] }
 0x2fc   : > { %18823 = vmatmul.mubr.msk.f32.gmra.mrb[20].mxu0 %vm434_vm0, %v21984_v39  ;;  %v7890_v39 = vld [vmem:[#allocation2 + $0x61] sm:$0xff]  ;;  %18891 = vmatpush3.msk.msra.mxu1 %vm686_vm2, %v4185_v48 }
 0x2fd   : > { %18825 = vmatprep.mubr.msk.f32.mxu0 %vm434_vm0, %v25700_v21  ;;  %v7904_v21 = vld [vmem:[#allocation2 + $0x109] sm:$0xff]  ;;  %18940 = vmatprep.subr.msk.mxu1 %vm686_vm2, %v16214_v2 }
 0x2fe   : > { %v8574_v48 = vld [vmem:[#allocation2 + $0x82] sm:$0xff] }
 0x300   : > { %18826 = vmatmul.mubr.msk.f32.gmra.mrb[22].mxu0 %vm434_vm0, %v25701_v38  ;;  %v7905_v38 = vld [vmem:[#allocation2 + $0x111] sm:$0xff] }
 0x301   : > { %18828 = vmatprep.mubr.msk.f32.mxu0 %vm434_vm0, %v25702_v51  ;;  %v7906_v51 = vld [vmem:[#allocation2 + $0x121] sm:$0xff] }
 0x304   : > { %18829 = vmatmul.mubr.msk.f32.gmra.mrb[24].mxu0 %vm434_vm0, %v25703_v41  ;;  %v7902_v41 = vld [vmem:[#allocation2 + $0xf1] sm:$0xff] }
 0x305   : > { %18831 = vmatprep.mubr.msk.f32.mxu0 %vm434_vm0, %v22048_v27  ;;  %v7886_v27 = vld [vmem:[#allocation2 + $0x31] sm:$0xff] }
 0x308   : > { %18832 = vmatmul.mubr.msk.f32.gmra.mrb[26].mxu0 %vm434_vm0, %v22054_v11  ;;  %v22694_v11 = vld [vmem:[%s25453_s2 + $0x8] sm:$0xf] }
 0x309   : > { %18834 = vmatprep.mubr.msk.f32.mxu0 %vm434_vm0, %v25736_v15  ;;  %v7911_v15 = vld [vmem:[#allocation2 + $0x159] sm:$0xff] }
 0x30c   : > { %18835 = vmatmul.mubr.msk.f32.gmra.mrb[28].mxu0 %vm434_vm0, %v25737_v29  ;;  %v7913_v29 = vld [vmem:[#allocation2 + $0x171] sm:$0xff] }
 0x30d   : > { %18837 = vmatprep.mubr.msk.f32.mxu0 %vm434_vm0, %v22519_v22  ;;  %v7850_v22 = vld [vmem:[#allocation2 + $0x8] sm:$0xff] }
 0x310   : > { %18838 = vmatmul.mubr.msk.f32.gmra.mrb[30].mxu0 %vm434_vm0, %v22526_v35  ;;  %v22749_v35 = vld [vmem:[#allocation2 + $0x18] sm:$0xff] }
 0x311   : > { %19292 = vmatprep.mubr.msk.f32.mxu0 %vm434_vm0, %v7882_v0  ;;  %v7872_v0 = vld [vmem:[#allocation2 + $0x110] sm:$0xff] }
 0x314   : > { %19293 = vmatmul.mubr.msk.f32.vlgmr.msra.gmra.mrb[32].mxu0 %vm434_vm0, %v7883_v13  ;;  %v7873_v13 = vld [vmem:[#allocation2 + $0x120] sm:$0xff] }
 0x315   : > { %19341 = vmatpush3.msk.msra.mxu0 %vm686_vm2, %v7881_v1  ;;  %19295 = vmatprep.mubr.msk.f32.mxu0 %vm434_vm0, %v7884_v23  ;;  %v7761_v1 = vpop.trf.xlu1  ;;  %v7874_v23 = vld [vmem:[#allocation2 + $0x128] sm:$0xff] }
 0x316   : > { %19390 = vmatprep.subr.msk.mxu0 %vm686_vm2, %v22694_v11  ;;  %7847 = vst.msk [vmem:[#allocation2 + $0x181] sm:$0xff] %vm434_vm0, %v7761_v1  ;;  %v22875_v1 = vld [vmem:[#allocation3 + $0x8] sm:$0xff] }
 0x318   : > { %19296 = vmatmul.mubr.msk.f32.gmra.mrb[34].mxu0 %vm434_vm0, %v7885_v26  ;;  %v7875_v26 = vld [vmem:[#allocation2 + $0x138] sm:$0xff] }
 0x319   : > { %19298 = vmatprep.mubr.msk.f32.mxu0 %vm434_vm0, %v7886_v27  ;;  %v7876_v27 = vld [vmem:[#allocation2 + $0x140] sm:$0xff] }
 0x31c   : > { %19299 = vmatmul.mubr.msk.f32.gmra.mrb[36].mxu0 %vm434_vm0, %v7887_v33  ;;  %v7877_v33 = vld [vmem:[#allocation2 + $0x150] sm:$0xff] }
 0x31d   : > { %19301 = vmatprep.mubr.msk.f32.mxu0 %vm434_vm0, %v7888_v34  ;;  %v7878_v34 = vld [vmem:[#allocation2 + $0x158] sm:$0xff] }
 0x320   : > { %19302 = vmatmul.mubr.msk.f32.gmra.mrb[38].mxu0 %vm434_vm0, %v7889_v36  ;;  %v7879_v36 = vld [vmem:[#allocation2 + $0x168] sm:$0xff] }
 0x321   : > { %19304 = vmatprep.mubr.msk.f32.mxu0 %vm434_vm0, %v7890_v39  ;;  %v8563_v39 = vld [vmem:[#allocation2 + $0x2] sm:$0xff] }
 0x324   : > { %19305 = vmatmul.mubr.msk.f32.gmra.mrb[40].mxu0 %vm434_vm0, %v7891_v43  ;;  %v7880_v43 = vld [vmem:[#allocation2 + $0x170] sm:$0xff] }
 0x325   : > { %19307 = vmatprep.mubr.msk.f32.mxu0 %vm434_vm0, %v7892_v44  ;;  %v8564_v44 = vld [vmem:[#allocation2 + $0xa] sm:$0xff] }
 0x328   : > { %19308 = vmatmul.mubr.msk.f32.gmra.mrb[42].mxu0 %vm434_vm0, %v7893_v46  ;;  %v22844_v46 = vld [vmem:[%s25453_s2 + $0x10] sm:$0xf] }
 0x329   : > { %19310 = vmatprep.mubr.msk.f32.mxu0 %vm434_vm0, %v7894_v49  ;;  %v8565_v49 = vld [vmem:[#allocation2 + $0x1a] sm:$0xff] }
 0x32c   : > { %19311 = vmatmul.mubr.msk.f32.gmra.mrb[44].mxu0 %vm434_vm0, %v7895_v53  ;;  %v8566_v53 = vld [vmem:[#allocation2 + $0x22] sm:$0xff] }
 0x32d   : > { %19313 = vmatprep.mubr.msk.f32.mxu0 %vm434_vm0, %v7896_v56  ;;  %v8567_v56 = vld [vmem:[#allocation2 + $0x32] sm:$0xff] }
 0x330   : > { %19314 = vmatmul.mubr.msk.f32.gmra.mrb[46].mxu0 %vm434_vm0, %v7897_v57  ;;  %v8568_v57 = vld [vmem:[#allocation2 + $0x3a] sm:$0xff] }
 0x331   : > { %19316 = vmatprep.mubr.msk.f32.mxu0 %vm434_vm0, %v7898_v63  ;;  %v8570_v63 = vld [vmem:[#allocation2 + $0x52] sm:$0xff] }
 0x334   : > { %19317 = vmatmul.mubr.msk.f32.gmra.mrb[48].mxu0 %vm434_vm0, %v7899_v12  ;;  %v8573_v12 = vld [vmem:[#allocation2 + $0x7a] sm:$0xff] }
 0x335   : > { %19319 = vmatprep.mubr.msk.f32.mxu0 %vm434_vm0, %v7900_v28 }
 0x338   : > { %19320 = vmatmul.mubr.msk.f32.gmra.mrb[50].mxu0 %vm434_vm0, %v7901_v4 }
 0x339   : > { %19322 = vmatprep.mubr.msk.f32.mxu0 %vm434_vm0, %v7902_v41 }
 0x33c   : > { %19323 = vmatmul.mubr.msk.f32.gmra.mrb[52].mxu0 %vm434_vm0, %v7903_v7  ;;  %v8575_v7 = vld [vmem:[#allocation2 + $0x92] sm:$0xff] }
 0x33d   : > { %19325 = vmatprep.mubr.msk.f32.mxu0 %vm434_vm0, %v7904_v21 }
 0x340   : > { %19326 = vmatmul.mubr.msk.f32.gmra.mrb[54].mxu0 %vm434_vm0, %v7905_v38 }
 0x341   : > { %19328 = vmatprep.mubr.msk.f32.mxu0 %vm434_vm0, %v7906_v51 }
 0x344   : > { %19329 = vmatmul.mubr.msk.f32.gmra.mrb[56].mxu0 %vm434_vm0, %v7907_v16 }
 0x345   : > { %19331 = vmatprep.mubr.msk.f32.mxu0 %vm434_vm0, %v7908_v24  ;;  %v8576_v24 = vld [vmem:[#allocation2 + $0x9a] sm:$0xff] }
 0x348   : > { %19332 = vmatmul.mubr.msk.f32.gmra.mrb[58].mxu0 %vm434_vm0, %v7909_v19 }
 0x349   : > { %19334 = vmatprep.mubr.msk.f32.mxu0 %vm434_vm0, %v7910_v31 }
 0x34c   : > { %19335 = vmatmul.mubr.msk.f32.gmra.mrb[60].mxu0 %vm434_vm0, %v7911_v15 }
 0x34d   : > { %19337 = vmatprep.mubr.msk.f32.mxu0 %vm434_vm0, %v7912_v32  ;;  %v8577_v32 = vld [vmem:[#allocation2 + $0xaa] sm:$0xff] }
 0x350   : > { %19338 = vmatmul.mubr.msk.f32.gmra.mrb[62].mxu0 %vm434_vm0, %v7913_v29  ;;  %v22866_v29 = vld [vmem:[#allocation3] sm:$0xff] }
 0x351   : > { %19342 = vmatprep.mubr.msk.f32.mxu0 %vm434_vm0, %v7849_v17  ;;  %v22868_v17 = vld [vmem:[#allocation3 + $0x2] sm:$0xff] }
 0x352   : > { %11382 = vst.msk [vmem:[#allocation3] sm:$0xff] %vm434_vm0, %v25746_v30 }
 0x354   : > { %19343 = vmatmul.mubr.msk.f32.vlgmr.msra.gmra.mrb[32].mxu0 %vm434_vm0, %v7850_v22 }
 0x355   : > { %19391 = vmatpush3.msk.msra.mxu0 %vm686_vm2, %v22694_v11  ;;  %19345 = vmatprep.mubr.msk.f32.mxu0 %vm434_vm0, %v22749_v35  ;;  %v7762_v11 = vpop.trf.xlu1 }
 0x356   : > { %19440 = vmatprep.subr.msk.mxu0 %vm686_vm2, %v22746_v25  ;;  %7848 = vst.msk [vmem:[#allocation2 + $0x189] sm:$0xff] %vm434_vm0, %v7762_v11  ;;  %v8580_v11 = vld [vmem:[#allocation2 + $0xca] sm:$0xff] }
 0x358   : > { %19346 = vmatmul.mubr.msk.f32.gmra.mrb[34].mxu0 %vm434_vm0, %v22757_v50 }
 0x359   : > { %19348 = vmatprep.mubr.msk.f32.mxu0 %vm434_vm0, %v22761_v61 }
 0x35c   : > { %19349 = vmatmul.mubr.msk.f32.gmra.mrb[36].mxu0 %vm434_vm0, %v22765_v8 }
 0x35d   : > { %19351 = vmatprep.mubr.msk.f32.mxu0 %vm434_vm0, %v22769_v14 }
 0x360   : > { %19352 = vmatmul.mubr.msk.f32.gmra.mrb[38].mxu0 %vm434_vm0, %v22773_v20 }
 0x361   : > { %19354 = vmatprep.mubr.msk.f32.mxu0 %vm434_vm0, %v22777_v40 }
 0x364   : > { %19355 = vmatmul.mubr.msk.f32.gmra.mrb[40].mxu0 %vm434_vm0, %v22781_v45 }
 0x365   : > { %19357 = vmatprep.mubr.msk.f32.mxu0 %vm434_vm0, %v22785_v55 }
 0x368   : > { %19358 = vmatmul.mubr.msk.f32.gmra.mrb[42].mxu0 %vm434_vm0, %v22789_v60 }
 0x369   : > { %19360 = vmatprep.mubr.msk.f32.mxu0 %vm434_vm0, %v22793_v37 }
 0x36c   : > { %19361 = vmatmul.mubr.msk.f32.gmra.mrb[44].mxu0 %vm434_vm0, %v22797_v47 }
 0x36d   : > { %19363 = vmatprep.mubr.msk.f32.mxu0 %vm434_vm0, %v22801_v54 }
 0x370   : > { %19364 = vmatmul.mubr.msk.f32.gmra.mrb[46].mxu0 %vm434_vm0, %v22808_v62 }
 0x371   : > { %19366 = vmatprep.mubr.msk.f32.mxu0 %vm434_vm0, %v22813_v9 }
 0x374   : > { %19367 = vmatmul.mubr.msk.f32.gmra.mrb[48].mxu0 %vm434_vm0, %v22817_v6 }
 0x375   : > { %19369 = vmatprep.mubr.msk.f32.mxu0 %vm434_vm0, %v22821_v52 }
 0x378   : > { %19370 = vmatmul.mubr.msk.f32.gmra.mrb[50].mxu0 %vm434_vm0, %v7868_v42  ;;  %v8578_v42 = vld [vmem:[#allocation2 + $0xb2] sm:$0xff] }
 0x379   : > { %19372 = vmatprep.mubr.msk.f32.mxu0 %vm434_vm0, %v7869_v10  ;;  %v8579_v10 = vld [vmem:[#allocation2 + $0xc2] sm:$0xff] }
 0x37c   : > { %19373 = vmatmul.mubr.msk.f32.gmra.mrb[52].mxu0 %vm434_vm0, %v7870_v18 }
 0x37d   : > { %19375 = vmatprep.mubr.msk.f32.mxu0 %vm434_vm0, %v7871_v58 }
 0x380   : > { %19376 = vmatmul.mubr.msk.f32.gmra.mrb[54].mxu0 %vm434_vm0, %v7872_v0  ;;  %v22877_v0 = vld [vmem:[#allocation3 + $0xa] sm:$0xff] }
 0x381   : > { %19378 = vmatprep.mubr.msk.f32.mxu0 %vm434_vm0, %v7873_v13  ;;  %11383 = vst.msk [vmem:[#allocation3 + $0x8] sm:$0xff] %vm434_vm0, %v25746_v30 }
 0x382   : > { %11384 = vst.msk [vmem:[#allocation3 + $0x10] sm:$0x3] %vm437_vm1, %v25746_v30 }
 0x384   : > { %19379 = vmatmul.mubr.msk.f32.gmra.mrb[56].mxu0 %vm434_vm0, %v7874_v23 }
 0x385   : > { %19381 = vmatprep.mubr.msk.f32.mxu0 %vm434_vm0, %v7875_v26 }
 0x388   : > { %19382 = vmatmul.mubr.msk.f32.gmra.mrb[58].mxu0 %vm434_vm0, %v7876_v27  ;;  %v8581_v27 = vld [vmem:[#allocation2 + $0xda] sm:$0xff] }
 0x389   : > { %19384 = vmatprep.mubr.msk.f32.mxu0 %vm434_vm0, %v7877_v33 }
 0x38c   : > { %19385 = vmatmul.mubr.msk.f32.gmra.mrb[60].mxu0 %vm434_vm0, %v7878_v34 }
 0x38d   : > { %19387 = vmatprep.mubr.msk.f32.mxu0 %vm434_vm0, %v7879_v36 }
 0x390   : > { %19388 = vmatmul.mubr.msk.f32.gmra.mrb[62].mxu0 %vm434_vm0, %v7880_v43 }
 0x391   : > { %19392 = vmatprep.mubr.msk.f32.mxu0 %vm434_vm0, %v8563_v39 }
 0x394   : > { %19393 = vmatmul.mubr.msk.f32.vlgmr.msra.gmra.mrb[32].mxu0 %vm434_vm0, %v8564_v44 }
 0x395   : > { %19441 = vmatpush3.msk.msra.mxu0 %vm686_vm2, %v22746_v25  ;;  %19395 = vmatprep.mubr.msk.f32.mxu0 %vm434_vm0, %v8565_v49 }
 0x396   : > { %19490 = vmatprep.subr.msk.mxu0 %vm686_vm2, %v22844_v46 }
 0x398   : > { %19396 = vmatmul.mubr.msk.f32.gmra.mrb[34].mxu0 %vm434_vm0, %v8566_v53 }
 0x399   : > { %19398 = vmatprep.mubr.msk.f32.mxu0 %vm434_vm0, %v8567_v56 }
 0x39c   : > { %19399 = vmatmul.mubr.msk.f32.gmra.mrb[36].mxu0 %vm434_vm0, %v8568_v57 }
 0x39d   : > { %19401 = vmatprep.mubr.msk.f32.mxu0 %vm434_vm0, %v8569_v59 }
 0x3a0   : > { %19402 = vmatmul.mubr.msk.f32.gmra.mrb[38].mxu0 %vm434_vm0, %v8570_v63 }
 0x3a1   : > { %19404 = vmatprep.mubr.msk.f32.mxu0 %vm434_vm0, %v8571_v3 }
 0x3a4   : > { %19405 = vmatmul.mubr.msk.f32.gmra.mrb[40].mxu0 %vm434_vm0, %v8572_v5  ;;  %v8582_v5 = vld [vmem:[#allocation2 + $0xe2] sm:$0xff] }
 0x3a5   : > { %19407 = vmatprep.mubr.msk.f32.mxu0 %vm434_vm0, %v8573_v12 }
 0x3a7   : > { %v18794_v28 = vpop.f32.mrb[0].mxu0 }
 0x3a8   : > { %vm3971_vm3 = vcmp.ge.f32.partialorder %v18794_v28, 0.0  ;;  %v4003_v4 = vmul.f32 0.1, %v18794_v28  ;;  %v3779_v41 = vpop.f32.mrb[1].mxu0  ;;  %19408 = vmatmul.mubr.msk.f32.gmra.mrb[42].mxu0 %vm434_vm0, %v8574_v48 }
 0x3a9   : > { %vm3970_vm4 = vcmp.ge.f32.partialorder %v3779_v41, 0.0  ;;  %v4002_v21 = vmul.f32 0.1, %v3779_v41  ;;  %19410 = vmatprep.mubr.msk.f32.mxu0 %vm434_vm0, %v8575_v7 }
 0x3aa   : > { %v4035_v38 = vsel %vm3971_vm3, %v18794_v28, %v4003_v4 }
 0x3ab   : > { %4122 = vst.msk [vmem:[#allocation3 + $0x21] sm:$0xff] %vm434_vm0, %v4035_v38  ;;  %v4034_v51 = vsel %vm3970_vm4, %v3779_v41, %v4002_v21  ;;  %v18797_v16 = vpop.f32.mrb[2].mxu0  ;;  %v8583_v41 = vld [vmem:[#allocation2 + $0xf2] sm:$0xff] }
 0x3ac   : > { %4121 = vst.msk [vmem:[#allocation3 + $0x19] sm:$0xff] %vm434_vm0, %v4034_v51  ;;  %vm3973_vm5 = vcmp.ge.f32.partialorder %v18797_v16, 0.0  ;;  %v4005_v19 = vmul.f32 0.1, %v18797_v16  ;;  %v3789_v31 = vpop.f32.mrb[3].mxu0  ;;  %19411 = vmatmul.mubr.msk.f32.gmra.mrb[44].mxu0 %vm434_vm0, %v8576_v24 }
 0x3ad   : > { %vm3972_vm6 = vcmp.ge.f32.partialorder %v3789_v31, 0.0  ;;  %v4004_v15 = vmul.f32 0.1, %v3789_v31  ;;  %19413 = vmatprep.mubr.msk.f32.mxu0 %vm434_vm0, %v8577_v32 }
 0x3ae   : > { %v4037_v22 = vsel %vm3973_vm5, %v18797_v16, %v4005_v19 }
 0x3af   : > { %4124 = vst.msk [vmem:[#allocation3 + $0x39] sm:$0xff] %vm434_vm0, %v4037_v22  ;;  %v4036_v25 = vsel %vm3972_vm6, %v3789_v31, %v4004_v15  ;;  %v18800_v2 = vpop.f32.mrb[4].mxu0  ;;  %v8584_v15 = vld [vmem:[#allocation2 + $0xfa] sm:$0xff] }
 0x3b0   : > { %4123 = vst.msk [vmem:[#allocation3 + $0x31] sm:$0xff] %vm434_vm0, %v4036_v25  ;;  %vm3975_vm7 = vcmp.ge.f32.partialorder %v18800_v2, 0.0  ;;  %v4007_v18 = vmul.f32 0.1, %v18800_v2  ;;  %v3799_v58 = vpop.f32.mrb[5].mxu0  ;;  %19414 = vmatmul.mubr.msk.f32.gmra.mrb[46].mxu0 %vm434_vm0, %v8578_v42  ;;  %v8585_v42 = vld [vmem:[#allocation2 + $0x10a] sm:$0xff] }
 0x3b1   : > { %vm3974_vm8 = vcmp.ge.f32.partialorder %v3799_v58, 0.0  ;;  %v4006_v13 = vmul.f32 0.1, %v3799_v58  ;;  %19416 = vmatprep.mubr.msk.f32.mxu0 %vm434_vm0, %v8579_v10 }
 0x3b2   : > { %v4039_v23 = vsel %vm3975_vm7, %v18800_v2, %v4007_v18  ;;  %v4189_v26 = vld [vmem:[#allocation3 + $0x21] sm:$0xff] }
 0x3b3   : > { %v22884_v33 = vld [vmem:[#allocation3 + $0x22] sm:$0xff]  ;;  %4126 = vst.msk [vmem:[#allocation3 + $0x51] sm:$0xff] %vm434_vm0, %v4039_v23  ;;  %v4038_v36 = vsel %vm3974_vm8, %v3799_v58, %v4006_v13  ;;  %v18803_v39 = vpop.f32.mrb[6].mxu0  ;;  %v4188_v43 = vld [vmem:[#allocation3 + $0x19] sm:$0xff] }
 0x3b4   : > { %v22886_v34 = vld [vmem:[#allocation3 + $0x21] sm:$0xff]  ;;  %v22889_v44 = vld [vmem:[#allocation3 + $0x18] sm:$0xff]  ;;  %4125 = vst.msk [vmem:[#allocation3 + $0x49] sm:$0xff] %vm434_vm0, %v4038_v36  ;;  %vm3977_vm9 = vcmp.ge.f32.partialorder %v18803_v39, 0.0  ;;  %v4009_v53 = vmul.f32 0.1, %v18803_v39  ;;  %18845 = vmatprep.mubr.msk.f32.mxu1 %vm434_vm0, %v4188_v43  ;;  %19417 = vmatmul.mubr.msk.f32.gmra.mrb[48].mxu0 %vm434_vm0, %v8580_v11 }
 0x3b5   : > { %25769 = vst [vmem:[#allocation40_spill] sm:$0xff] %v22886_v34  ;;  %25770 = vst [vmem:[#allocation42_spill] sm:$0xff] %v22889_v44  ;;  %v22891_v49 = vld [vmem:[#allocation3 + $0x20] sm:$0xff]  ;;  %v3809_v56 = vpop.f32.mrb[7].mxu0  ;;  %18846 = vmatmul.mubr.msk.f32.gmra.mrb[2].mxu1 %vm434_vm0, %v4189_v26  ;;  %19419 = vmatprep.mubr.msk.f32.mxu0 %vm434_vm0, %v8581_v27 }
 0x3b6   : > { %11387 = vst.msk [vmem:[#allocation3 + $0x28] sm:$0x3] %vm437_vm1, %v25746_v30  ;;  %v22898_v57 = vld [vmem:[#allocation3 + $0x1a] sm:$0xff]  ;;  %vm3976_vm10 = vcmp.ge.f32.partialorder %v3809_v56, 0.0  ;;  %v4008_v63 = vmul.f32 0.1, %v3809_v56  ;;  %v4041_v3 = vsel %vm3977_vm9, %v18803_v39, %v4009_v53 }
 0x3b7   : > { %v22900_v59 = vld [vmem:[#allocation3 + $0x19] sm:$0xff]  ;;  %4128 = vst.msk [vmem:[#allocation3 + $0x69] sm:$0xff] %vm434_vm0, %v4041_v3  ;;  %v18806_v28 = vpop.f32.mrb[8].mxu0  ;;  %v4190_v48 = vld [vmem:[#allocation3 + $0x31] sm:$0xff]  ;;  %v8586_v43 = vld [vmem:[#allocation2 + $0x112] sm:$0xff] }
 0x3b8   : > { %25771 = vst [vmem:[#allocation46_spill] sm:$0xff] %v22900_v59  ;;  %11385 = vst.msk [vmem:[#allocation3 + $0x18] sm:$0xff] %vm434_vm0, %v25746_v30  ;;  %v4040_v12 = vsel %vm3976_vm10, %v3809_v56, %v4008_v63  ;;  %v4191_v4 = vld [vmem:[#allocation3 + $0x39] sm:$0xff]  ;;  %vm3979_vm11 = vcmp.ge.f32.partialorder %v18806_v28, 0.0  ;;  %v4011_v7 = vmul.f32 0.1, %v18806_v28  ;;  %18848 = vmatprep.mubr.msk.f32.mxu1 %vm434_vm0, %v4190_v48  ;;  %19420 = vmatmul.mubr.msk.f32.gmra.mrb[50].mxu0 %vm434_vm0, %v8582_v5 }
 0x3b9   : > { %11386 = vst.msk [vmem:[#allocation3 + $0x20] sm:$0xff] %vm434_vm0, %v25746_v30  ;;  %4127 = vst.msk [vmem:[#allocation3 + $0x61] sm:$0xff] %vm434_vm0, %v4040_v12  ;;  %v3819_v21 = vpop.f32.mrb[9].mxu0  ;;  %v22912_v38 = vld [vmem:[#allocation3 + $0x30] sm:$0xff]  ;;  %18849 = vmatmul.mubr.msk.f32.gmra.mrb[4].mxu1 %vm434_vm0, %v4191_v4  ;;  %19422 = vmatprep.mubr.msk.f32.mxu0 %vm434_vm0, %v8583_v41  ;;  %v22927_v10 = vld [vmem:[#allocation3 + $0x3a] sm:$0xff] }
 0x3ba   : > { %v22914_v51 = vld [vmem:[#allocation3 + $0x32] sm:$0xff]  ;;  %vm3978_vm12 = vcmp.ge.f32.partialorder %v3819_v21, 0.0  ;;  %v4010_v16 = vmul.f32 0.1, %v3819_v21  ;;  %v4043_v32 = vsel %vm3979_vm11, %v18806_v28, %v4011_v7  ;;  %v22940_v36 = vld [vmem:[#allocation3 + $0x3a] sm:$0xff] }
 0x3bb   : > { %25772 = vst [vmem:[#allocation48_spill] sm:$0xff] %v22914_v51  ;;  %v22918_v24 = vld [vmem:[#allocation3 + $0x31] sm:$0xff]  ;;  %4130 = vst.msk [vmem:[#allocation3 + $0x81] sm:$0xff] %vm434_vm0, %v4043_v32  ;;  %v18809_v25 = vpop.f32.mrb[10].mxu0  ;;  %v4192_v2 = vld [vmem:[#allocation3 + $0x49] sm:$0xff] }
 0x3bc   : > { %25773 = vst [vmem:[#allocation4_spill] sm:$0xff] %v22918_v24  ;;  %v22920_v19 = vld [vmem:[#allocation3 + $0x30] sm:$0xff]  ;;  %v4042_v22 = vsel %vm3978_vm12, %v3819_v21, %v4010_v16  ;;  %vm3981_vm13 = vcmp.ge.f32.partialorder %v18809_v25, 0.0  ;;  %v4013_v18 = vmul.f32 0.1, %v18809_v25  ;;  %v3829_v58 = vpop.f32.mrb[11].mxu0  ;;  %18851 = vmatprep.mubr.msk.f32.mxu1 %vm434_vm0, %v4192_v2  ;;  %19423 = vmatmul.mubr.msk.f32.gmra.mrb[52].mxu0 %vm434_vm0, %v8584_v15 }
 0x3bd   : > { %25774 = vst [vmem:[#allocation5_spill] sm:$0xff] %v22920_v19  ;;  %v22922_v31 = vld [vmem:[#allocation3 + $0x32] sm:$0xff]  ;;  %4129 = vst.msk [vmem:[#allocation3 + $0x79] sm:$0xff] %vm434_vm0, %v4042_v22  ;;  %vm3980_vm14 = vcmp.ge.f32.partialorder %v3829_v58, 0.0  ;;  %v4012_v23 = vmul.f32 0.1, %v3829_v58  ;;  %19425 = vmatprep.mubr.msk.f32.mxu0 %vm434_vm0, %v8585_v42 }
 0x3be   : > { %25775 = vst [vmem:[#allocation6_spill] sm:$0xff] %v22922_v31  ;;  %11388 = vst.msk [vmem:[#allocation3 + $0x30] sm:$0xff] %vm434_vm0, %v25746_v30  ;;  %v4193_v13 = vld [vmem:[#allocation3 + $0x51] sm:$0xff]  ;;  %v22932_v11 = vld [vmem:[#allocation3 + $0x39] sm:$0xff]  ;;  %v4045_v39 = vsel %vm3981_vm13, %v18809_v25, %v4013_v18 }
 0x3bf   : > { %25776 = vst [vmem:[#allocation7_spill] sm:$0xff] %v22932_v11  ;;  %18852 = vmatmul.mubr.msk.f32.gmra.mrb[6].mxu1 %vm434_vm0, %v4193_v13  ;;  %v22936_v26 = vld [vmem:[#allocation3 + $0x38] sm:$0xff]  ;;  %25778 = vst [vmem:[#allocation11_spill] sm:$0xff] %v22940_v36  ;;  %v4044_v53 = vsel %vm3980_vm14, %v3829_v58, %v4012_v23  ;;  %v18812_v56 = vpop.f32.mrb[12].mxu0  ;;  %v22947_v5 = vld [vmem:[#allocation3 + $0x48] sm:$0xff] }
 0x3c0   : > { %v22938_v27 = vld [vmem:[#allocation3 + $0x38] sm:$0xff]  ;;  %11390 = vst.msk [vmem:[#allocation3 + $0x40] sm:$0x3] %vm437_vm1, %v25746_v30  ;;  %v4194_v63 = vld [vmem:[#allocation3 + $0x61] sm:$0xff]  ;;  %vm3983_vm15 = vcmp.ge.f32.partialorder %v18812_v56, 0.0  ;;  %v3839_v28 = vpop.f32.mrb[13].mxu0  ;;  %19426 = vmatmul.mubr.msk.f32.gmra.mrb[54].mxu0 %vm434_vm0, %v8586_v43 }
 0x3c1   : > { %25777 = vst [vmem:[#allocation10_spill] sm:$0xff] %v22938_v27  ;;  %11389 = vst.msk [vmem:[#allocation3 + $0x38] sm:$0xff] %vm434_vm0, %v25746_v30  ;;  %v8587_v3 = vld [vmem:[#allocation2 + $0x122] sm:$0xff]  ;;  %v4015_v12 = vmul.f32 0.1, %v18812_v56  ;;  %18854 = vmatprep.mubr.msk.f32.mxu1 %vm434_vm0, %v4194_v63  ;;  %v4195_v48 = vld [vmem:[#allocation3 + $0x69] sm:$0xff] }
 0x3c2   : > { %4132 = vst.msk [vmem:[#allocation3 + $0x99] sm:$0xff] %vm434_vm0, %v4045_v39  ;;  %4131 = vst.msk [vmem:[#allocation3 + $0x91] sm:$0xff] %vm434_vm0, %v4044_v53  ;;  %v22952_v4 = vld [vmem:[#allocation3 + $0x4a] sm:$0xff]  ;;  %vm3982_vm3 = vcmp.ge.f32.partialorder %v3839_v28, 0.0  ;;  %v4014_v41 = vmul.f32 0.1, %v3839_v28  ;;  %19428 = vmatprep.mubr.msk.f32.mxu0 %vm434_vm0, %v8587_v3 }
 0x3c3   : > { %25779 = vst [vmem:[#allocation14_spill] sm:$0xff] %v22952_v4  ;;  %18855 = vmatmul.mubr.msk.f32.gmra.mrb[8].mxu1 %vm434_vm0, %v4195_v48  ;;  %v22956_v7 = vld [vmem:[#allocation3 + $0x49] sm:$0xff]  ;;  %v4047_v32 = vsel %vm3983_vm15, %v18812_v56, %v4015_v12  ;;  %v8588_v15 = vld [vmem:[#allocation2 + $0x12a] sm:$0xff]  ;;  %v18815_v25 = vpop.f32.mrb[14].mxu0  ;;  %v22965_v18 = vld [vmem:[#allocation3 + $0x52] sm:$0xff] }
 0x3c4   : > { %25780 = vst [vmem:[#allocation15_spill] sm:$0xff] %v22956_v7  ;;  %v22958_v21 = vld [vmem:[#allocation3 + $0x48] sm:$0xff]  ;;  %4134 = vst.msk [vmem:[#allocation3 + $0xb1] sm:$0xff] %vm434_vm0, %v4047_v32  ;;  %v4046_v22 = vsel %vm3982_vm3, %v3839_v28, %v4014_v41  ;;  %v4196_v2 = vld [vmem:[#allocation3 + $0x79] sm:$0xff]  ;;  %vm3985_vm4 = vcmp.ge.f32.partialorder %v18815_v25, 0.0  ;;  %v3849_v13 = vpop.f32.mrb[15].mxu0  ;;  %19429 = vmatmul.mubr.msk.f32.gmra.mrb[56].mxu0 %vm434_vm0, %v8588_v15 }
 0x3c5   : > { %25781 = vst [vmem:[#allocation18_spill] sm:$0xff] %v22958_v21  ;;  %v22960_v16 = vld [vmem:[#allocation3 + $0x4a] sm:$0xff]  ;;  %4133 = vst.msk [vmem:[#allocation3 + $0xa9] sm:$0xff] %vm434_vm0, %v4046_v22  ;;  %v4017_v58 = vmul.f32 0.1, %v18815_v25  ;;  %18857 = vmatprep.mubr.msk.f32.mxu1 %vm434_vm0, %v4196_v2  ;;  %v4197_v23 = vld [vmem:[#allocation3 + $0x81] sm:$0xff] }
 0x3c6   : > { %25782 = vst [vmem:[#allocation19_spill] sm:$0xff] %v22960_v16  ;;  %11391 = vst.msk [vmem:[#allocation3 + $0x48] sm:$0xff] %vm434_vm0, %v25746_v30  ;;  %v8589_v42 = vld [vmem:[#allocation2 + $0x13a] sm:$0xff]  ;;  %vm3984_vm5 = vcmp.ge.f32.partialorder %v3849_v13, 0.0  ;;  %v4016_v43 = vmul.f32 0.1, %v3849_v13 }
 0x3c7   : > { %v22970_v39 = vld [vmem:[#allocation3 + $0x51] sm:$0xff]  ;;  %18858 = vmatmul.mubr.msk.f32.gmra.mrb[10].mxu1 %vm434_vm0, %v4197_v23  ;;  %19431 = vmatprep.mubr.msk.f32.mxu0 %vm434_vm0, %v8589_v42  ;;  %v4049_v3 = vsel %vm3985_vm4, %v18815_v25, %v4017_v58  ;;  %v18818_v48 = vpop.f32.mrb[16].mxu0  ;;  %v8591_v32 = vld [vmem:[#allocation2 + $0x152] sm:$0xff]  ;;  %v23003_v16 = vld [vmem:[#allocation2 + $0x16a] sm:$0xff] }
 0x3c8   : > { %25783 = vst [vmem:[#allocation22_spill] sm:$0xff] %v22970_v39  ;;  %v22974_v53 = vld [vmem:[#allocation3 + $0x50] sm:$0xff]  ;;  %4136 = vst.msk [vmem:[#allocation3 + $0xc9] sm:$0xff] %vm434_vm0, %v4049_v3  ;;  %v4048_v28 = vsel %vm3984_vm5, %v3849_v13, %v4016_v43  ;;  %v22985_v15 = vld [vmem:[#allocation3 + $0x60] sm:$0xff]  ;;  %vm3987_vm6 = vcmp.ge.f32.partialorder %v18818_v48, 0.0  ;;  %v3859_v25 = vpop.f32.mrb[17].mxu0 }
 0x3c9   : > { %v22976_v56 = vld [vmem:[#allocation3 + $0x50] sm:$0xff]  ;;  %4135 = vst.msk [vmem:[#allocation3 + $0xc1] sm:$0xff] %vm434_vm0, %v4048_v28  ;;  %v4019_v22 = vmul.f32 0.1, %v18818_v48  ;;  %v4199_v2 = vld [vmem:[#allocation3 + $0x99] sm:$0xff]  ;;  %v22990_v42 = vld [vmem:[#allocation3 + $0x62] sm:$0xff] }
 0x3ca   : > { %25784 = vst [vmem:[#allocation36_spill] sm:$0xff] %v22976_v56  ;;  %v22978_v63 = vld [vmem:[#allocation3 + $0x52] sm:$0xff]  ;;  %25786 = vst [vmem:[#allocation38_spill] sm:$0xff] %v22990_v42  ;;  %vm3986_vm7 = vcmp.ge.f32.partialorder %v3859_v25, 0.0  ;;  %v4018_v58 = vmul.f32 0.1, %v3859_v25 }
 0x3cb   : > { %25785 = vst [vmem:[#allocation37_spill] sm:$0xff] %v22978_v63  ;;  %v8590_v12 = vld [vmem:[#allocation2 + $0x142] sm:$0xff]  ;;  %11393 = vst.msk [vmem:[#allocation3 + $0x58] sm:$0x3] %vm437_vm1, %v25746_v30  ;;  %v22994_v13 = vld [vmem:[#allocation3 + $0x61] sm:$0xff]  ;;  %v4051_v3 = vsel %vm3987_vm6, %v18818_v48, %v4019_v22 }
 0x3cc   : > { %11392 = vst.msk [vmem:[#allocation3 + $0x50] sm:$0xff] %vm434_vm0, %v25746_v30  ;;  %v4198_v41 = vld [vmem:[#allocation3 + $0x91] sm:$0xff]  ;;  %19432 = vmatmul.mubr.msk.f32.gmra.mrb[58].mxu0 %vm434_vm0, %v8590_v12  ;;  %25787 = vst [vmem:[#allocation43_spill] sm:$0xff] %v22994_v13  ;;  %v22996_v23 = vld [vmem:[#allocation3 + $0x60] sm:$0xff]  ;;  %v4050_v12 = vsel %vm3986_vm7, %v3859_v25, %v4018_v58 }
 0x3cd   : > { %18860 = vmatprep.mubr.msk.f32.mxu1 %vm434_vm0, %v4198_v41  ;;  %19434 = vmatprep.mubr.msk.f32.mxu0 %vm434_vm0, %v8591_v32  ;;  %25788 = vst [vmem:[#allocation49_spill] sm:$0xff] %v22996_v23  ;;  %v22998_v43 = vld [vmem:[#allocation3 + $0x62] sm:$0xff]  ;;  %v8592_v28 = vld [vmem:[#allocation2 + $0x15a] sm:$0xff]  ;;  %4138 = vst.msk [vmem:[#allocation3 + $0xe1] sm:$0xff] %vm434_vm0, %v4051_v3  ;;  %v18821_v41 = vpop.f32.mrb[18].mxu0 }
 0x3ce   : > { %18861 = vmatmul.mubr.msk.f32.gmra.mrb[12].mxu1 %vm434_vm0, %v4199_v2  ;;  %25789 = vst [vmem:[#allocation50_spill] sm:$0xff] %v22998_v43  ;;  %11394 = vst.msk [vmem:[#allocation3 + $0x60] sm:$0xff] %vm434_vm0, %v25746_v30  ;;  %v4200_v63 = vld [vmem:[#allocation3 + $0xa9] sm:$0xff]  ;;  %vm3989_vm8 = vcmp.ge.f32.partialorder %v18821_v41, 0.0  ;;  %v4021_v32 = vmul.f32 0.1, %v18821_v41 }
 0x3cf   : > { %25790 = vst [vmem:[#allocation54_spill] sm:$0xff] %v23003_v16  ;;  %v23005_v2 = vld [vmem:[#allocation3 + $0x6a] sm:$0xff]  ;;  %4137 = vst.msk [vmem:[#allocation3 + $0xd9] sm:$0xff] %vm434_vm0, %v4050_v12  ;;  %v3869_v36 = vpop.f32.mrb[19].mxu0  ;;  %18863 = vmatprep.mubr.msk.f32.mxu1 %vm434_vm0, %v4200_v63  ;;  %v23026_v31 = vld [vmem:[#allocation2 + $0x172] sm:$0xff] }
 0x3d0   : > { %19435 = vmatmul.mubr.msk.f32.gmra.mrb[60].mxu0 %vm434_vm0, %v8592_v28  ;;  %v4201_v48 = vld [vmem:[#allocation3 + $0xb1] sm:$0xff]  ;;  %v23010_v22 = vld [vmem:[#allocation3 + $0x69] sm:$0xff]  ;;  %vm3988_vm9 = vcmp.ge.f32.partialorder %v3869_v36, 0.0  ;;  %v4020_v25 = vmul.f32 0.1, %v3869_v36  ;;  %v4053_v43 = vsel %vm3989_vm8, %v18821_v41, %v4021_v32  ;;  %v18824_v28 = vpop.f32.mrb[20].mxu0 }
 0x3d1   : > { %25791 = vst [vmem:[#allocation56_spill] sm:$0xff] %v23010_v22  ;;  %19437 = vmatprep.mubr.msk.f32.mxu0 %vm434_vm0, %v23003_v16  ;;  %v23015_v58 = vld [vmem:[#allocation3 + $0x68] sm:$0xff]  ;;  %4140 = vst.msk [vmem:[#allocation3 + $0xf9] sm:$0xff] %vm434_vm0, %v4053_v43  ;;  %v23028_v23 = vld [vmem:[#allocation3 + $0x78] sm:$0xff]  ;;  %vm3991_vm10 = vcmp.ge.f32.partialorder %v18824_v28, 0.0  ;;  %v3879_v41 = vpop.f32.mrb[21].mxu0 }
 0x3d2   : > { %18864 = vmatmul.mubr.msk.f32.gmra.mrb[14].mxu1 %vm434_vm0, %v4201_v48  ;;  %v23017_v3 = vld [vmem:[#allocation3 + $0x68] sm:$0xff]  ;;  %v4052_v63 = vsel %vm3988_vm9, %v3869_v36, %v4020_v25  ;;  %25794 = vst [vmem:[#allocation45_spill] sm:$0xff] %v23026_v31  ;;  %vm3990_vm11 = vcmp.ge.f32.partialorder %v3879_v41, 0.0  ;;  %v4022_v36 = vmul.f32 0.1, %v3879_v41  ;;  %v23039_v43 = vld [vmem:[#allocation3 + $0x79] sm:$0xff] }
 0x3d3   : > { %25792 = vst [vmem:[#allocation39_spill] sm:$0xff] %v23017_v3  ;;  %v23019_v12 = vld [vmem:[#allocation3 + $0x6a] sm:$0xff]  ;;  %v4202_v48 = vld [vmem:[#allocation3 + $0xc1] sm:$0xff]  ;;  %4139 = vst.msk [vmem:[#allocation3 + $0xf1] sm:$0xff] %vm434_vm0, %v4052_v63  ;;  %v18827_v21 = vpop.f32.mrb[22].mxu0 }
 0x3d4   : > { %25793 = vst [vmem:[#allocation41_spill] sm:$0xff] %v23019_v12  ;;  %11396 = vst.msk [vmem:[#allocation3 + $0x70] sm:$0x3] %vm437_vm1, %v25746_v30  ;;  %v4023_v12 = vmul.f32 0.1, %v18824_v28  ;;  %18866 = vmatprep.mubr.msk.f32.mxu1 %vm434_vm0, %v4202_v48  ;;  %19438 = vmatmul.mubr.msk.f32.gmra.mrb[62].mxu0 %vm434_vm0, %v23026_v31  ;;  %v4203_v32 = vld [vmem:[#allocation3 + $0xc9] sm:$0xff]  ;;  %v4054_v56 = vsel %vm3990_vm11, %v3879_v41, %v4022_v36 }
 0x3d5   : > { %11395 = vst.msk [vmem:[#allocation3 + $0x68] sm:$0xff] %vm434_vm0, %v25746_v30  ;;  %v23034_v3 = vld [vmem:[#allocation3 + $0x7a] sm:$0xff]  ;;  %19442 = vmatprep.mubr.msk.f32.mxu0 %vm434_vm0, %v22749_v35  ;;  %25796 = vst [vmem:[#allocation51_spill] sm:$0xff] %v23039_v43  ;;  %vm3993_vm12 = vcmp.ge.f32.partialorder %v18827_v21, 0.0  ;;  %v4025_v35 = vmul.f32 0.1, %v18827_v21 }
 0x3d6   : > { %25795 = vst [vmem:[#allocation47_spill] sm:$0xff] %v23034_v3  ;;  %18867 = vmatmul.mubr.msk.f32.gmra.mrb[16].mxu1 %vm434_vm0, %v4203_v32  ;;  %v23041_v25 = vld [vmem:[#allocation3 + $0x78] sm:$0xff]  ;;  %v4055_v48 = vsel %vm3991_vm10, %v18824_v28, %v4023_v12  ;;  %v23051_v32 = vld [vmem:[%s25453_s2 + $0x14] sm:$0xf]  ;;  %4141 = vst.msk [vmem:[#allocation3 + $0x109] sm:$0xff] %vm434_vm0, %v4054_v56 }
 0x3d7   : > { %25797 = vst [vmem:[#allocation52_spill] sm:$0xff] %v23041_v25  ;;  %v23043_v63 = vld [vmem:[#allocation3 + $0x7a] sm:$0xff]  ;;  %4142 = vst.msk [vmem:[#allocation3 + $0x111] sm:$0xff] %vm434_vm0, %v4055_v48  ;;  %v3889_v25 = vpop.f32.mrb[23].mxu0  ;;  %v4057_v41 = vsel %vm3993_vm12, %v18827_v21, %v4025_v35  ;;  %v23065_v36 = vld [vmem:[#allocation3 + $0x82] sm:$0xff] }
 0x3d8   : > { %25798 = vst [vmem:[#allocation53_spill] sm:$0xff] %v23043_v63  ;;  %11397 = vst.msk [vmem:[#allocation3 + $0x78] sm:$0xff] %vm434_vm0, %v25746_v30  ;;  %v4204_v27 = vld [vmem:[#allocation3 + $0xd9] sm:$0xff]  ;;  %19443 = vmatmul.mubr.msk.f32.vlgmr.msra.gmra.mrb[32].mxu0 %vm434_vm0, %v22757_v50  ;;  %v4205_v12 = vld [vmem:[#allocation3 + $0xe1] sm:$0xff]  ;;  %vm3992_vm13 = vcmp.ge.f32.partialorder %v3889_v25, 0.0  ;;  %v18830_v56 = vpop.f32.mrb[24].mxu0 }
 0x3d9   : > { %18869 = vmatprep.mubr.msk.f32.mxu1 %vm434_vm0, %v4204_v27  ;;  %v4024_v28 = vmul.f32 0.1, %v3889_v25  ;;  %19491 = vmatpush3.msk.msra.mxu0 %vm686_vm2, %v22844_v46  ;;  %4144 = vst.msk [vmem:[#allocation3 + $0x129] sm:$0xff] %vm434_vm0, %v4057_v41  ;;  %vm3995_vm14 = vcmp.ge.f32.partialorder %v18830_v56, 0.0  ;;  %v4027_v46 = vmul.f32 0.1, %v18830_v56 }
 0x3da   : > { %18870 = vmatmul.mubr.msk.f32.gmra.mrb[18].mxu1 %vm434_vm0, %v4205_v12  ;;  %19445 = vmatprep.mubr.msk.f32.mxu0 %vm434_vm0, %v22761_v61  ;;  %v4206_v50 = vld [vmem:[#allocation3 + $0xf1] sm:$0xff]  ;;  %v3899_v48 = vpop.f32.mrb[25].mxu0  ;;  %v4207_v61 = vld [vmem:[#allocation3 + $0xf9] sm:$0xff]  ;;  %v23071_v21 = vld [vmem:[#allocation3 + $0x81] sm:$0xff] }
 0x3db   : > { %19540 = vmatprep.subr.msk.mxu0 %vm686_vm2, %v23051_v32  ;;  %v4056_v27 = vsel %vm3992_vm13, %v3889_v25, %v4024_v28  ;;  %18872 = vmatprep.mubr.msk.f32.mxu1 %vm434_vm0, %v4206_v50  ;;  %25799 = vst [vmem:[#allocation55_spill] sm:$0xff] %v23071_v21  ;;  %vm3994_vm15 = vcmp.ge.f32.partialorder %v3899_v48, 0.0  ;;  %v4026_v35 = vmul.f32 0.1, %v3899_v48  ;;  %v23076_v25 = vld [vmem:[#allocation3 + $0x80] sm:$0xff]  ;;  %v4059_v41 = vsel %vm3995_vm14, %v18830_v56, %v4027_v46  ;;  %v23093_v46 = vld [vmem:[#allocation3 + $0x92] sm:$0xff] }
 0x3dc   : > { %4143 = vst.msk [vmem:[#allocation3 + $0x121] sm:$0xff] %vm434_vm0, %v4056_v27  ;;  %19446 = vmatmul.mubr.msk.f32.gmra.mrb[34].mxu0 %vm434_vm0, %v22765_v8  ;;  %v23078_v12 = vld [vmem:[#allocation3 + $0x80] sm:$0xff]  ;;  %4146 = vst.msk [vmem:[#allocation3 + $0x141] sm:$0xff] %vm434_vm0, %v4059_v41  ;;  %v18833_v27 = vpop.f32.mrb[26].mxu0  ;;  %v23265_v11 = vld [vmem:[#allocation3 + $0xf8] sm:$0xff] }
 0x3dd   : > { %19448 = vmatprep.mubr.msk.f32.mxu0 %vm434_vm0, %v22769_v14  ;;  %25800 = vst [vmem:[#allocation8_spill] sm:$0xff] %v23078_v12  ;;  %v23080_v28 = vld [vmem:[#allocation3 + $0x82] sm:$0xff]  ;;  %v4058_v8 = vsel %vm3994_vm15, %v3899_v48, %v4026_v35  ;;  %vm3997_vm3 = vcmp.ge.f32.partialorder %v18833_v27, 0.0  ;;  %v4029_v14 = vmul.f32 0.1, %v18833_v27  ;;  %v3909_v63 = vpop.f32.mrb[27].mxu0 }
 0x3de   : > { %18873 = vmatmul.mubr.msk.f32.gmra.mrb[20].mxu1 %vm434_vm0, %v4207_v61  ;;  %25801 = vst [vmem:[#allocation9_spill] sm:$0xff] %v23080_v28  ;;  %11399 = vst.msk [vmem:[#allocation3 + $0x88] sm:$0x3] %vm437_vm1, %v25746_v30  ;;  %v4208_v50 = vld [vmem:[#allocation3 + $0x109] sm:$0xff]  ;;  %v4209_v56 = vld [vmem:[#allocation3 + $0x111] sm:$0xff]  ;;  %vm3996_vm4 = vcmp.ge.f32.partialorder %v3909_v63, 0.0 }
 0x3df   : > { %11398 = vst.msk [vmem:[#allocation3 + $0x80] sm:$0xff] %vm434_vm0, %v25746_v30  ;;  %v23087_v61 = vld [vmem:[#allocation3 + $0x90] sm:$0xff]  ;;  %4145 = vst.msk [vmem:[#allocation3 + $0x139] sm:$0xff] %vm434_vm0, %v4058_v8  ;;  %18875 = vmatprep.mubr.msk.f32.mxu1 %vm434_vm0, %v4208_v50  ;;  %v4028_v41 = vmul.f32 0.1, %v3909_v63  ;;  %v4061_v50 = vsel %vm3997_vm3, %v18833_v27, %v4029_v14  ;;  %v18836_v28 = vpop.f32.mrb[28].mxu0 }
 0x3e0   : > { %19449 = vmatmul.mubr.msk.f32.gmra.mrb[36].mxu0 %vm434_vm0, %v22773_v20  ;;  %25802 = vst [vmem:[#allocation12_spill] sm:$0xff] %v23093_v46  ;;  %v23098_v48 = vld [vmem:[#allocation3 + $0x91] sm:$0xff]  ;;  %4148 = vst.msk [vmem:[#allocation3 + $0x159] sm:$0xff] %vm434_vm0, %v4061_v50  ;;  %v23107_v19 = vld [vmem:[#allocation3 + $0x9a] sm:$0xff]  ;;  %vm3999_vm5 = vcmp.ge.f32.partialorder %v18836_v28, 0.0 }
 0x3e1   : > { %19451 = vmatprep.mubr.msk.f32.mxu0 %vm434_vm0, %v22777_v40  ;;  %25803 = vst [vmem:[#allocation13_spill] sm:$0xff] %v23098_v48  ;;  %v23100_v35 = vld [vmem:[#allocation3 + $0x90] sm:$0xff]  ;;  %v4060_v20 = vsel %vm3996_vm4, %v3909_v63, %v4028_v41  ;;  %v4031_v40 = vmul.f32 0.1, %v18836_v28  ;;  %v23113_v14 = vld [vmem:[#allocation3 + $0x99] sm:$0xff]  ;;  %25844 = vst [vmem:[#allocation79_spill] sm:$0xff] %v23265_v11 }
 0x3e2   : > { %18876 = vmatmul.mubr.msk.f32.gmra.mrb[22].mxu1 %vm434_vm0, %v4209_v56  ;;  %25804 = vst [vmem:[#allocation16_spill] sm:$0xff] %v23100_v35  ;;  %v23102_v8 = vld [vmem:[#allocation3 + $0x92] sm:$0xff]  ;;  %4147 = vst.msk [vmem:[#allocation3 + $0x151] sm:$0xff] %vm434_vm0, %v4060_v20  ;;  %v3919_v56 = vpop.f32.mrb[29].mxu0  ;;  %v4211_v27 = vld [vmem:[#allocation3 + $0x129] sm:$0xff] }
 0x3e3   : > { %25805 = vst [vmem:[#allocation17_spill] sm:$0xff] %v23102_v8  ;;  %11400 = vst.msk [vmem:[#allocation3 + $0x90] sm:$0xff] %vm434_vm0, %v25746_v30  ;;  %v4210_v12 = vld [vmem:[#allocation3 + $0x121] sm:$0xff]  ;;  %vm3998_vm6 = vcmp.ge.f32.partialorder %v3919_v56, 0.0  ;;  %v4030_v50 = vmul.f32 0.1, %v3919_v56 }
 0x3e4   : > { %18878 = vmatprep.mubr.msk.f32.mxu1 %vm434_vm0, %v4210_v12  ;;  %19452 = vmatmul.mubr.msk.f32.gmra.mrb[38].mxu0 %vm434_vm0, %v22781_v45  ;;  %25806 = vst [vmem:[#allocation20_spill] sm:$0xff] %v23113_v14  ;;  %v23118_v63 = vld [vmem:[#allocation3 + $0x98] sm:$0xff]  ;;  %v4063_v12 = vsel %vm3999_vm5, %v18836_v28, %v4031_v40  ;;  %v23129_v35 = vld [vmem:[#allocation3 + $0xa8] sm:$0xff]  ;;  %v23149_v14 = vld [vmem:[#allocation3 + $0xb0] sm:$0xff] }
 0x3e5   : > { %19454 = vmatprep.mubr.msk.f32.mxu0 %vm434_vm0, %v22785_v55  ;;  %v23120_v41 = vld [vmem:[#allocation3 + $0x98] sm:$0xff]  ;;  %4150 = vst.msk [vmem:[#allocation3 + $0x171] sm:$0xff] %vm434_vm0, %v4063_v12  ;;  %v4062_v45 = vsel %vm3998_vm6, %v3919_v56, %v4030_v50  ;;  %v4213_v28 = vld [vmem:[#allocation3 + $0x141] sm:$0xff]  ;;  %v23135_v40 = vld [vmem:[#allocation3 + $0xaa] sm:$0xff] }
 0x3e6   : > { %18879 = vmatmul.mubr.msk.f32.gmra.mrb[24].mxu1 %vm434_vm0, %v4211_v27  ;;  %25807 = vst [vmem:[#allocation21_spill] sm:$0xff] %v23120_v41  ;;  %v23122_v20 = vld [vmem:[#allocation3 + $0x9a] sm:$0xff]  ;;  %v18839_v27 = vpop.f32.mrb[30].mxu0  ;;  %4149 = vst.msk [vmem:[#allocation3 + $0x169] sm:$0xff] %vm434_vm0, %v4062_v45  ;;  %v23140_v56 = vld [vmem:[#allocation3 + $0xa9] sm:$0xff] }
 0x3e7   : > { %25808 = vst [vmem:[#allocation24_spill] sm:$0xff] %v23122_v20  ;;  %11402 = vst.msk [vmem:[#allocation3 + $0xa0] sm:$0x3] %vm437_vm1, %v25746_v30  ;;  %v4212_v8 = vld [vmem:[#allocation3 + $0x139] sm:$0xff]  ;;  %vm4001_vm7 = vcmp.ge.f32.partialorder %v18839_v27, 0.0  ;;  %v3929_v41 = vpop.f32.mrb[31].mxu0 }
 0x3e8   : > { %11401 = vst.msk [vmem:[#allocation3 + $0x98] sm:$0xff] %vm434_vm0, %v25746_v30  ;;  %v4033_v55 = vmul.f32 0.1, %v18839_v27  ;;  %18881 = vmatprep.mubr.msk.f32.mxu1 %vm434_vm0, %v4212_v8  ;;  %19455 = vmatmul.mubr.msk.f32.gmra.mrb[40].mxu0 %vm434_vm0, %v22789_v60  ;;  %25809 = vst [vmem:[#allocation23_spill] sm:$0xff] %v23135_v40  ;;  %vm4000_vm8 = vcmp.ge.f32.partialorder %v3929_v41, 0.0  ;;  %v23142_v50 = vld [vmem:[#allocation3 + $0xa8] sm:$0xff] }
 0x3e9   : > { %v4032_v12 = vmul.f32 0.1, %v3929_v41  ;;  %19457 = vmatprep.mubr.msk.f32.mxu0 %vm434_vm0, %v22793_v37  ;;  %25810 = vst [vmem:[#allocation25_spill] sm:$0xff] %v23140_v56  ;;  %25811 = vst [vmem:[#allocation26_spill] sm:$0xff] %v23142_v50  ;;  %v23144_v45 = vld [vmem:[#allocation3 + $0xaa] sm:$0xff]  ;;  %v23153_v48 = vld [vmem:[#allocation3 + $0xb2] sm:$0xff] }
 0x3ea   : > { %18882 = vmatmul.mubr.msk.f32.gmra.mrb[26].mxu1 %vm434_vm0, %v4213_v28  ;;  %25812 = vst [vmem:[#allocation27_spill] sm:$0xff] %v23144_v45  ;;  %v4065_v8 = vsel %vm4001_vm7, %v18839_v27, %v4033_v55  ;;  %11403 = vst.msk [vmem:[#allocation3 + $0xa8] sm:$0xff] %vm434_vm0, %v25746_v30  ;;  %v4214_v20 = vld [vmem:[#allocation3 + $0x151] sm:$0xff]  ;;  %v23151_v28 = vld [vmem:[#allocation3 + $0xc0] sm:$0xff] }
 0x3eb   : > { %4152 = vst.msk [vmem:[#allocation3 + $0x189] sm:$0xff] %vm434_vm0, %v4065_v8  ;;  %v4064_v60 = vsel %vm4000_vm8, %v3929_v41, %v4032_v12  ;;  %25813 = vst [vmem:[#allocation28_spill] sm:$0xff] %v23153_v48  ;;  %v23155_v37 = vld [vmem:[#allocation3 + $0xb1] sm:$0xff]  ;;  %18884 = vmatprep.mubr.msk.f32.mxu1 %vm434_vm0, %v4214_v20  ;;  %v4215_v27 = vld [vmem:[#allocation3 + $0x159] sm:$0xff] }
 0x3ec   : > { %25814 = vst [vmem:[#allocation29_spill] sm:$0xff] %v23155_v37  ;;  %v23157_v56 = vld [vmem:[#allocation3 + $0xb0] sm:$0xff]  ;;  %4151 = vst.msk [vmem:[#allocation3 + $0x181] sm:$0xff] %vm434_vm0, %v4064_v60  ;;  %19458 = vmatmul.mubr.msk.f32.gmra.mrb[42].mxu0 %vm434_vm0, %v22797_v47  ;;  %v23163_v41 = vld [vmem:[#allocation3 + $0xc2] sm:$0xff] }
 0x3ed   : > { %25815 = vst [vmem:[#allocation30_spill] sm:$0xff] %v23157_v56  ;;  %25816 = vst [vmem:[#allocation31_spill] sm:$0xff] %v23163_v41  ;;  %v23165_v55 = vld [vmem:[#allocation3 + $0xc1] sm:$0xff]  ;;  %19460 = vmatprep.mubr.msk.f32.mxu0 %vm434_vm0, %v22801_v54  ;;  %v23172_v8 = vld [vmem:[#allocation3 + $0xb2] sm:$0xff] }
 0x3ee   : > { %25817 = vst [vmem:[#allocation32_spill] sm:$0xff] %v23165_v55  ;;  %18885 = vmatmul.mubr.msk.f32.gmra.mrb[28].mxu1 %vm434_vm0, %v4215_v27  ;;  %v23170_v12 = vld [vmem:[#allocation3 + $0xc0] sm:$0xff]  ;;  %25819 = vst [vmem:[#allocation34_spill] sm:$0xff] %v23172_v8  ;;  %v4216_v47 = vld [vmem:[#allocation3 + $0x169] sm:$0xff] }
 0x3ef   : > { %25818 = vst [vmem:[#allocation33_spill] sm:$0xff] %v23170_v12  ;;  %v23174_v60 = vld [vmem:[#allocation3 + $0xc2] sm:$0xff]  ;;  %11405 = vst.msk [vmem:[#allocation3 + $0xb8] sm:$0x3] %vm437_vm1, %v25746_v30  ;;  %v23184_v27 = vld [vmem:[#allocation3 + $0xd8] sm:$0xff]  ;;  %18887 = vmatprep.mubr.msk.f32.mxu1 %vm434_vm0, %v4216_v47 }
 0x3f0   : > { %25820 = vst [vmem:[#allocation35_spill] sm:$0xff] %v23174_v60  ;;  %11404 = vst.msk [vmem:[#allocation3 + $0xb0] sm:$0xff] %vm434_vm0, %v25746_v30  ;;  %v23182_v20 = vld [vmem:[#allocation3 + $0xc8] sm:$0xff]  ;;  %19461 = vmatmul.mubr.msk.f32.gmra.mrb[44].mxu0 %vm434_vm0, %v22808_v62  ;;  %v4217_v60 = vld [vmem:[#allocation3 + $0x171] sm:$0xff] }
 0x3f1   : > { %11406 = vst.msk [vmem:[#allocation3 + $0xc0] sm:$0xff] %vm434_vm0, %v25746_v30  ;;  %v23186_v54 = vld [vmem:[#allocation3 + $0xca] sm:$0xff]  ;;  %v23195_v12 = vld [vmem:[#allocation3 + $0xda] sm:$0xff]  ;;  %19463 = vmatprep.mubr.msk.f32.mxu0 %vm434_vm0, %v22813_v9  ;;  %v23221_v9 = vld [vmem:[#allocation3 + $0xf2] sm:$0xff] }
 0x3f2   : > { %25821 = vst [vmem:[#allocation44_spill] sm:$0xff] %v23186_v54  ;;  %v23188_v45 = vld [vmem:[#allocation3 + $0xc9] sm:$0xff]  ;;  %v23197_v56 = vld [vmem:[#allocation3 + $0xd9] sm:$0xff]  ;;  %18888 = vmatmul.mubr.msk.f32.gmra.mrb[30].mxu1 %vm434_vm0, %v4217_v60  ;;  %25828 = vst [vmem:[#allocation63_spill] sm:$0xff] %v23221_v9 }
 0x3f3   : > { %25822 = vst [vmem:[#allocation57_spill] sm:$0xff] %v23188_v45  ;;  %v23190_v8 = vld [vmem:[#allocation3 + $0xc8] sm:$0xff]  ;;  %25824 = vst [vmem:[#allocation59_spill] sm:$0xff] %v23197_v56  ;;  %v23202_v50 = vld [vmem:[#allocation3 + $0xd8] sm:$0xff]  ;;  %18892 = vmatprep.mubr.msk.f32.mxu1 %vm434_vm0, %v22866_v29 }
 0x3f4   : > { %25823 = vst [vmem:[#allocation58_spill] sm:$0xff] %v23190_v8  ;;  %25825 = vst [vmem:[#allocation60_spill] sm:$0xff] %v23202_v50  ;;  %v23204_v45 = vld [vmem:[#allocation3 + $0xca] sm:$0xff]  ;;  %v23206_v8 = vld [vmem:[#allocation3 + $0xda] sm:$0xff]  ;;  %19464 = vmatmul.mubr.msk.f32.gmra.mrb[46].mxu0 %vm434_vm0, %v22817_v6 }
 0x3f5   : > { %25826 = vst [vmem:[#allocation61_spill] sm:$0xff] %v23204_v45  ;;  %25827 = vst [vmem:[#allocation62_spill] sm:$0xff] %v23206_v8  ;;  %v23210_v62 = vld [vmem:[#allocation3 + $0xe0] sm:$0xff]  ;;  %v23212_v47 = vld [vmem:[#allocation3 + $0xf0] sm:$0xff]  ;;  %19466 = vmatprep.mubr.msk.f32.mxu0 %vm434_vm0, %v22821_v52 }
 0x3f6   : > { %v23217_v60 = vld [vmem:[%s25454_s3 + $0xc] sm:$0xf]  ;;  %v23219_v56 = vld [vmem:[#allocation3 + $0xe2] sm:$0xff]  ;;  %v23225_v45 = vld [vmem:[#allocation3 + $0xf1] sm:$0xff]  ;;  %11408 = vst.msk [vmem:[#allocation3 + $0xd0] sm:$0x3] %vm437_vm1, %v25746_v30  ;;  %18893 = vmatmul.mubr.msk.f32.vlgmr.msra.gmra.mrb[0].mxu1 %vm434_vm0, %v22875_v1 }
 0x3f7   : > { %v23223_v50 = vld [vmem:[#allocation3 + $0xe1] sm:$0xff]  ;;  %25830 = vst [vmem:[#allocation65_spill] sm:$0xff] %v23225_v45  ;;  %v23227_v8 = vld [vmem:[#allocation3 + $0x189] sm:$0xff]  ;;  %11407 = vst.msk [vmem:[#allocation3 + $0xc8] sm:$0xff] %vm434_vm0, %v25746_v30  ;;  %18895 = vmatprep.mubr.msk.f32.mxu1 %vm434_vm0, %v22889_v44 }
 0x3f8   : > { %25829 = vst [vmem:[#allocation64_spill] sm:$0xff] %v23223_v50  ;;  %25831 = vst [vmem:[#allocation66_spill] sm:$0xff] %v23227_v8  ;;  %v23229_v29 = vld [vmem:[#allocation3 + $0x18a] sm:$0xff]  ;;  %v23231_v55 = vld [vmem:[#allocation3 + $0xe0] sm:$0xff] }
 0x3f9   : > { %25832 = vst [vmem:[#allocation67_spill] sm:$0xff] %v23229_v29  ;;  %25833 = vst [vmem:[#allocation68_spill] sm:$0xff] %v23231_v55  ;;  %v23233_v37 = vld [vmem:[#allocation3 + $0xf0] sm:$0xff]  ;;  %v23241_v50 = vld [vmem:[#allocation3 + $0xf8] sm:$0xff] }
 0x3fa   : > { %25834 = vst [vmem:[#allocation69_spill] sm:$0xff] %v23233_v37  ;;  %11409 = vst.msk [vmem:[#allocation3 + $0xd8] sm:$0xff] %vm434_vm0, %v25746_v30  ;;  %v23243_v45 = vld [vmem:[#allocation3 + $0x108] sm:$0xff]  ;;  %v23245_v8 = vld [vmem:[#allocation3 + $0x110] sm:$0xff]  ;;  %18896 = vmatmul.mubr.msk.f32.gmra.mrb[2].mxu1 %vm434_vm0, %v22891_v49 }
 0x3fb   : > { %v23247_v29 = vld [vmem:[#allocation3 + $0xfa] sm:$0xff]  ;;  %v23249_v55 = vld [vmem:[#allocation3 + $0x10a] sm:$0xff]  ;;  %v23251_v37 = vld [vmem:[#allocation3 + $0x112] sm:$0xff]  ;;  %11432 = vst.msk [vmem:[#allocation3 + $0x190] sm:$0x3] %vm437_vm1, %v25746_v30  ;;  %18898 = vmatprep.mubr.msk.f32.mxu1 %vm434_vm0, %v22912_v38 }
 0x3fc   : > { %25835 = vst [vmem:[#allocation70_spill] sm:$0xff] %v23247_v29  ;;  %25836 = vst [vmem:[#allocation71_spill] sm:$0xff] %v23249_v55  ;;  %v23253_v21 = vld [vmem:[#allocation3 + $0x180] sm:$0xff]  ;;  %v23255_v43 = vld [vmem:[#allocation3 + $0x188] sm:$0xff] }
 0x3fd   : > { %25837 = vst [vmem:[#allocation72_spill] sm:$0xff] %v23251_v37  ;;  %25838 = vst [vmem:[#allocation73_spill] sm:$0xff] %v23253_v21  ;;  %v23257_v22 = vld [vmem:[#allocation3 + $0xf9] sm:$0xff]  ;;  %v23259_v13 = vld [vmem:[#allocation3 + $0x109] sm:$0xff] }
 0x3fe   : > { %25839 = vst [vmem:[#allocation74_spill] sm:$0xff] %v23255_v43  ;;  %25840 = vst [vmem:[#allocation75_spill] sm:$0xff] %v23257_v22  ;;  %v23261_v39 = vld [vmem:[#allocation3 + $0x111] sm:$0xff]  ;;  %v23263_v7 = vld [vmem:[#allocation3 + $0x181] sm:$0xff]  ;;  %18899 = vmatmul.mubr.msk.f32.gmra.mrb[4].mxu1 %vm434_vm0, %v22936_v26 }
 0x3ff   : > { %25841 = vst [vmem:[#allocation76_spill] sm:$0xff] %v23259_v13  ;;  %25842 = vst [vmem:[#allocation77_spill] sm:$0xff] %v23261_v39  ;;  %v23267_v24 = vld [vmem:[#allocation3 + $0x108] sm:$0xff]  ;;  %v23269_v34 = vld [vmem:[#allocation3 + $0x110] sm:$0xff]  ;;  %18901 = vmatprep.mubr.msk.f32.mxu1 %vm434_vm0, %v22947_v5 }
 0x400   : > { %25843 = vst [vmem:[#allocation78_spill] sm:$0xff] %v23263_v7  ;;  %25845 = vst [vmem:[#allocation80_spill] sm:$0xff] %v23267_v24  ;;  %v23275_v59 = vld [vmem:[#allocation3 + $0x120] sm:$0xff]  ;;  %v23277_v22 = vld [vmem:[#allocation3 + $0x128] sm:$0xff] }
 0x401   : > { %25846 = vst [vmem:[#allocation81_spill] sm:$0xff] %v23269_v34  ;;  %v23279_v13 = vld [vmem:[#allocation3 + $0x138] sm:$0xff]  ;;  %v23281_v39 = vld [vmem:[#allocation3 + $0x122] sm:$0xff]  ;;  %v23283_v7 = vld [vmem:[#allocation3 + $0x12a] sm:$0xff] }
 0x402   : > { %25847 = vst [vmem:[#allocation82_spill] sm:$0xff] %v23281_v39  ;;  %25848 = vst [vmem:[#allocation83_spill] sm:$0xff] %v23283_v7  ;;  %v23285_v11 = vld [vmem:[#allocation3 + $0x13a] sm:$0xff]  ;;  %v23289_v34 = vld [vmem:[#allocation3 + $0x129] sm:$0xff]  ;;  %18902 = vmatmul.mubr.msk.f32.gmra.mrb[6].mxu1 %vm434_vm0, %v22974_v53 }
 0x403   : > { %25849 = vst [vmem:[#allocation84_spill] sm:$0xff] %v23285_v11  ;;  %v23287_v24 = vld [vmem:[#allocation3 + $0x121] sm:$0xff]  ;;  %25851 = vst [vmem:[#allocation86_spill] sm:$0xff] %v23289_v34  ;;  %v23291_v43 = vld [vmem:[#allocation3 + $0x139] sm:$0xff]  ;;  %18904 = vmatprep.mubr.msk.f32.mxu1 %vm434_vm0, %v22985_v15 }
 0x404   : > { %25850 = vst [vmem:[#allocation85_spill] sm:$0xff] %v23287_v24  ;;  %25852 = vst [vmem:[#allocation87_spill] sm:$0xff] %v23291_v43  ;;  %v23293_v21 = vld [vmem:[#allocation3 + $0x182] sm:$0xff]  ;;  %v23299_v16 = vld [vmem:[#allocation3 + $0x138] sm:$0xff] }
 0x405   : > { %25853 = vst [vmem:[#allocation88_spill] sm:$0xff] %v23293_v21  ;;  %v23295_v6 = vld [vmem:[#allocation3 + $0x120] sm:$0xff]  ;;  %v23297_v31 = vld [vmem:[#allocation3 + $0x128] sm:$0xff]  ;;  %25856 = vst [vmem:[#allocation91_spill] sm:$0xff] %v23299_v16 }
 0x406   : > { %25854 = vst [vmem:[#allocation89_spill] sm:$0xff] %v23295_v6  ;;  %25855 = vst [vmem:[#allocation90_spill] sm:$0xff] %v23297_v31  ;;  %v23301_v37 = vld [vmem:[#allocation3 + $0xe2] sm:$0xff]  ;;  %v23303_v39 = vld [vmem:[#allocation3 + $0xf2] sm:$0xff]  ;;  %18905 = vmatmul.mubr.msk.f32.gmra.mrb[8].mxu1 %vm434_vm0, %v23015_v58 }
 0x407   : > { %25857 = vst [vmem:[#allocation92_spill] sm:$0xff] %v23301_v37  ;;  %25858 = vst [vmem:[#allocation93_spill] sm:$0xff] %v23303_v39  ;;  %v23309_v34 = vld [vmem:[#allocation3 + $0x140] sm:$0xff]  ;;  %v23311_v43 = vld [vmem:[#allocation3 + $0x150] sm:$0xff]  ;;  %18907 = vmatprep.mubr.msk.f32.mxu1 %vm434_vm0, %v23028_v23 }
 0x408   : > { %v23313_v21 = vld [vmem:[#allocation3 + $0x158] sm:$0xff]  ;;  %v23315_v6 = vld [vmem:[#allocation3 + $0x142] sm:$0xff]  ;;  %v23329_v52 = vld [vmem:[#allocation3 + $0x150] sm:$0xff]  ;;  %11411 = vst.msk [vmem:[#allocation3 + $0xe8] sm:$0x3] %vm437_vm1, %v25746_v30 }
 0x409   : > { %v23317_v31 = vld [vmem:[#allocation3 + $0x152] sm:$0xff]  ;;  %v23319_v16 = vld [vmem:[#allocation3 + $0x15a] sm:$0xff]  ;;  %25865 = vst [vmem:[#allocation100_spill] sm:$0xff] %v23329_v52  ;;  %11410 = vst.msk [vmem:[#allocation3 + $0xe0] sm:$0xff] %vm434_vm0, %v25746_v30 }
 0x40a   : > { %25859 = vst [vmem:[#allocation94_spill] sm:$0xff] %v23317_v31  ;;  %25860 = vst [vmem:[#allocation95_spill] sm:$0xff] %v23319_v16  ;;  %v23321_v37 = vld [vmem:[#allocation3 + $0x141] sm:$0xff]  ;;  %v23323_v39 = vld [vmem:[#allocation3 + $0x151] sm:$0xff]  ;;  %18908 = vmatmul.mubr.msk.f32.gmra.mrb[10].mxu1 %vm434_vm0, %v23076_v25 }
 0x40b   : > { %25861 = vst [vmem:[#allocation96_spill] sm:$0xff] %v23321_v37  ;;  %25862 = vst [vmem:[#allocation97_spill] sm:$0xff] %v23323_v39  ;;  %v23325_v1 = vld [vmem:[#allocation3 + $0x159] sm:$0xff]  ;;  %v23341_v39 = vld [vmem:[#allocation3 + $0x10a] sm:$0xff]  ;;  %18910 = vmatprep.mubr.msk.f32.mxu1 %vm434_vm0, %v23087_v61 }
 0x40c   : > { %25863 = vst [vmem:[#allocation98_spill] sm:$0xff] %v23325_v1  ;;  %v23327_v24 = vld [vmem:[#allocation3 + $0x140] sm:$0xff]  ;;  %v23331_v11 = vld [vmem:[#allocation3 + $0x158] sm:$0xff]  ;;  %11412 = vst.msk [vmem:[#allocation3 + $0xf0] sm:$0xff] %vm434_vm0, %v25746_v30 }
 0x40d   : > { %25864 = vst [vmem:[#allocation99_spill] sm:$0xff] %v23327_v24  ;;  %25866 = vst [vmem:[#allocation101_spill] sm:$0xff] %v23331_v11  ;;  %v23339_v37 = vld [vmem:[#allocation3 + $0xfa] sm:$0xff]  ;;  %v23343_v1 = vld [vmem:[#allocation3 + $0x112] sm:$0xff] }
 0x40e   : > { %25867 = vst [vmem:[#allocation102_spill] sm:$0xff] %v23339_v37  ;;  %25868 = vst [vmem:[#allocation103_spill] sm:$0xff] %v23341_v39  ;;  %v21325_v11 = vld [vmem:[%s25454_s3 + $0x8] sm:$0xf]  ;;  %v23355_v37 = vld [vmem:[#allocation3 + $0x168] sm:$0xff]  ;;  %18911 = vmatmul.mubr.msk.f32.gmra.mrb[12].mxu1 %vm434_vm0, %v23118_v63 }
 0x40f   : > { %25869 = vst [vmem:[#allocation104_spill] sm:$0xff] %v23343_v1  ;;  %11430 = vst.msk [vmem:[#allocation3 + $0x180] sm:$0xff] %vm434_vm0, %v25746_v30  ;;  %18941 = vmatpush3.msk.msra.mxu1 %vm686_vm2, %v21325_v11  ;;  %v23357_v39 = vld [vmem:[#allocation3 + $0x170] sm:$0xff]  ;;  %v23367_v31 = vld [vmem:[#allocation3 + $0x168] sm:$0xff]  ;;  %18913 = vmatprep.mubr.msk.f32.mxu1 %vm434_vm0, %v23129_v35 }
 0x410   : > { %11431 = vst.msk [vmem:[#allocation3 + $0x188] sm:$0xff] %vm434_vm0, %v25746_v30  ;;  %v23359_v1 = vld [vmem:[#allocation3 + $0x16a] sm:$0xff]  ;;  %v23361_v52 = vld [vmem:[#allocation3 + $0x172] sm:$0xff]  ;;  %25873 = vst [vmem:[#allocation108_spill] sm:$0xff] %v23367_v31  ;;  %18990 = vmatprep.subr.msk.mxu1 %vm686_vm2, %v23217_v60 }
 0x411   : > { %25870 = vst [vmem:[#allocation105_spill] sm:$0xff] %v23359_v1  ;;  %v23363_v24 = vld [vmem:[#allocation3 + $0x169] sm:$0xff]  ;;  %v23365_v16 = vld [vmem:[#allocation3 + $0x171] sm:$0xff]  ;;  %11414 = vst.msk [vmem:[#allocation3 + $0x100] sm:$0x3] %vm437_vm1, %v25746_v30 }
 0x412   : > { %25871 = vst [vmem:[#allocation106_spill] sm:$0xff] %v23363_v24  ;;  %25872 = vst [vmem:[#allocation107_spill] sm:$0xff] %v23365_v16  ;;  %v23379_v11 = vld [vmem:[#allocation3 + $0x122] sm:$0xff]  ;;  %v23381_v16 = vld [vmem:[#allocation3 + $0x12a] sm:$0xff]  ;;  %18914 = vmatmul.mubr.msk.f32.gmra.mrb[14].mxu1 %vm434_vm0, %v23149_v14 }
 0x413   : > { %11413 = vst.msk [vmem:[#allocation3 + $0xf8] sm:$0xff] %vm434_vm0, %v25746_v30  ;;  %11415 = vst.msk [vmem:[#allocation3 + $0x108] sm:$0xff] %vm434_vm0, %v25746_v30  ;;  %v23383_v31 = vld [vmem:[#allocation3 + $0x13a] sm:$0xff]  ;;  %v21326_v24 = vld [vmem:[#allocation2 + $0xe0] sm:$0xff]  ;;  %18916 = vmatprep.mubr.msk.f32.mxu1 %vm434_vm0, %v23151_v28 }
 0x414   : > { %11417 = vst.msk [vmem:[#allocation3 + $0x118] sm:$0x3] %vm437_vm1, %v25746_v30  ;;  %25874 = vst [vmem:[#allocation109_spill] sm:$0xff] %v23379_v11  ;;  %v23395_v11 = vld [vmem:[#allocation3 + $0x142] sm:$0xff]  ;;  %19467 = vmatmul.mubr.msk.f32.gmra.mrb[48].mxu0 %vm434_vm0, %v21326_v24  ;;  %v23402_v44 = vld [vmem:[#allocation3 + $0x170] sm:$0xff] }
 0x415   : > { %11416 = vst.msk [vmem:[#allocation3 + $0x110] sm:$0xff] %vm434_vm0, %v25746_v30  ;;  %25875 = vst [vmem:[#allocation110_spill] sm:$0xff] %v23381_v16  ;;  %v23397_v16 = vld [vmem:[#allocation3 + $0x152] sm:$0xff] }
 0x416   : > { %25876 = vst [vmem:[#allocation111_spill] sm:$0xff] %v23383_v31  ;;  %11418 = vst.msk [vmem:[#allocation3 + $0x120] sm:$0xff] %vm434_vm0, %v25746_v30  ;;  %v23399_v31 = vld [vmem:[#allocation3 + $0x15a] sm:$0xff]  ;;  %v23416_v24 = vld [vmem:[#allocation3 + $0x172] sm:$0xff]  ;;  %18917 = vmatmul.mubr.msk.f32.gmra.mrb[16].mxu1 %vm434_vm0, %v23182_v20 }
 0x417   : > { %11420 = vst.msk [vmem:[#allocation3 + $0x130] sm:$0x3] %vm437_vm1, %v25746_v30  ;;  %25877 = vst [vmem:[#allocation112_spill] sm:$0xff] %v23395_v11  ;;  %v21331_v11 = vld [vmem:[#allocation2 + $0x120] sm:$0xff]  ;;  %18919 = vmatprep.mubr.msk.f32.mxu1 %vm434_vm0, %v23184_v27 }
 0x418   : > { %11419 = vst.msk [vmem:[#allocation3 + $0x128] sm:$0xff] %vm434_vm0, %v25746_v30  ;;  %11421 = vst.msk [vmem:[#allocation3 + $0x138] sm:$0xff] %vm434_vm0, %v25746_v30 }
 0x419   : > { %25878 = vst [vmem:[#allocation113_spill] sm:$0xff] %v23397_v16  ;;  %25879 = vst [vmem:[#allocation114_spill] sm:$0xff] %v23399_v31  ;;  %v23414_v31 = vld [vmem:[#allocation3 + $0x16a] sm:$0xff]  ;;  %v21327_v16 = vld [vmem:[#allocation2 + $0xf0] sm:$0xff] }
 0x41a   : > { %25880 = vst [vmem:[#allocation115_spill] sm:$0xff] %v23402_v44  ;;  %11423 = vst.msk [vmem:[#allocation3 + $0x148] sm:$0x3] %vm437_vm1, %v25746_v30  ;;  %19469 = vmatprep.mubr.msk.f32.mxu0 %vm434_vm0, %v21327_v16  ;;  %v21330_v16 = vld [vmem:[#allocation2 + $0x110] sm:$0xff]  ;;  %18920 = vmatmul.mubr.msk.f32.gmra.mrb[18].mxu1 %vm434_vm0, %v23210_v62 }
 0x41b   : > { %11422 = vst.msk [vmem:[#allocation3 + $0x140] sm:$0xff] %vm434_vm0, %v25746_v30  ;;  %11424 = vst.msk [vmem:[#allocation3 + $0x150] sm:$0xff] %vm434_vm0, %v25746_v30  ;;  %v23487_v44 = vld [vmem:[#allocation2 + $0x31] sm:$0xff]  ;;  %18922 = vmatprep.mubr.msk.f32.mxu1 %vm434_vm0, %v23212_v47 }
 0x41c   : > { %11426 = vst.msk [vmem:[#allocation3 + $0x160] sm:$0x3] %vm437_vm1, %v25746_v30  ;;  %25881 = vst [vmem:[#allocation116_spill] sm:$0xff] %v23414_v31  ;;  %v21328_v31 = vld [vmem:[#allocation2 + $0xf8] sm:$0xff] }
 0x41d   : > { %11425 = vst.msk [vmem:[#allocation3 + $0x158] sm:$0xff] %vm434_vm0, %v25746_v30  ;;  %25882 = vst [vmem:[#allocation117_spill] sm:$0xff] %v23416_v24  ;;  %19470 = vmatmul.mubr.msk.f32.gmra.mrb[50].mxu0 %vm434_vm0, %v21328_v31  ;;  %v21329_v24 = vld [vmem:[#allocation2 + $0x108] sm:$0xff] }
 0x41e   : > { %11427 = vst.msk [vmem:[#allocation3 + $0x168] sm:$0xff] %vm434_vm0, %v25746_v30  ;;  %11428 = vst.msk [vmem:[#allocation3 + $0x170] sm:$0xff] %vm434_vm0, %v25746_v30  ;;  %19472 = vmatprep.mubr.msk.f32.mxu0 %vm434_vm0, %v21329_v24  ;;  %v21332_v31 = vld [vmem:[#allocation2 + $0x128] sm:$0xff]  ;;  %v21333_v24 = vld [vmem:[#allocation2 + $0x138] sm:$0xff]  ;;  %18923 = vmatmul.mubr.msk.f32.gmra.mrb[20].mxu1 %vm434_vm0, %v23241_v50 }
 0x41f   : > { %11429 = vst.msk [vmem:[#allocation3 + $0x178] sm:$0x3] %vm437_vm1, %v25746_v30  ;;  %v21338_v30 = vld [vmem:[#allocation2 + $0x170] sm:$0xff]  ;;  %25883 = vst [vmem:[#allocation118_spill] sm:$0xff] %v23487_v44  ;;  %18925 = vmatprep.mubr.msk.f32.mxu1 %vm434_vm0, %v23243_v45 }
 0x421   : > { %19473 = vmatmul.mubr.msk.f32.gmra.mrb[52].mxu0 %vm434_vm0, %v21330_v16  ;;  %v21334_v16 = vld [vmem:[#allocation2 + $0x140] sm:$0xff] }
 0x422   : > { %19475 = vmatprep.mubr.msk.f32.mxu0 %vm434_vm0, %v21331_v11  ;;  %v21335_v11 = vld [vmem:[#allocation2 + $0x150] sm:$0xff]  ;;  %18926 = vmatmul.mubr.msk.f32.gmra.mrb[22].mxu1 %vm434_vm0, %v23245_v8 }
 0x423   : > { %18928 = vmatprep.mubr.msk.f32.mxu1 %vm434_vm0, %v23275_v59 }
 0x425   : > { %19476 = vmatmul.mubr.msk.f32.gmra.mrb[54].mxu0 %vm434_vm0, %v21332_v31  ;;  %v21336_v31 = vld [vmem:[#allocation2 + $0x158] sm:$0xff] }
 0x426   : > { %19478 = vmatprep.mubr.msk.f32.mxu0 %vm434_vm0, %v21333_v24  ;;  %v21337_v24 = vld [vmem:[#allocation2 + $0x168] sm:$0xff]  ;;  %18929 = vmatmul.mubr.msk.f32.gmra.mrb[24].mxu1 %vm434_vm0, %v23277_v22 }
 0x427   : > { %18931 = vmatprep.mubr.msk.f32.mxu1 %vm434_vm0, %v23279_v13 }
 0x429   : > { %19479 = vmatmul.mubr.msk.f32.gmra.mrb[56].mxu0 %vm434_vm0, %v21334_v16  ;;  %v23459_v16 = vld [vmem:[#allocation2 + $0x180] sm:$0xff] }
 0x42a   : > { %19481 = vmatprep.mubr.msk.f32.mxu0 %vm434_vm0, %v21335_v11  ;;  %v23468_v11 = vld [vmem:[#allocation2 + $0x188] sm:$0xff]  ;;  %18932 = vmatmul.mubr.msk.f32.gmra.mrb[26].mxu1 %vm434_vm0, %v23309_v34 }
 0x42b   : > { %18934 = vmatprep.mubr.msk.f32.mxu1 %vm434_vm0, %v23311_v43 }
 0x42d   : > { %19482 = vmatmul.mubr.msk.f32.gmra.mrb[58].mxu0 %vm434_vm0, %v21336_v31  ;;  %v9341_v31 = vld [vmem:[#allocation2 + $0x19] sm:$0xff] }
 0x42e   : > { %19484 = vmatprep.mubr.msk.f32.mxu0 %vm434_vm0, %v21337_v24  ;;  %v23481_v24 = vld [vmem:[%s25453_s2 + $0x18] sm:$0xf]  ;;  %18935 = vmatmul.mubr.msk.f32.gmra.mrb[28].mxu1 %vm434_vm0, %v23313_v21 }
 0x42f   : > { %18937 = vmatprep.mubr.msk.f32.mxu1 %vm434_vm0, %v23355_v37 }
 0x431   : > { %19485 = vmatmul.mubr.msk.f32.gmra.mrb[60].mxu0 %vm434_vm0, %v21338_v30  ;;  %v9342_v30 = vld [vmem:[#allocation2 + $0x21] sm:$0xff] }
 0x432   : > { %19487 = vmatprep.mubr.msk.f32.mxu0 %vm434_vm0, %v23459_v16  ;;  %18938 = vmatmul.mubr.msk.f32.gmra.mrb[30].mxu1 %vm434_vm0, %v23357_v39 }
 0x433   : > { %18942 = vmatprep.mubr.msk.f32.mxu1 %vm434_vm0, %v22868_v17  ;;  %v23586_v17 = vld [vmem:[#allocation2 + $0xe1] sm:$0xff] }
 0x435   : > { %19488 = vmatmul.mubr.msk.f32.gmra.mrb[62].mxu0 %vm434_vm0, %v23468_v11 }
 0x436   : > { %19492 = vmatprep.mubr.msk.f32.mxu0 %vm434_vm0, %v9341_v31  ;;  %v23493_v31 = vld [vmem:[#allocation2 + $0x39] sm:$0xff]  ;;  %18943 = vmatmul.mubr.msk.f32.vlgmr.msra.gmra.mrb[0].mxu1 %vm434_vm0, %v22877_v0 }
 0x437   : > { %25884 = vst [vmem:[#allocation119_spill] sm:$0xff] %v23493_v31  ;;  %18991 = vmatpush3.msk.msra.mxu1 %vm686_vm2, %v23217_v60  ;;  %18945 = vmatprep.mubr.msk.f32.mxu1 %vm434_vm0, %v22898_v57  ;;  %v23600_v0 = vld [vmem:[#allocation2 + $0xf9] sm:$0xff]  ;;  %v23604_v60 = vld [vmem:[#allocation2 + $0x109] sm:$0xff] }
 0x438   : > { %25897 = vst [vmem:[#allocation132_spill] sm:$0xff] %v23604_v60 }
 0x439   : > { %19493 = vmatmul.mubr.msk.f32.vlgmr.msra.gmra.mrb[32].mxu0 %vm434_vm0, %v9342_v30  ;;  %v23507_v30 = vld [vmem:[#allocation2 + $0x51] sm:$0xff] }
 0x43a   : > { %19541 = vmatpush3.msk.msra.mxu0 %vm686_vm2, %v23051_v32  ;;  %19495 = vmatprep.mubr.msk.f32.mxu0 %vm434_vm0, %v23487_v44  ;;  %v23499_v32 = vld [vmem:[#allocation2 + $0x49] sm:$0xff]  ;;  %25886 = vst [vmem:[#allocation121_spill] sm:$0xff] %v23507_v30  ;;  %v23511_v44 = vld [vmem:[#allocation2 + $0x61] sm:$0xff] }
 0x43b   : > { %19590 = vmatprep.subr.msk.mxu0 %vm686_vm2, %v23481_v24  ;;  %25885 = vst [vmem:[#allocation120_spill] sm:$0xff] %v23499_v32  ;;  %25887 = vst [vmem:[#allocation122_spill] sm:$0xff] %v23511_v44  ;;  %18946 = vmatmul.mubr.msk.f32.gmra.mrb[2].mxu1 %vm434_vm0, %v22884_v33 }
 0x43c   : > { %18948 = vmatprep.mubr.msk.f32.mxu1 %vm434_vm0, %v22914_v51  ;;  %v23616_v51 = vld [vmem:[#allocation2 + $0x121] sm:$0xff] }
 0x43d   : > { %19496 = vmatmul.mubr.msk.f32.gmra.mrb[34].mxu0 %vm434_vm0, %v23493_v31  ;;  %v23523_v31 = vld [vmem:[#allocation2 + $0x79] sm:$0xff]  ;;  %25898 = vst [vmem:[#allocation133_spill] sm:$0xff] %v23616_v51 }
 0x43e   : > { %19498 = vmatprep.mubr.msk.f32.mxu0 %vm434_vm0, %v23499_v32  ;;  %v23519_v32 = vld [vmem:[#allocation2 + $0x69] sm:$0xff]  ;;  %25889 = vst [vmem:[#allocation124_spill] sm:$0xff] %v23523_v31 }
 0x43f   : > { %25888 = vst [vmem:[#allocation123_spill] sm:$0xff] %v23519_v32  ;;  %18949 = vmatmul.mubr.msk.f32.gmra.mrb[4].mxu1 %vm434_vm0, %v22927_v10 }
 0x440   : > { %18951 = vmatprep.mubr.msk.f32.mxu1 %vm434_vm0, %v22952_v4  ;;  %v23628_v4 = vld [vmem:[#allocation2 + $0x139] sm:$0xff] }
 0x441   : > { %19499 = vmatmul.mubr.msk.f32.gmra.mrb[36].mxu0 %vm434_vm0, %v23507_v30  ;;  %v23535_v30 = vld [vmem:[#allocation2 + $0x91] sm:$0xff]  ;;  %25899 = vst [vmem:[#allocation134_spill] sm:$0xff] %v23628_v4 }
 0x442   : > { %19501 = vmatprep.mubr.msk.f32.mxu0 %vm434_vm0, %v23511_v44  ;;  %v23531_v44 = vld [vmem:[#allocation2 + $0x81] sm:$0xff]  ;;  %25891 = vst [vmem:[#allocation126_spill] sm:$0xff] %v23535_v30 }
 0x443   : > { %25890 = vst [vmem:[#allocation125_spill] sm:$0xff] %v23531_v44  ;;  %18952 = vmatmul.mubr.msk.f32.gmra.mrb[6].mxu1 %vm434_vm0, %v22965_v18 }
 0x444   : > { %18954 = vmatprep.mubr.msk.f32.mxu1 %vm434_vm0, %v22990_v42  ;;  %v23640_v42 = vld [vmem:[#allocation2 + $0x151] sm:$0xff] }
 0x445   : > { %19502 = vmatmul.mubr.msk.f32.gmra.mrb[38].mxu0 %vm434_vm0, %v23519_v32  ;;  %v23547_v32 = vld [vmem:[#allocation2 + $0xa9] sm:$0xff]  ;;  %25900 = vst [vmem:[#allocation135_spill] sm:$0xff] %v23640_v42 }
 0x446   : > { %19504 = vmatprep.mubr.msk.f32.mxu0 %vm434_vm0, %v23523_v31  ;;  %v23543_v31 = vld [vmem:[#allocation2 + $0x99] sm:$0xff]  ;;  %25893 = vst [vmem:[#allocation128_spill] sm:$0xff] %v23547_v32 }
 0x447   : > { %25892 = vst [vmem:[#allocation127_spill] sm:$0xff] %v23543_v31  ;;  %18955 = vmatmul.mubr.msk.f32.gmra.mrb[8].mxu1 %vm434_vm0, %v23005_v2 }
 0x448   : > { %18957 = vmatprep.mubr.msk.f32.mxu1 %vm434_vm0, %v23034_v3  ;;  %v23652_v3 = vld [vmem:[#allocation2 + $0x169] sm:$0xff] }
 0x449   : > { %19505 = vmatmul.mubr.msk.f32.gmra.mrb[40].mxu0 %vm434_vm0, %v23531_v44  ;;  %v23559_v44 = vld [vmem:[#allocation2 + $0xc1] sm:$0xff]  ;;  %25901 = vst [vmem:[#allocation136_spill] sm:$0xff] %v23652_v3 }
 0x44a   : > { %19507 = vmatprep.mubr.msk.f32.mxu0 %vm434_vm0, %v23535_v30  ;;  %v23555_v30 = vld [vmem:[#allocation2 + $0xb1] sm:$0xff] }
 0x44b   : > { %25894 = vst [vmem:[#allocation129_spill] sm:$0xff] %v23555_v30  ;;  %18958 = vmatmul.mubr.msk.f32.gmra.mrb[10].mxu1 %vm434_vm0, %v23065_v36 }
 0x44c   : > { %18960 = vmatprep.mubr.msk.f32.mxu1 %vm434_vm0, %v23093_v46  ;;  %v23664_v46 = vld [vmem:[#allocation2 + $0x181] sm:$0xff] }
 0x44d   : > { %19508 = vmatmul.mubr.msk.f32.gmra.mrb[42].mxu0 %vm434_vm0, %v23543_v31  ;;  %v23571_v31 = vld [vmem:[#allocation2 + $0xd9] sm:$0xff] }
 0x44e   : > { %19510 = vmatprep.mubr.msk.f32.mxu0 %vm434_vm0, %v23547_v32  ;;  %v23567_v32 = vld [vmem:[#allocation2 + $0xc9] sm:$0xff] }
 0x44f   : > { %25895 = vst [vmem:[#allocation130_spill] sm:$0xff] %v23567_v32  ;;  %18961 = vmatmul.mubr.msk.f32.gmra.mrb[12].mxu1 %vm434_vm0, %v23107_v19 }
 0x450   : > { %18963 = vmatprep.mubr.msk.f32.mxu1 %vm434_vm0, %v23135_v40  ;;  %v9730_v40 = vld [vmem:[#allocation2 + $0x1a] sm:$0xff] }
 0x451   : > { %19511 = vmatmul.mubr.msk.f32.gmra.mrb[44].mxu0 %vm434_vm0, %v23555_v30  ;;  %v23576_v30 = vld [vmem:[%s25454_s3 + $0x10] sm:$0xf] }
 0x452   : > { %19513 = vmatprep.mubr.msk.f32.mxu0 %vm434_vm0, %v23559_v44  ;;  %19040 = vmatprep.subr.msk.mxu1 %vm686_vm2, %v23576_v30 }
 0x453   : > { %18964 = vmatmul.mubr.msk.f32.gmra.mrb[14].mxu1 %vm434_vm0, %v23153_v48  ;;  %v9731_v48 = vld [vmem:[#allocation2 + $0x22] sm:$0xff] }
 0x454   : > { %18966 = vmatprep.mubr.msk.f32.mxu1 %vm434_vm0, %v23163_v41  ;;  %v23685_v41 = vld [vmem:[%s25453_s2 + $0x1c] sm:$0xf] }
 0x455   : > { %19514 = vmatmul.mubr.msk.f32.gmra.mrb[46].mxu0 %vm434_vm0, %v23567_v32  ;;  %v23592_v32 = vld [vmem:[#allocation2 + $0xf1] sm:$0xff] }
 0x456   : > { %19516 = vmatprep.mubr.msk.f32.mxu0 %vm434_vm0, %v23571_v31  ;;  %25896 = vst [vmem:[#allocation131_spill] sm:$0xff] %v23592_v32 }
 0x457   : > { %18967 = vmatmul.mubr.msk.f32.gmra.mrb[16].mxu1 %vm434_vm0, %v23186_v54  ;;  %v23691_v54 = vld [vmem:[#allocation2 + $0x32] sm:$0xff] }
 0x458   : > { %18969 = vmatprep.mubr.msk.f32.mxu1 %vm434_vm0, %v23195_v12  ;;  %25902 = vst [vmem:[#allocation137_spill] sm:$0xff] %v23691_v54 }
 0x459   : > { %19517 = vmatmul.mubr.msk.f32.gmra.mrb[48].mxu0 %vm434_vm0, %v23586_v17 }
 0x45a   : > { %19519 = vmatprep.mubr.msk.f32.mxu0 %vm434_vm0, %v23592_v32  ;;  %v23612_v32 = vld [vmem:[#allocation2 + $0x111] sm:$0xff] }
 0x45b   : > { %18970 = vmatmul.mubr.msk.f32.gmra.mrb[18].mxu1 %vm434_vm0, %v23219_v56 }
 0x45c   : > { %18972 = vmatprep.mubr.msk.f32.mxu1 %vm434_vm0, %v23221_v9  ;;  %v23715_v9 = vld [vmem:[#allocation2 + $0x62] sm:$0xff] }
 0x45d   : > { %19520 = vmatmul.mubr.msk.f32.gmra.mrb[50].mxu0 %vm434_vm0, %v23600_v0  ;;  %25904 = vst [vmem:[#allocation139_spill] sm:$0xff] %v23715_v9 }
 0x45e   : > { %19522 = vmatprep.mubr.msk.f32.mxu0 %vm434_vm0, %v23604_v60  ;;  %v23624_v60 = vld [vmem:[#allocation2 + $0x129] sm:$0xff] }
 0x45f   : > { %18973 = vmatmul.mubr.msk.f32.gmra.mrb[20].mxu1 %vm434_vm0, %v23247_v29  ;;  %v25906_v29 = vld [vmem:[#allocation82_spill] sm:$0xff] }
 0x460   : > { %18975 = vmatprep.mubr.msk.f32.mxu1 %vm434_vm0, %v23249_v55  ;;  %v23727_v55 = vld [vmem:[#allocation2 + $0x7a] sm:$0xff] }
 0x461   : > { %19523 = vmatmul.mubr.msk.f32.gmra.mrb[52].mxu0 %vm434_vm0, %v23612_v32  ;;  %25908 = vst [vmem:[#allocation141_spill] sm:$0xff] %v23727_v55 }
 0x462   : > { %19525 = vmatprep.mubr.msk.f32.mxu0 %vm434_vm0, %v23616_v51  ;;  %v23636_v51 = vld [vmem:[#allocation2 + $0x141] sm:$0xff] }
 0x465   : > { %19526 = vmatmul.mubr.msk.f32.gmra.mrb[54].mxu0 %vm434_vm0, %v23624_v60 }
 0x466   : > { %19528 = vmatprep.mubr.msk.f32.mxu0 %vm434_vm0, %v23628_v4  ;;  %v23648_v4 = vld [vmem:[#allocation2 + $0x159] sm:$0xff] }
 0x469   : > { %19529 = vmatmul.mubr.msk.f32.gmra.mrb[56].mxu0 %vm434_vm0, %v23636_v51 }
 0x46a   : > { %19531 = vmatprep.mubr.msk.f32.mxu0 %vm434_vm0, %v23640_v42  ;;  %v23660_v42 = vld [vmem:[#allocation2 + $0x171] sm:$0xff] }
 0x46d   : > { %19532 = vmatmul.mubr.msk.f32.gmra.mrb[58].mxu0 %vm434_vm0, %v23648_v4 }
 0x46e   : > { %19534 = vmatprep.mubr.msk.f32.mxu0 %vm434_vm0, %v23652_v3  ;;  %v23672_v3 = vld [vmem:[#allocation2 + $0x189] sm:$0xff] }
 0x471   : > { %19535 = vmatmul.mubr.msk.f32.gmra.mrb[60].mxu0 %vm434_vm0, %v23660_v42 }
 0x472   : > { %19537 = vmatprep.mubr.msk.f32.mxu0 %vm434_vm0, %v23664_v46 }
 0x475   : > { %19538 = vmatmul.mubr.msk.f32.gmra.mrb[62].mxu0 %vm434_vm0, %v23672_v3 }
 0x476   : > { %19542 = vmatprep.mubr.msk.f32.mxu0 %vm434_vm0, %v9730_v40  ;;  %v23703_v40 = vld [vmem:[#allocation2 + $0x4a] sm:$0xff] }
 0x477   : > { %25903 = vst [vmem:[#allocation138_spill] sm:$0xff] %v23703_v40 }
 0x479   : > { %19543 = vmatmul.mubr.msk.f32.vlgmr.msra.gmra.mrb[32].mxu0 %vm434_vm0, %v9731_v48  ;;  %v23697_v48 = vld [vmem:[#allocation2 + $0x3a] sm:$0xff] }
 0x47a   : > { %19591 = vmatpush3.msk.msra.mxu0 %vm686_vm2, %v23481_v24  ;;  %19545 = vmatprep.mubr.msk.f32.mxu0 %vm434_vm0, %v23691_v54  ;;  %v23711_v24 = vld [vmem:[#allocation2 + $0x52] sm:$0xff]  ;;  %v25905_v54 = vld [vmem:[#allocation72_spill] sm:$0xff] }
 0x47b   : > { %19640 = vmatprep.subr.msk.mxu0 %vm686_vm2, %v23685_v41  ;;  %18976 = vmatmul.mubr.msk.f32.gmra.mrb[22].mxu1 %vm434_vm0, %v25905_v54  ;;  %v25909_v54 = vld [vmem:[#allocation84_spill] sm:$0xff] }
 0x47c   : > { %18978 = vmatprep.mubr.msk.f32.mxu1 %vm434_vm0, %v25906_v29  ;;  %v23739_v29 = vld [vmem:[#allocation2 + $0x92] sm:$0xff] }
 0x47d   : > { %19546 = vmatmul.mubr.msk.f32.gmra.mrb[34].mxu0 %vm434_vm0, %v23697_v48  ;;  %25910 = vst [vmem:[#allocation142_spill] sm:$0xff] %v23739_v29 }
 0x47e   : > { %19548 = vmatprep.mubr.msk.f32.mxu0 %vm434_vm0, %v23703_v40  ;;  %v23723_v40 = vld [vmem:[#allocation2 + $0x6a] sm:$0xff] }
 0x47f   : > { %25907 = vst [vmem:[#allocation140_spill] sm:$0xff] %v23723_v40  ;;  %18979 = vmatmul.mubr.msk.f32.gmra.mrb[24].mxu1 %vm434_vm0, %v23283_v7  ;;  %v25911_v7 = vld [vmem:[#allocation94_spill] sm:$0xff] }
 0x480   : > { %18981 = vmatprep.mubr.msk.f32.mxu1 %vm434_vm0, %v25909_v54  ;;  %v23751_v54 = vld [vmem:[#allocation2 + $0xaa] sm:$0xff] }
 0x481   : > { %19549 = vmatmul.mubr.msk.f32.gmra.mrb[36].mxu0 %vm434_vm0, %v23711_v24  ;;  %25912 = vst [vmem:[#allocation143_spill] sm:$0xff] %v23751_v54 }
 0x482   : > { %19551 = vmatprep.mubr.msk.f32.mxu0 %vm434_vm0, %v23715_v9  ;;  %v23735_v9 = vld [vmem:[#allocation2 + $0x82] sm:$0xff] }
 0x483   : > { %18982 = vmatmul.mubr.msk.f32.gmra.mrb[26].mxu1 %vm434_vm0, %v23315_v6 }
 0x484   : > { %18984 = vmatprep.mubr.msk.f32.mxu1 %vm434_vm0, %v25911_v7  ;;  %v23763_v7 = vld [vmem:[#allocation2 + $0xc2] sm:$0xff] }
 0x485   : > { %19552 = vmatmul.mubr.msk.f32.gmra.mrb[38].mxu0 %vm434_vm0, %v23723_v40  ;;  %v25913_v40 = vld [vmem:[#allocation95_spill] sm:$0xff] }
 0x486   : > { %19554 = vmatprep.mubr.msk.f32.mxu0 %vm434_vm0, %v23727_v55  ;;  %v23747_v55 = vld [vmem:[#allocation2 + $0x9a] sm:$0xff] }
 0x487   : > { %18985 = vmatmul.mubr.msk.f32.gmra.mrb[28].mxu1 %vm434_vm0, %v25913_v40  ;;  %v25915_v40 = vld [vmem:[#allocation42_spill] sm:$0xff] }
 0x488   : > { %18987 = vmatprep.mubr.msk.f32.mxu1 %vm434_vm0, %v23359_v1  ;;  %v23775_v1 = vld [vmem:[#allocation2 + $0xda] sm:$0xff] }
 0x489   : > { %19555 = vmatmul.mubr.msk.f32.gmra.mrb[40].mxu0 %vm434_vm0, %v23735_v9 }
 0x48a   : > { %19557 = vmatprep.mubr.msk.f32.mxu0 %vm434_vm0, %v23739_v29  ;;  %v23759_v29 = vld [vmem:[#allocation2 + $0xb2] sm:$0xff] }
 0x48b   : > { %25914 = vst [vmem:[#allocation144_spill] sm:$0xff] %v23759_v29  ;;  %18988 = vmatmul.mubr.msk.f32.gmra.mrb[30].mxu1 %vm434_vm0, %v23361_v52 }
 0x48c   : > { %18992 = vmatprep.mubr.msk.f32.mxu1 %vm434_vm0, %v25915_v40  ;;  %v21339_v40 = vld [vmem:[#allocation2 + $0xe2] sm:$0xff] }
 0x48d   : > { %19558 = vmatmul.mubr.msk.f32.gmra.mrb[42].mxu0 %vm434_vm0, %v23747_v55 }
 0x48e   : > { %19560 = vmatprep.mubr.msk.f32.mxu0 %vm434_vm0, %v23751_v54  ;;  %v23771_v54 = vld [vmem:[#allocation2 + $0xca] sm:$0xff] }
 0x48f   : > { %25916 = vst [vmem:[#allocation42_spill] sm:$0xff] %v23771_v54  ;;  %18993 = vmatmul.mubr.msk.f32.vlgmr.msra.gmra.mrb[0].mxu1 %vm434_vm0, %v22891_v49  ;;  %v21341_v49 = vld [vmem:[#allocation2 + $0xfa] sm:$0xff] }
 0x490   : > { %19041 = vmatpush3.msk.msra.mxu1 %vm686_vm2, %v23576_v30  ;;  %18995 = vmatprep.mubr.msk.f32.mxu1 %vm434_vm0, %v22912_v38  ;;  %v21342_v38 = vld [vmem:[#allocation2 + $0x10a] sm:$0xff]  ;;  %v21343_v30 = vld [vmem:[#allocation2 + $0x112] sm:$0xff] }
 0x491   : > { %19561 = vmatmul.mubr.msk.f32.gmra.mrb[44].mxu0 %vm434_vm0, %v23759_v29  ;;  %v23780_v29 = vld [vmem:[%s25454_s3 + $0x14] sm:$0xf] }
 0x492   : > { %19563 = vmatprep.mubr.msk.f32.mxu0 %vm434_vm0, %v23763_v7  ;;  %19090 = vmatprep.subr.msk.mxu1 %vm686_vm2, %v23780_v29 }
 0x493   : > { %18996 = vmatmul.mubr.msk.f32.gmra.mrb[2].mxu1 %vm434_vm0, %v22936_v26  ;;  %v21344_v26 = vld [vmem:[#allocation2 + $0x122] sm:$0xff] }
 0x494   : > { %18998 = vmatprep.mubr.msk.f32.mxu1 %vm434_vm0, %v22947_v5  ;;  %v21345_v5 = vld [vmem:[#allocation2 + $0x12a] sm:$0xff] }
 0x495   : > { %19564 = vmatmul.mubr.msk.f32.gmra.mrb[46].mxu0 %vm434_vm0, %v23771_v54  ;;  %v21340_v54 = vld [vmem:[#allocation2 + $0xf2] sm:$0xff] }
 0x496   : > { %19566 = vmatprep.mubr.msk.f32.mxu0 %vm434_vm0, %v23775_v1 }
 0x497   : > { %18999 = vmatmul.mubr.msk.f32.gmra.mrb[4].mxu1 %vm434_vm0, %v22974_v53  ;;  %v21346_v53 = vld [vmem:[#allocation2 + $0x13a] sm:$0xff] }
 0x498   : > { %19001 = vmatprep.mubr.msk.f32.mxu1 %vm434_vm0, %v22985_v15  ;;  %v21347_v15 = vld [vmem:[#allocation2 + $0x142] sm:$0xff] }
 0x499   : > { %19567 = vmatmul.mubr.msk.f32.gmra.mrb[48].mxu0 %vm434_vm0, %v21339_v40  ;;  %v25920_v40 = vld [vmem:[#allocation74_spill] sm:$0xff] }
 0x49a   : > { %19569 = vmatprep.mubr.msk.f32.mxu0 %vm434_vm0, %v21340_v54  ;;  %v10122_v54 = vld [vmem:[#allocation2 + $0x50] sm:$0xff] }
 0x49b   : > { %19002 = vmatmul.mubr.msk.f32.gmra.mrb[6].mxu1 %vm434_vm0, %v23015_v58  ;;  %v21348_v58 = vld [vmem:[#allocation2 + $0x152] sm:$0xff] }
 0x49c   : > { %19004 = vmatprep.mubr.msk.f32.mxu1 %vm434_vm0, %v23028_v23  ;;  %v21349_v23 = vld [vmem:[#allocation2 + $0x15a] sm:$0xff] }
 0x49d   : > { %19570 = vmatmul.mubr.msk.f32.gmra.mrb[50].mxu0 %vm434_vm0, %v21341_v49  ;;  %v10134_v49 = vld [vmem:[#allocation2 + $0xe0] sm:$0xff] }
 0x49e   : > { %19572 = vmatprep.mubr.msk.f32.mxu0 %vm434_vm0, %v21342_v38  ;;  %v23903_v38 = vld [vmem:[%s25454_s3 + $0x18] sm:$0xf] }
 0x49f   : > { %19005 = vmatmul.mubr.msk.f32.gmra.mrb[8].mxu1 %vm434_vm0, %v23076_v25  ;;  %v25917_v25 = vld [vmem:[#allocation54_spill] sm:$0xff] }
 0x4a0   : > { %19007 = vmatprep.mubr.msk.f32.mxu1 %vm434_vm0, %v23087_v61  ;;  %v25918_v61 = vld [vmem:[#allocation45_spill] sm:$0xff] }
 0x4a1   : > { %19573 = vmatmul.mubr.msk.f32.gmra.mrb[52].mxu0 %vm434_vm0, %v21343_v30  ;;  %v25922_v30 = vld [vmem:[#allocation40_spill] sm:$0xff] }
 0x4a2   : > { %19575 = vmatprep.mubr.msk.f32.mxu0 %vm434_vm0, %v21344_v26  ;;  %v25923_v26 = vld [vmem:[#allocation4_spill] sm:$0xff] }
 0x4a3   : > { %19008 = vmatmul.mubr.msk.f32.gmra.mrb[10].mxu1 %vm434_vm0, %v23118_v63  ;;  %v23831_v63 = vld [vmem:[#allocation2 + $0x182] sm:$0xff] }
 0x4a4   : > { %19010 = vmatprep.mubr.msk.f32.mxu1 %vm434_vm0, %v23129_v35  ;;  %v23839_v35 = vld [vmem:[#allocation2 + $0x18a] sm:$0xff] }
 0x4a5   : > { %19576 = vmatmul.mubr.msk.f32.gmra.mrb[54].mxu0 %vm434_vm0, %v21345_v5  ;;  %v10136_v5 = vld [vmem:[#allocation2 + $0xf8] sm:$0xff] }
 0x4a6   : > { %19578 = vmatprep.mubr.msk.f32.mxu0 %vm434_vm0, %v21346_v53  ;;  %v10137_v53 = vld [vmem:[#allocation2 + $0x108] sm:$0xff] }
 0x4a7   : > { %19011 = vmatmul.mubr.msk.f32.gmra.mrb[12].mxu1 %vm434_vm0, %v23149_v14  ;;  %v10119_v14 = vld [vmem:[#allocation2 + $0x30] sm:$0xff] }
 0x4a8   : > { %19013 = vmatprep.mubr.msk.f32.mxu1 %vm434_vm0, %v23151_v28  ;;  %v10120_v28 = vld [vmem:[#allocation2 + $0x38] sm:$0xff] }
 0x4a9   : > { %19579 = vmatmul.mubr.msk.f32.gmra.mrb[56].mxu0 %vm434_vm0, %v21347_v15  ;;  %v25924_v15 = vld [vmem:[#allocation7_spill] sm:$0xff] }
 0x4aa   : > { %19581 = vmatprep.mubr.msk.f32.mxu0 %vm434_vm0, %v21348_v58  ;;  %v25925_v58 = vld [vmem:[#allocation15_spill] sm:$0xff] }
 0x4ab   : > { %19014 = vmatmul.mubr.msk.f32.gmra.mrb[14].mxu1 %vm434_vm0, %v23182_v20  ;;  %v23852_v20 = vld [vmem:[%s25453_s2 + $0x20] sm:$0xf] }
 0x4ac   : > { %19016 = vmatprep.mubr.msk.f32.mxu1 %vm434_vm0, %v23184_v27  ;;  %v10121_v27 = vld [vmem:[#allocation2 + $0x48] sm:$0xff] }
 0x4ad   : > { %19582 = vmatmul.mubr.msk.f32.gmra.mrb[58].mxu0 %vm434_vm0, %v21349_v23  ;;  %v10138_v23 = vld [vmem:[#allocation2 + $0x110] sm:$0xff] }
 0x4ae   : > { %19584 = vmatprep.mubr.msk.f32.mxu0 %vm434_vm0, %v25917_v25  ;;  %v25926_v25 = vld [vmem:[#allocation22_spill] sm:$0xff] }
 0x4af   : > { %19017 = vmatmul.mubr.msk.f32.gmra.mrb[16].mxu1 %vm434_vm0, %v23210_v62  ;;  %v10123_v62 = vld [vmem:[#allocation2 + $0x60] sm:$0xff] }
 0x4b0   : > { %19019 = vmatprep.mubr.msk.f32.mxu1 %vm434_vm0, %v23212_v47  ;;  %v10132_v47 = vld [vmem:[#allocation2 + $0xc8] sm:$0xff] }
 0x4b1   : > { %19585 = vmatmul.mubr.msk.f32.gmra.mrb[60].mxu0 %vm434_vm0, %v25918_v61  ;;  %v25927_v61 = vld [vmem:[#allocation43_spill] sm:$0xff] }
 0x4b2   : > { %19587 = vmatprep.mubr.msk.f32.mxu0 %vm434_vm0, %v23831_v63 }
 0x4b3   : > { %19020 = vmatmul.mubr.msk.f32.gmra.mrb[18].mxu1 %vm434_vm0, %v23241_v50  ;;  %v10124_v50 = vld [vmem:[#allocation2 + $0x68] sm:$0xff] }
 0x4b4   : > { %19022 = vmatprep.mubr.msk.f32.mxu1 %vm434_vm0, %v23243_v45  ;;  %v10126_v45 = vld [vmem:[#allocation2 + $0x80] sm:$0xff] }
 0x4b5   : > { %19588 = vmatmul.mubr.msk.f32.gmra.mrb[62].mxu0 %vm434_vm0, %v23839_v35 }
 0x4b6   : > { %19592 = vmatprep.mubr.msk.f32.mxu0 %vm434_vm0, %v10119_v14  ;;  %v10140_v14 = vld [vmem:[#allocation2 + $0x128] sm:$0xff] }
 0x4b7   : > { %19023 = vmatmul.mubr.msk.f32.gmra.mrb[20].mxu1 %vm434_vm0, %v23245_v8  ;;  %v10127_v8 = vld [vmem:[#allocation2 + $0x90] sm:$0xff] }
 0x4b8   : > { %19025 = vmatprep.mubr.msk.f32.mxu1 %vm434_vm0, %v23275_v59  ;;  %v10128_v59 = vld [vmem:[#allocation2 + $0x98] sm:$0xff] }
 0x4b9   : > { %19593 = vmatmul.mubr.msk.f32.vlgmr.msra.gmra.mrb[32].mxu0 %vm434_vm0, %v10120_v28  ;;  %v10141_v28 = vld [vmem:[#allocation2 + $0x138] sm:$0xff] }
 0x4ba   : > { %19641 = vmatpush3.msk.msra.mxu0 %vm686_vm2, %v23685_v41  ;;  %19595 = vmatprep.mubr.msk.f32.mxu0 %vm434_vm0, %v10121_v27  ;;  %v10125_v41 = vld [vmem:[#allocation2 + $0x78] sm:$0xff]  ;;  %v25928_v27 = vld [vmem:[#allocation56_spill] sm:$0xff] }
 0x4bb   : > { %19690 = vmatprep.subr.msk.mxu0 %vm686_vm2, %v23852_v20  ;;  %19026 = vmatmul.mubr.msk.f32.gmra.mrb[22].mxu1 %vm434_vm0, %v23277_v22  ;;  %v10129_v22 = vld [vmem:[#allocation2 + $0xa8] sm:$0xff] }
 0x4bc   : > { %19028 = vmatprep.mubr.msk.f32.mxu1 %vm434_vm0, %v23279_v13  ;;  %v10130_v13 = vld [vmem:[#allocation2 + $0xb0] sm:$0xff] }
 0x4bd   : > { %19596 = vmatmul.mubr.msk.f32.gmra.mrb[34].mxu0 %vm434_vm0, %v10122_v54  ;;  %v25929_v54 = vld [vmem:[#allocation51_spill] sm:$0xff] }
 0x4be   : > { %19598 = vmatprep.mubr.msk.f32.mxu0 %vm434_vm0, %v10123_v62  ;;  %v10142_v62 = vld [vmem:[#allocation2 + $0x140] sm:$0xff] }
 0x4bf   : > { %19029 = vmatmul.mubr.msk.f32.gmra.mrb[24].mxu1 %vm434_vm0, %v23309_v34  ;;  %v10131_v34 = vld [vmem:[#allocation2 + $0xc0] sm:$0xff] }
 0x4c0   : > { %19031 = vmatprep.mubr.msk.f32.mxu1 %vm434_vm0, %v23311_v43  ;;  %v25919_v43 = vld [vmem:[#allocation73_spill] sm:$0xff] }
 0x4c1   : > { %19599 = vmatmul.mubr.msk.f32.gmra.mrb[36].mxu0 %vm434_vm0, %v10124_v50  ;;  %v10143_v50 = vld [vmem:[#allocation2 + $0x150] sm:$0xff] }
 0x4c2   : > { %19601 = vmatprep.mubr.msk.f32.mxu0 %vm434_vm0, %v10125_v41  ;;  %v25930_v41 = vld [vmem:[#allocation55_spill] sm:$0xff] }
 0x4c3   : > { %19032 = vmatmul.mubr.msk.f32.gmra.mrb[26].mxu1 %vm434_vm0, %v23313_v21  ;;  %v10133_v21 = vld [vmem:[#allocation2 + $0xd8] sm:$0xff] }
 0x4c4   : > { %19034 = vmatprep.mubr.msk.f32.mxu1 %vm434_vm0, %v23355_v37  ;;  %v25921_v37 = vld [vmem:[#allocation46_spill] sm:$0xff] }
 0x4c5   : > { %19602 = vmatmul.mubr.msk.f32.gmra.mrb[38].mxu0 %vm434_vm0, %v10126_v45  ;;  %v25931_v45 = vld [vmem:[#allocation13_spill] sm:$0xff] }
 0x4c6   : > { %19604 = vmatprep.mubr.msk.f32.mxu0 %vm434_vm0, %v10127_v8  ;;  %v10144_v8 = vld [vmem:[#allocation2 + $0x158] sm:$0xff] }
 0x4c7   : > { %19035 = vmatmul.mubr.msk.f32.gmra.mrb[28].mxu1 %vm434_vm0, %v23357_v39  ;;  %v10135_v39 = vld [vmem:[#allocation2 + $0xf0] sm:$0xff] }
 0x4c8   : > { %19037 = vmatprep.mubr.msk.f32.mxu1 %vm434_vm0, %v25919_v43 }
 0x4c9   : > { %19605 = vmatmul.mubr.msk.f32.gmra.mrb[40].mxu0 %vm434_vm0, %v10128_v59  ;;  %v10145_v59 = vld [vmem:[#allocation2 + $0x168] sm:$0xff] }
 0x4ca   : > { %19607 = vmatprep.mubr.msk.f32.mxu0 %vm434_vm0, %v10129_v22  ;;  %v25932_v22 = vld [vmem:[#allocation20_spill] sm:$0xff] }
 0x4cb   : > { %19038 = vmatmul.mubr.msk.f32.gmra.mrb[30].mxu1 %vm434_vm0, %v25920_v40 }
 0x4cc   : > { %19042 = vmatprep.mubr.msk.f32.mxu1 %vm434_vm0, %v25921_v37  ;;  %v10149_v37 = vld [vmem:[#allocation2 + $0x198] sm:$0xff] }
 0x4cd   : > { %19608 = vmatmul.mubr.msk.f32.gmra.mrb[42].mxu0 %vm434_vm0, %v10130_v13  ;;  %v25933_v13 = vld [vmem:[#allocation25_spill] sm:$0xff] }
 0x4ce   : > { %19610 = vmatprep.mubr.msk.f32.mxu0 %vm434_vm0, %v10131_v34  ;;  %v10146_v34 = vld [vmem:[#allocation2 + $0x170] sm:$0xff] }
 0x4cf   : > { %19043 = vmatmul.mubr.msk.f32.vlgmr.msra.gmra.mrb[0].mxu1 %vm434_vm0, %v25922_v30  ;;  %v25937_v30 = vld [vmem:[#allocation59_spill] sm:$0xff] }
 0x4d0   : > { %19091 = vmatpush3.msk.msra.mxu1 %vm686_vm2, %v23780_v29  ;;  %19045 = vmatprep.mubr.msk.f32.mxu1 %vm434_vm0, %v25923_v26  ;;  %v10139_v29 = vld [vmem:[#allocation2 + $0x120] sm:$0xff] }
 0x4d1   : > { %19611 = vmatmul.mubr.msk.f32.gmra.mrb[44].mxu0 %vm434_vm0, %v10132_v47  ;;  %19140 = vmatprep.subr.msk.mxu1 %vm686_vm2, %v23903_v38  ;;  %v25934_v47 = vld [vmem:[#allocation29_spill] sm:$0xff] }
 0x4d2   : > { %19613 = vmatprep.mubr.msk.f32.mxu0 %vm434_vm0, %v10133_v21  ;;  %v25935_v21 = vld [vmem:[#allocation32_spill] sm:$0xff] }
 0x4d3   : > { %19046 = vmatmul.mubr.msk.f32.gmra.mrb[2].mxu1 %vm434_vm0, %v25924_v15 }
 0x4d4   : > { %19048 = vmatprep.mubr.msk.f32.mxu1 %vm434_vm0, %v25925_v58 }
 0x4d5   : > { %19614 = vmatmul.mubr.msk.f32.gmra.mrb[46].mxu0 %vm434_vm0, %v10134_v49  ;;  %v25936_v49 = vld [vmem:[#allocation57_spill] sm:$0xff] }
 0x4d6   : > { %19616 = vmatprep.mubr.msk.f32.mxu0 %vm434_vm0, %v10135_v39  ;;  %v10150_v39 = vld [vmem:[#allocation2 + $0x1a0] sm:$0xff] }
 0x4d7   : > { %19049 = vmatmul.mubr.msk.f32.gmra.mrb[4].mxu1 %vm434_vm0, %v25926_v25 }
 0x4d8   : > { %19051 = vmatprep.mubr.msk.f32.mxu1 %vm434_vm0, %v25927_v61 }
 0x4d9   : > { %19617 = vmatmul.mubr.msk.f32.gmra.mrb[48].mxu0 %vm434_vm0, %v10136_v5  ;;  %v25938_v5 = vld [vmem:[#allocation64_spill] sm:$0xff] }
 0x4da   : > { %19619 = vmatprep.mubr.msk.f32.mxu0 %vm434_vm0, %v10137_v53  ;;  %v25940_v53 = vld [vmem:[#allocation65_spill] sm:$0xff] }
 0x4db   : > { %19052 = vmatmul.mubr.msk.f32.gmra.mrb[6].mxu1 %vm434_vm0, %v25928_v27 }
 0x4dc   : > { %19054 = vmatprep.mubr.msk.f32.mxu1 %vm434_vm0, %v25929_v54 }
 0x4dd   : > { %19620 = vmatmul.mubr.msk.f32.gmra.mrb[50].mxu0 %vm434_vm0, %v10138_v23  ;;  %v25942_v23 = vld [vmem:[#allocation75_spill] sm:$0xff] }
 0x4de   : > { %19622 = vmatprep.mubr.msk.f32.mxu0 %vm434_vm0, %v10139_v29  ;;  %v25943_v29 = vld [vmem:[#allocation120_spill] sm:$0xff] }
 0x4df   : > { %19055 = vmatmul.mubr.msk.f32.gmra.mrb[8].mxu1 %vm434_vm0, %v25930_v41 }
 0x4e0   : > { %19057 = vmatprep.mubr.msk.f32.mxu1 %vm434_vm0, %v25931_v45 }
 0x4e1   : > { %19623 = vmatmul.mubr.msk.f32.gmra.mrb[52].mxu0 %vm434_vm0, %v10140_v14  ;;  %v25944_v14 = vld [vmem:[#allocation76_spill] sm:$0xff] }
 0x4e2   : > { %19625 = vmatprep.mubr.msk.f32.mxu0 %vm434_vm0, %v10141_v28  ;;  %v25945_v28 = vld [vmem:[#allocation121_spill] sm:$0xff] }
 0x4e3   : > { %19058 = vmatmul.mubr.msk.f32.gmra.mrb[10].mxu1 %vm434_vm0, %v25932_v22 }
 0x4e4   : > { %19060 = vmatprep.mubr.msk.f32.mxu1 %vm434_vm0, %v25933_v13 }
 0x4e5   : > { %19626 = vmatmul.mubr.msk.f32.gmra.mrb[54].mxu0 %vm434_vm0, %v10142_v62  ;;  %v25946_v62 = vld [vmem:[#allocation77_spill] sm:$0xff] }
 0x4e6   : > { %19628 = vmatprep.mubr.msk.f32.mxu0 %vm434_vm0, %v10143_v50  ;;  %v25947_v50 = vld [vmem:[#allocation122_spill] sm:$0xff] }
 0x4e7   : > { %19061 = vmatmul.mubr.msk.f32.gmra.mrb[12].mxu1 %vm434_vm0, %v25934_v47 }
 0x4e8   : > { %19063 = vmatprep.mubr.msk.f32.mxu1 %vm434_vm0, %v25935_v21 }
 0x4e9   : > { %19629 = vmatmul.mubr.msk.f32.gmra.mrb[56].mxu0 %vm434_vm0, %v10144_v8  ;;  %v25948_v8 = vld [vmem:[#allocation85_spill] sm:$0xff] }
 0x4ea   : > { %19631 = vmatprep.mubr.msk.f32.mxu0 %vm434_vm0, %v10145_v59  ;;  %v25950_v59 = vld [vmem:[#allocation86_spill] sm:$0xff] }
 0x4eb   : > { %19064 = vmatmul.mubr.msk.f32.gmra.mrb[14].mxu1 %vm434_vm0, %v25936_v49 }
 0x4ec   : > { %19066 = vmatprep.mubr.msk.f32.mxu1 %vm434_vm0, %v25937_v30 }
 0x4ed   : > { %19632 = vmatmul.mubr.msk.f32.gmra.mrb[58].mxu0 %vm434_vm0, %v10146_v34  ;;  %v25951_v34 = vld [vmem:[#allocation124_spill] sm:$0xff] }
 0x4ee   : > { %19634 = vmatprep.mubr.msk.f32.mxu0 %vm434_vm0, %v23459_v16  ;;  %v25939_v16 = vld [vmem:[#allocation118_spill] sm:$0xff] }
 0x4ef   : > { %19067 = vmatmul.mubr.msk.f32.gmra.mrb[16].mxu1 %vm434_vm0, %v25938_v5 }
 0x4f0   : > { %19069 = vmatprep.mubr.msk.f32.mxu1 %vm434_vm0, %v25940_v53 }
 0x4f1   : > { %19635 = vmatmul.mubr.msk.f32.gmra.mrb[60].mxu0 %vm434_vm0, %v23468_v11  ;;  %v25941_v11 = vld [vmem:[#allocation119_spill] sm:$0xff] }
 0x4f2   : > { %19637 = vmatprep.mubr.msk.f32.mxu0 %vm434_vm0, %v10149_v37  ;;  %v25952_v37 = vld [vmem:[#allocation87_spill] sm:$0xff] }
 0x4f3   : > { %19070 = vmatmul.mubr.msk.f32.gmra.mrb[18].mxu1 %vm434_vm0, %v25942_v23 }
 0x4f4   : > { %19072 = vmatprep.mubr.msk.f32.mxu1 %vm434_vm0, %v25944_v14 }
 0x4f5   : > { %19638 = vmatmul.mubr.msk.f32.gmra.mrb[62].mxu0 %vm434_vm0, %v10150_v39  ;;  %v25953_v39 = vld [vmem:[#allocation125_spill] sm:$0xff] }
 0x4f6   : > { %19642 = vmatprep.mubr.msk.f32.mxu0 %vm434_vm0, %v25939_v16  ;;  %v25954_v16 = vld [vmem:[#allocation96_spill] sm:$0xff] }
 0x4f7   : > { %19073 = vmatmul.mubr.msk.f32.gmra.mrb[20].mxu1 %vm434_vm0, %v25946_v62 }
 0x4f8   : > { %19075 = vmatprep.mubr.msk.f32.mxu1 %vm434_vm0, %v25948_v8 }
 0x4f9   : > { %19643 = vmatmul.mubr.msk.f32.vlgmr.msra.gmra.mrb[32].mxu0 %vm434_vm0, %v25941_v11  ;;  %v25955_v11 = vld [vmem:[#allocation126_spill] sm:$0xff] }
 0x4fa   : > { %19691 = vmatpush3.msk.msra.mxu0 %vm686_vm2, %v23852_v20  ;;  %19645 = vmatprep.mubr.msk.f32.mxu0 %vm434_vm0, %v25943_v29  ;;  %v25949_v20 = vld [vmem:[#allocation123_spill] sm:$0xff]  ;;  %v25956_v29 = vld [vmem:[#allocation97_spill] sm:$0xff] }
 0x4fb   : > { %19076 = vmatmul.mubr.msk.f32.gmra.mrb[22].mxu1 %vm434_vm0, %v25950_v59 }
 0x4fc   : > { %19078 = vmatprep.mubr.msk.f32.mxu1 %vm434_vm0, %v25952_v37 }
 0x4fd   : > { %19646 = vmatmul.mubr.msk.f32.gmra.mrb[34].mxu0 %vm434_vm0, %v25945_v28  ;;  %v25957_v28 = vld [vmem:[#allocation127_spill] sm:$0xff] }
 0x4fe   : > { %19648 = vmatprep.mubr.msk.f32.mxu0 %vm434_vm0, %v25947_v50  ;;  %v25958_v50 = vld [vmem:[#allocation98_spill] sm:$0xff] }
 0x4ff   : > { %19079 = vmatmul.mubr.msk.f32.gmra.mrb[24].mxu1 %vm434_vm0, %v25954_v16  ;;  %v25962_v16 = vld [vmem:[#allocation107_spill] sm:$0xff] }
 0x500   : > { %19081 = vmatprep.mubr.msk.f32.mxu1 %vm434_vm0, %v25956_v29 }
 0x501   : > { %19649 = vmatmul.mubr.msk.f32.gmra.mrb[36].mxu0 %vm434_vm0, %v25949_v20  ;;  %v25959_v20 = vld [vmem:[#allocation128_spill] sm:$0xff] }
 0x502   : > { %19651 = vmatprep.mubr.msk.f32.mxu0 %vm434_vm0, %v25951_v34  ;;  %v25960_v34 = vld [vmem:[#allocation106_spill] sm:$0xff] }
 0x503   : > { %19082 = vmatmul.mubr.msk.f32.gmra.mrb[26].mxu1 %vm434_vm0, %v25958_v50  ;;  %v25965_v50 = vld [vmem:[#allocation66_spill] sm:$0xff] }
 0x504   : > { %19084 = vmatprep.mubr.msk.f32.mxu1 %vm434_vm0, %v25960_v34 }
 0x505   : > { %19652 = vmatmul.mubr.msk.f32.gmra.mrb[38].mxu0 %vm434_vm0, %v25953_v39  ;;  %v25961_v39 = vld [vmem:[#allocation129_spill] sm:$0xff] }
 0x506   : > { %19654 = vmatprep.mubr.msk.f32.mxu0 %vm434_vm0, %v25955_v11  ;;  %v25963_v11 = vld [vmem:[#allocation78_spill] sm:$0xff] }
 0x507   : > { %19085 = vmatmul.mubr.msk.f32.gmra.mrb[28].mxu1 %vm434_vm0, %v25962_v16 }
 0x508   : > { %19087 = vmatprep.mubr.msk.f32.mxu1 %vm434_vm0, %v25963_v11 }
 0x509   : > { %19655 = vmatmul.mubr.msk.f32.gmra.mrb[40].mxu0 %vm434_vm0, %v25957_v28  ;;  %v25964_v28 = vld [vmem:[#allocation130_spill] sm:$0xff] }
 0x50a   : > { %19657 = vmatprep.mubr.msk.f32.mxu0 %vm434_vm0, %v25959_v20  ;;  %v25966_v20 = vld [vmem:[#allocation131_spill] sm:$0xff] }
 0x50b   : > { %19088 = vmatmul.mubr.msk.f32.gmra.mrb[30].mxu1 %vm434_vm0, %v25965_v50 }
 0x50c   : > { %19092 = vmatprep.mubr.msk.f32.mxu1 %vm434_vm0, %v22898_v57  ;;  %v25968_v57 = vld [vmem:[#allocation132_spill] sm:$0xff] }
 0x50d   : > { %19658 = vmatmul.mubr.msk.f32.gmra.mrb[42].mxu0 %vm434_vm0, %v25961_v39  ;;  %v10539_v39 = vld [vmem:[#allocation2 + $0x1a1] sm:$0xff] }
 0x50e   : > { %19660 = vmatprep.mubr.msk.f32.mxu0 %vm434_vm0, %v23559_v44  ;;  %v24028_v44 = vld [vmem:[%s25454_s3 + $0x1c] sm:$0xf] }
 0x50f   : > { %19093 = vmatmul.mubr.msk.f32.vlgmr.msra.gmra.mrb[0].mxu1 %vm434_vm0, %v22884_v33  ;;  %v25969_v33 = vld [vmem:[#allocation14_spill] sm:$0xff] }
 0x510   : > { %19141 = vmatpush3.msk.msra.mxu1 %vm686_vm2, %v23903_v38  ;;  %v25971_v38 = vld [vmem:[#allocation38_spill] sm:$0xff] }
 0x511   : > { %19661 = vmatmul.mubr.msk.f32.gmra.mrb[44].mxu0 %vm434_vm0, %v25964_v28  ;;  %19190 = vmatprep.subr.msk.mxu1 %vm686_vm2, %v24028_v44  ;;  %v25984_v28 = vld [vmem:[#allocation138_spill] sm:$0xff] }
 0x512   : > { %19663 = vmatprep.mubr.msk.f32.mxu0 %vm434_vm0, %v23571_v31  ;;  %v25967_v31 = vld [vmem:[#allocation48_spill] sm:$0xff] }
 0x513   : > { %19095 = vmatprep.mubr.msk.f32.mxu1 %vm434_vm0, %v25967_v31  ;;  %v25988_v31 = vld [vmem:[#allocation82_spill] sm:$0xff] }
 0x514   : > { %19096 = vmatmul.mubr.msk.f32.gmra.mrb[2].mxu1 %vm434_vm0, %v22927_v10  ;;  %v25972_v10 = vld [vmem:[#allocation134_spill] sm:$0xff] }
 0x515   : > { %19664 = vmatmul.mubr.msk.f32.gmra.mrb[46].mxu0 %vm434_vm0, %v23586_v17  ;;  %19098 = vmatprep.mubr.msk.f32.mxu1 %vm434_vm0, %v25969_v33  ;;  %v25970_v17 = vld [vmem:[#allocation133_spill] sm:$0xff] }
 0x516   : > { %19666 = vmatprep.mubr.msk.f32.mxu0 %vm434_vm0, %v25966_v20  ;;  %v25987_v20 = vld [vmem:[#allocation139_spill] sm:$0xff]  ;;  %v25991_v33 = vld [vmem:[#allocation141_spill] sm:$0xff] }
 0x518   : > { %19099 = vmatmul.mubr.msk.f32.gmra.mrb[4].mxu1 %vm434_vm0, %v22965_v18  ;;  %v25974_v18 = vld [vmem:[#allocation135_spill] sm:$0xff] }
 0x519   : > { %19667 = vmatmul.mubr.msk.f32.gmra.mrb[48].mxu0 %vm434_vm0, %v23600_v0  ;;  %19101 = vmatprep.mubr.msk.f32.mxu1 %vm434_vm0, %v25971_v38  ;;  %v25973_v0 = vld [vmem:[#allocation47_spill] sm:$0xff]  ;;  %v25994_v38 = vld [vmem:[#allocation94_spill] sm:$0xff] }
 0x51a   : > { %19669 = vmatprep.mubr.msk.f32.mxu0 %vm434_vm0, %v25968_v57  ;;  %v25990_v57 = vld [vmem:[#allocation83_spill] sm:$0xff] }
 0x51c   : > { %19102 = vmatmul.mubr.msk.f32.gmra.mrb[6].mxu1 %vm434_vm0, %v23005_v2  ;;  %v25976_v2 = vld [vmem:[#allocation136_spill] sm:$0xff] }
 0x51d   : > { %19670 = vmatmul.mubr.msk.f32.gmra.mrb[50].mxu0 %vm434_vm0, %v23612_v32  ;;  %19104 = vmatprep.mubr.msk.f32.mxu1 %vm434_vm0, %v25973_v0  ;;  %v25975_v32 = vld [vmem:[#allocation12_spill] sm:$0xff]  ;;  %v25996_v0 = vld [vmem:[#allocation143_spill] sm:$0xff] }
 0x51e   : > { %19672 = vmatprep.mubr.msk.f32.mxu0 %vm434_vm0, %v25970_v17  ;;  %v25992_v17 = vld [vmem:[#allocation84_spill] sm:$0xff] }
 0x520   : > { %19105 = vmatmul.mubr.msk.f32.gmra.mrb[8].mxu1 %vm434_vm0, %v23065_v36  ;;  %v25979_v36 = vld [vmem:[#allocation31_spill] sm:$0xff] }
 0x521   : > { %19673 = vmatmul.mubr.msk.f32.gmra.mrb[52].mxu0 %vm434_vm0, %v23624_v60  ;;  %19107 = vmatprep.mubr.msk.f32.mxu1 %vm434_vm0, %v25975_v32  ;;  %v25977_v60 = vld [vmem:[#allocation23_spill] sm:$0xff] }
 0x522   : > { %19675 = vmatprep.mubr.msk.f32.mxu0 %vm434_vm0, %v25972_v10  ;;  %v25995_v10 = vld [vmem:[#allocation95_spill] sm:$0xff] }
 0x523   : > { %v26001_v32 = vld [vmem:[#allocation67_spill] sm:$0xff] }
 0x524   : > { %19108 = vmatmul.mubr.msk.f32.gmra.mrb[10].mxu1 %vm434_vm0, %v23107_v19  ;;  %v25980_v19 = vld [vmem:[#allocation44_spill] sm:$0xff] }
 0x525   : > { %19676 = vmatmul.mubr.msk.f32.gmra.mrb[54].mxu0 %vm434_vm0, %v23636_v51  ;;  %19110 = vmatprep.mubr.msk.f32.mxu1 %vm434_vm0, %v25977_v60  ;;  %v25978_v51 = vld [vmem:[#allocation28_spill] sm:$0xff] }
 0x526   : > { %19678 = vmatprep.mubr.msk.f32.mxu0 %vm434_vm0, %v25974_v18  ;;  %v25997_v18 = vld [vmem:[#allocation105_spill] sm:$0xff] }
 0x527   : > { %v10912_v60 = vld [vmem:[#allocation2 + $0xe2] sm:$0xff] }
 0x528   : > { %19111 = vmatmul.mubr.msk.f32.gmra.mrb[12].mxu1 %vm434_vm0, %v25978_v51  ;;  %v26003_v51 = vld [vmem:[#allocation10_spill] sm:$0xff] }
 0x529   : > { %19679 = vmatmul.mubr.msk.f32.gmra.mrb[56].mxu0 %vm434_vm0, %v23648_v4  ;;  %19113 = vmatprep.mubr.msk.f32.mxu1 %vm434_vm0, %v25979_v36  ;;  %v10538_v4 = vld [vmem:[#allocation2 + $0x199] sm:$0xff] }
 0x52a   : > { %19681 = vmatprep.mubr.msk.f32.mxu0 %vm434_vm0, %v25976_v2  ;;  %v26002_v2 = vld [vmem:[#allocation5_spill] sm:$0xff]  ;;  %v10914_v36 = vld [vmem:[#allocation2 + $0xfa] sm:$0xff] }
 0x52c   : > { %19114 = vmatmul.mubr.msk.f32.gmra.mrb[14].mxu1 %vm434_vm0, %v25980_v19  ;;  %v26005_v19 = vld [vmem:[#allocation36_spill] sm:$0xff] }
 0x52d   : > { %19682 = vmatmul.mubr.msk.f32.gmra.mrb[58].mxu0 %vm434_vm0, %v23660_v42  ;;  %19116 = vmatprep.mubr.msk.f32.mxu1 %vm434_vm0, %v23195_v12  ;;  %v25981_v42 = vld [vmem:[#allocation137_spill] sm:$0xff]  ;;  %v25985_v12 = vld [vmem:[#allocation71_spill] sm:$0xff] }
 0x52e   : > { %19684 = vmatprep.mubr.msk.f32.mxu0 %vm434_vm0, %v23664_v46  ;;  %v25982_v46 = vld [vmem:[#allocation63_spill] sm:$0xff] }
 0x530   : > { %19117 = vmatmul.mubr.msk.f32.gmra.mrb[16].mxu1 %vm434_vm0, %v23219_v56  ;;  %v25986_v56 = vld [vmem:[#allocation72_spill] sm:$0xff] }
 0x531   : > { %19685 = vmatmul.mubr.msk.f32.gmra.mrb[60].mxu0 %vm434_vm0, %v23672_v3  ;;  %19119 = vmatprep.mubr.msk.f32.mxu1 %vm434_vm0, %v25982_v46  ;;  %v25983_v3 = vld [vmem:[#allocation70_spill] sm:$0xff]  ;;  %v26007_v46 = vld [vmem:[#allocation39_spill] sm:$0xff] }
 0x532   : > { %19687 = vmatprep.mubr.msk.f32.mxu0 %vm434_vm0, %v10538_v4  ;;  %v10915_v4 = vld [vmem:[#allocation2 + $0x10a] sm:$0xff] }
 0x534   : > { %19120 = vmatmul.mubr.msk.f32.gmra.mrb[18].mxu1 %vm434_vm0, %v25983_v3  ;;  %v26008_v3 = vld [vmem:[#allocation52_spill] sm:$0xff] }
 0x535   : > { %19688 = vmatmul.mubr.msk.f32.gmra.mrb[62].mxu0 %vm434_vm0, %v10539_v39  ;;  %19122 = vmatprep.mubr.msk.f32.mxu1 %vm434_vm0, %v25985_v12  ;;  %v26006_v39 = vld [vmem:[#allocation49_spill] sm:$0xff]  ;;  %v10919_v12 = vld [vmem:[#allocation2 + $0x13a] sm:$0xff] }
 0x536   : > { %19692 = vmatprep.mubr.msk.f32.mxu0 %vm434_vm0, %v25981_v42  ;;  %v10916_v42 = vld [vmem:[#allocation2 + $0x112] sm:$0xff] }
 0x538   : > { %19123 = vmatmul.mubr.msk.f32.gmra.mrb[20].mxu1 %vm434_vm0, %v25986_v56  ;;  %v26009_v56 = vld [vmem:[#allocation8_spill] sm:$0xff] }
 0x539   : > { %19693 = vmatmul.mubr.msk.f32.vlgmr.msra.gmra.mrb[32].mxu0 %vm434_vm0, %v23697_v48  ;;  %19125 = vmatprep.mubr.msk.f32.mxu1 %vm434_vm0, %v25988_v31  ;;  %v25989_v48 = vld [vmem:[#allocation140_spill] sm:$0xff] }
 0x53a   : > { %19695 = vmatprep.mubr.msk.f32.mxu0 %vm434_vm0, %v25984_v28  ;;  %v10918_v28 = vld [vmem:[#allocation2 + $0x12a] sm:$0xff]  ;;  %v10920_v31 = vld [vmem:[#allocation2 + $0x142] sm:$0xff] }
 0x53c   : > { %19126 = vmatmul.mubr.msk.f32.gmra.mrb[22].mxu1 %vm434_vm0, %v25990_v57  ;;  %v26011_v57 = vld [vmem:[#allocation21_spill] sm:$0xff] }
 0x53d   : > { %19696 = vmatmul.mubr.msk.f32.gmra.mrb[34].mxu0 %vm434_vm0, %v23711_v24  ;;  %19128 = vmatprep.mubr.msk.f32.mxu1 %vm434_vm0, %v25992_v17  ;;  %v25993_v24 = vld [vmem:[#allocation142_spill] sm:$0xff]  ;;  %v10922_v17 = vld [vmem:[#allocation2 + $0x15a] sm:$0xff] }
 0x53e   : > { %19698 = vmatprep.mubr.msk.f32.mxu0 %vm434_vm0, %v25987_v20  ;;  %v26010_v20 = vld [vmem:[#allocation16_spill] sm:$0xff] }
 0x540   : > { %19129 = vmatmul.mubr.msk.f32.gmra.mrb[24].mxu1 %vm434_vm0, %v23315_v6  ;;  %v25999_v6 = vld [vmem:[#allocation88_spill] sm:$0xff] }
 0x541   : > { %19699 = vmatmul.mubr.msk.f32.gmra.mrb[36].mxu0 %vm434_vm0, %v25989_v48  ;;  %19131 = vmatprep.mubr.msk.f32.mxu1 %vm434_vm0, %v25994_v38  ;;  %v10921_v48 = vld [vmem:[#allocation2 + $0x152] sm:$0xff] }
 0x542   : > { %19701 = vmatprep.mubr.msk.f32.mxu0 %vm434_vm0, %v25991_v33  ;;  %v26012_v33 = vld [vmem:[#allocation26_spill] sm:$0xff] }
 0x543   : > { %v26013_v38 = vld [vmem:[#allocation30_spill] sm:$0xff] }
 0x544   : > { %19132 = vmatmul.mubr.msk.f32.gmra.mrb[26].mxu1 %vm434_vm0, %v25995_v10  ;;  %v26014_v10 = vld [vmem:[#allocation33_spill] sm:$0xff] }
 0x545   : > { %19702 = vmatmul.mubr.msk.f32.gmra.mrb[38].mxu0 %vm434_vm0, %v23735_v9  ;;  %19134 = vmatprep.mubr.msk.f32.mxu1 %vm434_vm0, %v25997_v18  ;;  %v25998_v9 = vld [vmem:[#allocation144_spill] sm:$0xff]  ;;  %v26015_v18 = vld [vmem:[#allocation58_spill] sm:$0xff] }
 0x546   : > { %19704 = vmatprep.mubr.msk.f32.mxu0 %vm434_vm0, %v25993_v24  ;;  %v10923_v24 = vld [vmem:[#allocation2 + $0x16a] sm:$0xff] }
 0x548   : > { %19135 = vmatmul.mubr.msk.f32.gmra.mrb[28].mxu1 %vm434_vm0, %v23361_v52  ;;  %v10913_v52 = vld [vmem:[#allocation2 + $0xf2] sm:$0xff] }
 0x549   : > { %19705 = vmatmul.mubr.msk.f32.gmra.mrb[40].mxu0 %vm434_vm0, %v23747_v55  ;;  %19137 = vmatprep.mubr.msk.f32.mxu1 %vm434_vm0, %v25999_v6  ;;  %v26000_v55 = vld [vmem:[#allocation42_spill] sm:$0xff] }
 0x54a   : > { %19707 = vmatprep.mubr.msk.f32.mxu0 %vm434_vm0, %v25996_v0  ;;  %v10924_v0 = vld [vmem:[#allocation2 + $0x172] sm:$0xff] }
 0x54c   : > { %19138 = vmatmul.mubr.msk.f32.gmra.mrb[30].mxu1 %vm434_vm0, %v26001_v32 }
 0x54d   : > { %19708 = vmatmul.mubr.msk.f32.gmra.mrb[42].mxu0 %vm434_vm0, %v25998_v9  ;;  %19142 = vmatprep.mubr.msk.f32.mxu1 %vm434_vm0, %v26002_v2  ;;  %v26016_v9 = vld [vmem:[#allocation60_spill] sm:$0xff] }
 0x54e   : > { %19710 = vmatprep.mubr.msk.f32.mxu0 %vm434_vm0, %v23763_v7  ;;  %v24162_v7 = vld [vmem:[%s25454_s3 + $0x20] sm:$0xf] }
 0x54f   : > { %v26017_v2 = vld [vmem:[#allocation68_spill] sm:$0xff] }
 0x550   : > { %19143 = vmatmul.mubr.msk.f32.vlgmr.msra.gmra.mrb[0].mxu1 %vm434_vm0, %v26003_v51  ;;  %v26019_v51 = vld [vmem:[#allocation79_spill] sm:$0xff] }
 0x551   : > { %19711 = vmatmul.mubr.msk.f32.gmra.mrb[44].mxu0 %vm434_vm0, %v26000_v55  ;;  %19191 = vmatpush3.msk.msra.mxu1 %vm686_vm2, %v24028_v44  ;;  %v10917_v44 = vld [vmem:[#allocation2 + $0x122] sm:$0xff]  ;;  %v10927_v55 = vld [vmem:[#allocation2 + $0x19a] sm:$0xff] }
 0x552   : > { %19713 = vmatprep.mubr.msk.f32.mxu0 %vm434_vm0, %v23775_v1  ;;  %v26004_v1 = vld [vmem:[#allocation18_spill] sm:$0xff]  ;;  %19240 = vmatprep.subr.msk.mxu1 %vm686_vm2, %v24162_v7 }
 0x553   : > { %19145 = vmatprep.mubr.msk.f32.mxu1 %vm434_vm0, %v26004_v1  ;;  %v26021_v1 = vld [vmem:[#allocation81_spill] sm:$0xff] }
 0x554   : > { %19146 = vmatmul.mubr.msk.f32.gmra.mrb[2].mxu1 %vm434_vm0, %v26005_v19  ;;  %v26025_v19 = vld [vmem:[#allocation99_spill] sm:$0xff] }
 0x555   : > { %19714 = vmatmul.mubr.msk.f32.gmra.mrb[46].mxu0 %vm434_vm0, %v10912_v60  ;;  %19148 = vmatprep.mubr.msk.f32.mxu1 %vm434_vm0, %v26006_v39  ;;  %v10928_v60 = vld [vmem:[#allocation2 + $0x1a2] sm:$0xff] }
 0x556   : > { %19716 = vmatprep.mubr.msk.f32.mxu0 %vm434_vm0, %v10913_v52  ;;  %v26018_v52 = vld [vmem:[#allocation69_spill] sm:$0xff]  ;;  %v26026_v39 = vld [vmem:[#allocation100_spill] sm:$0xff] }
 0x558   : > { %19149 = vmatmul.mubr.msk.f32.gmra.mrb[4].mxu1 %vm434_vm0, %v26007_v46  ;;  %v26029_v46 = vld [vmem:[#allocation115_spill] sm:$0xff] }
 0x559   : > { %19717 = vmatmul.mubr.msk.f32.gmra.mrb[48].mxu0 %vm434_vm0, %v10914_v36  ;;  %19151 = vmatprep.mubr.msk.f32.mxu1 %vm434_vm0, %v26008_v3  ;;  %v26023_v36 = vld [vmem:[#allocation90_spill] sm:$0xff]  ;;  %v6459_v3 = vld [vmem:[#allocation3 + $0x198] sm:$0xff] }
 0x55a   : > { %19719 = vmatprep.mubr.msk.f32.mxu0 %vm434_vm0, %v10915_v4  ;;  %v26024_v4 = vld [vmem:[#allocation91_spill] sm:$0xff] }
 0x55c   : > { %19152 = vmatmul.mubr.msk.f32.gmra.mrb[6].mxu1 %vm434_vm0, %v26009_v56  ;;  %v24248_v56 = vld [vmem:[#allocation3 + $0x19a] sm:$0xff] }
 0x55d   : > { %19720 = vmatmul.mubr.msk.f32.gmra.mrb[50].mxu0 %vm434_vm0, %v10916_v42  ;;  %19154 = vmatprep.mubr.msk.f32.mxu1 %vm434_vm0, %v26010_v20  ;;  %v26027_v42 = vld [vmem:[#allocation101_spill] sm:$0xff]  ;;  %v6850_v20 = vld [vmem:[#allocation3 + $0x1a1] sm:$0xff] }
 0x55e   : > { %19722 = vmatprep.mubr.msk.f32.mxu0 %vm434_vm0, %v10917_v44  ;;  %v26028_v44 = vld [vmem:[#allocation108_spill] sm:$0xff] }
 0x560   : > { %19155 = vmatmul.mubr.msk.f32.gmra.mrb[8].mxu1 %vm434_vm0, %v26011_v57  ;;  %v26060_v57 = vld [vmem:[#allocation117_spill] sm:$0xff] }
 0x561   : > { %19723 = vmatmul.mubr.msk.f32.gmra.mrb[52].mxu0 %vm434_vm0, %v10918_v28  ;;  %19157 = vmatprep.mubr.msk.f32.mxu1 %vm434_vm0, %v26012_v33  ;;  %v6460_v28 = vld [vmem:[#allocation3 + $0x1a0] sm:$0xff] }
 0x562   : > { %19725 = vmatprep.mubr.msk.f32.mxu0 %vm434_vm0, %v10919_v12  ;;  %v6849_v12 = vld [vmem:[#allocation3 + $0x199] sm:$0xff] }
 0x564   : > { %19158 = vmatmul.mubr.msk.f32.gmra.mrb[10].mxu1 %vm434_vm0, %v26013_v38 }
 0x565   : > { %19726 = vmatmul.mubr.msk.f32.gmra.mrb[54].mxu0 %vm434_vm0, %v10920_v31  ;;  %19160 = vmatprep.mubr.msk.f32.mxu1 %vm434_vm0, %v26014_v10  ;;  %v26030_v31 = vmov 0.0  }
 0x566   : > { %19728 = vmatprep.mubr.msk.f32.mxu0 %vm434_vm0, %v10921_v48  ;;  %11433 = vst.msk [vmem:[#allocation3 + $0x198] sm:$0xff] %vm434_vm0, %v26030_v31  ;;  %v26059_v48 = vld [vmem:[#allocation116_spill] sm:$0xff] }
 0x568   : > { %19161 = vmatmul.mubr.msk.f32.gmra.mrb[12].mxu1 %vm434_vm0, %v26015_v18 }
 0x569   : > { %19729 = vmatmul.mubr.msk.f32.gmra.mrb[56].mxu0 %vm434_vm0, %v10922_v17  ;;  %19163 = vmatprep.mubr.msk.f32.mxu1 %vm434_vm0, %v26016_v9  ;;  %v11501_v9 = vld [vmem:[#allocation3 + $0x1] sm:$0xff] }
 0x56a   : > { %19731 = vmatprep.mubr.msk.f32.mxu0 %vm434_vm0, %v10923_v24 }
 0x56c   : > { %19164 = vmatmul.mubr.msk.f32.gmra.mrb[14].mxu1 %vm434_vm0, %v26017_v2 }
 0x56d   : > { %19732 = vmatmul.mubr.msk.f32.gmra.mrb[58].mxu0 %vm434_vm0, %v10924_v0  ;;  %19166 = vmatprep.mubr.msk.f32.mxu1 %vm434_vm0, %v26018_v52 }
 0x56e   : > { %19734 = vmatprep.mubr.msk.f32.mxu0 %vm434_vm0, %v23831_v63  ;;  %v26020_v63 = vld [vmem:[#allocation80_spill] sm:$0xff] }
 0x570   : > { %19167 = vmatmul.mubr.msk.f32.gmra.mrb[16].mxu1 %vm434_vm0, %v26019_v51 }
 0x571   : > { %19735 = vmatmul.mubr.msk.f32.gmra.mrb[60].mxu0 %vm434_vm0, %v23839_v35  ;;  %19169 = vmatprep.mubr.msk.f32.mxu1 %vm434_vm0, %v26020_v63  ;;  %v26022_v35 = vld [vmem:[#allocation89_spill] sm:$0xff] }
 0x572   : > { %19737 = vmatprep.mubr.msk.f32.mxu0 %vm434_vm0, %v10927_v55 }
 0x574   : > { %19170 = vmatmul.mubr.msk.f32.gmra.mrb[18].mxu1 %vm434_vm0, %v26021_v1 }
 0x575   : > { %19738 = vmatmul.mubr.msk.f32.gmra.mrb[62].mxu0 %vm434_vm0, %v10928_v60  ;;  %19172 = vmatprep.mubr.msk.f32.mxu1 %vm434_vm0, %v26022_v35  ;;  %v11502_v60 = vld [vmem:[#allocation3 + $0x9] sm:$0xff]  ;;  %v24404_v35 = vld [vmem:[%s25454_s3 + $0x8] sm:$0xf] }
 0x578   : > { %19173 = vmatmul.mubr.msk.f32.gmra.mrb[20].mxu1 %vm434_vm0, %v26023_v36 }
 0x579   : > { %19175 = vmatprep.mubr.msk.f32.mxu1 %vm434_vm0, %v26024_v4 }
 0x57c   : > { %19176 = vmatmul.mubr.msk.f32.gmra.mrb[22].mxu1 %vm434_vm0, %v26025_v19 }
 0x57d   : > { %19178 = vmatprep.mubr.msk.f32.mxu1 %vm434_vm0, %v26026_v39 }
 0x580   : > { %19179 = vmatmul.mubr.msk.f32.gmra.mrb[24].mxu1 %vm434_vm0, %v26027_v42 }
 0x581   : > { %19181 = vmatprep.mubr.msk.f32.mxu1 %vm434_vm0, %v26028_v44 }
 0x584   : > { %19182 = vmatmul.mubr.msk.f32.gmra.mrb[26].mxu1 %vm434_vm0, %v26029_v46 }
 0x585   : > { %19184 = vmatprep.mubr.msk.f32.mxu1 %vm434_vm0, %v25919_v43  ;;  %v16757_v43 = vld [vmem:[%s25454_s3 + $0x4] sm:$0xf] }
 0x588   : > { %19185 = vmatmul.mubr.msk.f32.gmra.mrb[28].mxu1 %vm434_vm0, %v25920_v40  ;;  %v24255_v40 = vld [vmem:[#allocation3 + $0x1a2] sm:$0xff] }
 0x589   : > { %19187 = vmatprep.mubr.msk.f32.mxu1 %vm434_vm0, %v6459_v3  ;;  %11434 = vst.msk [vmem:[#allocation3 + $0x1a0] sm:$0xff] %vm434_vm0, %v26030_v31 }
 0x58a   : > { %11435 = vst.msk [vmem:[#allocation3 + $0x1a8] sm:$0x3] %vm437_vm1, %v26030_v31 }
 0x58c   : > { %19188 = vmatmul.mubr.msk.f32.gmra.mrb[30].mxu1 %vm434_vm0, %v6460_v28 }
 0x58d   : > { %19192 = vmatprep.mubr.msk.f32.mxu1 %vm434_vm0, %v25923_v26  ;;  %v26031_v26 = vld [vmem:[#allocation96_spill] sm:$0xff] }
 0x590   : > { %19193 = vmatmul.mubr.msk.f32.vlgmr.msra.gmra.mrb[0].mxu1 %vm434_vm0, %v25924_v15  ;;  %v26032_v15 = vld [vmem:[#allocation98_spill] sm:$0xff] }
 0x591   : > { %19241 = vmatpush3.msk.msra.mxu1 %vm686_vm2, %v24162_v7  ;;  %19195 = vmatprep.mubr.msk.f32.mxu1 %vm434_vm0, %v25925_v58  ;;  %v26033_v58 = vld [vmem:[#allocation6_spill] sm:$0xff] }
 0x592   : > { %19740 = vmatprep.subr.msk.mxu1 %vm686_vm2, %v16757_v43  ;;  %v26058_v7 = vld [vmem:[#allocation114_spill] sm:$0xff] }
 0x594   : > { %19196 = vmatmul.mubr.msk.f32.gmra.mrb[2].mxu1 %vm434_vm0, %v25926_v25  ;;  %v24329_v25 = vld [vmem:[%s25454_s3] sm:$0xf] }
 0x595   : > { %19198 = vmatprep.mubr.msk.f32.mxu1 %vm434_vm0, %v25927_v61  ;;  %v26034_v61 = vld [vmem:[#allocation11_spill] sm:$0xff] }
 0x598   : > { %19199 = vmatmul.mubr.msk.f32.gmra.mrb[4].mxu1 %vm434_vm0, %v25928_v27  ;;  %v26035_v27 = vld [vmem:[#allocation19_spill] sm:$0xff] }
 0x599   : > { %19201 = vmatprep.mubr.msk.f32.mxu1 %vm434_vm0, %v25929_v54  ;;  %v26036_v54 = vld [vmem:[#allocation37_spill] sm:$0xff] }
 0x59c   : > { %19202 = vmatmul.mubr.msk.f32.gmra.mrb[6].mxu1 %vm434_vm0, %v25930_v41  ;;  %v26037_v41 = vld [vmem:[#allocation50_spill] sm:$0xff] }
 0x59d   : > { %19204 = vmatprep.mubr.msk.f32.mxu1 %vm434_vm0, %v25931_v45  ;;  %v26038_v45 = vld [vmem:[#allocation41_spill] sm:$0xff] }
 0x5a0   : > { %19205 = vmatmul.mubr.msk.f32.gmra.mrb[8].mxu1 %vm434_vm0, %v25932_v22  ;;  %v26039_v22 = vld [vmem:[#allocation53_spill] sm:$0xff] }
 0x5a1   : > { %19207 = vmatprep.mubr.msk.f32.mxu1 %vm434_vm0, %v25933_v13  ;;  %v26040_v13 = vld [vmem:[#allocation9_spill] sm:$0xff] }
 0x5a4   : > { %19208 = vmatmul.mubr.msk.f32.gmra.mrb[10].mxu1 %vm434_vm0, %v25934_v47  ;;  %v26041_v47 = vld [vmem:[#allocation17_spill] sm:$0xff] }
 0x5a5   : > { %19210 = vmatprep.mubr.msk.f32.mxu1 %vm434_vm0, %v25935_v21  ;;  %v26042_v21 = vld [vmem:[#allocation24_spill] sm:$0xff] }
 0x5a8   : > { %19211 = vmatmul.mubr.msk.f32.gmra.mrb[12].mxu1 %vm434_vm0, %v25936_v49  ;;  %v26043_v49 = vld [vmem:[#allocation27_spill] sm:$0xff] }
 0x5a9   : > { %19213 = vmatprep.mubr.msk.f32.mxu1 %vm434_vm0, %v25937_v30  ;;  %v26044_v30 = vld [vmem:[#allocation34_spill] sm:$0xff] }
 0x5ac   : > { %19214 = vmatmul.mubr.msk.f32.gmra.mrb[14].mxu1 %vm434_vm0, %v25938_v5  ;;  %v26045_v5 = vld [vmem:[#allocation35_spill] sm:$0xff] }
 0x5ad   : > { %19216 = vmatprep.mubr.msk.f32.mxu1 %vm434_vm0, %v25940_v53  ;;  %v26046_v53 = vld [vmem:[#allocation61_spill] sm:$0xff] }
 0x5b0   : > { %19217 = vmatmul.mubr.msk.f32.gmra.mrb[16].mxu1 %vm434_vm0, %v25942_v23  ;;  %v26047_v23 = vld [vmem:[#allocation62_spill] sm:$0xff] }
 0x5b1   : > { %19219 = vmatprep.mubr.msk.f32.mxu1 %vm434_vm0, %v25944_v14  ;;  %v26048_v14 = vld [vmem:[#allocation92_spill] sm:$0xff] }
 0x5b4   : > { %19220 = vmatmul.mubr.msk.f32.gmra.mrb[18].mxu1 %vm434_vm0, %v25946_v62  ;;  %v26049_v62 = vld [vmem:[#allocation93_spill] sm:$0xff] }
 0x5b5   : > { %19222 = vmatprep.mubr.msk.f32.mxu1 %vm434_vm0, %v25948_v8  ;;  %v26050_v8 = vld [vmem:[#allocation102_spill] sm:$0xff] }
 0x5b8   : > { %19223 = vmatmul.mubr.msk.f32.gmra.mrb[20].mxu1 %vm434_vm0, %v25950_v59  ;;  %v26051_v59 = vld [vmem:[#allocation103_spill] sm:$0xff] }
 0x5b9   : > { %19225 = vmatprep.mubr.msk.f32.mxu1 %vm434_vm0, %v25952_v37  ;;  %v26052_v37 = vld [vmem:[#allocation104_spill] sm:$0xff] }
 0x5bc   : > { %19226 = vmatmul.mubr.msk.f32.gmra.mrb[22].mxu1 %vm434_vm0, %v26031_v26 }
 0x5bd   : > { %19228 = vmatprep.mubr.msk.f32.mxu1 %vm434_vm0, %v25956_v29  ;;  %v26054_v29 = vld [vmem:[#allocation110_spill] sm:$0xff] }
 0x5c0   : > { %19229 = vmatmul.mubr.msk.f32.gmra.mrb[24].mxu1 %vm434_vm0, %v26032_v15 }
 0x5c1   : > { %19231 = vmatprep.mubr.msk.f32.mxu1 %vm434_vm0, %v25960_v34  ;;  %v26056_v34 = vld [vmem:[#allocation112_spill] sm:$0xff] }
 0x5c4   : > { %19232 = vmatmul.mubr.msk.f32.gmra.mrb[26].mxu1 %vm434_vm0, %v25962_v16  ;;  %v26053_v16 = vld [vmem:[#allocation109_spill] sm:$0xff] }
 0x5c5   : > { %19234 = vmatprep.mubr.msk.f32.mxu1 %vm434_vm0, %v25963_v11  ;;  %v26057_v11 = vld [vmem:[#allocation113_spill] sm:$0xff] }
 0x5c8   : > { %19235 = vmatmul.mubr.msk.f32.gmra.mrb[28].mxu1 %vm434_vm0, %v25965_v50  ;;  %v26055_v50 = vld [vmem:[#allocation111_spill] sm:$0xff] }
 0x5c9   : > { %19237 = vmatprep.mubr.msk.f32.mxu1 %vm434_vm0, %v6849_v12 }
 0x5cc   : > { %19238 = vmatmul.mubr.msk.f32.gmra.mrb[30].mxu1 %vm434_vm0, %v6850_v20 }
 0x5cd   : > { %19242 = vmatprep.mubr.msk.f32.mxu1 %vm434_vm0, %v26033_v58 }
 0x5d0   : > { %19243 = vmatmul.mubr.msk.f32.vlgmr.msra.gmra.mrb[0].mxu1 %vm434_vm0, %v26034_v61 }
 0x5d1   : > { %19741 = vmatpush3.msk.msra.mxu1 %vm686_vm2, %v16757_v43  ;;  %19245 = vmatprep.mubr.msk.f32.mxu1 %vm434_vm0, %v26035_v27 }
 0x5d2   : > { %19790 = vmatprep.subr.msk.mxu1 %vm686_vm2, %v24329_v25 }
 0x5d4   : > { %19246 = vmatmul.mubr.msk.f32.gmra.mrb[2].mxu1 %vm434_vm0, %v26036_v54 }
 0x5d5   : > { %19248 = vmatprep.mubr.msk.f32.mxu1 %vm434_vm0, %v26037_v41 }
 0x5d8   : > { %19249 = vmatmul.mubr.msk.f32.gmra.mrb[4].mxu1 %vm434_vm0, %v26038_v45 }
 0x5d9   : > { %19251 = vmatprep.mubr.msk.f32.mxu1 %vm434_vm0, %v26039_v22 }
 0x5dc   : > { %19252 = vmatmul.mubr.msk.f32.gmra.mrb[6].mxu1 %vm434_vm0, %v26040_v13 }
 0x5dd   : > { %19254 = vmatprep.mubr.msk.f32.mxu1 %vm434_vm0, %v26041_v47 }
 0x5e0   : > { %19255 = vmatmul.mubr.msk.f32.gmra.mrb[8].mxu1 %vm434_vm0, %v26042_v21 }
 0x5e1   : > { %19257 = vmatprep.mubr.msk.f32.mxu1 %vm434_vm0, %v26043_v49 }
 0x5e4   : > { %19258 = vmatmul.mubr.msk.f32.gmra.mrb[10].mxu1 %vm434_vm0, %v26044_v30 }
 0x5e5   : > { %19260 = vmatprep.mubr.msk.f32.mxu1 %vm434_vm0, %v26045_v5 }
 0x5e8   : > { %19261 = vmatmul.mubr.msk.f32.gmra.mrb[12].mxu1 %vm434_vm0, %v26046_v53 }
 0x5e9   : > { %19263 = vmatprep.mubr.msk.f32.mxu1 %vm434_vm0, %v26047_v23 }
 0x5ec   : > { %19264 = vmatmul.mubr.msk.f32.gmra.mrb[14].mxu1 %vm434_vm0, %v26048_v14 }
 0x5ed   : > { %19266 = vmatprep.mubr.msk.f32.mxu1 %vm434_vm0, %v26049_v62 }
 0x5f0   : > { %19267 = vmatmul.mubr.msk.f32.gmra.mrb[16].mxu1 %vm434_vm0, %v26050_v8 }
 0x5f1   : > { %19269 = vmatprep.mubr.msk.f32.mxu1 %vm434_vm0, %v26051_v59 }
 0x5f4   : > { %19270 = vmatmul.mubr.msk.f32.gmra.mrb[18].mxu1 %vm434_vm0, %v26052_v37 }
 0x5f5   : > { %19272 = vmatprep.mubr.msk.f32.mxu1 %vm434_vm0, %v26053_v16 }
 0x5f8   : > { %19273 = vmatmul.mubr.msk.f32.gmra.mrb[20].mxu1 %vm434_vm0, %v26054_v29 }
 0x5f9   : > { %19275 = vmatprep.mubr.msk.f32.mxu1 %vm434_vm0, %v26055_v50 }
 0x5fc   : > { %19276 = vmatmul.mubr.msk.f32.gmra.mrb[22].mxu1 %vm434_vm0, %v26056_v34 }
 0x5fd   : > { %19278 = vmatprep.mubr.msk.f32.mxu1 %vm434_vm0, %v26057_v11 }
 0x600   : > { %19279 = vmatmul.mubr.msk.f32.gmra.mrb[24].mxu1 %vm434_vm0, %v26058_v7 }
 0x601   : > { %19281 = vmatprep.mubr.msk.f32.mxu1 %vm434_vm0, %v26059_v48 }
 0x604   : > { %19282 = vmatmul.mubr.msk.f32.gmra.mrb[26].mxu1 %vm434_vm0, %v26060_v57 }
 0x605   : > { %19284 = vmatprep.mubr.msk.f32.mxu1 %vm434_vm0, %v25999_v6 }
 0x608   : > { %19285 = vmatmul.mubr.msk.f32.gmra.mrb[28].mxu1 %vm434_vm0, %v26001_v32 }
 0x609   : > { %19287 = vmatprep.mubr.msk.f32.mxu1 %vm434_vm0, %v24248_v56 }
 0x60c   : > { %v19694_v33 = vpop.f32.mrb[32].mxu0  ;;  %19288 = vmatmul.mubr.msk.f32.gmra.mrb[30].mxu1 %vm434_vm0, %v24255_v40 }
 0x60d   : > { %vm11287_vm1 = vcmp.ge.f32.partialorder %v19694_v33, 0.0  ;;  %v11319_v17 = vmul.f32 0.1, %v19694_v33  ;;  %v11095_v24 = vpop.f32.mrb[33].mxu0  ;;  %19742 = vmatprep.mubr.msk.f32.mxu1 %vm434_vm0, %v11501_v9 }
 0x60e   : > { %vm11286_vm9 = vcmp.ge.f32.partialorder %v11095_v24, 0.0  ;;  %v11318_v38 = vmul.f32 0.1, %v11095_v24 }
 0x60f   : > { %v11351_v10 = vsel %vm11287_vm1, %v19694_v33, %v11319_v17 }
 0x610   : > { %11437 = vst.msk [vmem:[#allocation3 + $0x21] sm:$0xff] %vm434_vm0, %v11351_v10  ;;  %v11350_v0 = vsel %vm11286_vm9, %v11095_v24, %v11318_v38  ;;  %v19697_v18 = vpop.f32.mrb[34].mxu0  ;;  %19743 = vmatmul.mubr.msk.f32.vlgmr.msra.gmra.mrb[32].mxu1 %vm434_vm0, %v11502_v60  ;;  %v15001_v38 = vld [vmem:[%s25455_s4] sm:$0xf] }
 0x611   : > { %11436 = vst.msk [vmem:[#allocation3 + $0x19] sm:$0xff] %vm434_vm0, %v11350_v0  ;;  %vm11289_vm10 = vcmp.ge.f32.partialorder %v19697_v18, 0.0  ;;  %v11321_v6 = vmul.f32 0.1, %v19697_v18  ;;  %v11105_v55 = vpop.f32.mrb[35].mxu0  ;;  %19791 = vmatpush3.msk.msra.mxu1 %vm686_vm2, %v24329_v25  ;;  %20190 = vmatprep.subr.msk.mxu0 %vm686_vm2, %v15001_v38 }
 0x612   : > { %vm11288_vm11 = vcmp.ge.f32.partialorder %v11105_v55, 0.0  ;;  %v11320_v2 = vmul.f32 0.1, %v11105_v55  ;;  %19840 = vmatprep.subr.msk.mxu1 %vm686_vm2, %v24404_v35  ;;  %20191 = vmatpush3.msk.msra.mxu0 %vm686_vm2, %v15001_v38 }
 0x613   : > { %v11353_v32 = vsel %vm11289_vm10, %v19697_v18, %v11321_v6 }
 0x614   : > { %11439 = vst.msk [vmem:[#allocation3 + $0x39] sm:$0xff] %vm434_vm0, %v11353_v32  ;;  %v11352_v52 = vsel %vm11288_vm11, %v11105_v55, %v11320_v2  ;;  %v19700_v51 = vpop.f32.mrb[36].mxu0 }
 0x615   : > { %11438 = vst.msk [vmem:[#allocation3 + $0x31] sm:$0xff] %vm434_vm0, %v11352_v52  ;;  %vm11291_vm12 = vcmp.ge.f32.partialorder %v19700_v51, 0.0  ;;  %v11323_v63 = vmul.f32 0.1, %v19700_v51  ;;  %v11115_v1 = vpop.f32.mrb[37].mxu0 }
 0x616   : > { %vm11290_vm13 = vcmp.ge.f32.partialorder %v11115_v1, 0.0  ;;  %v11322_v36 = vmul.f32 0.1, %v11115_v1 }
 0x617   : > { %v11355_v4 = vsel %vm11291_vm12, %v19700_v51, %v11323_v63  ;;  %v11504_v3 = vld [vmem:[#allocation3 + $0x21] sm:$0xff] }
 0x618   : > { %11441 = vst.msk [vmem:[#allocation3 + $0x51] sm:$0xff] %vm434_vm0, %v11355_v4  ;;  %v11354_v19 = vsel %vm11290_vm13, %v11115_v1, %v11322_v36  ;;  %v19703_v39 = vpop.f32.mrb[38].mxu0  ;;  %v11503_v42 = vld [vmem:[#allocation3 + $0x19] sm:$0xff] }
 0x619   : > { %11440 = vst.msk [vmem:[#allocation3 + $0x49] sm:$0xff] %vm434_vm0, %v11354_v19  ;;  %vm11293_vm14 = vcmp.ge.f32.partialorder %v19703_v39, 0.0  ;;  %v11325_v44 = vmul.f32 0.1, %v19703_v39  ;;  %v11125_v46 = vpop.f32.mrb[39].mxu0  ;;  %19745 = vmatprep.mubr.msk.f32.mxu1 %vm434_vm0, %v11503_v42 }
 0x61a   : > { %vm11292_vm15 = vcmp.ge.f32.partialorder %v11125_v46, 0.0  ;;  %v11324_v28 = vmul.f32 0.1, %v11125_v46  ;;  %19746 = vmatmul.mubr.msk.f32.gmra.mrb[34].mxu1 %vm434_vm0, %v11504_v3 }
 0x61b   : > { %v11357_v12 = vsel %vm11293_vm14, %v19703_v39, %v11325_v44  ;;  %v11506_v26 = vld [vmem:[#allocation3 + $0x39] sm:$0xff] }
 0x61c   : > { %11443 = vst.msk [vmem:[#allocation3 + $0x69] sm:$0xff] %vm434_vm0, %v11357_v12  ;;  %v11356_v56 = vsel %vm11292_vm15, %v11125_v46, %v11324_v28  ;;  %v19706_v20 = vpop.f32.mrb[40].mxu0  ;;  %v11505_v43 = vld [vmem:[#allocation3 + $0x31] sm:$0xff] }
 0x61d   : > { %11442 = vst.msk [vmem:[#allocation3 + $0x61] sm:$0xff] %vm434_vm0, %v11356_v56  ;;  %vm11295_vm3 = vcmp.ge.f32.partialorder %v19706_v20, 0.0  ;;  %v11327_v31 = vmul.f32 0.1, %v19706_v20  ;;  %v11135_v40 = vpop.f32.mrb[41].mxu0  ;;  %19748 = vmatprep.mubr.msk.f32.mxu1 %vm434_vm0, %v11505_v43 }
 0x61e   : > { %vm11294_vm4 = vcmp.ge.f32.partialorder %v11135_v40, 0.0  ;;  %v11326_v15 = vmul.f32 0.1, %v11135_v40  ;;  %19749 = vmatmul.mubr.msk.f32.gmra.mrb[36].mxu1 %vm434_vm0, %v11506_v26 }
 0x61f   : > { %v11359_v58 = vsel %vm11295_vm3, %v19706_v20, %v11327_v31  ;;  %v11508_v45 = vld [vmem:[#allocation3 + $0x51] sm:$0xff] }
 0x620   : > { %11445 = vst.msk [vmem:[#allocation3 + $0x81] sm:$0xff] %vm434_vm0, %v11359_v58  ;;  %v11358_v25 = vsel %vm11294_vm4, %v11135_v40, %v11326_v15  ;;  %v19709_v61 = vpop.f32.mrb[42].mxu0  ;;  %v11507_v27 = vld [vmem:[#allocation3 + $0x49] sm:$0xff] }
 0x621   : > { %11444 = vst.msk [vmem:[#allocation3 + $0x79] sm:$0xff] %vm434_vm0, %v11358_v25  ;;  %vm11297_vm5 = vcmp.ge.f32.partialorder %v19709_v61, 0.0  ;;  %v11329_v54 = vmul.f32 0.1, %v19709_v61  ;;  %v11145_v41 = vpop.f32.mrb[43].mxu0  ;;  %19751 = vmatprep.mubr.msk.f32.mxu1 %vm434_vm0, %v11507_v27 }
 0x622   : > { %vm11296_vm6 = vcmp.ge.f32.partialorder %v11145_v41, 0.0  ;;  %v11328_v22 = vmul.f32 0.1, %v11145_v41  ;;  %19752 = vmatmul.mubr.msk.f32.gmra.mrb[38].mxu1 %vm434_vm0, %v11508_v45 }
 0x623   : > { %v11361_v13 = vsel %vm11297_vm5, %v19709_v61, %v11329_v54  ;;  %v11510_v53 = vld [vmem:[#allocation3 + $0x69] sm:$0xff] }
 0x624   : > { %11447 = vst.msk [vmem:[#allocation3 + $0x99] sm:$0xff] %vm434_vm0, %v11361_v13  ;;  %v11360_v47 = vsel %vm11296_vm6, %v11145_v41, %v11328_v22  ;;  %v19712_v21 = vpop.f32.mrb[44].mxu0  ;;  %v11509_v49 = vld [vmem:[#allocation3 + $0x61] sm:$0xff] }
 0x625   : > { %11446 = vst.msk [vmem:[#allocation3 + $0x91] sm:$0xff] %vm434_vm0, %v11360_v47  ;;  %vm11299_vm7 = vcmp.ge.f32.partialorder %v19712_v21, 0.0  ;;  %v11331_v30 = vmul.f32 0.1, %v19712_v21  ;;  %v11155_v5 = vpop.f32.mrb[45].mxu0  ;;  %19754 = vmatprep.mubr.msk.f32.mxu1 %vm434_vm0, %v11509_v49 }
 0x626   : > { %vm11298_vm8 = vcmp.ge.f32.partialorder %v11155_v5, 0.0  ;;  %v11330_v23 = vmul.f32 0.1, %v11155_v5  ;;  %19755 = vmatmul.mubr.msk.f32.gmra.mrb[40].mxu1 %vm434_vm0, %v11510_v53 }
 0x627   : > { %v11363_v14 = vsel %vm11299_vm7, %v19712_v21, %v11331_v30  ;;  %v24433_v29 = vld [vmem:[#allocation3 + $0x81] sm:$0xff] }
 0x628   : > { %11449 = vst.msk [vmem:[#allocation3 + $0xb1] sm:$0xff] %vm434_vm0, %v11363_v14  ;;  %v11362_v62 = vsel %vm11298_vm8, %v11155_v5, %v11330_v23  ;;  %v19715_v8 = vpop.f32.mrb[46].mxu0  ;;  %v24428_v59 = vld [vmem:[#allocation3 + $0x79] sm:$0xff] }
 0x629   : > { %11448 = vst.msk [vmem:[#allocation3 + $0xa9] sm:$0xff] %vm434_vm0, %v11362_v62  ;;  %vm11301_vm1 = vcmp.ge.f32.partialorder %v19715_v8, 0.0  ;;  %v11333_v37 = vmul.f32 0.1, %v19715_v8  ;;  %v11165_v16 = vpop.f32.mrb[47].mxu0  ;;  %19757 = vmatprep.mubr.msk.f32.mxu1 %vm434_vm0, %v24428_v59 }
 0x62a   : > { %vm11300_vm9 = vcmp.ge.f32.partialorder %v11165_v16, 0.0  ;;  %v11332_v50 = vmul.f32 0.1, %v11165_v16  ;;  %19758 = vmatmul.mubr.msk.f32.gmra.mrb[42].mxu1 %vm434_vm0, %v24433_v29 }
 0x62b   : > { %v11365_v34 = vsel %vm11301_vm1, %v19715_v8, %v11333_v37  ;;  %v24443_v17 = vld [vmem:[#allocation3 + $0x99] sm:$0xff] }
 0x62c   : > { %11451 = vst.msk [vmem:[#allocation3 + $0xc9] sm:$0xff] %vm434_vm0, %v11365_v34  ;;  %v11364_v11 = vsel %vm11300_vm9, %v11165_v16, %v11332_v50  ;;  %v19718_v7 = vpop.f32.mrb[48].mxu0  ;;  %v24438_v48 = vld [vmem:[#allocation3 + $0x91] sm:$0xff] }
 0x62d   : > { %11450 = vst.msk [vmem:[#allocation3 + $0xc1] sm:$0xff] %vm434_vm0, %v11364_v11  ;;  %vm11303_vm10 = vcmp.ge.f32.partialorder %v19718_v7, 0.0  ;;  %v11335_v57 = vmul.f32 0.1, %v19718_v7  ;;  %v11175_v33 = vpop.f32.mrb[49].mxu0  ;;  %19760 = vmatprep.mubr.msk.f32.mxu1 %vm434_vm0, %v24438_v48 }
 0x62e   : > { %vm11302_vm11 = vcmp.ge.f32.partialorder %v11175_v33, 0.0  ;;  %v11334_v24 = vmul.f32 0.1, %v11175_v33  ;;  %19761 = vmatmul.mubr.msk.f32.gmra.mrb[44].mxu1 %vm434_vm0, %v24443_v17 }
 0x62f   : > { %v11367_v10 = vsel %vm11303_vm10, %v19718_v7, %v11335_v57  ;;  %v24458_v2 = vld [vmem:[#allocation3 + $0xb1] sm:$0xff] }
 0x630   : > { %11453 = vst.msk [vmem:[#allocation3 + $0xe1] sm:$0xff] %vm434_vm0, %v11367_v10  ;;  %v11366_v0 = vsel %vm11302_vm11, %v11175_v33, %v11334_v24  ;;  %v19721_v18 = vpop.f32.mrb[50].mxu0  ;;  %v24452_v9 = vld [vmem:[#allocation3 + $0xa9] sm:$0xff] }
 0x631   : > { %11452 = vst.msk [vmem:[#allocation3 + $0xd9] sm:$0xff] %vm434_vm0, %v11366_v0  ;;  %vm11305_vm12 = vcmp.ge.f32.partialorder %v19721_v18, 0.0  ;;  %v11337_v6 = vmul.f32 0.1, %v19721_v18  ;;  %v11185_v55 = vpop.f32.mrb[51].mxu0  ;;  %19763 = vmatprep.mubr.msk.f32.mxu1 %vm434_vm0, %v24452_v9 }
 0x632   : > { %vm11304_vm13 = vcmp.ge.f32.partialorder %v11185_v55, 0.0  ;;  %v11336_v32 = vmul.f32 0.1, %v11185_v55  ;;  %19764 = vmatmul.mubr.msk.f32.gmra.mrb[46].mxu1 %vm434_vm0, %v24458_v2 }
 0x633   : > { %v11369_v60 = vsel %vm11305_vm12, %v19721_v18, %v11337_v6  ;;  %v24468_v4 = vld [vmem:[#allocation3 + $0xc9] sm:$0xff]  ;;  %v11468_v18 = vld [vmem:[#allocation3] sm:$0xff] }
 0x634   : > { %11455 = vst.msk [vmem:[#allocation3 + $0xf9] sm:$0xff] %vm434_vm0, %v11369_v60  ;;  %v11368_v52 = vsel %vm11304_vm13, %v11185_v55, %v11336_v32  ;;  %v19724_v51 = vpop.f32.mrb[52].mxu0  ;;  %v24463_v63 = vld [vmem:[#allocation3 + $0xc1] sm:$0xff]  ;;  %v24544_v32 = vld [vmem:[%s25454_s3 + $0xc] sm:$0xf] }
 0x635   : > { %11454 = vst.msk [vmem:[#allocation3 + $0xf1] sm:$0xff] %vm434_vm0, %v11368_v52  ;;  %vm11307_vm14 = vcmp.ge.f32.partialorder %v19724_v51, 0.0  ;;  %v11339_v1 = vmul.f32 0.1, %v19724_v51  ;;  %v11195_v36 = vpop.f32.mrb[53].mxu0  ;;  %19766 = vmatprep.mubr.msk.f32.mxu1 %vm434_vm0, %v24463_v63  ;;  %v11469_v55 = vld [vmem:[#allocation3 + $0x8] sm:$0xff] }
 0x636   : > { %vm11306_vm15 = vcmp.ge.f32.partialorder %v11195_v36, 0.0  ;;  %v11338_v19 = vmul.f32 0.1, %v11195_v36  ;;  %19767 = vmatmul.mubr.msk.f32.gmra.mrb[48].mxu1 %vm434_vm0, %v24468_v4  ;;  %v24547_v60 = vld [vmem:[#allocation3 + $0x18] sm:$0xff]  ;;  %v24555_v52 = vld [vmem:[#allocation3 + $0x20] sm:$0xff] }
 0x637   : > { %v11371_v39 = vsel %vm11307_vm14, %v19724_v51, %v11339_v1  ;;  %v24478_v12 = vld [vmem:[#allocation3 + $0xe1] sm:$0xff]  ;;  %v24559_v51 = vld [vmem:[#allocation3 + $0x30] sm:$0xff]  ;;  %v24563_v1 = vld [vmem:[#allocation3 + $0x38] sm:$0xff] }
 0x638   : > { %11457 = vst.msk [vmem:[#allocation3 + $0x111] sm:$0xff] %vm434_vm0, %v11371_v39  ;;  %v11370_v42 = vsel %vm11306_vm15, %v11195_v36, %v11338_v19  ;;  %v19727_v44 = vpop.f32.mrb[54].mxu0  ;;  %v24473_v46 = vld [vmem:[#allocation3 + $0xd9] sm:$0xff]  ;;  %v24571_v36 = vld [vmem:[#allocation3 + $0x50] sm:$0xff]  ;;  %v24579_v39 = vld [vmem:[#allocation3 + $0x68] sm:$0xff] }
 0x639   : > { %11456 = vst.msk [vmem:[#allocation3 + $0x109] sm:$0xff] %vm434_vm0, %v11370_v42  ;;  %vm11309_vm3 = vcmp.ge.f32.partialorder %v19727_v44, 0.0  ;;  %v11341_v3 = vmul.f32 0.1, %v19727_v44  ;;  %v11205_v28 = vpop.f32.mrb[55].mxu0  ;;  %19769 = vmatprep.mubr.msk.f32.mxu1 %vm434_vm0, %v24473_v46  ;;  %v24575_v19 = vld [vmem:[#allocation3 + $0x60] sm:$0xff] }
 0x63a   : > { %vm11308_vm4 = vcmp.ge.f32.partialorder %v11205_v28, 0.0  ;;  %v11340_v56 = vmul.f32 0.1, %v11205_v28  ;;  %19770 = vmatmul.mubr.msk.f32.gmra.mrb[50].mxu1 %vm434_vm0, %v24478_v12  ;;  %v24583_v42 = vld [vmem:[#allocation3 + $0x78] sm:$0xff] }
 0x63b   : > { %v11373_v20 = vsel %vm11309_vm3, %v19727_v44, %v11341_v3  ;;  %v24488_v58 = vld [vmem:[#allocation3 + $0xf9] sm:$0xff]  ;;  %v24591_v3 = vld [vmem:[#allocation3 + $0x90] sm:$0xff] }
 0x63c   : > { %11459 = vst.msk [vmem:[#allocation3 + $0x129] sm:$0xff] %vm434_vm0, %v11373_v20  ;;  %v11372_v43 = vsel %vm11308_vm4, %v11205_v28, %v11340_v56  ;;  %v19730_v31 = vpop.f32.mrb[56].mxu0  ;;  %v24483_v40 = vld [vmem:[#allocation3 + $0xf1] sm:$0xff]  ;;  %v24587_v44 = vld [vmem:[#allocation3 + $0x80] sm:$0xff]  ;;  %v24599_v56 = vld [vmem:[#allocation3 + $0xa8] sm:$0xff] }
 0x63d   : > { %11458 = vst.msk [vmem:[#allocation3 + $0x121] sm:$0xff] %vm434_vm0, %v11372_v43  ;;  %vm11311_vm5 = vcmp.ge.f32.partialorder %v19730_v31, 0.0  ;;  %v11343_v26 = vmul.f32 0.1, %v19730_v31  ;;  %v11215_v15 = vpop.f32.mrb[57].mxu0  ;;  %19772 = vmatprep.mubr.msk.f32.mxu1 %vm434_vm0, %v24483_v40  ;;  %v24595_v28 = vld [vmem:[#allocation3 + $0x98] sm:$0xff] }
 0x63e   : > { %vm11310_vm6 = vcmp.ge.f32.partialorder %v11215_v15, 0.0  ;;  %v11342_v25 = vmul.f32 0.1, %v11215_v15  ;;  %19773 = vmatmul.mubr.msk.f32.gmra.mrb[52].mxu1 %vm434_vm0, %v24488_v58  ;;  %v24603_v20 = vld [vmem:[#allocation3 + $0xb0] sm:$0xff]  ;;  %v24607_v43 = vld [vmem:[#allocation3 + $0xc0] sm:$0xff] }
 0x63f   : > { %v11375_v61 = vsel %vm11311_vm5, %v19730_v31, %v11343_v26  ;;  %v24498_v13 = vld [vmem:[#allocation3 + $0x111] sm:$0xff]  ;;  %v24611_v31 = vld [vmem:[#allocation3 + $0xc8] sm:$0xff] }
 0x640   : > { %11461 = vst.msk [vmem:[#allocation3 + $0x141] sm:$0xff] %vm434_vm0, %v11375_v61  ;;  %v11374_v27 = vsel %vm11310_vm6, %v11215_v15, %v11342_v25  ;;  %v19733_v54 = vpop.f32.mrb[58].mxu0  ;;  %v24493_v41 = vld [vmem:[#allocation3 + $0x109] sm:$0xff]  ;;  %v24615_v26 = vld [vmem:[#allocation3 + $0xd8] sm:$0xff]  ;;  %v24619_v15 = vld [vmem:[#allocation3 + $0xe0] sm:$0xff] }
 0x641   : > { %11460 = vst.msk [vmem:[#allocation3 + $0x139] sm:$0xff] %vm434_vm0, %v11374_v27  ;;  %vm11313_vm7 = vcmp.ge.f32.partialorder %v19733_v54, 0.0  ;;  %v11345_v45 = vmul.f32 0.1, %v19733_v54  ;;  %v11225_v22 = vpop.f32.mrb[59].mxu0  ;;  %19775 = vmatprep.mubr.msk.f32.mxu1 %vm434_vm0, %v24493_v41  ;;  %v24623_v25 = vld [vmem:[#allocation3 + $0xf0] sm:$0xff] }
 0x642   : > { %vm11312_vm8 = vcmp.ge.f32.partialorder %v11225_v22, 0.0  ;;  %v11344_v47 = vmul.f32 0.1, %v11225_v22  ;;  %19776 = vmatmul.mubr.msk.f32.gmra.mrb[54].mxu1 %vm434_vm0, %v24498_v13  ;;  %v24627_v61 = vld [vmem:[#allocation3 + $0xf8] sm:$0xff]  ;;  %v24631_v27 = vld [vmem:[#allocation3 + $0x108] sm:$0xff] }
 0x643   : > { %v11377_v21 = vsel %vm11313_vm7, %v19733_v54, %v11345_v45  ;;  %v24508_v14 = vld [vmem:[#allocation3 + $0x129] sm:$0xff] }
 0x644   : > { %11463 = vst.msk [vmem:[#allocation3 + $0x159] sm:$0xff] %vm434_vm0, %v11377_v21  ;;  %v11376_v49 = vsel %vm11312_vm8, %v11225_v22, %v11344_v47  ;;  %v19736_v30 = vpop.f32.mrb[60].mxu0  ;;  %v24503_v5 = vld [vmem:[#allocation3 + $0x121] sm:$0xff]  ;;  %v24635_v54 = vld [vmem:[#allocation3 + $0x110] sm:$0xff] }
 0x645   : > { %11462 = vst.msk [vmem:[#allocation3 + $0x151] sm:$0xff] %vm434_vm0, %v11376_v49  ;;  %vm11315_vm1 = vcmp.ge.f32.partialorder %v19736_v30, 0.0  ;;  %v11347_v53 = vmul.f32 0.1, %v19736_v30  ;;  %v11235_v23 = vpop.f32.mrb[61].mxu0  ;;  %19778 = vmatprep.mubr.msk.f32.mxu1 %vm434_vm0, %v24503_v5  ;;  %v24639_v45 = vld [vmem:[#allocation3 + $0x120] sm:$0xff] }
 0x646   : > { %vm11314_vm9 = vcmp.ge.f32.partialorder %v11235_v23, 0.0  ;;  %v11346_v62 = vmul.f32 0.1, %v11235_v23  ;;  %19779 = vmatmul.mubr.msk.f32.gmra.mrb[56].mxu1 %vm434_vm0, %v24508_v14  ;;  %v24643_v22 = vld [vmem:[#allocation3 + $0x128] sm:$0xff] }
 0x647   : > { %v11379_v8 = vsel %vm11315_vm1, %v19736_v30, %v11347_v53  ;;  %v24518_v7 = vld [vmem:[#allocation3 + $0x141] sm:$0xff] }
 0x648   : > { %11465 = vst.msk [vmem:[#allocation3 + $0x171] sm:$0xff] %vm434_vm0, %v11379_v8  ;;  %v11378_v37 = vsel %vm11314_vm9, %v11235_v23, %v11346_v62  ;;  %v19739_v16 = vpop.f32.mrb[62].mxu0  ;;  %v24513_v50 = vld [vmem:[#allocation3 + $0x139] sm:$0xff]  ;;  %v12182_v23 = vld [vmem:[#allocation3 + $0x2] sm:$0xff]  ;;  %v12183_v8 = vld [vmem:[#allocation3 + $0xa] sm:$0xff] }
 0x649   : > { %11464 = vst.msk [vmem:[#allocation3 + $0x169] sm:$0xff] %vm434_vm0, %v11378_v37  ;;  %vm11317_vm10 = vcmp.ge.f32.partialorder %v19739_v16, 0.0  ;;  %v11349_v34 = vmul.f32 0.1, %v19739_v16  ;;  %v11245_v11 = vpop.f32.mrb[63].mxu0  ;;  %19781 = vmatprep.mubr.msk.f32.mxu1 %vm434_vm0, %v24513_v50  ;;  %v24647_v47 = vld [vmem:[#allocation3 + $0x138] sm:$0xff] }
 0x64a   : > { %vm11316_vm11 = vcmp.ge.f32.partialorder %v11245_v11, 0.0  ;;  %v11348_v57 = vmul.f32 0.1, %v11245_v11  ;;  %19782 = vmatmul.mubr.msk.f32.gmra.mrb[58].mxu1 %vm434_vm0, %v24518_v7  ;;  %v24651_v21 = vld [vmem:[#allocation3 + $0x140] sm:$0xff] }
 0x64b   : > { %v11381_v33 = vsel %vm11317_vm10, %v19739_v16, %v11349_v34  ;;  %v24528_v10 = vld [vmem:[#allocation3 + $0x159] sm:$0xff]  ;;  %v24686_v34 = vld [vmem:[#allocation3 + $0x22] sm:$0xff] }
 0x64c   : > { %11467 = vst.msk [vmem:[#allocation3 + $0x189] sm:$0xff] %vm434_vm0, %v11381_v33  ;;  %v11380_v24 = vsel %vm11316_vm11, %v11245_v11, %v11348_v57  ;;  %v24523_v38 = vld [vmem:[#allocation3 + $0x151] sm:$0xff]  ;;  %26062 = vst [vmem:[#allocation45_spill] sm:$0xff] %v24528_v10  ;;  %v24675_v37 = vld [vmem:[%s25454_s3 + $0x10] sm:$0xf] }
 0x64d   : > { %26061 = vst [vmem:[#allocation54_spill] sm:$0xff] %v24523_v38  ;;  %11466 = vst.msk [vmem:[#allocation3 + $0x181] sm:$0xff] %vm434_vm0, %v11380_v24  ;;  %19784 = vmatprep.mubr.msk.f32.mxu1 %vm434_vm0, %v24523_v38  ;;  %v24655_v49 = vld [vmem:[#allocation3 + $0x150] sm:$0xff]  ;;  %v24659_v30 = vld [vmem:[#allocation3 + $0x158] sm:$0xff] }
 0x64e   : > { %19785 = vmatmul.mubr.msk.f32.gmra.mrb[60].mxu1 %vm434_vm0, %v24528_v10  ;;  %v24678_v16 = vld [vmem:[#allocation3 + $0x1a] sm:$0xff]  ;;  %26066 = vst [vmem:[#allocation40_spill] sm:$0xff] %v24686_v34  ;;  %v24690_v11 = vld [vmem:[#allocation3 + $0x32] sm:$0xff]  ;;  %v24698_v33 = vld [vmem:[#allocation3 + $0x4a] sm:$0xff] }
 0x64f   : > { %v24536_v6 = vld [vmem:[#allocation3 + $0x171] sm:$0xff]  ;;  %26065 = vst [vmem:[#allocation46_spill] sm:$0xff] %v24678_v16  ;;  %26067 = vst [vmem:[#allocation4_spill] sm:$0xff] %v24690_v11  ;;  %v24694_v57 = vld [vmem:[#allocation3 + $0x3a] sm:$0xff] }
 0x650   : > { %v24532_v0 = vld [vmem:[#allocation3 + $0x169] sm:$0xff]  ;;  %26064 = vst [vmem:[#allocation74_spill] sm:$0xff] %v24536_v6  ;;  %26068 = vst [vmem:[#allocation7_spill] sm:$0xff] %v24694_v57  ;;  %v24702_v24 = vld [vmem:[#allocation3 + $0x52] sm:$0xff] }
 0x651   : > { %26063 = vst [vmem:[#allocation73_spill] sm:$0xff] %v24532_v0  ;;  %19787 = vmatprep.mubr.msk.f32.mxu1 %vm434_vm0, %v24532_v0  ;;  %v24663_v53 = vld [vmem:[#allocation3 + $0x168] sm:$0xff]  ;;  %v24667_v62 = vld [vmem:[#allocation3 + $0x170] sm:$0xff]  ;;  %26069 = vst [vmem:[#allocation15_spill] sm:$0xff] %v24698_v33 }
 0x652   : > { %19788 = vmatmul.mubr.msk.f32.gmra.mrb[62].mxu1 %vm434_vm0, %v24536_v6  ;;  %26070 = vst [vmem:[#allocation22_spill] sm:$0xff] %v24702_v24 }
 0x653   : > { %19792 = vmatprep.mubr.msk.f32.mxu1 %vm434_vm0, %v11468_v18  ;;  %v24706_v18 = vld [vmem:[#allocation3 + $0x62] sm:$0xff] }
 0x654   : > { %26071 = vst [vmem:[#allocation43_spill] sm:$0xff] %v24706_v18 }
 0x656   : > { %19793 = vmatmul.mubr.msk.f32.vlgmr.msra.gmra.mrb[32].mxu1 %vm434_vm0, %v11469_v55  ;;  %v24710_v55 = vld [vmem:[#allocation3 + $0x6a] sm:$0xff] }
 0x657   : > { %19841 = vmatpush3.msk.msra.mxu1 %vm686_vm2, %v24404_v35  ;;  %19795 = vmatprep.mubr.msk.f32.mxu1 %vm434_vm0, %v24547_v60  ;;  %v24567_v35 = vld [vmem:[#allocation3 + $0x48] sm:$0xff]  ;;  %26072 = vst [vmem:[#allocation56_spill] sm:$0xff] %v24710_v55 }
 0x658   : > { %19890 = vmatprep.subr.msk.mxu1 %vm686_vm2, %v24544_v32 }
 0x65a   : > { %19796 = vmatmul.mubr.msk.f32.gmra.mrb[34].mxu1 %vm434_vm0, %v24555_v52 }
 0x65b   : > { %19798 = vmatprep.mubr.msk.f32.mxu1 %vm434_vm0, %v24559_v51 }
 0x65e   : > { %19799 = vmatmul.mubr.msk.f32.gmra.mrb[36].mxu1 %vm434_vm0, %v24563_v1 }
 0x65f   : > { %19801 = vmatprep.mubr.msk.f32.mxu1 %vm434_vm0, %v24567_v35 }
 0x662   : > { %19802 = vmatmul.mubr.msk.f32.gmra.mrb[38].mxu1 %vm434_vm0, %v24571_v36 }
 0x663   : > { %19804 = vmatprep.mubr.msk.f32.mxu1 %vm434_vm0, %v24575_v19 }
 0x666   : > { %19805 = vmatmul.mubr.msk.f32.gmra.mrb[40].mxu1 %vm434_vm0, %v24579_v39 }
 0x667   : > { %19807 = vmatprep.mubr.msk.f32.mxu1 %vm434_vm0, %v24583_v42 }
 0x66a   : > { %19808 = vmatmul.mubr.msk.f32.gmra.mrb[42].mxu1 %vm434_vm0, %v24587_v44 }
 0x66b   : > { %19810 = vmatprep.mubr.msk.f32.mxu1 %vm434_vm0, %v24591_v3 }
 0x66e   : > { %19811 = vmatmul.mubr.msk.f32.gmra.mrb[44].mxu1 %vm434_vm0, %v24595_v28 }
 0x66f   : > { %19813 = vmatprep.mubr.msk.f32.mxu1 %vm434_vm0, %v24599_v56 }
 0x672   : > { %19814 = vmatmul.mubr.msk.f32.gmra.mrb[46].mxu1 %vm434_vm0, %v24603_v20 }
 0x673   : > { %19816 = vmatprep.mubr.msk.f32.mxu1 %vm434_vm0, %v24607_v43 }
 0x676   : > { %19817 = vmatmul.mubr.msk.f32.gmra.mrb[48].mxu1 %vm434_vm0, %v24611_v31 }
 0x677   : > { %19819 = vmatprep.mubr.msk.f32.mxu1 %vm434_vm0, %v24615_v26 }
 0x67a   : > { %19820 = vmatmul.mubr.msk.f32.gmra.mrb[50].mxu1 %vm434_vm0, %v24619_v15 }
 0x67b   : > { %19822 = vmatprep.mubr.msk.f32.mxu1 %vm434_vm0, %v24623_v25 }
 0x67e   : > { %19823 = vmatmul.mubr.msk.f32.gmra.mrb[52].mxu1 %vm434_vm0, %v24627_v61 }
 0x67f   : > { %19825 = vmatprep.mubr.msk.f32.mxu1 %vm434_vm0, %v24631_v27 }
 0x682   : > { %19826 = vmatmul.mubr.msk.f32.gmra.mrb[54].mxu1 %vm434_vm0, %v24635_v54 }
 0x683   : > { %19828 = vmatprep.mubr.msk.f32.mxu1 %vm434_vm0, %v24639_v45 }
 0x686   : > { %19829 = vmatmul.mubr.msk.f32.gmra.mrb[56].mxu1 %vm434_vm0, %v24643_v22 }
 0x687   : > { %19831 = vmatprep.mubr.msk.f32.mxu1 %vm434_vm0, %v24647_v47 }
 0x68a   : > { %19832 = vmatmul.mubr.msk.f32.gmra.mrb[58].mxu1 %vm434_vm0, %v24651_v21 }
 0x68b   : > { %19834 = vmatprep.mubr.msk.f32.mxu1 %vm434_vm0, %v24655_v49 }
 0x68e   : > { %19835 = vmatmul.mubr.msk.f32.gmra.mrb[60].mxu1 %vm434_vm0, %v24659_v30 }
 0x68f   : > { %19837 = vmatprep.mubr.msk.f32.mxu1 %vm434_vm0, %v24663_v53 }
 0x692   : > { %19838 = vmatmul.mubr.msk.f32.gmra.mrb[62].mxu1 %vm434_vm0, %v24667_v62 }
 0x693   : > { %19842 = vmatprep.mubr.msk.f32.mxu1 %vm434_vm0, %v12182_v23 }
 0x696   : > { %19843 = vmatmul.mubr.msk.f32.vlgmr.msra.gmra.mrb[32].mxu1 %vm434_vm0, %v12183_v8  ;;  %v24718_v8 = vld [vmem:[#allocation3 + $0x82] sm:$0xff] }
 0x697   : > { %19891 = vmatpush3.msk.msra.mxu1 %vm686_vm2, %v24544_v32  ;;  %19845 = vmatprep.mubr.msk.f32.mxu1 %vm434_vm0, %v24678_v16  ;;  %v24714_v32 = vld [vmem:[#allocation3 + $0x7a] sm:$0xff]  ;;  %26074 = vst [vmem:[#allocation55_spill] sm:$0xff] %v24718_v8 }
 0x698   : > { %19940 = vmatprep.subr.msk.mxu1 %vm686_vm2, %v24675_v37  ;;  %26073 = vst [vmem:[#allocation51_spill] sm:$0xff] %v24714_v32 }
 0x69a   : > { %19846 = vmatmul.mubr.msk.f32.gmra.mrb[34].mxu1 %vm434_vm0, %v24686_v34 }
 0x69b   : > { %19848 = vmatprep.mubr.msk.f32.mxu1 %vm434_vm0, %v24690_v11  ;;  %v24726_v11 = vld [vmem:[#allocation3 + $0x9a] sm:$0xff] }
 0x69c   : > { %26076 = vst [vmem:[#allocation20_spill] sm:$0xff] %v24726_v11 }
 0x69e   : > { %19849 = vmatmul.mubr.msk.f32.gmra.mrb[36].mxu1 %vm434_vm0, %v24694_v57  ;;  %v24722_v57 = vld [vmem:[#allocation3 + $0x92] sm:$0xff] }
 0x69f   : > { %19851 = vmatprep.mubr.msk.f32.mxu1 %vm434_vm0, %v24698_v33  ;;  %26075 = vst [vmem:[#allocation13_spill] sm:$0xff] %v24722_v57 }
 0x6a2   : > { %19852 = vmatmul.mubr.msk.f32.gmra.mrb[38].mxu1 %vm434_vm0, %v24702_v24 }
 0x6a3   : > { %19854 = vmatprep.mubr.msk.f32.mxu1 %vm434_vm0, %v24706_v18  ;;  %v19244_v23 = vpop.f32.mrb[0].mxu1 }
 0x6a4   : > { %v7632_v33 = vmul.f32 0.1, %v19244_v23  ;;  %v7408_v24 = vpop.f32.mrb[1].mxu1  ;;  %vm7600_vm12 = vcmp.ge.f32.partialorder %v19244_v23, 0.0 }
 0x6a5   : > { %vm7599_vm13 = vcmp.ge.f32.partialorder %v7408_v24, 0.0  ;;  %v7631_v18 = vmul.f32 0.1, %v7408_v24 }
 0x6a6   : > { %19855 = vmatmul.mubr.msk.f32.gmra.mrb[40].mxu1 %vm434_vm0, %v24710_v55  ;;  %v7664_v34 = vsel %vm7600_vm12, %v19244_v23, %v7632_v33 }
 0x6a7   : > { %19857 = vmatprep.mubr.msk.f32.mxu1 %vm434_vm0, %v24714_v32  ;;  %v19247_v55 = vpop.f32.mrb[2].mxu1  ;;  %v7663_v32 = vsel %vm7599_vm13, %v7408_v24, %v7631_v18  ;;  %v24736_v24 = vld [vmem:[#allocation3 + $0xb2] sm:$0xff] }
 0x6a8   : > { %v7634_v16 = vmul.f32 0.1, %v19247_v55  ;;  %v7418_v6 = vpop.f32.mrb[3].mxu1  ;;  %20192 = vmatprep.mubr.msk.f32.mxu0 %vm434_vm0, %v7663_v32  ;;  %vm7602_vm14 = vcmp.ge.f32.partialorder %v19247_v55, 0.0  ;;  %26078 = vst [vmem:[#allocation29_spill] sm:$0xff] %v24736_v24  ;;  %v24741_v32 = vld [vmem:[#allocation3 + $0xc2] sm:$0xff] }
 0x6a9   : > { %vm7601_vm15 = vcmp.ge.f32.partialorder %v7418_v6, 0.0  ;;  %v7633_v0 = vmul.f32 0.1, %v7418_v6  ;;  %20193 = vmatmul.mubr.msk.f32.vlgmr.msra.gmra.mrb[64].mxu0 %vm434_vm0, %v7664_v34  ;;  %26079 = vst [vmem:[#allocation32_spill] sm:$0xff] %v24741_v32 }
 0x6aa   : > { %19858 = vmatmul.mubr.msk.f32.gmra.mrb[42].mxu1 %vm434_vm0, %v24718_v8  ;;  %v24731_v8 = vld [vmem:[#allocation3 + $0xaa] sm:$0xff] }
 0x6ab   : > { %19860 = vmatprep.mubr.msk.f32.mxu1 %vm434_vm0, %v24722_v57  ;;  %26077 = vst [vmem:[#allocation25_spill] sm:$0xff] %v24731_v8  ;;  %v19250_v57 = vpop.f32.mrb[4].mxu1  ;;  %v7665_v33 = vsel %vm7601_vm15, %v7418_v6, %v7633_v0  ;;  %v24746_v0 = vld [vmem:[#allocation3 + $0xca] sm:$0xff] }
 0x6ac   : > { %v7636_v18 = vmul.f32 0.1, %v19250_v57  ;;  %v7428_v23 = vpop.f32.mrb[5].mxu1  ;;  %20195 = vmatprep.mubr.msk.f32.mxu0 %vm434_vm0, %v7665_v33  ;;  %vm7604_vm3 = vcmp.ge.f32.partialorder %v19250_v57, 0.0  ;;  %26080 = vst [vmem:[#allocation57_spill] sm:$0xff] %v24746_v0 }
 0x6ad   : > { %vm7603_vm4 = vcmp.ge.f32.partialorder %v7428_v23, 0.0  ;;  %v7635_v10 = vmul.f32 0.1, %v7428_v23 }
 0x6ae   : > { %19861 = vmatmul.mubr.msk.f32.gmra.mrb[44].mxu1 %vm434_vm0, %v24726_v11  ;;  %v7666_v11 = vsel %vm7602_vm14, %v19247_v55, %v7634_v16  ;;  %v24751_v16 = vld [vmem:[#allocation3 + $0xda] sm:$0xff]  ;;  %v7668_v55 = vsel %vm7604_vm3, %v19250_v57, %v7636_v18  ;;  %v24761_v57 = vld [vmem:[#allocation3 + $0xf2] sm:$0xff] }
 0x6af   : > { %19863 = vmatprep.mubr.msk.f32.mxu1 %vm434_vm0, %v24731_v8  ;;  %20196 = vmatmul.mubr.msk.f32.gmra.mrb[66].mxu0 %vm434_vm0, %v7666_v11  ;;  %v19253_v34 = vpop.f32.mrb[6].mxu1  ;;  %v7667_v6 = vsel %vm7603_vm4, %v7428_v23, %v7635_v10  ;;  %26081 = vst [vmem:[#allocation59_spill] sm:$0xff] %v24751_v16  ;;  %v24756_v10 = vld [vmem:[#allocation3 + $0xe2] sm:$0xff]  ;;  %26083 = vst [vmem:[#allocation118_spill] sm:$0xff] %v24761_v57 }
 0x6b0   : > { %v7638_v8 = vmul.f32 0.1, %v19253_v34  ;;  %v7438_v38 = vpop.f32.mrb[7].mxu1  ;;  %20198 = vmatprep.mubr.msk.f32.mxu0 %vm434_vm0, %v7667_v6  ;;  %vm7606_vm5 = vcmp.ge.f32.partialorder %v19253_v34, 0.0  ;;  %26082 = vst [vmem:[#allocation64_spill] sm:$0xff] %v24756_v10 }
 0x6b1   : > { %vm7605_vm6 = vcmp.ge.f32.partialorder %v7438_v38, 0.0  ;;  %v7637_v33 = vmul.f32 0.1, %v7438_v38 }
 0x6b2   : > { %19864 = vmatmul.mubr.msk.f32.gmra.mrb[46].mxu1 %vm434_vm0, %v24736_v24  ;;  %v7670_v18 = vsel %vm7606_vm5, %v19253_v34, %v7638_v8  ;;  %v24771_v8 = vld [vmem:[#allocation3 + $0x10a] sm:$0xff] }
 0x6b3   : > { %19866 = vmatprep.mubr.msk.f32.mxu1 %vm434_vm0, %v24741_v32  ;;  %20199 = vmatmul.mubr.msk.f32.gmra.mrb[68].mxu0 %vm434_vm0, %v7668_v55  ;;  %v19256_v11 = vpop.f32.mrb[8].mxu1  ;;  %v7669_v23 = vsel %vm7605_vm6, %v7438_v38, %v7637_v33  ;;  %v24766_v38 = vld [vmem:[#allocation3 + $0xfa] sm:$0xff]  ;;  %26085 = vst [vmem:[#allocation119_spill] sm:$0xff] %v24771_v8 }
 0x6b4   : > { %v7640_v32 = vmul.f32 0.1, %v19256_v11  ;;  %v7448_v24 = vpop.f32.mrb[9].mxu1  ;;  %20201 = vmatprep.mubr.msk.f32.mxu0 %vm434_vm0, %v7669_v23  ;;  %vm7608_vm7 = vcmp.ge.f32.partialorder %v19256_v11, 0.0  ;;  %26084 = vst [vmem:[#allocation65_spill] sm:$0xff] %v24766_v38 }
 0x6b5   : > { %vm7607_vm8 = vcmp.ge.f32.partialorder %v7448_v24, 0.0  ;;  %v7639_v6 = vmul.f32 0.1, %v7448_v24 }
 0x6b6   : > { %19867 = vmatmul.mubr.msk.f32.gmra.mrb[48].mxu1 %vm434_vm0, %v24746_v0  ;;  %v7672_v34 = vsel %vm7608_vm7, %v19256_v11, %v7640_v32  ;;  %v24781_v32 = vld [vmem:[#allocation3 + $0x122] sm:$0xff] }
 0x6b7   : > { %19869 = vmatprep.mubr.msk.f32.mxu1 %vm434_vm0, %v24751_v16  ;;  %20202 = vmatmul.mubr.msk.f32.gmra.mrb[70].mxu0 %vm434_vm0, %v7670_v18  ;;  %v19259_v55 = vpop.f32.mrb[10].mxu1  ;;  %v7671_v33 = vsel %vm7607_vm8, %v7448_v24, %v7639_v6  ;;  %v24776_v24 = vld [vmem:[#allocation3 + $0x112] sm:$0xff]  ;;  %26087 = vst [vmem:[#allocation120_spill] sm:$0xff] %v24781_v32 }
 0x6b8   : > { %v7642_v16 = vmul.f32 0.1, %v19259_v55  ;;  %v7458_v0 = vpop.f32.mrb[11].mxu1  ;;  %20204 = vmatprep.mubr.msk.f32.mxu0 %vm434_vm0, %v7671_v33  ;;  %vm7610_vm1 = vcmp.ge.f32.partialorder %v19259_v55, 0.0  ;;  %26086 = vst [vmem:[#allocation75_spill] sm:$0xff] %v24776_v24 }
 0x6b9   : > { %vm7609_vm9 = vcmp.ge.f32.partialorder %v7458_v0, 0.0  ;;  %v7641_v23 = vmul.f32 0.1, %v7458_v0 }
 0x6ba   : > { %19870 = vmatmul.mubr.msk.f32.gmra.mrb[50].mxu1 %vm434_vm0, %v24756_v10  ;;  %v7674_v11 = vsel %vm7610_vm1, %v19259_v55, %v7642_v16  ;;  %v24791_v16 = vld [vmem:[#allocation3 + $0x13a] sm:$0xff] }
 0x6bb   : > { %19872 = vmatprep.mubr.msk.f32.mxu1 %vm434_vm0, %v24761_v57  ;;  %20205 = vmatmul.mubr.msk.f32.gmra.mrb[72].mxu0 %vm434_vm0, %v7672_v34  ;;  %v19262_v18 = vpop.f32.mrb[12].mxu1  ;;  %v7673_v6 = vsel %vm7609_vm9, %v7458_v0, %v7641_v23  ;;  %v24786_v0 = vld [vmem:[#allocation3 + $0x12a] sm:$0xff]  ;;  %26089 = vst [vmem:[#allocation121_spill] sm:$0xff] %v24791_v16 }
 0x6bc   : > { %v7644_v57 = vmul.f32 0.1, %v19262_v18  ;;  %v7468_v10 = vpop.f32.mrb[13].mxu1  ;;  %20207 = vmatprep.mubr.msk.f32.mxu0 %vm434_vm0, %v7673_v6  ;;  %vm7612_vm10 = vcmp.ge.f32.partialorder %v19262_v18, 0.0  ;;  %26088 = vst [vmem:[#allocation76_spill] sm:$0xff] %v24786_v0 }
 0x6bd   : > { %vm7611_vm11 = vcmp.ge.f32.partialorder %v7468_v10, 0.0  ;;  %v7643_v33 = vmul.f32 0.1, %v7468_v10 }
 0x6be   : > { %19873 = vmatmul.mubr.msk.f32.gmra.mrb[52].mxu1 %vm434_vm0, %v24766_v38  ;;  %v7676_v55 = vsel %vm7612_vm10, %v19262_v18, %v7644_v57  ;;  %v24801_v57 = vld [vmem:[#allocation3 + $0x152] sm:$0xff] }
 0x6bf   : > { %19875 = vmatprep.mubr.msk.f32.mxu1 %vm434_vm0, %v24771_v8  ;;  %20208 = vmatmul.mubr.msk.f32.gmra.mrb[74].mxu0 %vm434_vm0, %v7674_v11  ;;  %v19265_v34 = vpop.f32.mrb[14].mxu1  ;;  %v7675_v23 = vsel %vm7611_vm11, %v7468_v10, %v7643_v33  ;;  %v24796_v10 = vld [vmem:[#allocation3 + $0x142] sm:$0xff]  ;;  %26090 = vst [vmem:[#allocation77_spill] sm:$0xff] %v24801_v57 }
 0x6c0   : > { %v7646_v8 = vmul.f32 0.1, %v19265_v34  ;;  %v7478_v38 = vpop.f32.mrb[15].mxu1  ;;  %20210 = vmatprep.mubr.msk.f32.mxu0 %vm434_vm0, %v7675_v23  ;;  %vm7614_vm12 = vcmp.ge.f32.partialorder %v19265_v34, 0.0 }
 0x6c1   : > { %vm7613_vm13 = vcmp.ge.f32.partialorder %v7478_v38, 0.0  ;;  %v7645_v6 = vmul.f32 0.1, %v7478_v38 }
 0x6c2   : > { %19876 = vmatmul.mubr.msk.f32.gmra.mrb[54].mxu1 %vm434_vm0, %v24776_v24  ;;  %v7678_v18 = vsel %vm7614_vm12, %v19265_v34, %v7646_v8  ;;  %v24811_v8 = vld [vmem:[#allocation3 + $0x16a] sm:$0xff] }
 0x6c3   : > { %19878 = vmatprep.mubr.msk.f32.mxu1 %vm434_vm0, %v24781_v32  ;;  %20211 = vmatmul.mubr.msk.f32.gmra.mrb[76].mxu0 %vm434_vm0, %v7676_v55  ;;  %v19268_v11 = vpop.f32.mrb[16].mxu1  ;;  %v7677_v33 = vsel %vm7613_vm13, %v7478_v38, %v7645_v6  ;;  %v24806_v38 = vld [vmem:[#allocation3 + $0x15a] sm:$0xff]  ;;  %26091 = vst [vmem:[#allocation122_spill] sm:$0xff] %v24811_v8 }
 0x6c4   : > { %v7648_v32 = vmul.f32 0.1, %v19268_v11  ;;  %v7488_v24 = vpop.f32.mrb[17].mxu1  ;;  %20213 = vmatprep.mubr.msk.f32.mxu0 %vm434_vm0, %v7677_v33  ;;  %vm7616_vm14 = vcmp.ge.f32.partialorder %v19268_v11, 0.0 }
 0x6c5   : > { %vm7615_vm15 = vcmp.ge.f32.partialorder %v7488_v24, 0.0  ;;  %v7647_v23 = vmul.f32 0.1, %v7488_v24 }
 0x6c6   : > { %19879 = vmatmul.mubr.msk.f32.gmra.mrb[56].mxu1 %vm434_vm0, %v24786_v0  ;;  %v7680_v34 = vsel %vm7616_vm14, %v19268_v11, %v7648_v32 }
 0x6c7   : > { %19881 = vmatprep.mubr.msk.f32.mxu1 %vm434_vm0, %v24791_v16  ;;  %20214 = vmatmul.mubr.msk.f32.gmra.mrb[78].mxu0 %vm434_vm0, %v7678_v18  ;;  %v19271_v55 = vpop.f32.mrb[18].mxu1  ;;  %v7679_v6 = vsel %vm7615_vm15, %v7488_v24, %v7647_v23  ;;  %v24816_v24 = vld [vmem:[#allocation3 + $0x172] sm:$0xff] }
 0x6c8   : > { %v7650_v16 = vmul.f32 0.1, %v19271_v55  ;;  %v7498_v0 = vpop.f32.mrb[19].mxu1  ;;  %20216 = vmatprep.mubr.msk.f32.mxu0 %vm434_vm0, %v7679_v6  ;;  %vm7618_vm3 = vcmp.ge.f32.partialorder %v19271_v55, 0.0 }
 0x6c9   : > { %vm7617_vm4 = vcmp.ge.f32.partialorder %v7498_v0, 0.0  ;;  %v7649_v33 = vmul.f32 0.1, %v7498_v0 }
 0x6ca   : > { %19882 = vmatmul.mubr.msk.f32.gmra.mrb[58].mxu1 %vm434_vm0, %v24796_v10  ;;  %v7682_v6 = vsel %vm7618_vm3, %v19271_v55, %v7650_v16 }
 0x6cb   : > { %19884 = vmatprep.mubr.msk.f32.mxu1 %vm434_vm0, %v24801_v57  ;;  %20217 = vmatmul.mubr.msk.f32.gmra.mrb[80].mxu0 %vm434_vm0, %v7680_v34  ;;  %v19274_v18 = vpop.f32.mrb[20].mxu1  ;;  %v7681_v23 = vsel %vm7617_vm4, %v7498_v0, %v7649_v33  ;;  %v24827_v0 = vld [vmem:[%s25454_s3 + $0x14] sm:$0xf] }
 0x6cc   : > { %v7508_v57 = vpop.f32.mrb[21].mxu1  ;;  %20219 = vmatprep.mubr.msk.f32.mxu0 %vm434_vm0, %v7681_v23  ;;  %v7652_v32 = vmul.f32 0.1, %v19274_v18  ;;  %vm7620_vm6 = vcmp.ge.f32.partialorder %v19274_v18, 0.0 }
 0x6cd   : > { %vm7619_vm5 = vcmp.ge.f32.partialorder %v7508_v57, 0.0  ;;  %v7651_v11 = vmul.f32 0.1, %v7508_v57 }
 0x6ce   : > { %19885 = vmatmul.mubr.msk.f32.gmra.mrb[60].mxu1 %vm434_vm0, %v24806_v38 }
 0x6cf   : > { %19887 = vmatprep.mubr.msk.f32.mxu1 %vm434_vm0, %v24811_v8  ;;  %20220 = vmatmul.mubr.msk.f32.gmra.mrb[82].mxu0 %vm434_vm0, %v7682_v6  ;;  %v19277_v34 = vpop.f32.mrb[22].mxu1  ;;  %v7683_v8 = vsel %vm7619_vm5, %v7508_v57, %v7651_v11 }
 0x6d0   : > { %v7518_v33 = vpop.f32.mrb[23].mxu1  ;;  %20222 = vmatprep.mubr.msk.f32.mxu0 %vm434_vm0, %v7683_v8  ;;  %v7654_v16 = vmul.f32 0.1, %v19277_v34  ;;  %vm7622_vm8 = vcmp.ge.f32.partialorder %v19277_v34, 0.0 }
 0x6d1   : > { %vm7621_vm7 = vcmp.ge.f32.partialorder %v7518_v33, 0.0  ;;  %v7653_v55 = vmul.f32 0.1, %v7518_v33 }
 0x6d2   : > { %19888 = vmatmul.mubr.msk.f32.gmra.mrb[62].mxu1 %vm434_vm0, %v24816_v24 }
 0x6d3   : > { %19892 = vmatprep.mubr.msk.f32.mxu1 %vm434_vm0, %v24547_v60  ;;  %v7684_v60 = vsel %vm7620_vm6, %v19274_v18, %v7652_v32  ;;  %v19280_v57 = vpop.f32.mrb[24].mxu1 }
 0x6d4   : > { %20223 = vmatmul.mubr.msk.f32.gmra.mrb[84].mxu0 %vm434_vm0, %v7684_v60  ;;  %v7528_v23 = vpop.f32.mrb[25].mxu1  ;;  %v7656_v8 = vmul.f32 0.1, %v19280_v57  ;;  %vm7624_vm9 = vcmp.ge.f32.partialorder %v19280_v57, 0.0 }
 0x6d5   : > { %vm7623_vm1 = vcmp.ge.f32.partialorder %v7528_v23, 0.0 }
 0x6d6   : > { %19893 = vmatmul.mubr.msk.f32.vlgmr.msra.gmra.mrb[32].mxu1 %vm434_vm0, %v24555_v52  ;;  %v7685_v52 = vsel %vm7621_vm7, %v7518_v33, %v7653_v55  ;;  %v7688_v33 = vsel %vm7624_vm9, %v19280_v57, %v7656_v8 }
 0x6d7   : > { %19941 = vmatpush3.msk.msra.mxu1 %vm686_vm2, %v24675_v37  ;;  %19895 = vmatprep.mubr.msk.f32.mxu1 %vm434_vm0, %v24559_v51  ;;  %v7655_v37 = vmul.f32 0.1, %v7528_v23  ;;  %v7686_v51 = vsel %vm7622_vm8, %v19277_v34, %v7654_v16  ;;  %v19283_v18 = vpop.f32.mrb[26].mxu1 }
 0x6d8   : > { %19990 = vmatprep.subr.msk.mxu1 %vm686_vm2, %v24827_v0  ;;  %20225 = vmatprep.mubr.msk.f32.mxu0 %vm434_vm0, %v7685_v52  ;;  %v7538_v32 = vpop.f32.mrb[27].mxu1  ;;  %vm7626_vm11 = vcmp.ge.f32.partialorder %v19283_v18, 0.0 }
 0x6d9   : > { %20226 = vmatmul.mubr.msk.f32.gmra.mrb[86].mxu0 %vm434_vm0, %v7686_v51  ;;  %v7687_v6 = vsel %vm7623_vm1, %v7528_v23, %v7655_v37  ;;  %vm7625_vm10 = vcmp.ge.f32.partialorder %v7538_v32, 0.0  ;;  %v7657_v11 = vmul.f32 0.1, %v7538_v32  ;;  %v26117_v37 = vld [vmem:[#allocation75_spill] sm:$0xff]  ;;  %v26118_v51 = vld [vmem:[#allocation120_spill] sm:$0xff] }
 0x6da   : > { %19896 = vmatmul.mubr.msk.f32.gmra.mrb[34].mxu1 %vm434_vm0, %v24563_v1  ;;  %20228 = vmatprep.mubr.msk.f32.mxu0 %vm434_vm0, %v7687_v6  ;;  %v7658_v1 = vmul.f32 0.1, %v19283_v18  ;;  %v26119_v6 = vld [vmem:[#allocation76_spill] sm:$0xff] }
 0x6db   : > { %19898 = vmatprep.mubr.msk.f32.mxu1 %vm434_vm0, %v24567_v35  ;;  %v19286_v35 = vpop.f32.mrb[28].mxu1  ;;  %v7689_v34 = vsel %vm7625_vm10, %v7538_v32, %v7657_v11  ;;  %v26120_v11 = vld [vmem:[#allocation121_spill] sm:$0xff] }
 0x6dc   : > { %v7548_v16 = vpop.f32.mrb[29].mxu1  ;;  %v7690_v60 = vsel %vm7626_vm11, %v19283_v18, %v7658_v1  ;;  %vm7628_vm13 = vcmp.ge.f32.partialorder %v19286_v35, 0.0  ;;  %v25053_v18 = vld [vmem:[%s25456_s5] ss:$0 sm:$0xff] }
 0x6dd   : > { %20229 = vmatmul.mubr.msk.f32.gmra.mrb[88].mxu0 %vm434_vm0, %v7688_v33  ;;  %vm7627_vm12 = vcmp.ge.f32.partialorder %v7548_v16, 0.0  ;;  %v7659_v55 = vmul.f32 0.1, %v7548_v16 }
 0x6de   : > { %19899 = vmatmul.mubr.msk.f32.gmra.mrb[36].mxu1 %vm434_vm0, %v24571_v36  ;;  %20231 = vmatprep.mubr.msk.f32.mxu0 %vm434_vm0, %v7689_v34  ;;  %v7660_v36 = vmul.f32 0.1, %v19286_v35 }
 0x6df   : > { %19901 = vmatprep.mubr.msk.f32.mxu1 %vm434_vm0, %v24575_v19  ;;  %v19289_v19 = vpop.f32.mrb[30].mxu1  ;;  %v7691_v57 = vsel %vm7627_vm12, %v7548_v16, %v7659_v55 }
 0x6e0   : > { %v7558_v52 = vpop.f32.mrb[31].mxu1  ;;  %v7692_v8 = vsel %vm7628_vm13, %v19286_v35, %v7660_v36  ;;  %vm7630_vm15 = vcmp.ge.f32.partialorder %v19289_v19, 0.0  ;;  %v26121_v36 = vld [vmem:[#allocation77_spill] sm:$0xff] }
 0x6e1   : > { %20232 = vmatmul.mubr.msk.f32.gmra.mrb[90].mxu0 %vm434_vm0, %v7690_v60  ;;  %vm7629_vm14 = vcmp.ge.f32.partialorder %v7558_v52, 0.0  ;;  %v7661_v23 = vmul.f32 0.1, %v7558_v52 }
 0x6e2   : > { %19902 = vmatmul.mubr.msk.f32.gmra.mrb[38].mxu1 %vm434_vm0, %v24579_v39  ;;  %20234 = vmatprep.mubr.msk.f32.mxu0 %vm434_vm0, %v7691_v57  ;;  %v7662_v39 = vmul.f32 0.1, %v19289_v19  ;;  %v26122_v57 = vld [vmem:[#allocation122_spill] sm:$0xff] }
 0x6e3   : > { %19904 = vmatprep.mubr.msk.f32.mxu1 %vm434_vm0, %v24583_v42  ;;  %v7693_v42 = vsel %vm7629_vm14, %v7558_v52, %v7661_v23 }
 0x6e5   : > { %20235 = vmatmul.mubr.msk.f32.gmra.mrb[92].mxu0 %vm434_vm0, %v7692_v8 }
 0x6e6   : > { %19905 = vmatmul.mubr.msk.f32.gmra.mrb[40].mxu1 %vm434_vm0, %v24587_v44  ;;  %20237 = vmatprep.mubr.msk.f32.mxu0 %vm434_vm0, %v7693_v42  ;;  %v7694_v44 = vsel %vm7630_vm15, %v19289_v19, %v7662_v39 }
 0x6e7   : > { %19907 = vmatprep.mubr.msk.f32.mxu1 %vm434_vm0, %v24591_v3  ;;  %v24903_v3 = vld [vmem:[#allocation3 + $0x180] sm:$0xff] }
 0x6e9   : > { %20238 = vmatmul.mubr.msk.f32.gmra.mrb[94].mxu0 %vm434_vm0, %v7694_v44 }
 0x6ea   : > { %19908 = vmatmul.mubr.msk.f32.gmra.mrb[42].mxu1 %vm434_vm0, %v24595_v28  ;;  %v24907_v28 = vld [vmem:[#allocation3 + $0x188] sm:$0xff] }
 0x6eb   : > { %19910 = vmatprep.mubr.msk.f32.mxu1 %vm434_vm0, %v24599_v56  ;;  %v12960_v56 = vld [vmem:[#allocation3 + $0x19] sm:$0xff] }
 0x6ee   : > { %19911 = vmatmul.mubr.msk.f32.gmra.mrb[44].mxu1 %vm434_vm0, %v24603_v20  ;;  %v12961_v20 = vld [vmem:[#allocation3 + $0x21] sm:$0xff] }
 0x6ef   : > { %19913 = vmatprep.mubr.msk.f32.mxu1 %vm434_vm0, %v24607_v43  ;;  %v16960_v43 = vld [vmem:[%s25454_s3 + $0x18] sm:$0xf] }
 0x6f2   : > { %19914 = vmatmul.mubr.msk.f32.gmra.mrb[46].mxu1 %vm434_vm0, %v24611_v31  ;;  %v24916_v31 = vld [vmem:[#allocation3 + $0x31] sm:$0xff] }
 0x6f3   : > { %19916 = vmatprep.mubr.msk.f32.mxu1 %vm434_vm0, %v24615_v26  ;;  %v24923_v26 = vld [vmem:[#allocation3 + $0x39] sm:$0xff] }
 0x6f6   : > { %19917 = vmatmul.mubr.msk.f32.gmra.mrb[48].mxu1 %vm434_vm0, %v24619_v15  ;;  %v24927_v15 = vld [vmem:[#allocation3 + $0x49] sm:$0xff] }
 0x6f7   : > { %19919 = vmatprep.mubr.msk.f32.mxu1 %vm434_vm0, %v24623_v25  ;;  %v24931_v25 = vld [vmem:[#allocation3 + $0x51] sm:$0xff] }
 0x6fa   : > { %19920 = vmatmul.mubr.msk.f32.gmra.mrb[50].mxu1 %vm434_vm0, %v24627_v61  ;;  %v24935_v61 = vld [vmem:[#allocation3 + $0x61] sm:$0xff] }
 0x6fb   : > { %19922 = vmatprep.mubr.msk.f32.mxu1 %vm434_vm0, %v24631_v27  ;;  %v24939_v27 = vld [vmem:[#allocation3 + $0x69] sm:$0xff] }
 0x6fe   : > { %19923 = vmatmul.mubr.msk.f32.gmra.mrb[52].mxu1 %vm434_vm0, %v24635_v54  ;;  %v26107_v54 = vld [vmem:[#allocation20_spill] sm:$0xff] }
 0x6ff   : > { %19925 = vmatprep.mubr.msk.f32.mxu1 %vm434_vm0, %v24639_v45  ;;  %v26108_v45 = vld [vmem:[#allocation25_spill] sm:$0xff] }
 0x702   : > { %19926 = vmatmul.mubr.msk.f32.gmra.mrb[54].mxu1 %vm434_vm0, %v24643_v22  ;;  %v26109_v22 = vld [vmem:[#allocation29_spill] sm:$0xff] }
 0x703   : > { %19928 = vmatprep.mubr.msk.f32.mxu1 %vm434_vm0, %v24647_v47  ;;  %v26110_v47 = vld [vmem:[#allocation32_spill] sm:$0xff] }
 0x706   : > { %19929 = vmatmul.mubr.msk.f32.gmra.mrb[56].mxu1 %vm434_vm0, %v24651_v21  ;;  %v26111_v21 = vld [vmem:[#allocation57_spill] sm:$0xff] }
 0x707   : > { %19931 = vmatprep.mubr.msk.f32.mxu1 %vm434_vm0, %v24655_v49  ;;  %v26112_v49 = vld [vmem:[#allocation59_spill] sm:$0xff] }
 0x70a   : > { %19932 = vmatmul.mubr.msk.f32.gmra.mrb[58].mxu1 %vm434_vm0, %v24659_v30  ;;  %v26113_v30 = vld [vmem:[#allocation64_spill] sm:$0xff] }
 0x70b   : > { %19934 = vmatprep.mubr.msk.f32.mxu1 %vm434_vm0, %v24663_v53  ;;  %v26114_v53 = vld [vmem:[#allocation118_spill] sm:$0xff] }
 0x70e   : > { %19935 = vmatmul.mubr.msk.f32.gmra.mrb[60].mxu1 %vm434_vm0, %v24667_v62  ;;  %v26115_v62 = vld [vmem:[#allocation65_spill] sm:$0xff] }
 0x70f   : > { %19937 = vmatprep.mubr.msk.f32.mxu1 %vm434_vm0, %v24903_v3 }
 0x712   : > { %19938 = vmatmul.mubr.msk.f32.gmra.mrb[62].mxu1 %vm434_vm0, %v24907_v28 }
 0x713   : > { %19942 = vmatprep.mubr.msk.f32.mxu1 %vm434_vm0, %v12960_v56  ;;  %v25102_v56 = vld [vmem:[#allocation3 + $0x18a] sm:$0xff] }
 0x716   : > { %19943 = vmatmul.mubr.msk.f32.vlgmr.msra.gmra.mrb[32].mxu1 %vm434_vm0, %v12961_v20  ;;  %v13738_v20 = vld [vmem:[#allocation3 + $0x30] sm:$0xff] }
 0x717   : > { %19991 = vmatpush3.msk.msra.mxu1 %vm686_vm2, %v24827_v0  ;;  %19945 = vmatprep.mubr.msk.f32.mxu1 %vm434_vm0, %v24916_v31  ;;  %v26116_v0 = vld [vmem:[#allocation119_spill] sm:$0xff] }
 0x718   : > { %20040 = vmatprep.subr.msk.mxu1 %vm686_vm2, %v16960_v43 }
 0x71a   : > { %19946 = vmatmul.mubr.msk.f32.gmra.mrb[34].mxu1 %vm434_vm0, %v24923_v26 }
 0x71b   : > { %19948 = vmatprep.mubr.msk.f32.mxu1 %vm434_vm0, %v24927_v15 }
 0x71e   : > { %19949 = vmatmul.mubr.msk.f32.gmra.mrb[36].mxu1 %vm434_vm0, %v24931_v25 }
 0x71f   : > { %19951 = vmatprep.mubr.msk.f32.mxu1 %vm434_vm0, %v24935_v61 }
 0x722   : > { %19952 = vmatmul.mubr.msk.f32.gmra.mrb[38].mxu1 %vm434_vm0, %v24939_v27 }
 0x723   : > { %19954 = vmatprep.mubr.msk.f32.mxu1 %vm434_vm0, %v24428_v59  ;;  %v26092_v59 = vld [vmem:[#allocation54_spill] sm:$0xff] }
 0x726   : > { %19955 = vmatmul.mubr.msk.f32.gmra.mrb[40].mxu1 %vm434_vm0, %v24433_v29  ;;  %v26093_v29 = vld [vmem:[#allocation45_spill] sm:$0xff] }
 0x727   : > { %19957 = vmatprep.mubr.msk.f32.mxu1 %vm434_vm0, %v24438_v48  ;;  %v26094_v48 = vld [vmem:[#allocation73_spill] sm:$0xff] }
 0x72a   : > { %19958 = vmatmul.mubr.msk.f32.gmra.mrb[42].mxu1 %vm434_vm0, %v24443_v17  ;;  %v26095_v17 = vld [vmem:[#allocation74_spill] sm:$0xff] }
 0x72b   : > { %19960 = vmatprep.mubr.msk.f32.mxu1 %vm434_vm0, %v24452_v9  ;;  %v24987_v9 = vld [vmem:[#allocation3 + $0x181] sm:$0xff] }
 0x72e   : > { %19961 = vmatmul.mubr.msk.f32.gmra.mrb[44].mxu1 %vm434_vm0, %v24458_v2  ;;  %v24991_v2 = vld [vmem:[#allocation3 + $0x189] sm:$0xff] }
 0x72f   : > { %19963 = vmatprep.mubr.msk.f32.mxu1 %vm434_vm0, %v24463_v63  ;;  %v26096_v63 = vld [vmem:[#allocation46_spill] sm:$0xff] }
 0x732   : > { %19964 = vmatmul.mubr.msk.f32.gmra.mrb[46].mxu1 %vm434_vm0, %v24468_v4  ;;  %v25000_v4 = vld [vmem:[%s25454_s3 + $0x1c] sm:$0xf] }
 0x733   : > { %19966 = vmatprep.mubr.msk.f32.mxu1 %vm434_vm0, %v24473_v46  ;;  %v26097_v46 = vld [vmem:[#allocation40_spill] sm:$0xff] }
 0x736   : > { %19967 = vmatmul.mubr.msk.f32.gmra.mrb[48].mxu1 %vm434_vm0, %v24478_v12  ;;  %v26098_v12 = vld [vmem:[#allocation4_spill] sm:$0xff] }
 0x737   : > { %19969 = vmatprep.mubr.msk.f32.mxu1 %vm434_vm0, %v24483_v40  ;;  %v26099_v40 = vld [vmem:[#allocation7_spill] sm:$0xff] }
 0x73a   : > { %19970 = vmatmul.mubr.msk.f32.gmra.mrb[50].mxu1 %vm434_vm0, %v24488_v58  ;;  %v26100_v58 = vld [vmem:[#allocation15_spill] sm:$0xff] }
 0x73b   : > { %19972 = vmatprep.mubr.msk.f32.mxu1 %vm434_vm0, %v24493_v41  ;;  %v26101_v41 = vld [vmem:[#allocation22_spill] sm:$0xff] }
 0x73e   : > { %19973 = vmatmul.mubr.msk.f32.gmra.mrb[52].mxu1 %vm434_vm0, %v24498_v13  ;;  %v26102_v13 = vld [vmem:[#allocation43_spill] sm:$0xff] }
 0x73f   : > { %19975 = vmatprep.mubr.msk.f32.mxu1 %vm434_vm0, %v24503_v5  ;;  %v26103_v5 = vld [vmem:[#allocation56_spill] sm:$0xff] }
 0x742   : > { %19976 = vmatmul.mubr.msk.f32.gmra.mrb[54].mxu1 %vm434_vm0, %v24508_v14  ;;  %v26104_v14 = vld [vmem:[#allocation51_spill] sm:$0xff] }
 0x743   : > { %19978 = vmatprep.mubr.msk.f32.mxu1 %vm434_vm0, %v24513_v50  ;;  %v26105_v50 = vld [vmem:[#allocation55_spill] sm:$0xff] }
 0x746   : > { %19979 = vmatmul.mubr.msk.f32.gmra.mrb[56].mxu1 %vm434_vm0, %v24518_v7  ;;  %v26106_v7 = vld [vmem:[#allocation13_spill] sm:$0xff] }
 0x747   : > { %19981 = vmatprep.mubr.msk.f32.mxu1 %vm434_vm0, %v26092_v59 }
 0x74a   : > { %19982 = vmatmul.mubr.msk.f32.gmra.mrb[58].mxu1 %vm434_vm0, %v26093_v29 }
 0x74b   : > { %19984 = vmatprep.mubr.msk.f32.mxu1 %vm434_vm0, %v26094_v48  ;;  %v13739_v48 = vld [vmem:[#allocation3 + $0x38] sm:$0xff] }
 0x74e   : > { %19985 = vmatmul.mubr.msk.f32.gmra.mrb[60].mxu1 %vm434_vm0, %v26095_v17  ;;  %v25116_v17 = vld [vmem:[%s25454_s3 + $0x20] sm:$0xf] }
 0x74f   : > { %19987 = vmatprep.mubr.msk.f32.mxu1 %vm434_vm0, %v24987_v9 }
 0x752   : > { %19988 = vmatmul.mubr.msk.f32.gmra.mrb[62].mxu1 %vm434_vm0, %v24991_v2 }
 0x753   : > { %19992 = vmatprep.mubr.msk.f32.mxu1 %vm434_vm0, %v26096_v63 }
 0x756   : > { %19993 = vmatmul.mubr.msk.f32.vlgmr.msra.gmra.mrb[32].mxu1 %vm434_vm0, %v26097_v46  ;;  %v13740_v46 = vld [vmem:[#allocation3 + $0x48] sm:$0xff] }
 0x757   : > { %20041 = vmatpush3.msk.msra.mxu1 %vm686_vm2, %v16960_v43  ;;  %19995 = vmatprep.mubr.msk.f32.mxu1 %vm434_vm0, %v26098_v12 }
 0x758   : > { %20090 = vmatprep.subr.msk.mxu1 %vm686_vm2, %v25000_v4 }
 0x75a   : > { %19996 = vmatmul.mubr.msk.f32.gmra.mrb[34].mxu1 %vm434_vm0, %v26099_v40 }
 0x75b   : > { %19998 = vmatprep.mubr.msk.f32.mxu1 %vm434_vm0, %v26100_v58 }
 0x75e   : > { %19999 = vmatmul.mubr.msk.f32.gmra.mrb[36].mxu1 %vm434_vm0, %v26101_v41  ;;  %v13741_v41 = vld [vmem:[#allocation3 + $0x50] sm:$0xff] }
 0x75f   : > { %20001 = vmatprep.mubr.msk.f32.mxu1 %vm434_vm0, %v26102_v13  ;;  %v13742_v13 = vld [vmem:[#allocation3 + $0x60] sm:$0xff] }
 0x762   : > { %20002 = vmatmul.mubr.msk.f32.gmra.mrb[38].mxu1 %vm434_vm0, %v26103_v5 }
 0x763   : > { %20004 = vmatprep.mubr.msk.f32.mxu1 %vm434_vm0, %v26104_v14 }
 0x766   : > { %20005 = vmatmul.mubr.msk.f32.gmra.mrb[40].mxu1 %vm434_vm0, %v26105_v50 }
 0x767   : > { %20007 = vmatprep.mubr.msk.f32.mxu1 %vm434_vm0, %v26106_v7  ;;  %v13743_v7 = vld [vmem:[#allocation3 + $0x68] sm:$0xff] }
 0x76a   : > { %20008 = vmatmul.mubr.msk.f32.gmra.mrb[42].mxu1 %vm434_vm0, %v26107_v54 }
 0x76b   : > { %20010 = vmatprep.mubr.msk.f32.mxu1 %vm434_vm0, %v26108_v45  ;;  %v13744_v45 = vld [vmem:[#allocation3 + $0x78] sm:$0xff] }
 0x76e   : > { %20011 = vmatmul.mubr.msk.f32.gmra.mrb[44].mxu1 %vm434_vm0, %v26109_v22 }
 0x76f   : > { %20013 = vmatprep.mubr.msk.f32.mxu1 %vm434_vm0, %v26110_v47 }
 0x772   : > { %20014 = vmatmul.mubr.msk.f32.gmra.mrb[46].mxu1 %vm434_vm0, %v26111_v21 }
 0x773   : > { %20016 = vmatprep.mubr.msk.f32.mxu1 %vm434_vm0, %v26112_v49  ;;  %v13745_v49 = vld [vmem:[#allocation3 + $0x80] sm:$0xff] }
 0x776   : > { %20017 = vmatmul.mubr.msk.f32.gmra.mrb[48].mxu1 %vm434_vm0, %v26113_v30 }
 0x777   : > { %20019 = vmatprep.mubr.msk.f32.mxu1 %vm434_vm0, %v26114_v53  ;;  %v13746_v53 = vld [vmem:[#allocation3 + $0x90] sm:$0xff] }
 0x77a   : > { %20020 = vmatmul.mubr.msk.f32.gmra.mrb[50].mxu1 %vm434_vm0, %v26115_v62 }
 0x77b   : > { %20022 = vmatprep.mubr.msk.f32.mxu1 %vm434_vm0, %v26116_v0 }
 0x77c   : > { %v20194_v32 = vpop.f32.mrb[64].mxu0 }
 0x77d   : > { %v15180_v1 = vadd.f32 %v20194_v32, %v25053_v18  ;;  %v15174_v33 = vpop.f32.mrb[65].mxu0  ;;  %v13748_v32 = vld [vmem:[#allocation3 + $0xa8] sm:$0xff] }
 0x77e   : > { %20023 = vmatmul.mubr.msk.f32.gmra.mrb[52].mxu1 %vm434_vm0, %v26117_v37  ;;  %v15175_v35 = vadd.f32 %v25053_v18, %v15174_v33 }
 0x77f   : > { %20025 = vmatprep.mubr.msk.f32.mxu1 %vm434_vm0, %v26118_v51  ;;  %15666 = vst.msk [vmem:[%s25060_s22 + $0x8] sm:$0xff] %vm434_vm0, %v15180_v1  ;;  %v13747_v51 = vld [vmem:[#allocation3 + $0x98] sm:$0xff] }
 0x780   : > { %15665 = vst.msk [vmem:[%s25060_s22] sm:$0xff] %vm434_vm0, %v15175_v35  ;;  %v13749_v35 = vld [vmem:[#allocation3 + $0xb0] sm:$0xff] }
 0x782   : > { %20026 = vmatmul.mubr.msk.f32.gmra.mrb[54].mxu1 %vm434_vm0, %v26119_v6  ;;  %v20197_v34 = vpop.f32.mrb[66].mxu0 }
 0x783   : > { %20028 = vmatprep.mubr.msk.f32.mxu1 %vm434_vm0, %v26120_v11  ;;  %v15190_v16 = vadd.f32 %v20197_v34, %v25053_v18  ;;  %v15184_v55 = vpop.f32.mrb[67].mxu0  ;;  %v13750_v34 = vld [vmem:[#allocation3 + $0xc0] sm:$0xff] }
 0x784   : > { %v15185_v60 = vadd.f32 %v25053_v18, %v15184_v55 }
 0x785   : > { %15668 = vst.msk [vmem:[%s25060_s22 + $0x18] sm:$0xff] %vm434_vm0, %v15190_v16 }
 0x786   : > { %20029 = vmatmul.mubr.msk.f32.gmra.mrb[56].mxu1 %vm434_vm0, %v24796_v10  ;;  %15667 = vst.msk [vmem:[%s25060_s22 + $0x10] sm:$0xff] %vm434_vm0, %v15185_v60  ;;  %v20200_v19 = vpop.f32.mrb[68].mxu0 }
 0x787   : > { %20031 = vmatprep.mubr.msk.f32.mxu1 %vm434_vm0, %v26121_v36  ;;  %v15200_v10 = vadd.f32 %v20200_v19, %v25053_v18  ;;  %v15194_v52 = vpop.f32.mrb[69].mxu0  ;;  %v13751_v19 = vld [vmem:[#allocation3 + $0xc8] sm:$0xff] }
 0x788   : > { %v15195_v39 = vadd.f32 %v25053_v18, %v15194_v52 }
 0x789   : > { %15670 = vst.msk [vmem:[%s25060_s22 + $0x28] sm:$0xff] %vm434_vm0, %v15200_v10  ;;  %v13752_v10 = vld [vmem:[#allocation3 + $0xd8] sm:$0xff] }
 0x78a   : > { %20032 = vmatmul.mubr.msk.f32.gmra.mrb[58].mxu1 %vm434_vm0, %v24806_v38  ;;  %15669 = vst.msk [vmem:[%s25060_s22 + $0x20] sm:$0xff] %vm434_vm0, %v15195_v39  ;;  %v20203_v23 = vpop.f32.mrb[70].mxu0  ;;  %v25094_v38 = vld [vmem:[#allocation3 + $0x182] sm:$0xff] }
 0x78b   : > { %20034 = vmatprep.mubr.msk.f32.mxu1 %vm434_vm0, %v26122_v57  ;;  %v15210_v8 = vadd.f32 %v20203_v23, %v25053_v18  ;;  %v15204_v42 = vpop.f32.mrb[71].mxu0 }
 0x78c   : > { %v15205_v44 = vadd.f32 %v25053_v18, %v15204_v42  ;;  %v13754_v42 = vld [vmem:[#allocation3 + $0xf0] sm:$0xff] }
 0x78d   : > { %15672 = vst.msk [vmem:[%s25060_s22 + $0x38] sm:$0xff] %vm434_vm0, %v15210_v8  ;;  %v13753_v8 = vld [vmem:[#allocation3 + $0xe0] sm:$0xff] }
 0x78e   : > { %20035 = vmatmul.mubr.msk.f32.gmra.mrb[60].mxu1 %vm434_vm0, %v24816_v24  ;;  %15671 = vst.msk [vmem:[%s25060_s22 + $0x30] sm:$0xff] %vm434_vm0, %v15205_v44  ;;  %v20206_v24 = vpop.f32.mrb[72].mxu0 }
 0x78f   : > { %20037 = vmatprep.mubr.msk.f32.mxu1 %vm434_vm0, %v25094_v38  ;;  %v15220_v43 = vadd.f32 %v20206_v24, %v25053_v18  ;;  %v15214_v59 = vpop.f32.mrb[73].mxu0 }
 0x790   : > { %v15215_v29 = vadd.f32 %v25053_v18, %v15214_v59  ;;  %v13755_v59 = vld [vmem:[#allocation3 + $0xf8] sm:$0xff] }
 0x791   : > { %15674 = vst.msk [vmem:[%s25060_s22 + $0x48] sm:$0xff] %vm434_vm0, %v15220_v43 }
 0x792   : > { %20038 = vmatmul.mubr.msk.f32.gmra.mrb[62].mxu1 %vm434_vm0, %v25102_v56  ;;  %15673 = vst.msk [vmem:[%s25060_s22 + $0x40] sm:$0xff] %vm434_vm0, %v15215_v29  ;;  %v20209_v63 = vpop.f32.mrb[74].mxu0  ;;  %v13756_v29 = vld [vmem:[#allocation3 + $0x108] sm:$0xff] }
 0x793   : > { %20042 = vmatprep.mubr.msk.f32.mxu1 %vm434_vm0, %v13738_v20  ;;  %v15230_v12 = vadd.f32 %v20209_v63, %v25053_v18  ;;  %v15224_v40 = vpop.f32.mrb[75].mxu0 }
 0x794   : > { %v15225_v58 = vadd.f32 %v25053_v18, %v15224_v40  ;;  %v13757_v40 = vld [vmem:[#allocation3 + $0x110] sm:$0xff] }
 0x795   : > { %15676 = vst.msk [vmem:[%s25060_s22 + $0x58] sm:$0xff] %vm434_vm0, %v15230_v12 }
 0x796   : > { %20043 = vmatmul.mubr.msk.f32.vlgmr.msra.gmra.mrb[32].mxu1 %vm434_vm0, %v13739_v48  ;;  %15675 = vst.msk [vmem:[%s25060_s22 + $0x50] sm:$0xff] %vm434_vm0, %v15225_v58  ;;  %v13758_v58 = vld [vmem:[#allocation3 + $0x120] sm:$0xff] }
 0x797   : > { %20091 = vmatpush3.msk.msra.mxu1 %vm686_vm2, %v25000_v4  ;;  %20045 = vmatprep.mubr.msk.f32.mxu1 %vm434_vm0, %v13740_v46  ;;  %v20212_v4 = vpop.f32.mrb[76].mxu0 }
 0x798   : > { %20140 = vmatprep.subr.msk.mxu1 %vm686_vm2, %v25116_v17  ;;  %v15240_v5 = vadd.f32 %v20212_v4, %v25053_v18  ;;  %v15234_v14 = vpop.f32.mrb[77].mxu0 }
 0x799   : > { %v15235_v50 = vadd.f32 %v25053_v18, %v15234_v14  ;;  %v13759_v14 = vld [vmem:[#allocation3 + $0x128] sm:$0xff] }
 0x79a   : > { %20046 = vmatmul.mubr.msk.f32.gmra.mrb[34].mxu1 %vm434_vm0, %v13741_v41  ;;  %15678 = vst.msk [vmem:[%s25060_s22 + $0x68] sm:$0xff] %vm434_vm0, %v15240_v5  ;;  %v20215_v54 = vpop.f32.mrb[78].mxu0 }
 0x79b   : > { %20048 = vmatprep.mubr.msk.f32.mxu1 %vm434_vm0, %v13742_v13  ;;  %15677 = vst.msk [vmem:[%s25060_s22 + $0x60] sm:$0xff] %vm434_vm0, %v15235_v50  ;;  %v15250_v22 = vadd.f32 %v20215_v54, %v25053_v18  ;;  %v15244_v47 = vpop.f32.mrb[79].mxu0  ;;  %v13760_v50 = vld [vmem:[#allocation3 + $0x138] sm:$0xff] }
 0x79c   : > { %v15245_v21 = vadd.f32 %v25053_v18, %v15244_v47  ;;  %v13761_v47 = vld [vmem:[#allocation3 + $0x140] sm:$0xff] }
 0x79d   : > { %15680 = vst.msk [vmem:[%s25060_s22 + $0x78] sm:$0xff] %vm434_vm0, %v15250_v22 }
 0x79e   : > { %20049 = vmatmul.mubr.msk.f32.gmra.mrb[36].mxu1 %vm434_vm0, %v13743_v7  ;;  %15679 = vst.msk [vmem:[%s25060_s22 + $0x70] sm:$0xff] %vm434_vm0, %v15245_v21  ;;  %v20218_v30 = vpop.f32.mrb[80].mxu0  ;;  %v13762_v21 = vld [vmem:[#allocation3 + $0x150] sm:$0xff] }
 0x79f   : > { %20051 = vmatprep.mubr.msk.f32.mxu1 %vm434_vm0, %v13744_v45  ;;  %v15260_v62 = vadd.f32 %v20218_v30, %v25053_v18  ;;  %v15254_v0 = vpop.f32.mrb[81].mxu0  ;;  %v13764_v30 = vld [vmem:[#allocation3 + $0x168] sm:$0xff] }
 0x7a0   : > { %v15255_v37 = vadd.f32 %v25053_v18, %v15254_v0  ;;  %v25228_v0 = vld [vmem:[%s25457_s6] sm:$0xf] }
 0x7a1   : > { %15682 = vst.msk [vmem:[%s25060_s22 + $0x88] sm:$0xff] %vm434_vm0, %v15260_v62  ;;  %v13769_v62 = vld [vmem:[#allocation3 + $0x1a0] sm:$0xff] }
 0x7a2   : > { %20052 = vmatmul.mubr.msk.f32.gmra.mrb[38].mxu1 %vm434_vm0, %v13745_v49  ;;  %15681 = vst.msk [vmem:[%s25060_s22 + $0x80] sm:$0xff] %vm434_vm0, %v15255_v37  ;;  %v20221_v6 = vpop.f32.mrb[82].mxu0  ;;  %v13763_v49 = vld [vmem:[#allocation3 + $0x158] sm:$0xff]  ;;  %v14142_v37 = vld [vmem:[#allocation3 + $0xe1] sm:$0xff] }
 0x7a3   : > { %20054 = vmatprep.mubr.msk.f32.mxu1 %vm434_vm0, %v13746_v53  ;;  %v15270_v1 = vadd.f32 %v20221_v6, %v25053_v18  ;;  %v15264_v11 = vpop.f32.mrb[83].mxu0  ;;  %v13765_v53 = vld [vmem:[#allocation3 + $0x170] sm:$0xff]  ;;  %v14144_v6 = vld [vmem:[#allocation3 + $0xf9] sm:$0xff] }
 0x7a4   : > { %v15265_v33 = vadd.f32 %v25053_v18, %v15264_v11  ;;  %v14147_v11 = vld [vmem:[#allocation3 + $0x121] sm:$0xff] }
 0x7a5   : > { %15684 = vst.msk [vmem:[%s25060_s22 + $0x98] sm:$0xff] %vm434_vm0, %v15270_v1  ;;  %v14146_v1 = vld [vmem:[#allocation3 + $0x111] sm:$0xff] }
 0x7a6   : > { %20055 = vmatmul.mubr.msk.f32.gmra.mrb[40].mxu1 %vm434_vm0, %v13747_v51  ;;  %15683 = vst.msk [vmem:[%s25060_s22 + $0x90] sm:$0xff] %vm434_vm0, %v15265_v33  ;;  %v14143_v51 = vld [vmem:[#allocation3 + $0xf1] sm:$0xff]  ;;  %v14148_v33 = vld [vmem:[#allocation3 + $0x129] sm:$0xff] }
 0x7a7   : > { %20057 = vmatprep.mubr.msk.f32.mxu1 %vm434_vm0, %v13748_v32  ;;  %v20224_v16 = vpop.f32.mrb[84].mxu0  ;;  %v14145_v32 = vld [vmem:[#allocation3 + $0x109] sm:$0xff] }
 0x7a8   : > { %v15280_v36 = vadd.f32 %v20224_v16, %v25053_v18  ;;  %v15274_v55 = vpop.f32.mrb[85].mxu0  ;;  %v14151_v16 = vld [vmem:[#allocation3 + $0x151] sm:$0xff] }
 0x7a9   : > { %v15275_v60 = vadd.f32 %v25053_v18, %v15274_v55  ;;  %v14153_v55 = vld [vmem:[#allocation3 + $0x169] sm:$0xff] }
 0x7aa   : > { %20058 = vmatmul.mubr.msk.f32.gmra.mrb[42].mxu1 %vm434_vm0, %v13749_v35  ;;  %15686 = vst.msk [vmem:[%s25060_s22 + $0xa8] sm:$0xff] %vm434_vm0, %v15280_v36  ;;  %v14149_v35 = vld [vmem:[#allocation3 + $0x139] sm:$0xff] }
 0x7ab   : > { %20060 = vmatprep.mubr.msk.f32.mxu1 %vm434_vm0, %v13750_v34  ;;  %15685 = vst.msk [vmem:[%s25060_s22 + $0xa0] sm:$0xff] %vm434_vm0, %v15275_v60  ;;  %v14150_v34 = vld [vmem:[#allocation3 + $0x141] sm:$0xff]  ;;  %v14152_v36 = vld [vmem:[#allocation3 + $0x159] sm:$0xff]  ;;  %v14154_v60 = vld [vmem:[#allocation3 + $0x171] sm:$0xff] }
 0x7ac   : > { %v20227_v57 = vpop.f32.mrb[86].mxu0 }
 0x7ad   : > { %v15290_v52 = vadd.f32 %v20227_v57, %v25053_v18  ;;  %v15284_v39 = vpop.f32.mrb[87].mxu0  ;;  %v14516_v57 = vld [vmem:[#allocation3 + $0x32] sm:$0xff] }
 0x7ae   : > { %20061 = vmatmul.mubr.msk.f32.gmra.mrb[44].mxu1 %vm434_vm0, %v13751_v19  ;;  %v15285_v23 = vadd.f32 %v25053_v18, %v15284_v39  ;;  %v14157_v19 = vld [vmem:[#allocation3 + $0x199] sm:$0xff]  ;;  %v14518_v39 = vld [vmem:[#allocation3 + $0x4a] sm:$0xff] }
 0x7af   : > { %20063 = vmatprep.mubr.msk.f32.mxu1 %vm434_vm0, %v13752_v10  ;;  %15688 = vst.msk [vmem:[%s25060_s22 + $0xb8] sm:$0xff] %vm434_vm0, %v15290_v52  ;;  %v14158_v10 = vld [vmem:[#allocation3 + $0x1a1] sm:$0xff] }
 0x7b0   : > { %15687 = vst.msk [vmem:[%s25060_s22 + $0xb0] sm:$0xff] %vm434_vm0, %v15285_v23  ;;  %v20230_v44 = vpop.f32.mrb[88].mxu0  ;;  %v14517_v52 = vld [vmem:[#allocation3 + $0x3a] sm:$0xff]  ;;  %v14521_v23 = vld [vmem:[#allocation3 + $0x6a] sm:$0xff] }
 0x7b1   : > { %v15300_v24 = vadd.f32 %v20230_v44, %v25053_v18  ;;  %v15294_v20 = vpop.f32.mrb[89].mxu0  ;;  %v14524_v44 = vld [vmem:[#allocation3 + $0x92] sm:$0xff] }
 0x7b2   : > { %20064 = vmatmul.mubr.msk.f32.gmra.mrb[46].mxu1 %vm434_vm0, %v13753_v8  ;;  %v15295_v43 = vadd.f32 %v25053_v18, %v15294_v20  ;;  %v14522_v8 = vld [vmem:[#allocation3 + $0x7a] sm:$0xff]  ;;  %v14526_v20 = vld [vmem:[#allocation3 + $0xaa] sm:$0xff] }
 0x7b3   : > { %20066 = vmatprep.mubr.msk.f32.mxu1 %vm434_vm0, %v13754_v42  ;;  %15690 = vst.msk [vmem:[%s25060_s22 + $0xc8] sm:$0xff] %vm434_vm0, %v15300_v24  ;;  %v14523_v42 = vld [vmem:[#allocation3 + $0x82] sm:$0xff]  ;;  %v14525_v24 = vld [vmem:[#allocation3 + $0x9a] sm:$0xff] }
 0x7b4   : > { %15689 = vst.msk [vmem:[%s25060_s22 + $0xc0] sm:$0xff] %vm434_vm0, %v15295_v43  ;;  %v20233_v48 = vpop.f32.mrb[90].mxu0  ;;  %v14527_v43 = vld [vmem:[#allocation3 + $0xb2] sm:$0xff] }
 0x7b5   : > { %v15310_v63 = vadd.f32 %v20233_v48, %v25053_v18  ;;  %v15304_v46 = vpop.f32.mrb[91].mxu0  ;;  %v14530_v48 = vld [vmem:[#allocation3 + $0xda] sm:$0xff] }
 0x7b6   : > { %20067 = vmatmul.mubr.msk.f32.gmra.mrb[48].mxu1 %vm434_vm0, %v13755_v59  ;;  %v15305_v12 = vadd.f32 %v25053_v18, %v15304_v46  ;;  %v14528_v59 = vld [vmem:[#allocation3 + $0xc2] sm:$0xff]  ;;  %v14532_v46 = vld [vmem:[#allocation3 + $0xf2] sm:$0xff] }
 0x7b7   : > { %20069 = vmatprep.mubr.msk.f32.mxu1 %vm434_vm0, %v13756_v29  ;;  %15692 = vst.msk [vmem:[%s25060_s22 + $0xd8] sm:$0xff] %vm434_vm0, %v15310_v63  ;;  %v14529_v29 = vld [vmem:[#allocation3 + $0xca] sm:$0xff]  ;;  %v14531_v63 = vld [vmem:[#allocation3 + $0xe2] sm:$0xff] }
 0x7b8   : > { %15691 = vst.msk [vmem:[%s25060_s22 + $0xd0] sm:$0xff] %vm434_vm0, %v15305_v12  ;;  %v20236_v41 = vpop.f32.mrb[92].mxu0  ;;  %v14533_v12 = vld [vmem:[#allocation3 + $0xfa] sm:$0xff] }
 0x7b9   : > { %v15320_v4 = vadd.f32 %v20236_v41, %v25053_v18  ;;  %v15314_v13 = vpop.f32.mrb[93].mxu0  ;;  %v14536_v41 = vld [vmem:[#allocation3 + $0x122] sm:$0xff] }
 0x7ba   : > { %20070 = vmatmul.mubr.msk.f32.gmra.mrb[50].mxu1 %vm434_vm0, %v13757_v40  ;;  %v15315_v5 = vadd.f32 %v25053_v18, %v15314_v13  ;;  %v14534_v40 = vld [vmem:[#allocation3 + $0x10a] sm:$0xff]  ;;  %v14538_v13 = vld [vmem:[#allocation3 + $0x13a] sm:$0xff] }
 0x7bb   : > { %20072 = vmatprep.mubr.msk.f32.mxu1 %vm434_vm0, %v13758_v58  ;;  %15694 = vst.msk [vmem:[%s25060_s22 + $0xe8] sm:$0xff] %vm434_vm0, %v15320_v4  ;;  %v14535_v58 = vld [vmem:[#allocation3 + $0x112] sm:$0xff]  ;;  %v14537_v4 = vld [vmem:[#allocation3 + $0x12a] sm:$0xff] }
 0x7bc   : > { %15693 = vst.msk [vmem:[%s25060_s22 + $0xe0] sm:$0xff] %vm434_vm0, %v15315_v5  ;;  %v20239_v7 = vpop.f32.mrb[94].mxu0  ;;  %v14539_v5 = vld [vmem:[#allocation3 + $0x142] sm:$0xff] }
 0x7bd   : > { %v15330_v54 = vadd.f32 %v20239_v7, %v25053_v18  ;;  %v15324_v45 = vpop.f32.mrb[95].mxu0  ;;  %v14542_v7 = vld [vmem:[#allocation3 + $0x16a] sm:$0xff] }
 0x7be   : > { %20073 = vmatmul.mubr.msk.f32.gmra.mrb[52].mxu1 %vm434_vm0, %v13759_v14  ;;  %v15325_v22 = vadd.f32 %v25053_v18, %v15324_v45  ;;  %v13768_v18 = vld [vmem:[#allocation3 + $0x198] sm:$0xff] }
 0x7bf   : > { %20075 = vmatprep.mubr.msk.f32.mxu1 %vm434_vm0, %v13760_v50  ;;  %15696 = vst.msk [vmem:[%s25060_s22 + $0xf8] sm:$0xff] %vm434_vm0, %v15330_v54  ;;  %v14540_v14 = vld [vmem:[#allocation3 + $0x152] sm:$0xff]  ;;  %v14541_v50 = vld [vmem:[#allocation3 + $0x15a] sm:$0xff] }
 0x7c0   : > { %15695 = vst.msk [vmem:[%s25060_s22 + $0xf0] sm:$0xff] %vm434_vm0, %v15325_v22  ;;  %v14543_v54 = vld [vmem:[#allocation3 + $0x172] sm:$0xff]  ;;  %v14546_v45 = vld [vmem:[#allocation3 + $0x19a] sm:$0xff]  ;;  %v14547_v22 = vld [vmem:[#allocation3 + $0x1a2] sm:$0xff] }
 0x7c2   : > { %20076 = vmatmul.mubr.msk.f32.gmra.mrb[54].mxu1 %vm434_vm0, %v13761_v47 }
 0x7c3   : > { %20078 = vmatprep.mubr.msk.f32.mxu1 %vm434_vm0, %v13762_v21 }
 0x7c6   : > { %20079 = vmatmul.mubr.msk.f32.gmra.mrb[56].mxu1 %vm434_vm0, %v13763_v49 }
 0x7c7   : > { %20081 = vmatprep.mubr.msk.f32.mxu1 %vm434_vm0, %v13764_v30 }
 0x7ca   : > { %20082 = vmatmul.mubr.msk.f32.gmra.mrb[58].mxu1 %vm434_vm0, %v13765_v53 }
 0x7cb   : > { %20084 = vmatprep.mubr.msk.f32.mxu1 %vm434_vm0, %v24903_v3  ;;  %v14133_v3 = vld [vmem:[#allocation3 + $0x79] sm:$0xff] }
 0x7ce   : > { %20085 = vmatmul.mubr.msk.f32.gmra.mrb[60].mxu1 %vm434_vm0, %v24907_v28  ;;  %v14134_v28 = vld [vmem:[#allocation3 + $0x81] sm:$0xff] }
 0x7cf   : > { %20087 = vmatprep.mubr.msk.f32.mxu1 %vm434_vm0, %v13768_v18 }
 0x7d2   : > { %20088 = vmatmul.mubr.msk.f32.gmra.mrb[62].mxu1 %vm434_vm0, %v13769_v62 }
 0x7d3   : > { %20092 = vmatprep.mubr.msk.f32.mxu1 %vm434_vm0, %v24916_v31  ;;  %v14135_v31 = vld [vmem:[#allocation3 + $0x91] sm:$0xff] }
 0x7d6   : > { %20093 = vmatmul.mubr.msk.f32.vlgmr.msra.gmra.mrb[32].mxu1 %vm434_vm0, %v24923_v26  ;;  %v14136_v26 = vld [vmem:[#allocation3 + $0x99] sm:$0xff] }
 0x7d7   : > { %20141 = vmatpush3.msk.msra.mxu1 %vm686_vm2, %v25116_v17  ;;  %20095 = vmatprep.mubr.msk.f32.mxu1 %vm434_vm0, %v24927_v15  ;;  %v14137_v15 = vld [vmem:[#allocation3 + $0xa9] sm:$0xff]  ;;  %v14141_v17 = vld [vmem:[#allocation3 + $0xd9] sm:$0xff] }
 0x7d8   : > { %20240 = vmatprep.subr.msk.mxu1 %vm686_vm2, %v25228_v0 }
 0x7da   : > { %20096 = vmatmul.mubr.msk.f32.gmra.mrb[34].mxu1 %vm434_vm0, %v24931_v25  ;;  %v14138_v25 = vld [vmem:[#allocation3 + $0xb1] sm:$0xff] }
 0x7db   : > { %20098 = vmatprep.mubr.msk.f32.mxu1 %vm434_vm0, %v24935_v61  ;;  %v14139_v61 = vld [vmem:[#allocation3 + $0xc1] sm:$0xff] }
 0x7de   : > { %20099 = vmatmul.mubr.msk.f32.gmra.mrb[36].mxu1 %vm434_vm0, %v24939_v27  ;;  %v14140_v27 = vld [vmem:[#allocation3 + $0xc9] sm:$0xff] }
 0x7df   : > { %20101 = vmatprep.mubr.msk.f32.mxu1 %vm434_vm0, %v14133_v3 }
 0x7e2   : > { %20102 = vmatmul.mubr.msk.f32.gmra.mrb[38].mxu1 %vm434_vm0, %v14134_v28 }
 0x7e3   : > { %20104 = vmatprep.mubr.msk.f32.mxu1 %vm434_vm0, %v14135_v31 }
 0x7e6   : > { %20105 = vmatmul.mubr.msk.f32.gmra.mrb[40].mxu1 %vm434_vm0, %v14136_v26 }
 0x7e7   : > { %20107 = vmatprep.mubr.msk.f32.mxu1 %vm434_vm0, %v14137_v15 }
 0x7ea   : > { %20108 = vmatmul.mubr.msk.f32.gmra.mrb[42].mxu1 %vm434_vm0, %v14138_v25 }
 0x7eb   : > { %20110 = vmatprep.mubr.msk.f32.mxu1 %vm434_vm0, %v14139_v61 }
 0x7ee   : > { %20111 = vmatmul.mubr.msk.f32.gmra.mrb[44].mxu1 %vm434_vm0, %v14140_v27 }
 0x7ef   : > { %20113 = vmatprep.mubr.msk.f32.mxu1 %vm434_vm0, %v14141_v17 }
 0x7f2   : > { %20114 = vmatmul.mubr.msk.f32.gmra.mrb[46].mxu1 %vm434_vm0, %v14142_v37 }
 0x7f3   : > { %20116 = vmatprep.mubr.msk.f32.mxu1 %vm434_vm0, %v14143_v51 }
 0x7f6   : > { %20117 = vmatmul.mubr.msk.f32.gmra.mrb[48].mxu1 %vm434_vm0, %v14144_v6 }
 0x7f7   : > { %20119 = vmatprep.mubr.msk.f32.mxu1 %vm434_vm0, %v14145_v32 }
 0x7fa   : > { %20120 = vmatmul.mubr.msk.f32.gmra.mrb[50].mxu1 %vm434_vm0, %v14146_v1 }
 0x7fb   : > { %20122 = vmatprep.mubr.msk.f32.mxu1 %vm434_vm0, %v14147_v11 }
 0x7fe   : > { %20123 = vmatmul.mubr.msk.f32.gmra.mrb[52].mxu1 %vm434_vm0, %v14148_v33 }
 0x7ff   : > { %20125 = vmatprep.mubr.msk.f32.mxu1 %vm434_vm0, %v14149_v35 }
 0x802   : > { %20126 = vmatmul.mubr.msk.f32.gmra.mrb[54].mxu1 %vm434_vm0, %v14150_v34 }
 0x803   : > { %20128 = vmatprep.mubr.msk.f32.mxu1 %vm434_vm0, %v14151_v16 }
 0x806   : > { %20129 = vmatmul.mubr.msk.f32.gmra.mrb[56].mxu1 %vm434_vm0, %v14152_v36 }
 0x807   : > { %20131 = vmatprep.mubr.msk.f32.mxu1 %vm434_vm0, %v14153_v55 }
 0x80a   : > { %20132 = vmatmul.mubr.msk.f32.gmra.mrb[58].mxu1 %vm434_vm0, %v14154_v60 }
 0x80b   : > { %20134 = vmatprep.mubr.msk.f32.mxu1 %vm434_vm0, %v24987_v9  ;;  %v14519_v9 = vld [vmem:[#allocation3 + $0x52] sm:$0xff] }
 0x80e   : > { %20135 = vmatmul.mubr.msk.f32.gmra.mrb[60].mxu1 %vm434_vm0, %v24991_v2  ;;  %v14520_v2 = vld [vmem:[#allocation3 + $0x62] sm:$0xff] }
 0x80f   : > { %20137 = vmatprep.mubr.msk.f32.mxu1 %vm434_vm0, %v14157_v19 }
 0x812   : > { %20138 = vmatmul.mubr.msk.f32.gmra.mrb[62].mxu1 %vm434_vm0, %v14158_v10 }
 0x813   : > { %20142 = vmatprep.mubr.msk.f32.mxu1 %vm434_vm0, %v14516_v57 }
 0x816   : > { %20143 = vmatmul.mubr.msk.f32.vlgmr.msra.gmra.mrb[32].mxu1 %vm434_vm0, %v14517_v52 }
 0x817   : > { %20145 = vmatprep.mubr.msk.f32.mxu1 %vm434_vm0, %v14518_v39  ;;  %20241 = vmatpush3.msk.msra.mxu1 %vm686_vm2, %v25228_v0 }
 0x81a   : > { %20146 = vmatmul.mubr.msk.f32.gmra.mrb[34].mxu1 %vm434_vm0, %v14519_v9 }
 0x81b   : > { %20148 = vmatprep.mubr.msk.f32.mxu1 %vm434_vm0, %v14520_v2 }
 0x81e   : > { %20149 = vmatmul.mubr.msk.f32.gmra.mrb[36].mxu1 %vm434_vm0, %v14521_v23 }
 0x81f   : > { %20151 = vmatprep.mubr.msk.f32.mxu1 %vm434_vm0, %v14522_v8 }
 0x822   : > { %20152 = vmatmul.mubr.msk.f32.gmra.mrb[38].mxu1 %vm434_vm0, %v14523_v42 }
 0x823   : > { %20154 = vmatprep.mubr.msk.f32.mxu1 %vm434_vm0, %v14524_v44 }
 0x826   : > { %20155 = vmatmul.mubr.msk.f32.gmra.mrb[40].mxu1 %vm434_vm0, %v14525_v24 }
 0x827   : > { %20157 = vmatprep.mubr.msk.f32.mxu1 %vm434_vm0, %v14526_v20 }
 0x82a   : > { %20158 = vmatmul.mubr.msk.f32.gmra.mrb[42].mxu1 %vm434_vm0, %v14527_v43 }
 0x82b   : > { %20160 = vmatprep.mubr.msk.f32.mxu1 %vm434_vm0, %v14528_v59 }
 0x82e   : > { %20161 = vmatmul.mubr.msk.f32.gmra.mrb[44].mxu1 %vm434_vm0, %v14529_v29 }
 0x82f   : > { %20163 = vmatprep.mubr.msk.f32.mxu1 %vm434_vm0, %v14530_v48 }
 0x832   : > { %20164 = vmatmul.mubr.msk.f32.gmra.mrb[46].mxu1 %vm434_vm0, %v14531_v63 }
 0x833   : > { %20166 = vmatprep.mubr.msk.f32.mxu1 %vm434_vm0, %v14532_v46 }
 0x836   : > { %20167 = vmatmul.mubr.msk.f32.gmra.mrb[48].mxu1 %vm434_vm0, %v14533_v12 }
 0x837   : > { %20169 = vmatprep.mubr.msk.f32.mxu1 %vm434_vm0, %v14534_v40 }
 0x83a   : > { %20170 = vmatmul.mubr.msk.f32.gmra.mrb[50].mxu1 %vm434_vm0, %v14535_v58 }
 0x83b   : > { %20172 = vmatprep.mubr.msk.f32.mxu1 %vm434_vm0, %v14536_v41 }
 0x83e   : > { %20173 = vmatmul.mubr.msk.f32.gmra.mrb[52].mxu1 %vm434_vm0, %v14537_v4 }
 0x83f   : > { %20175 = vmatprep.mubr.msk.f32.mxu1 %vm434_vm0, %v14538_v13 }
 0x842   : > { %20176 = vmatmul.mubr.msk.f32.gmra.mrb[54].mxu1 %vm434_vm0, %v14539_v5 }
 0x843   : > { %20178 = vmatprep.mubr.msk.f32.mxu1 %vm434_vm0, %v14540_v14 }
 0x846   : > { %20179 = vmatmul.mubr.msk.f32.gmra.mrb[56].mxu1 %vm434_vm0, %v14541_v50 }
 0x847   : > { %20181 = vmatprep.mubr.msk.f32.mxu1 %vm434_vm0, %v14542_v7 }
 0x84a   : > { %20182 = vmatmul.mubr.msk.f32.gmra.mrb[58].mxu1 %vm434_vm0, %v14543_v54 }
 0x84b   : > { %20184 = vmatprep.mubr.msk.f32.mxu1 %vm434_vm0, %v25094_v38 }
 0x84e   : > { %20185 = vmatmul.mubr.msk.f32.gmra.mrb[60].mxu1 %vm434_vm0, %v25102_v56 }
 0x84f   : > { %20187 = vmatprep.mubr.msk.f32.mxu1 %vm434_vm0, %v14546_v45 }
 0x852   : > { %20188 = vmatmul.mubr.msk.f32.gmra.mrb[62].mxu1 %vm434_vm0, %v14547_v22 }
 0x8e9   : > { %v20144_v47 = vpop.f32.mrb[32].mxu1 }
 0x8ea   : > { %v14938_v21 = vmul.f32 0.1, %v20144_v47  ;;  %v14714_v49 = vpop.f32.mrb[33].mxu1  ;;  %vm14906_vm2 = vcmp.ge.f32.partialorder %v20144_v47, 0.0 }
 0x8eb   : > { %vm14905_vm3 = vcmp.ge.f32.partialorder %v14714_v49, 0.0  ;;  %v14937_v30 = vmul.f32 0.1, %v14714_v49 }
 0x8ec   : > { %v14970_v62 = vsel %vm14906_vm2, %v20144_v47, %v14938_v21 }
 0x8ed   : > { %v20147_v53 = vpop.f32.mrb[34].mxu1  ;;  %v14969_v18 = vsel %vm14905_vm3, %v14714_v49, %v14937_v30 }
 0x8ee   : > { %v14940_v0 = vmul.f32 0.1, %v20147_v53  ;;  %v14724_v38 = vpop.f32.mrb[35].mxu1  ;;  %20242 = vmatprep.mubr.msk.f32.mxu1 %vm434_vm0, %v14969_v18  ;;  %vm14908_vm4 = vcmp.ge.f32.partialorder %v20147_v53, 0.0 }
 0x8ef   : > { %vm14907_vm5 = vcmp.ge.f32.partialorder %v14724_v38, 0.0  ;;  %v14939_v56 = vmul.f32 0.1, %v14724_v38  ;;  %20243 = vmatmul.mubr.msk.f32.vlgmr.msra.gmra.mrb[64].mxu1 %vm434_vm0, %v14970_v62 }
 0x8f0   : > { %v14972_v15 = vsel %vm14908_vm4, %v20147_v53, %v14940_v0 }
 0x8f1   : > { %v20150_v3 = vpop.f32.mrb[36].mxu1  ;;  %v14971_v28 = vsel %vm14907_vm5, %v14724_v38, %v14939_v56 }
 0x8f2   : > { %v14942_v31 = vmul.f32 0.1, %v20150_v3  ;;  %v14734_v26 = vpop.f32.mrb[37].mxu1  ;;  %20245 = vmatprep.mubr.msk.f32.mxu1 %vm434_vm0, %v14971_v28  ;;  %vm14910_vm6 = vcmp.ge.f32.partialorder %v20150_v3, 0.0 }
 0x8f3   : > { %vm14909_vm7 = vcmp.ge.f32.partialorder %v14734_v26, 0.0  ;;  %v14941_v25 = vmul.f32 0.1, %v14734_v26  ;;  %20246 = vmatmul.mubr.msk.f32.gmra.mrb[66].mxu1 %vm434_vm0, %v14972_v15 }
 0x8f4   : > { %v14974_v51 = vsel %vm14910_vm6, %v20150_v3, %v14942_v31 }
 0x8f5   : > { %v20153_v61 = vpop.f32.mrb[38].mxu1  ;;  %v14973_v27 = vsel %vm14909_vm7, %v14734_v26, %v14941_v25 }
 0x8f6   : > { %v14944_v17 = vmul.f32 0.1, %v20153_v61  ;;  %v14744_v37 = vpop.f32.mrb[39].mxu1  ;;  %20248 = vmatprep.mubr.msk.f32.mxu1 %vm434_vm0, %v14973_v27  ;;  %vm14912_vm8 = vcmp.ge.f32.partialorder %v20153_v61, 0.0 }
 0x8f7   : > { %vm14911_vm1 = vcmp.ge.f32.partialorder %v14744_v37, 0.0  ;;  %v14943_v6 = vmul.f32 0.1, %v14744_v37  ;;  %20249 = vmatmul.mubr.msk.f32.gmra.mrb[68].mxu1 %vm434_vm0, %v14974_v51 }
 0x8f8   : > { %v14976_v35 = vsel %vm14912_vm8, %v20153_v61, %v14944_v17 }
 0x8f9   : > { %v20156_v32 = vpop.f32.mrb[40].mxu1  ;;  %v14975_v1 = vsel %vm14911_vm1, %v14744_v37, %v14943_v6 }
 0x8fa   : > { %v14946_v11 = vmul.f32 0.1, %v20156_v32  ;;  %v14754_v33 = vpop.f32.mrb[41].mxu1  ;;  %20251 = vmatprep.mubr.msk.f32.mxu1 %vm434_vm0, %v14975_v1  ;;  %vm14914_vm9 = vcmp.ge.f32.partialorder %v20156_v32, 0.0 }
 0x8fb   : > { %vm14913_vm10 = vcmp.ge.f32.partialorder %v14754_v33, 0.0  ;;  %v14945_v34 = vmul.f32 0.1, %v14754_v33  ;;  %20252 = vmatmul.mubr.msk.f32.gmra.mrb[70].mxu1 %vm434_vm0, %v14976_v35 }
 0x8fc   : > { %v14978_v19 = vsel %vm14914_vm9, %v20156_v32, %v14946_v11 }
 0x8fd   : > { %v20159_v16 = vpop.f32.mrb[42].mxu1  ;;  %v14977_v36 = vsel %vm14913_vm10, %v14754_v33, %v14945_v34 }
 0x8fe   : > { %v14948_v55 = vmul.f32 0.1, %v20159_v16  ;;  %v14764_v60 = vpop.f32.mrb[43].mxu1  ;;  %20254 = vmatprep.mubr.msk.f32.mxu1 %vm434_vm0, %v14977_v36  ;;  %vm14916_vm11 = vcmp.ge.f32.partialorder %v20159_v16, 0.0 }
 0x8ff   : > { %vm14915_vm12 = vcmp.ge.f32.partialorder %v14764_v60, 0.0  ;;  %v14947_v10 = vmul.f32 0.1, %v14764_v60  ;;  %20255 = vmatmul.mubr.msk.f32.gmra.mrb[72].mxu1 %vm434_vm0, %v14978_v19  ;;  %v25343_v19 = vld [vmem:[%s25458_s7] ss:$0 sm:$0xff] }
 0x900   : > { %v14980_v2 = vsel %vm14916_vm11, %v20159_v16, %v14948_v55 }
 0x901   : > { %v20162_v57 = vpop.f32.mrb[44].mxu1  ;;  %v14979_v52 = vsel %vm14915_vm12, %v14764_v60, %v14947_v10 }
 0x902   : > { %v14950_v39 = vmul.f32 0.1, %v20162_v57  ;;  %v14774_v9 = vpop.f32.mrb[45].mxu1  ;;  %20257 = vmatprep.mubr.msk.f32.mxu1 %vm434_vm0, %v14979_v52  ;;  %vm14918_vm13 = vcmp.ge.f32.partialorder %v20162_v57, 0.0 }
 0x903   : > { %vm14917_vm14 = vcmp.ge.f32.partialorder %v14774_v9, 0.0  ;;  %v14949_v23 = vmul.f32 0.1, %v14774_v9  ;;  %20258 = vmatmul.mubr.msk.f32.gmra.mrb[74].mxu1 %vm434_vm0, %v14980_v2 }
 0x904   : > { %v14982_v20 = vsel %vm14918_vm13, %v20162_v57, %v14950_v39 }
 0x905   : > { %v20165_v8 = vpop.f32.mrb[46].mxu1  ;;  %v14981_v42 = vsel %vm14917_vm14, %v14774_v9, %v14949_v23 }
 0x906   : > { %v14952_v44 = vmul.f32 0.1, %v20165_v8  ;;  %v14784_v24 = vpop.f32.mrb[47].mxu1  ;;  %20260 = vmatprep.mubr.msk.f32.mxu1 %vm434_vm0, %v14981_v42  ;;  %vm14920_vm15 = vcmp.ge.f32.partialorder %v20165_v8, 0.0 }
 0x907   : > { %vm14919_vm2 = vcmp.ge.f32.partialorder %v14784_v24, 0.0  ;;  %v14951_v43 = vmul.f32 0.1, %v14784_v24  ;;  %20261 = vmatmul.mubr.msk.f32.gmra.mrb[76].mxu1 %vm434_vm0, %v14982_v20 }
 0x908   : > { %v14984_v46 = vsel %vm14920_vm15, %v20165_v8, %v14952_v44 }
 0x909   : > { %v20168_v59 = vpop.f32.mrb[48].mxu1  ;;  %v14983_v29 = vsel %vm14919_vm2, %v14784_v24, %v14951_v43 }
 0x90a   : > { %v14954_v48 = vmul.f32 0.1, %v20168_v59  ;;  %v14794_v63 = vpop.f32.mrb[49].mxu1  ;;  %20263 = vmatprep.mubr.msk.f32.mxu1 %vm434_vm0, %v14983_v29  ;;  %vm14922_vm3 = vcmp.ge.f32.partialorder %v20168_v59, 0.0 }
 0x90b   : > { %vm14921_vm4 = vcmp.ge.f32.partialorder %v14794_v63, 0.0  ;;  %v14953_v12 = vmul.f32 0.1, %v14794_v63  ;;  %20264 = vmatmul.mubr.msk.f32.gmra.mrb[78].mxu1 %vm434_vm0, %v14984_v46 }
 0x90c   : > { %v14986_v13 = vsel %vm14922_vm3, %v20168_v59, %v14954_v48 }
 0x90d   : > { %v20171_v40 = vpop.f32.mrb[50].mxu1  ;;  %v14985_v58 = vsel %vm14921_vm4, %v14794_v63, %v14953_v12 }
 0x90e   : > { %v14956_v41 = vmul.f32 0.1, %v20171_v40  ;;  %v14804_v4 = vpop.f32.mrb[51].mxu1  ;;  %20266 = vmatprep.mubr.msk.f32.mxu1 %vm434_vm0, %v14985_v58  ;;  %vm14924_vm5 = vcmp.ge.f32.partialorder %v20171_v40, 0.0 }
 0x90f   : > { %vm14923_vm6 = vcmp.ge.f32.partialorder %v14804_v4, 0.0  ;;  %v14955_v5 = vmul.f32 0.1, %v14804_v4  ;;  %20267 = vmatmul.mubr.msk.f32.gmra.mrb[80].mxu1 %vm434_vm0, %v14986_v13 }
 0x910   : > { %v14988_v45 = vsel %vm14924_vm5, %v20171_v40, %v14956_v41 }
 0x911   : > { %v20174_v14 = vpop.f32.mrb[52].mxu1  ;;  %v14987_v50 = vsel %vm14923_vm6, %v14804_v4, %v14955_v5 }
 0x912   : > { %v14958_v7 = vmul.f32 0.1, %v20174_v14  ;;  %v14814_v54 = vpop.f32.mrb[53].mxu1  ;;  %20269 = vmatprep.mubr.msk.f32.mxu1 %vm434_vm0, %v14987_v50  ;;  %vm14926_vm7 = vcmp.ge.f32.partialorder %v20174_v14, 0.0 }
 0x913   : > { %vm14925_vm8 = vcmp.ge.f32.partialorder %v14814_v54, 0.0  ;;  %v14957_v22 = vmul.f32 0.1, %v14814_v54  ;;  %20270 = vmatmul.mubr.msk.f32.gmra.mrb[82].mxu1 %vm434_vm0, %v14988_v45 }
 0x914   : > { %v14990_v53 = vsel %vm14926_vm7, %v20174_v14, %v14958_v7 }
 0x915   : > { %v20177_v47 = vpop.f32.mrb[54].mxu1  ;;  %v14989_v21 = vsel %vm14925_vm8, %v14814_v54, %v14957_v22 }
 0x916   : > { %v14960_v49 = vmul.f32 0.1, %v20177_v47  ;;  %v14824_v30 = vpop.f32.mrb[55].mxu1  ;;  %20272 = vmatprep.mubr.msk.f32.mxu1 %vm434_vm0, %v14989_v21  ;;  %vm14928_vm1 = vcmp.ge.f32.partialorder %v20177_v47, 0.0 }
 0x917   : > { %vm14927_vm9 = vcmp.ge.f32.partialorder %v14824_v30, 0.0  ;;  %v14959_v18 = vmul.f32 0.1, %v14824_v30  ;;  %20273 = vmatmul.mubr.msk.f32.gmra.mrb[84].mxu1 %vm434_vm0, %v14990_v53 }
 0x918   : > { %v14992_v3 = vsel %vm14928_vm1, %v20177_v47, %v14960_v49 }
 0x919   : > { %v20180_v62 = vpop.f32.mrb[56].mxu1  ;;  %v14991_v0 = vsel %vm14927_vm9, %v14824_v30, %v14959_v18 }
 0x91a   : > { %v14962_v38 = vmul.f32 0.1, %v20180_v62  ;;  %v14834_v56 = vpop.f32.mrb[57].mxu1  ;;  %20275 = vmatprep.mubr.msk.f32.mxu1 %vm434_vm0, %v14991_v0  ;;  %vm14930_vm10 = vcmp.ge.f32.partialorder %v20180_v62, 0.0 }
 0x91b   : > { %vm14929_vm11 = vcmp.ge.f32.partialorder %v14834_v56, 0.0  ;;  %v14961_v28 = vmul.f32 0.1, %v14834_v56  ;;  %20276 = vmatmul.mubr.msk.f32.gmra.mrb[86].mxu1 %vm434_vm0, %v14992_v3 }
 0x91c   : > { %v14994_v61 = vsel %vm14930_vm10, %v20180_v62, %v14962_v38 }
 0x91d   : > { %v20183_v31 = vpop.f32.mrb[58].mxu1  ;;  %v14993_v26 = vsel %vm14929_vm11, %v14834_v56, %v14961_v28 }
 0x91e   : > { %v14964_v15 = vmul.f32 0.1, %v20183_v31  ;;  %v14844_v25 = vpop.f32.mrb[59].mxu1  ;;  %20278 = vmatprep.mubr.msk.f32.mxu1 %vm434_vm0, %v14993_v26  ;;  %vm14932_vm12 = vcmp.ge.f32.partialorder %v20183_v31, 0.0 }
 0x91f   : > { %vm14931_vm13 = vcmp.ge.f32.partialorder %v14844_v25, 0.0  ;;  %v14963_v27 = vmul.f32 0.1, %v14844_v25  ;;  %20279 = vmatmul.mubr.msk.f32.gmra.mrb[88].mxu1 %vm434_vm0, %v14994_v61 }
 0x920   : > { %v14996_v32 = vsel %vm14932_vm12, %v20183_v31, %v14964_v15 }
 0x921   : > { %v20186_v17 = vpop.f32.mrb[60].mxu1  ;;  %v14995_v37 = vsel %vm14931_vm13, %v14844_v25, %v14963_v27 }
 0x922   : > { %v14966_v51 = vmul.f32 0.1, %v20186_v17  ;;  %v14854_v6 = vpop.f32.mrb[61].mxu1  ;;  %20281 = vmatprep.mubr.msk.f32.mxu1 %vm434_vm0, %v14995_v37  ;;  %vm14934_vm14 = vcmp.ge.f32.partialorder %v20186_v17, 0.0 }
 0x923   : > { %vm14933_vm15 = vcmp.ge.f32.partialorder %v14854_v6, 0.0  ;;  %v14965_v1 = vmul.f32 0.1, %v14854_v6  ;;  %20282 = vmatmul.mubr.msk.f32.gmra.mrb[90].mxu1 %vm434_vm0, %v14996_v32 }
 0x924   : > { %v14998_v16 = vsel %vm14934_vm14, %v20186_v17, %v14966_v51 }
 0x925   : > { %v20189_v11 = vpop.f32.mrb[62].mxu1  ;;  %v14997_v33 = vsel %vm14933_vm15, %v14854_v6, %v14965_v1 }
 0x926   : > { %v14968_v35 = vmul.f32 0.1, %v20189_v11  ;;  %v14864_v34 = vpop.f32.mrb[63].mxu1  ;;  %20284 = vmatprep.mubr.msk.f32.mxu1 %vm434_vm0, %v14997_v33  ;;  %vm14936_vm2 = vcmp.ge.f32.partialorder %v20189_v11, 0.0 }
 0x927   : > { %vm14935_vm3 = vcmp.ge.f32.partialorder %v14864_v34, 0.0  ;;  %v14967_v36 = vmul.f32 0.1, %v14864_v34  ;;  %20285 = vmatmul.mubr.msk.f32.gmra.mrb[92].mxu1 %vm434_vm0, %v14998_v16 }
 0x928   : > { %v15000_v60 = vsel %vm14936_vm2, %v20189_v11, %v14968_v35 }
 0x929   : > { %v14999_v55 = vsel %vm14935_vm3, %v14864_v34, %v14967_v36 }
 0x92a   : > { %20287 = vmatprep.mubr.msk.f32.mxu1 %vm434_vm0, %v14999_v55 }
 0x92b   : > { %20288 = vmatmul.mubr.msk.f32.gmra.mrb[94].mxu1 %vm434_vm0, %v15000_v60 }
 0x9c2   : > { %v20244_v10 = vpop.f32.mrb[64].mxu1 }
 0x9c3   : > { %v15512_v57 = vadd.f32 %v20244_v10, %v25343_v19  ;;  %v15506_v52 = vpop.f32.mrb[65].mxu1 }
 0x9c4   : > { %v15507_v39 = vadd.f32 %v25343_v19, %v15506_v52 }
 0x9c5   : > { %15698 = vst.msk [vmem:[%s25350_s13 + $0x8] sm:$0xff] %vm434_vm0, %v15512_v57 }
 0x9c6   : > { %15697 = vst.msk [vmem:[%s25350_s13] sm:$0xff] %vm434_vm0, %v15507_v39  ;;  %v20247_v9 = vpop.f32.mrb[66].mxu1 }
 0x9c7   : > { %v15522_v2 = vadd.f32 %v20247_v9, %v25343_v19  ;;  %v15516_v23 = vpop.f32.mrb[67].mxu1 }
 0x9c8   : > { %v15517_v8 = vadd.f32 %v25343_v19, %v15516_v23 }
 0x9c9   : > { %15700 = vst.msk [vmem:[%s25350_s13 + $0x18] sm:$0xff] %vm434_vm0, %v15522_v2 }
 0x9ca   : > { %15699 = vst.msk [vmem:[%s25350_s13 + $0x10] sm:$0xff] %vm434_vm0, %v15517_v8  ;;  %v20250_v42 = vpop.f32.mrb[68].mxu1 }
 0x9cb   : > { %v15532_v44 = vadd.f32 %v20250_v42, %v25343_v19  ;;  %v15526_v24 = vpop.f32.mrb[69].mxu1 }
 0x9cc   : > { %v15527_v20 = vadd.f32 %v25343_v19, %v15526_v24 }
 0x9cd   : > { %15702 = vst.msk [vmem:[%s25350_s13 + $0x28] sm:$0xff] %vm434_vm0, %v15532_v44 }
 0x9ce   : > { %15701 = vst.msk [vmem:[%s25350_s13 + $0x20] sm:$0xff] %vm434_vm0, %v15527_v20  ;;  %v20253_v43 = vpop.f32.mrb[70].mxu1 }
 0x9cf   : > { %v15542_v59 = vadd.f32 %v20253_v43, %v25343_v19  ;;  %v15536_v29 = vpop.f32.mrb[71].mxu1 }
 0x9d0   : > { %v15537_v48 = vadd.f32 %v25343_v19, %v15536_v29 }
 0x9d1   : > { %15704 = vst.msk [vmem:[%s25350_s13 + $0x38] sm:$0xff] %vm434_vm0, %v15542_v59 }
 0x9d2   : > { %15703 = vst.msk [vmem:[%s25350_s13 + $0x30] sm:$0xff] %vm434_vm0, %v15537_v48  ;;  %v20256_v63 = vpop.f32.mrb[72].mxu1 }
 0x9d3   : > { %v15552_v46 = vadd.f32 %v20256_v63, %v25343_v19  ;;  %v15546_v12 = vpop.f32.mrb[73].mxu1 }
 0x9d4   : > { %v15547_v40 = vadd.f32 %v25343_v19, %v15546_v12 }
 0x9d5   : > { %15706 = vst.msk [vmem:[%s25350_s13 + $0x48] sm:$0xff] %vm434_vm0, %v15552_v46 }
 0x9d6   : > { %15705 = vst.msk [vmem:[%s25350_s13 + $0x40] sm:$0xff] %vm434_vm0, %v15547_v40  ;;  %v20259_v58 = vpop.f32.mrb[74].mxu1 }
 0x9d7   : > { %v15562_v41 = vadd.f32 %v20259_v58, %v25343_v19  ;;  %v15556_v4 = vpop.f32.mrb[75].mxu1 }
 0x9d8   : > { %v15557_v13 = vadd.f32 %v25343_v19, %v15556_v4 }
 0x9d9   : > { %15708 = vst.msk [vmem:[%s25350_s13 + $0x58] sm:$0xff] %vm434_vm0, %v15562_v41 }
 0x9da   : > { %15707 = vst.msk [vmem:[%s25350_s13 + $0x50] sm:$0xff] %vm434_vm0, %v15557_v13  ;;  %v20262_v5 = vpop.f32.mrb[76].mxu1 }
 0x9db   : > { %v15572_v14 = vadd.f32 %v20262_v5, %v25343_v19  ;;  %v15566_v50 = vpop.f32.mrb[77].mxu1 }
 0x9dc   : > { %v15567_v7 = vadd.f32 %v25343_v19, %v15566_v50 }
 0x9dd   : > { %15710 = vst.msk [vmem:[%s25350_s13 + $0x68] sm:$0xff] %vm434_vm0, %v15572_v14 }
 0x9de   : > { %15709 = vst.msk [vmem:[%s25350_s13 + $0x60] sm:$0xff] %vm434_vm0, %v15567_v7  ;;  %v20265_v54 = vpop.f32.mrb[78].mxu1 }
 0x9df   : > { %v15582_v45 = vadd.f32 %v20265_v54, %v25343_v19  ;;  %v15576_v22 = vpop.f32.mrb[79].mxu1 }
 0x9e0   : > { %v15577_v47 = vadd.f32 %v25343_v19, %v15576_v22 }
 0x9e1   : > { %15712 = vst.msk [vmem:[%s25350_s13 + $0x78] sm:$0xff] %vm434_vm0, %v15582_v45 }
 0x9e2   : > { %15711 = vst.msk [vmem:[%s25350_s13 + $0x70] sm:$0xff] %vm434_vm0, %v15577_v47  ;;  %v20268_v21 = vpop.f32.mrb[80].mxu1 }
 0x9e3   : > { %v15592_v49 = vadd.f32 %v20268_v21, %v25343_v19  ;;  %v15586_v30 = vpop.f32.mrb[81].mxu1 }
 0x9e4   : > { %v15587_v53 = vadd.f32 %v25343_v19, %v15586_v30 }
 0x9e5   : > { %15714 = vst.msk [vmem:[%s25350_s13 + $0x88] sm:$0xff] %vm434_vm0, %v15592_v49 }
 0x9e6   : > { %15713 = vst.msk [vmem:[%s25350_s13 + $0x80] sm:$0xff] %vm434_vm0, %v15587_v53  ;;  %v20271_v18 = vpop.f32.mrb[82].mxu1 }
 0x9e7   : > { %v15602_v62 = vadd.f32 %v20271_v18, %v25343_v19  ;;  %v15596_v0 = vpop.f32.mrb[83].mxu1 }
 0x9e8   : > { %v15597_v38 = vadd.f32 %v25343_v19, %v15596_v0 }
 0x9e9   : > { %15716 = vst.msk [vmem:[%s25350_s13 + $0x98] sm:$0xff] %vm434_vm0, %v15602_v62 }
 0x9ea   : > { %15715 = vst.msk [vmem:[%s25350_s13 + $0x90] sm:$0xff] %vm434_vm0, %v15597_v38  ;;  %v20274_v56 = vpop.f32.mrb[84].mxu1 }
 0x9eb   : > { %v15612_v3 = vadd.f32 %v20274_v56, %v25343_v19  ;;  %v15606_v28 = vpop.f32.mrb[85].mxu1 }
 0x9ec   : > { %v15607_v31 = vadd.f32 %v25343_v19, %v15606_v28 }
 0x9ed   : > { %15718 = vst.msk [vmem:[%s25350_s13 + $0xa8] sm:$0xff] %vm434_vm0, %v15612_v3 }
 0x9ee   : > { %15717 = vst.msk [vmem:[%s25350_s13 + $0xa0] sm:$0xff] %vm434_vm0, %v15607_v31  ;;  %v20277_v26 = vpop.f32.mrb[86].mxu1 }
 0x9ef   : > { %v15622_v15 = vadd.f32 %v20277_v26, %v25343_v19  ;;  %v15616_v25 = vpop.f32.mrb[87].mxu1 }
 0x9f0   : > { %v15617_v61 = vadd.f32 %v25343_v19, %v15616_v25 }
 0x9f1   : > { %15720 = vst.msk [vmem:[%s25350_s13 + $0xb8] sm:$0xff] %vm434_vm0, %v15622_v15 }
 0x9f2   : > { %15719 = vst.msk [vmem:[%s25350_s13 + $0xb0] sm:$0xff] %vm434_vm0, %v15617_v61  ;;  %v20280_v27 = vpop.f32.mrb[88].mxu1 }
 0x9f3   : > { %v15632_v17 = vadd.f32 %v20280_v27, %v25343_v19  ;;  %v15626_v37 = vpop.f32.mrb[89].mxu1 }
 0x9f4   : > { %v15627_v51 = vadd.f32 %v25343_v19, %v15626_v37 }
 0x9f5   : > { %15722 = vst.msk [vmem:[%s25350_s13 + $0xc8] sm:$0xff] %vm434_vm0, %v15632_v17 }
 0x9f6   : > { %15721 = vst.msk [vmem:[%s25350_s13 + $0xc0] sm:$0xff] %vm434_vm0, %v15627_v51  ;;  %v20283_v6 = vpop.f32.mrb[90].mxu1 }
 0x9f7   : > { %v15642_v32 = vadd.f32 %v20283_v6, %v25343_v19  ;;  %v15636_v1 = vpop.f32.mrb[91].mxu1 }
 0x9f8   : > { %v15637_v11 = vadd.f32 %v25343_v19, %v15636_v1 }
 0x9f9   : > { %15724 = vst.msk [vmem:[%s25350_s13 + $0xd8] sm:$0xff] %vm434_vm0, %v15642_v32 }
 0x9fa   : > { %15723 = vst.msk [vmem:[%s25350_s13 + $0xd0] sm:$0xff] %vm434_vm0, %v15637_v11  ;;  %v20286_v33 = vpop.f32.mrb[92].mxu1 }
 0x9fb   : > { %v15652_v35 = vadd.f32 %v20286_v33, %v25343_v19  ;;  %v15646_v34 = vpop.f32.mrb[93].mxu1 }
 0x9fc   : > { %v15647_v16 = vadd.f32 %v25343_v19, %v15646_v34 }
 0x9fd   : > { %15726 = vst.msk [vmem:[%s25350_s13 + $0xe8] sm:$0xff] %vm434_vm0, %v15652_v35 }
 0x9fe   : > { %15725 = vst.msk [vmem:[%s25350_s13 + $0xe0] sm:$0xff] %vm434_vm0, %v15647_v16  ;;  %v20289_v36 = vpop.f32.mrb[94].mxu1 }
 0x9ff   : > { %v15662_v55 = vadd.f32 %v20289_v36, %v25343_v19  ;;  %v15656_v60 = vpop.f32.mrb[95].mxu1 }
 0xa00   : > { %v15657_v10 = vadd.f32 %v25343_v19, %v15656_v60 }
 0xa01   : > { %15728 = vst.msk [vmem:[%s25350_s13 + $0xf8] sm:$0xff] %vm434_vm0, %v15662_v55 }
 0xa02   : > { %15727 = vst.msk [vmem:[%s25350_s13 + $0xf0] sm:$0xff] %vm434_vm0, %v15657_v10 }
 0xa03 PF: > { %s20_s30 = sadd.s32 1, %s21356_s30  }
 0xa04   : > { %p17_p4 = scmp.ge.s32.totalorder %s20_s30, 4  }
 0xa06   :  { %19 = sbr.rel (!%p17_p4) target bundleno = 1 (0x1), region = 117 }

</bundles_post_ra>
